<compile_context>
chip_gen: v5e
topology: v5e:2x2
jax: 0.10.0
libtpu: 0.0.40
codegen_flags: <defaults>
</compile_context>

<pallas_src>
import functools

import jax
import jax.numpy as jnp
from jax import lax
from jax.experimental import pallas as pl
from jax.experimental.pallas import tpu as pltpu

# Explicit scoped-VMEM budget: fits v5e/v6e (128 MiB phys) and v7x (64 MiB phys).
_VMEM_LIMIT = 48 * 1024 * 1024


def _round_up(x, m):
    return (x + m - 1) // m * m


# ----------------------------- Pallas kernels ------------------------------

def matmul_bias_kernel(x_ref, w_ref, b_ref, o_ref, *, act):
    # y = x @ w + b (+ optional ReLU).  bf16 operands, f32 accumulation.
    y = jnp.dot(x_ref[...], w_ref[...], preferred_element_type=jnp.float32)
    y = y + b_ref[...]
    if act == "relu":
        y = jnp.maximum(y, 0.0)
    o_ref[...] = y.astype(o_ref.dtype)


def logsoftmax_linear_kernel(x_ref, w_ref, b_ref, o_ref, *, vocab):
    # ctc_lo projection fused with log_softmax over the (128-padded) vocab.
    logits = jnp.dot(x_ref[...], w_ref[...], preferred_element_type=jnp.float32)
    logits = logits + b_ref[...]
    vp = logits.shape[-1]
    valid = lax.broadcasted_iota(jnp.int32, (1, vp), 1) < vocab
    logits = jnp.where(valid, logits, jnp.float32(-1e30))
    m = jnp.max(logits, axis=-1, keepdims=True)
    z = logits - m
    denom = jnp.sum(jnp.where(valid, jnp.exp(z), 0.0), axis=-1, keepdims=True)
    o_ref[...] = z - jnp.log(denom)


def lstm_ln_chunk_kernel(x_ref, wih_ref, whh_ref, b_ref, gam_ref, bet_ref,
                         y_ref, hout_ref, cout_ref,
                         xw_scr, h_scr, c_scr,
                         *, hidden, hidden_pad, chunk_t, block_b, seq_len):
    """One (batch-block, time-chunk) step of an LSTM layer + fused LayerNorm.

    x_ref   : (chunk_t, block_b, In)  bf16 input chunk (time-major)
    y_ref   : (chunk_t, block_b, Hp)  bf16 layer-normed hidden chunk
    hout/cout: (block_b, Hp) f32 final states (revisited accumulator blocks)
    h_scr/c_scr persist across the time-chunk grid axis.
    """
    c_idx = pl.program_id(1)
    Hp, CT, Bb = hidden_pad, chunk_t, block_b

    # Input projection (+ both biases) for the whole chunk in ONE MXU GEMM.
    # (CT, Bb, In) -> (CT*Bb, In) is a layout-trivial merge (Bb = 16 = one bf16
    # sublane tile).  Result stays resident in VMEM for the recurrence.
    xw_scr[...] = jnp.dot(x_ref[...].reshape(CT * Bb, -1), wih_ref[...],
                          preferred_element_type=jnp.float32) + b_ref[...]

    @pl.when(c_idx == 0)
    def _():
        h_scr[...] = jnp.zeros_like(h_scr)
        c_scr[...] = jnp.zeros_like(c_scr)

    whh = whh_ref[...]                                   # bf16 (Hp, 4Hp)
    gam = gam_ref[...]
    bet = bet_ref[...]
    hmask = (lax.broadcasted_iota(jnp.int32, (1, Hp), 1) < hidden
             ).astype(jnp.float32)
    inv_h = jnp.float32(1.0 / hidden)
    t0 = c_idx * CT

    def step(t, carry):
        h, cst = carry
        row = pl.multiple_of(t * Bb, Bb)                 # sublane-aligned slice
        gates = xw_scr[pl.ds(row, Bb), :] + jnp.dot(
            h.astype(jnp.bfloat16), whh, preferred_element_type=jnp.float32)
        # PyTorch gate order i, f, g, o; each gate block is 128-lane aligned.
        i = jax.nn.sigmoid(gates[:, 0:Hp])
        f = jax.nn.sigmoid(gates[:, Hp:2 * Hp])
        g = jnp.tanh(gates[:, 2 * Hp:3 * Hp])
        o = jax.nn.sigmoid(gates[:, 3 * Hp:4 * Hp])
        c_new = f * cst + i * g
        h_new = o * jnp.tanh(c_new)
        live = (t0 + t) < seq_len                        # mask padded frames
        cst = jnp.where(live, c_new, cst)
        h = jnp.where(live, h_new, h)
        # Fused LayerNorm over the real H lanes (pad lanes of h are exactly 0).
        mu = jnp.sum(h, axis=-1, keepdims=True) * inv_h
        d = (h - mu) * hmask
        var = jnp.sum(d * d, axis=-1, keepdims=True) * inv_h
        y_ref[t] = ((d * lax.rsqrt(var + 1e-5)) * gam + bet).astype(y_ref.dtype)
        return h, cst

    h, cst = lax.fori_loop(0, CT, step, (h_scr[...], c_scr[...]), unroll=True)
    h_scr[...] = h
    c_scr[...] = cst
    hout_ref[...] = h
    cout_ref[...] = cst


# ------------------------------ Pallas wrappers -----------------------------

def pallas_linear(x2d, w, b, act=None, block_m=512, out_dtype=jnp.bfloat16):
    """M-tiled GEMM (+bias, +optional ReLU).  N is padded to 128 lanes so the
    output spec is lane-dense (unmasked vst); the pad is sliced off outside."""
    M, K = x2d.shape
    N = w.shape[1]
    Np = _round_up(N, 128)
    if Np != N:
        w = jnp.pad(w, ((0, 0), (0, Np - N)))
        b = jnp.pad(b, (0, Np - N))
    bm = min(block_m, M)
    out = pl.pallas_call(
        functools.partial(matmul_bias_kernel, act=act),
        grid=(pl.cdiv(M, bm),),
        in_specs=[pl.BlockSpec((bm, K), lambda i: (i, 0)),
                  pl.BlockSpec((K, Np), lambda i: (0, 0)),
                  pl.BlockSpec((1, Np), lambda i: (0, 0))],
        out_specs=pl.BlockSpec((bm, Np), lambda i: (i, 0)),
        out_shape=jax.ShapeDtypeStruct((M, Np), out_dtype),
        compiler_params=pltpu.CompilerParams(
            dimension_semantics=("parallel",),
            vmem_limit_bytes=_VMEM_LIMIT),
    )(x2d.astype(jnp.bfloat16), w.astype(jnp.bfloat16),
      b.reshape(1, Np).astype(jnp.float32))
    return out[:, :N] if Np != N else out


def pallas_linear_logsoftmax(x2d, w, b, block_m=256):
    """ctc_lo + log_softmax.  w: (H, V) real weights; rows are padded to K and
    the vocab is padded to 128 lanes (masked inside the kernel)."""
    # TODO(synk): at production vocab sizes, tile the vocab axis with an online
    # log-softmax instead of keeping the full (K, Vp) weight resident.
    M, K = x2d.shape
    Hw, V = w.shape
    Vp = _round_up(V, 128)
    w = jnp.pad(w, ((0, K - Hw), (0, Vp - V)))
    b = jnp.pad(b, (0, Vp - V))
    bm = min(block_m, M)
    return pl.pallas_call(
        functools.partial(logsoftmax_linear_kernel, vocab=V),
        grid=(pl.cdiv(M, bm),),
        in_specs=[pl.BlockSpec((bm, K), lambda i: (i, 0)),
                  pl.BlockSpec((K, Vp), lambda i: (0, 0)),
                  pl.BlockSpec((1, Vp), lambda i: (0, 0))],
        out_specs=pl.BlockSpec((bm, Vp), lambda i: (i, 0)),
        out_shape=jax.ShapeDtypeStruct((M, Vp), jnp.float32),
        compiler_params=pltpu.CompilerParams(
            dimension_semantics=("parallel",),
            vmem_limit_bytes=_VMEM_LIMIT),
    )(x2d.astype(jnp.bfloat16), w.astype(jnp.bfloat16),
      b.reshape(1, Vp).astype(jnp.float32))


def pallas_lstm_ln(x, w_ih, w_hh, b_ih, b_hh, ln_g, ln_b, *, seq_len,
                   chunk_t=8, block_b=16):
    """One LSTM layer + LayerNorm as a single pallas_call over a
    (batch-block ["parallel"], time-chunk ["arbitrary"]) grid.

    x: (T_pad, B_pad, In) bf16 time-major (T_pad % chunk_t == 0,
       B_pad % block_b == 0).  Returns (y (T_pad,B_pad,Hp) bf16,
       h_n (B_pad,Hp) f32, c_n (B_pad,Hp) f32)."""
    Tp, Bp, In = x.shape
    H = w_hh.shape[1]
    Hp = _round_up(H, 128)

    def pad_gates(w, in_pad):
        # torch (4H, in_real) -> (in_pad, 4*Hp), gate-blocked 128-lane columns.
        in_real = w.shape[1]
        w4 = w.reshape(4, H, in_real)
        w4 = jnp.pad(w4, ((0, 0), (0, Hp - H), (0, in_pad - in_real)))
        return jnp.transpose(w4, (2, 0, 1)).reshape(in_pad, 4 * Hp)

    wih = pad_gates(w_ih, In).astype(jnp.bfloat16)
    whh = pad_gates(w_hh, Hp).astype(jnp.bfloat16)
    bias = jnp.pad((b_ih + b_hh).reshape(4, H), ((0, 0), (0, Hp - H))
                   ).reshape(1, 4 * Hp).astype(jnp.float32)
    gam = jnp.pad(ln_g, (0, Hp - H)).reshape(1, Hp).astype(jnp.float32)
    bet = jnp.pad(ln_b, (0, Hp - H)).reshape(1, Hp).astype(jnp.float32)

    grid = (Bp // block_b, Tp // chunk_t)
    # TODO(synk): the per-chunk x-projection GEMM still serializes with the
    # recurrence inside a chunk; a software pipeline (project chunk c+1 on the
    # MXU while chunk c recurses on VPU/EUP) would hide it entirely.
    y, h_n, c_n = pl.pallas_call(
        functools.partial(lstm_ln_chunk_kernel, hidden=H, hidden_pad=Hp,
                          chunk_t=chunk_t, block_b=block_b, seq_len=seq_len),
        grid=grid,
        in_specs=[
            pl.BlockSpec((chunk_t, block_b, In), lambda b, c: (c, b, 0)),
            pl.BlockSpec((In, 4 * Hp), lambda b, c: (0, 0)),
            pl.BlockSpec((Hp, 4 * Hp), lambda b, c: (0, 0)),
            pl.BlockSpec((1, 4 * Hp), lambda b, c: (0, 0)),
            pl.BlockSpec((1, Hp), lambda b, c: (0, 0)),
            pl.BlockSpec((1, Hp), lambda b, c: (0, 0)),
        ],
        out_specs=[
            pl.BlockSpec((chunk_t, block_b, Hp), lambda b, c: (c, b, 0)),
            pl.BlockSpec((block_b, Hp), lambda b, c: (b, 0)),
            pl.BlockSpec((block_b, Hp), lambda b, c: (b, 0)),
        ],
        out_shape=[jax.ShapeDtypeStruct((Tp, Bp, Hp), jnp.bfloat16),
                   jax.ShapeDtypeStruct((Bp, Hp), jnp.float32),
                   jax.ShapeDtypeStruct((Bp, Hp), jnp.float32)],
        scratch_shapes=[pltpu.VMEM((chunk_t * block_b, 4 * Hp), jnp.float32),
                        pltpu.VMEM((block_b, Hp), jnp.float32),
                        pltpu.VMEM((block_b, Hp), jnp.float32)],
        compiler_params=pltpu.CompilerParams(
            dimension_semantics=("parallel", "arbitrary"),
            vmem_limit_bytes=_VMEM_LIMIT),
    )(x.astype(jnp.bfloat16), wih, whh, bias, gam, bet)
    return y, h_n, c_n


# ------------------------------- glue (JAX) ---------------------------------

def im2col(x, k=3, stride=2):
    """x: (B, C, H, W) -> patches (B, H1, W1, C*k*k); C outer, (kh,kw) inner,
    matching torch Conv2d weight.reshape(C_out, C_in*k*k)."""
    # TODO(synk): streaming im2col inside the conv kernel (strided ref reads)
    # is left to XLA here; at these sizes it fuses into one gather pass.
    B, C, H, W = x.shape
    H1 = (H - k) // stride + 1
    W1 = (W - k) // stride + 1
    cols = []
    for di in range(k):
        for dj in range(k):
            cols.append(x[:, :, di:di + stride * (H1 - 1) + 1:stride,
                          dj:dj + stride * (W1 - 1) + 1:stride])
    p = jnp.stack(cols, axis=-1)                 # (B, C, H1, W1, k*k)
    p = jnp.transpose(p, (0, 2, 3, 1, 4))        # (B, H1, W1, C, k*k)
    return p.reshape(B, H1, W1, C * k * k), H1, W1


def conv_subsampling(x, params, conv_ch=32):
    """GlobalCMVN + Conv2dSubsampling4Pure (two Conv2d(3x3, s=2) + ReLU)."""
    B, T, D = x.shape
    # GlobalCMVN fused into the im2col prep.  Note: folding istd into conv1_w
    # is NOT a valid identity (istd varies along the conv's width axis).
    xn = (x - params["cmvn_mean"]) * params["cmvn_istd"]
    x4 = xn[:, None, :, :]                                       # (B,1,T,D) NCHW
    p, T1, D1 = im2col(x4)
    y = pallas_linear(p.reshape(B * T1 * D1, -1),
                      params["conv1_w"].reshape(conv_ch, -1).T,
                      params["conv1_b"], act="relu")
    y = y.reshape(B, T1, D1, conv_ch).transpose(0, 3, 1, 2)      # (B,C,T1,D1)
    p2, T2, D2 = im2col(y)
    y2 = pallas_linear(p2.reshape(B * T2 * D2, -1),
                       params["conv2_w"].reshape(conv_ch, -1).T,
                       params["conv2_b"], act="relu")
    y2 = y2.reshape(B, T2, D2, conv_ch)
    # torch: (B,C,T,D).permute(0,2,1,3).view(B,T,C*D)  -> C outer, D inner
    out = y2.transpose(0, 1, 3, 2).reshape(B, T2, conv_ch * D2)
    return out


def ctc_loss_nll(log_probs, targets, input_lengths, target_lengths, blank=0):
    """CTC negative log-likelihood per batch element (forward alpha recursion).
    log_probs: (T, B, V) already log-softmaxed.  Plain JAX (sequential DP)."""
    T, B, V = log_probs.shape
    U = targets.shape[1]
    S = 2 * U + 1
    neg_inf = jnp.float32(-1e30)

    ext = jnp.zeros((B, S), dtype=jnp.int32).at[:, 1::2].set(targets)
    ext_shift2 = jnp.concatenate([jnp.full((B, 2), -1, jnp.int32), ext[:, :-2]], axis=1)
    skip_ok = (ext != blank) & (ext != ext_shift2)

    emit0 = jnp.take_along_axis(log_probs[0], ext, axis=1)
    alpha0 = jnp.full((B, S), neg_inf)
    alpha0 = alpha0.at[:, 0].set(emit0[:, 0])
    alpha0 = alpha0.at[:, 1].set(jnp.where(target_lengths > 0, emit0[:, 1], neg_inf))

    def step(alpha, inp):
        lp, t = inp
        emit = jnp.take_along_axis(lp, ext, axis=1)
        a1 = jnp.concatenate([jnp.full((B, 1), neg_inf), alpha[:, :-1]], axis=1)
        a2 = jnp.concatenate([jnp.full((B, 2), neg_inf), alpha[:, :-2]], axis=1)
        a2 = jnp.where(skip_ok, a2, neg_inf)
        new = jnp.logaddexp(jnp.logaddexp(alpha, a1), a2) + emit
        active = (t < input_lengths)[:, None]
        return jnp.where(active, new, alpha), None

    alpha, _ = lax.scan(step, alpha0, (log_probs[1:], jnp.arange(1, T)))
    idx_last = jnp.clip(2 * target_lengths, 0, S - 1)[:, None]
    idx_prev = jnp.clip(2 * target_lengths - 1, 0, S - 1)[:, None]
    a_last = jnp.take_along_axis(alpha, idx_last, axis=1)[:, 0]
    a_prev = jnp.take_along_axis(alpha, idx_prev, axis=1)[:, 0]
    # Empty-target edge case: only the all-blank path counts (no double-count).
    return -jnp.where(target_lengths > 0, jnp.logaddexp(a_last, a_prev), a_last)


def init_params(key, input_dim, vocab, conv_ch=32, num_layers=2, rnn_size=32):
    keys = jax.random.split(key, 64)
    it = iter(keys)

    def nrm(shape, scale=0.1):
        return scale * jax.random.normal(next(it), shape, dtype=jnp.float32)

    D1 = (input_dim - 3) // 2 + 1
    D2 = (D1 - 3) // 2 + 1
    conv_out_dim = conv_ch * D2

    p = {
        # FeatureNormalizer stats are synthesized deterministically (no .pt load).
        "cmvn_mean": nrm((input_dim,), 1.0),
        "cmvn_istd": 0.5 + jax.nn.softplus(nrm((input_dim,), 1.0)),
        "conv1_w": nrm((conv_ch, 1, 3, 3)),
        "conv1_b": nrm((conv_ch,)),
        "conv2_w": nrm((conv_ch, conv_ch, 3, 3)),
        "conv2_b": nrm((conv_ch,)),
    }
    in_size = conv_out_dim
    for l in range(num_layers):
        p[f"lstm{l}_wih"] = nrm((4 * rnn_size, in_size))
        p[f"lstm{l}_whh"] = nrm((4 * rnn_size, rnn_size))
        p[f"lstm{l}_bih"] = nrm((4 * rnn_size,))
        p[f"lstm{l}_bhh"] = nrm((4 * rnn_size,))
        p[f"ln{l}_g"] = jnp.ones((rnn_size,), jnp.float32)
        p[f"ln{l}_b"] = jnp.zeros((rnn_size,), jnp.float32)
        in_size = rnn_size
    p["ctc_w"] = nrm((vocab, rnn_size))
    p["ctc_b"] = nrm((vocab,))
    return p


def deepspeech2_forward(params, speech, speech_lengths, text, text_lengths,
                        num_layers=2, chunk_t=8, block_b=16):
    # ---- CRNNEncoder ----
    x = conv_subsampling(speech, params)                       # (B, Tc, F) bf16
    eouts_len = ((speech_lengths - 1) // 2 - 1) // 2
    B, Tc, F = x.shape
    H = params["lstm0_whh"].shape[1]
    Hp = _round_up(H, 128)
    Tp = _round_up(Tc, chunk_t)
    Bp = _round_up(B, block_b)
    # Switch to time-major ONCE and pad (T, B) so every LSTM tile is
    # (sublane, lane)-aligned; all layers, ctc_lo and CTC consume this layout.
    cur = jnp.transpose(x, (1, 0, 2))                          # (Tc, B, F)
    cur = jnp.pad(cur, ((0, Tp - Tc), (0, Bp - B), (0, 0)))
    # TODO(synk): pack_padded_sequence-style per-example masking is not applied
    # inside the LSTM (padded frames are masked only by the global Tc and by
    # the CTC alpha gating on eouts_len); demo lengths below are all full.
    h_final, c_final = [], []
    for l in range(num_layers):
        y3, h_n, c_n = pallas_lstm_ln(
            cur, params[f"lstm{l}_wih"], params[f"lstm{l}_whh"],
            params[f"lstm{l}_bih"], params[f"lstm{l}_bhh"],
            params[f"ln{l}_g"], params[f"ln{l}_b"],
            seq_len=Tc, chunk_t=chunk_t, block_b=block_b)
        h_final.append(h_n[:B, :H])
        c_final.append(c_n[:B, :H])
        cur = y3                                               # (Tp, Bp, Hp) bf16
    final_state_h_box = jnp.stack(h_final)                     # (L, B, H)
    final_state_c_box = jnp.stack(c_final)

    # ---- CTC decoder ----
    V = params["ctc_b"].shape[0]
    logp = pallas_linear_logsoftmax(cur.reshape(Tp * Bp, Hp),
                                    params["ctc_w"].T, params["ctc_b"])
    logp = logp.reshape(Tp, Bp, -1)[:Tc, :B, :V]               # (T, B, V)
    nll = ctc_loss_nll(logp, text, eouts_len, text_lengths, blank=0)
    loss = jnp.sum(nll) / B                                    # sum + batch average
    del final_state_h_box, final_state_c_box
    return {"loss": loss}


# ----------------------------------- main -----------------------------------

if __name__ == "__main__":
    B, T, D = 2, 48, 16          # batch, time frames, feature dim (input_dim)
    VOCAB, U = 8, 4              # vocab_size, text length
    NUM_LAYERS, RNN = 2, 32

    key = jax.random.PRNGKey(0)
    kp, kx, kt = jax.random.split(key, 3)
    params = init_params(kp, D, VOCAB, num_layers=NUM_LAYERS, rnn_size=RNN)

    speech = jax.random.normal(kx, (B, T, D), dtype=jnp.float32)
    speech_lengths = jnp.array([T, T], dtype=jnp.int32)
    text = jax.random.randint(kt, (B, U), 1, VOCAB).astype(jnp.int32)
    text_lengths = jnp.array([U, U], dtype=jnp.int32)

    fwd = jax.jit(functools.partial(deepspeech2_forward, num_layers=NUM_LAYERS))
    out = fwd(params, speech, speech_lengths, text, text_lengths)
    loss = jax.block_until_ready(out["loss"])
    assert loss.shape == () and bool(jnp.isfinite(loss))
    print("KERNEL_OK")
</pallas_src>

<mosaic_0001>
module attributes {stable_mosaic.version = 11 : i64} {
  func.func @matmul_bias_kernel(%arg0: i32, %arg1: memref<322x9xbf16, #tpu.memory_space<vmem>>, %arg2: memref<9x128xbf16, #tpu.memory_space<vmem>>, %arg3: memref<1x128xf32, #tpu.memory_space<vmem>>, %arg4: memref<322x128xbf16, #tpu.memory_space<vmem>>) attributes {dimension_semantics = [#tpu.dimension_semantics<parallel>], iteration_bounds = array<i64: 1>, scalar_prefetch = 0 : i64, scratch_operands = 0 : i64, tpu.core_type = #tpu.core_type<tc>, window_params = [{transform_indices = @transform_0, window_bounds = array<i64: 322, 9>}, {pipeline_mode = #tpu.pipeline_mode<synchronous>, transform_indices = @transform_1, window_bounds = array<i64: 9, 128>}, {pipeline_mode = #tpu.pipeline_mode<synchronous>, transform_indices = @transform_2, window_bounds = array<i64: 1, 128>}, {transform_indices = @transform_3, window_bounds = array<i64: 322, 128>}]} {
    %c0 = arith.constant 0 : index
    %c0_0 = arith.constant 0 : index
    %0 = vector.load %arg1[%c0, %c0_0] : memref<322x9xbf16, #tpu.memory_space<vmem>>, vector<322x9xbf16>
    %c0_1 = arith.constant 0 : index
    %c0_2 = arith.constant 0 : index
    %1 = vector.load %arg2[%c0_1, %c0_2] : memref<9x128xbf16, #tpu.memory_space<vmem>>, vector<9x128xbf16>
    %cst = arith.constant dense<0.000000e+00> : vector<322x128xf32>
    %2 = tpu.matmul %0, %1, %cst {dimension_numbers = #tpu.dot_dimension_numbers<[1], [0], [0], [1], [0, 0, 1, 1], [], []>} : vector<322x9xbf16>, vector<9x128xbf16>, vector<322x128xf32> -> vector<322x128xf32>
    %c0_3 = arith.constant 0 : index
    %c0_4 = arith.constant 0 : index
    %3 = vector.load %arg3[%c0_3, %c0_4] : memref<1x128xf32, #tpu.memory_space<vmem>>, vector<1x128xf32>
    %4 = vector.broadcast %3 : vector<1x128xf32> to vector<322x128xf32>
    %5 = arith.addf %2, %4 : vector<322x128xf32>
    %cst_5 = arith.constant 0.000000e+00 : f32
    %6 = vector.broadcast %cst_5 : f32 to vector<322x128xf32>
    %7 = arith.maximumf %5, %6 : vector<322x128xf32>
    %8 = arith.truncf %7 : vector<322x128xf32> to vector<322x128xbf16>
    %c0_6 = arith.constant 0 : index
    %c0_7 = arith.constant 0 : index
    %9 = vector.load %arg4[%c0_6, %c0_7] : memref<322x128xbf16, #tpu.memory_space<vmem>>, vector<322x128xbf16>
    tpu.vector_store %arg4[%c0_6, %c0_7], %8 {strides = array<i32>} : memref<322x128xbf16, #tpu.memory_space<vmem>>, vector<322x128xbf16>,
    return
  }
  func.func @transform_0(%arg0: i32) -> (i32, i32) {
    %c0_i32 = arith.constant 0 : i32
    %c0_i32_0 = arith.constant 0 : i32
    return %arg0, %c0_i32 : i32, i32
  }
  func.func @transform_1(%arg0: i32) -> (i32, i32) {
    %c0_i32 = arith.constant 0 : i32
    %c0_i32_0 = arith.constant 0 : i32
    %c0_i32_1 = arith.constant 0 : i32
    return %c0_i32, %c0_i32_0 : i32, i32
  }
  func.func @transform_2(%arg0: i32) -> (i32, i32) {
    %c0_i32 = arith.constant 0 : i32
    %c0_i32_0 = arith.constant 0 : i32
    %c0_i32_1 = arith.constant 0 : i32
    return %c0_i32, %c0_i32_0 : i32, i32
  }
  func.func @transform_3(%arg0: i32) -> (i32, i32) {
    %c0_i32 = arith.constant 0 : i32
    %c0_i32_0 = arith.constant 0 : i32
    return %arg0, %c0_i32 : i32, i32
  }
}

module attributes {stable_mosaic.version = 11 : i64} {
  func.func @matmul_bias_kernel(%arg0: i32, %arg1: memref<66x288xbf16, #tpu.memory_space<vmem>>, %arg2: memref<288x128xbf16, #tpu.memory_space<vmem>>, %arg3: memref<1x128xf32, #tpu.memory_space<vmem>>, %arg4: memref<66x128xbf16, #tpu.memory_space<vmem>>) attributes {dimension_semantics = [#tpu.dimension_semantics<parallel>], iteration_bounds = array<i64: 1>, scalar_prefetch = 0 : i64, scratch_operands = 0 : i64, tpu.core_type = #tpu.core_type<tc>, window_params = [{transform_indices = @transform_0, window_bounds = array<i64: 66, 288>}, {pipeline_mode = #tpu.pipeline_mode<synchronous>, transform_indices = @transform_1, window_bounds = array<i64: 288, 128>}, {pipeline_mode = #tpu.pipeline_mode<synchronous>, transform_indices = @transform_2, window_bounds = array<i64: 1, 128>}, {transform_indices = @transform_3, window_bounds = array<i64: 66, 128>}]} {
    %c0 = arith.constant 0 : index
    %c0_0 = arith.constant 0 : index
    %0 = vector.load %arg1[%c0, %c0_0] : memref<66x288xbf16, #tpu.memory_space<vmem>>, vector<66x288xbf16>
    %c0_1 = arith.constant 0 : index
    %c0_2 = arith.constant 0 : index
    %1 = vector.load %arg2[%c0_1, %c0_2] : memref<288x128xbf16, #tpu.memory_space<vmem>>, vector<288x128xbf16>
    %cst = arith.constant dense<0.000000e+00> : vector<66x128xf32>
    %2 = tpu.matmul %0, %1, %cst {dimension_numbers = #tpu.dot_dimension_numbers<[1], [0], [0], [1], [0, 0, 1, 1], [], []>} : vector<66x288xbf16>, vector<288x128xbf16>, vector<66x128xf32> -> vector<66x128xf32>
    %c0_3 = arith.constant 0 : index
    %c0_4 = arith.constant 0 : index
    %3 = vector.load %arg3[%c0_3, %c0_4] : memref<1x128xf32, #tpu.memory_space<vmem>>, vector<1x128xf32>
    %4 = vector.broadcast %3 : vector<1x128xf32> to vector<66x128xf32>
    %5 = arith.addf %2, %4 : vector<66x128xf32>
    %cst_5 = arith.constant 0.000000e+00 : f32
    %6 = vector.broadcast %cst_5 : f32 to vector<66x128xf32>
    %7 = arith.maximumf %5, %6 : vector<66x128xf32>
    %8 = arith.truncf %7 : vector<66x128xf32> to vector<66x128xbf16>
    %c0_6 = arith.constant 0 : index
    %c0_7 = arith.constant 0 : index
    %9 = vector.load %arg4[%c0_6, %c0_7] : memref<66x128xbf16, #tpu.memory_space<vmem>>, vector<66x128xbf16>
    tpu.vector_store %arg4[%c0_6, %c0_7], %8 {strides = array<i32>} : memref<66x128xbf16, #tpu.memory_space<vmem>>, vector<66x128xbf16>,
    return
  }
  func.func @transform_0(%arg0: i32) -> (i32, i32) {
    %c0_i32 = arith.constant 0 : i32
    %c0_i32_0 = arith.constant 0 : i32
    return %arg0, %c0_i32 : i32, i32
  }
  func.func @transform_1(%arg0: i32) -> (i32, i32) {
    %c0_i32 = arith.constant 0 : i32
    %c0_i32_0 = arith.constant 0 : i32
    %c0_i32_1 = arith.constant 0 : i32
    return %c0_i32, %c0_i32_0 : i32, i32
  }
  func.func @transform_2(%arg0: i32) -> (i32, i32) {
    %c0_i32 = arith.constant 0 : i32
    %c0_i32_0 = arith.constant 0 : i32
    %c0_i32_1 = arith.constant 0 : i32
    return %c0_i32, %c0_i32_0 : i32, i32
  }
  func.func @transform_3(%arg0: i32) -> (i32, i32) {
    %c0_i32 = arith.constant 0 : i32
    %c0_i32_0 = arith.constant 0 : i32
    return %arg0, %c0_i32 : i32, i32
  }
}

module attributes {stable_mosaic.version = 11 : i64} {
  func.func @lstm_ln_chunk_kernel(%arg0: i32, %arg1: i32, %arg2: memref<8x16x96xbf16, #tpu.memory_space<vmem>>, %arg3: memref<96x512xbf16, #tpu.memory_space<vmem>>, %arg4: memref<128x512xbf16, #tpu.memory_space<vmem>>, %arg5: memref<1x512xf32, #tpu.memory_space<vmem>>, %arg6: memref<1x128xf32, #tpu.memory_space<vmem>>, %arg7: memref<1x128xf32, #tpu.memory_space<vmem>>, %arg8: memref<8x16x128xbf16, #tpu.memory_space<vmem>>, %arg9: memref<16x128xf32, #tpu.memory_space<vmem>>, %arg10: memref<16x128xf32, #tpu.memory_space<vmem>>, %arg11: memref<128x512xf32, #tpu.memory_space<vmem>>, %arg12: memref<16x128xf32, #tpu.memory_space<vmem>>, %arg13: memref<16x128xf32, #tpu.memory_space<vmem>>) attributes {dimension_semantics = [#tpu.dimension_semantics<parallel>, #tpu.dimension_semantics<arbitrary>], iteration_bounds = array<i64: 1, 2>, scalar_prefetch = 0 : i64, scratch_operands = 3 : i64, tpu.core_type = #tpu.core_type<tc>, window_params = [{transform_indices = @transform_0, window_bounds = array<i64: 8, 16, 96>}, {pipeline_mode = #tpu.pipeline_mode<synchronous>, transform_indices = @transform_1, window_bounds = array<i64: 96, 512>}, {pipeline_mode = #tpu.pipeline_mode<synchronous>, transform_indices = @transform_2, window_bounds = array<i64: 128, 512>}, {pipeline_mode = #tpu.pipeline_mode<synchronous>, transform_indices = @transform_3, window_bounds = array<i64: 1, 512>}, {pipeline_mode = #tpu.pipeline_mode<synchronous>, transform_indices = @transform_4, window_bounds = array<i64: 1, 128>}, {pipeline_mode = #tpu.pipeline_mode<synchronous>, transform_indices = @transform_5, window_bounds = array<i64: 1, 128>}, {transform_indices = @transform_6, window_bounds = array<i64: 8, 16, 128>}, {transform_indices = @transform_7, window_bounds = array<i64: 16, 128>}, {transform_indices = @transform_8, window_bounds = array<i64: 16, 128>}]} {
    %c0 = arith.constant 0 : index
    %c0_0 = arith.constant 0 : index
    %c0_1 = arith.constant 0 : index
    %0 = vector.load %arg2[%c0, %c0_0, %c0_1] : memref<8x16x96xbf16, #tpu.memory_space<vmem>>, vector<8x16x96xbf16>
    %1 = vector.shape_cast %0 : vector<8x16x96xbf16> to vector<128x96xbf16>
    %c0_2 = arith.constant 0 : index
    %c0_3 = arith.constant 0 : index
    %2 = vector.load %arg3[%c0_2, %c0_3] : memref<96x512xbf16, #tpu.memory_space<vmem>>, vector<96x512xbf16>
    %cst = arith.constant dense<0.000000e+00> : vector<128x512xf32>
    %3 = tpu.matmul %1, %2, %cst {dimension_numbers = #tpu.dot_dimension_numbers<[1], [0], [0], [1], [0, 0, 1, 1], [], []>} : vector<128x96xbf16>, vector<96x512xbf16>, vector<128x512xf32> -> vector<128x512xf32>
    %c0_4 = arith.constant 0 : index
    %c0_5 = arith.constant 0 : index
    %4 = vector.load %arg5[%c0_4, %c0_5] : memref<1x512xf32, #tpu.memory_space<vmem>>, vector<1x512xf32>
    %5 = vector.broadcast %4 : vector<1x512xf32> to vector<128x512xf32>
    %6 = arith.addf %3, %5 : vector<128x512xf32>
    %c0_6 = arith.constant 0 : index
    %c0_7 = arith.constant 0 : index
    %7 = vector.load %arg11[%c0_6, %c0_7] : memref<128x512xf32, #tpu.memory_space<vmem>>, vector<128x512xf32>
    tpu.vector_store %arg11[%c0_6, %c0_7], %6 {strides = array<i32>} : memref<128x512xf32, #tpu.memory_space<vmem>>, vector<128x512xf32>,
    %c0_i32 = arith.constant 0 : i32
    %8 = arith.cmpi eq, %arg1, %c0_i32 : i32
    %9 = arith.extui %8 : i1 to i32
    %c0_i32_8 = arith.constant 0 : i32
    %10 = arith.cmpi ne, %9, %c0_i32_8 : i32
    scf.if %10 {
      %cst_124 = arith.constant 0.000000e+00 : f32
      %530 = vector.broadcast %cst_124 : f32 to vector<16x128xf32>
      %c0_125 = arith.constant 0 : index
      %c0_126 = arith.constant 0 : index
      %531 = vector.load %arg12[%c0_125, %c0_126] : memref<16x128xf32, #tpu.memory_space<vmem>>, vector<16x128xf32>
      tpu.vector_store %arg12[%c0_125, %c0_126], %530 {strides = array<i32>} : memref<16x128xf32, #tpu.memory_space<vmem>>, vector<16x128xf32>,
      %cst_127 = arith.constant 0.000000e+00 : f32
      %532 = vector.broadcast %cst_127 : f32 to vector<16x128xf32>
      %c0_128 = arith.constant 0 : index
      %c0_129 = arith.constant 0 : index
      %533 = vector.load %arg13[%c0_128, %c0_129] : memref<16x128xf32, #tpu.memory_space<vmem>>, vector<16x128xf32>
      tpu.vector_store %arg13[%c0_128, %c0_129], %532 {strides = array<i32>} : memref<16x128xf32, #tpu.memory_space<vmem>>, vector<16x128xf32>,
    } else {
    }
    %c0_9 = arith.constant 0 : index
    %c0_10 = arith.constant 0 : index
    %11 = vector.load %arg4[%c0_9, %c0_10] : memref<128x512xbf16, #tpu.memory_space<vmem>>, vector<128x512xbf16>
    %c0_11 = arith.constant 0 : index
    %c0_12 = arith.constant 0 : index
    %12 = vector.load %arg6[%c0_11, %c0_12] : memref<1x128xf32, #tpu.memory_space<vmem>>, vector<1x128xf32>
    %c0_13 = arith.constant 0 : index
    %c0_14 = arith.constant 0 : index
    %13 = vector.load %arg7[%c0_13, %c0_14] : memref<1x128xf32, #tpu.memory_space<vmem>>, vector<1x128xf32>
    %14 = tpu.iota {dimensions = array<i32: 1>} : vector<1x128xi32>
    %c32_i32 = arith.constant 32 : i32
    %15 = vector.broadcast %c32_i32 : i32 to vector<1x128xi32>
    %16 = arith.cmpi slt, %14, %15 : vector<1x128xi32>
    %17 = arith.extui %16 : vector<1x128xi1> to vector<1x128xi32>
    %18 = arith.sitofp %17 : vector<1x128xi32> to vector<1x128xf32>
    %c8_i32 = arith.constant 8 : i32
    %19 = arith.muli %arg1, %c8_i32 : i32
    %c0_15 = arith.constant 0 : index
    %c0_16 = arith.constant 0 : index
    %20 = vector.load %arg12[%c0_15, %c0_16] : memref<16x128xf32, #tpu.memory_space<vmem>>, vector<16x128xf32>
    %c0_17 = arith.constant 0 : index
    %c0_18 = arith.constant 0 : index
    %21 = vector.load %arg13[%c0_17, %c0_18] : memref<16x128xf32, #tpu.memory_space<vmem>>, vector<16x128xf32>
    %cst_19 = arith.constant 3.125000e-02 : f32
    %c0_i32_20 = arith.constant 0 : i32
    %c16_i32 = arith.constant 16 : i32
    %22 = arith.muli %c0_i32_20, %c16_i32 : i32
    %23 = tpu.assume_multiple %22, 16 : i32
    %24 = arith.index_cast %23 : i32 to index
    %c0_21 = arith.constant 0 : index
    %25 = vector.load %arg11[%24, %c0_21] : memref<128x512xf32, #tpu.memory_space<vmem>>, vector<16x512xf32>
    %26 = arith.truncf %20 : vector<16x128xf32> to vector<16x128xbf16>
    %cst_22 = arith.constant dense<0.000000e+00> : vector<16x512xf32>
    %27 = tpu.matmul %26, %11, %cst_22 {dimension_numbers = #tpu.dot_dimension_numbers<[1], [0], [0], [1], [0, 0, 1, 1], [], []>} : vector<16x128xbf16>, vector<128x512xbf16>, vector<16x512xf32> -> vector<16x512xf32>
    %28 = arith.addf %25, %27 : vector<16x512xf32>
    %29 = vector.extract_strided_slice %28 {offsets = [0, 0], sizes = [16, 128], strides = [1, 1]} : vector<16x512xf32> to vector<16x128xf32>
    %30 = arith.negf %29 : vector<16x128xf32>
    %31 = math.exp %30 : vector<16x128xf32>
    %cst_23 = arith.constant 1.000000e+00 : f32
    %32 = vector.broadcast %cst_23 : f32 to vector<16x128xf32>
    %33 = arith.addf %32, %31 : vector<16x128xf32>
    %34 = arith.divf %32, %33 : vector<16x128xf32>
    %35 = vector.extract_strided_slice %28 {offsets = [0, 128], sizes = [16, 128], strides = [1, 1]} : vector<16x512xf32> to vector<16x128xf32>
    %36 = arith.negf %35 : vector<16x128xf32>
    %37 = math.exp %36 : vector<16x128xf32>
    %cst_24 = arith.constant 1.000000e+00 : f32
    %38 = vector.broadcast %cst_24 : f32 to vector<16x128xf32>
    %39 = arith.addf %38, %37 : vector<16x128xf32>
    %40 = arith.divf %38, %39 : vector<16x128xf32>
    %41 = vector.extract_strided_slice %28 {offsets = [0, 256], sizes = [16, 128], strides = [1, 1]} : vector<16x512xf32> to vector<16x128xf32>
    %42 = math.tanh %41 : vector<16x128xf32>
    %43 = vector.extract_strided_slice %28 {offsets = [0, 384], sizes = [16, 128], strides = [1, 1]} : vector<16x512xf32> to vector<16x128xf32>
    %44 = arith.negf %43 : vector<16x128xf32>
    %45 = math.exp %44 : vector<16x128xf32>
    %cst_25 = arith.constant 1.000000e+00 : f32
    %46 = vector.broadcast %cst_25 : f32 to vector<16x128xf32>
    %47 = arith.addf %46, %45 : vector<16x128xf32>
    %48 = arith.divf %46, %47 : vector<16x128xf32>
    %49 = arith.mulf %40, %21 : vector<16x128xf32>
    %50 = arith.mulf %34, %42 : vector<16x128xf32>
    %51 = arith.addf %49, %50 : vector<16x128xf32>
    %52 = math.tanh %51 : vector<16x128xf32>
    %53 = arith.mulf %48, %52 : vector<16x128xf32>
    %54 = arith.addi %19, %c0_i32_20 : i32
    %c11_i32 = arith.constant 11 : i32
    %55 = arith.cmpi slt, %54, %c11_i32 : i32
    %56 = arith.select %55, %51, %21 : vector<16x128xf32>
    %57 = arith.select %55, %53, %20 : vector<16x128xf32>
    %cst_26 = arith.constant dense<0.000000e+00> : vector<16xf32>
    %58 = vector.multi_reduction <add>, %57, %cst_26 [1] : vector<16x128xf32> to vector<16xf32>
    %59 = vector.shape_cast %58 : vector<16xf32> to vector<16x1xf32>
    %60 = vector.broadcast %cst_19 : f32 to vector<16x1xf32>
    %61 = arith.mulf %59, %60 : vector<16x1xf32>
    %62 = vector.broadcast %61 : vector<16x1xf32> to vector<16x128xf32>
    %63 = arith.subf %57, %62 : vector<16x128xf32>
    %64 = vector.broadcast %18 : vector<1x128xf32> to vector<16x128xf32>
    %65 = arith.mulf %63, %64 : vector<16x128xf32>
    %66 = arith.mulf %65, %65 : vector<16x128xf32>
    %cst_27 = arith.constant dense<0.000000e+00> : vector<16xf32>
    %67 = vector.multi_reduction <add>, %66, %cst_27 [1] : vector<16x128xf32> to vector<16xf32>
    %68 = vector.shape_cast %67 : vector<16xf32> to vector<16x1xf32>
    %69 = vector.broadcast %cst_19 : f32 to vector<16x1xf32>
    %70 = arith.mulf %68, %69 : vector<16x1xf32>
    %cst_28 = arith.constant 9.99999974E-6 : f32
    %71 = vector.broadcast %cst_28 : f32 to vector<16x1xf32>
    %72 = arith.addf %70, %71 : vector<16x1xf32>
    %73 = math.rsqrt %72 : vector<16x1xf32>
    %74 = vector.broadcast %73 : vector<16x1xf32> to vector<16x128xf32>
    %75 = arith.mulf %65, %74 : vector<16x128xf32>
    %76 = vector.broadcast %12 : vector<1x128xf32> to vector<16x128xf32>
    %77 = arith.mulf %75, %76 : vector<16x128xf32>
    %78 = vector.broadcast %13 : vector<1x128xf32> to vector<16x128xf32>
    %79 = arith.addf %77, %78 : vector<16x128xf32>
    %80 = arith.truncf %79 : vector<16x128xf32> to vector<16x128xbf16>
    %81 = arith.index_cast %c0_i32_20 : i32 to index
    %c0_29 = arith.constant 0 : index
    %c0_30 = arith.constant 0 : index
    %82 = vector.load %arg8[%81, %c0_29, %c0_30] : memref<8x16x128xbf16, #tpu.memory_space<vmem>>, vector<1x16x128xbf16>
    %83 = vector.shape_cast %82 : vector<1x16x128xbf16> to vector<16x128xbf16>
    %84 = vector.shape_cast %80 : vector<16x128xbf16> to vector<1x16x128xbf16>
    tpu.vector_store %arg8[%81, %c0_29, %c0_30], %84 {strides = array<i32>} : memref<8x16x128xbf16, #tpu.memory_space<vmem>>, vector<1x16x128xbf16>,
    %c1_i32 = arith.constant 1 : i32
    %c16_i32_31 = arith.constant 16 : i32
    %85 = arith.muli %c1_i32, %c16_i32_31 : i32
    %86 = tpu.assume_multiple %85, 16 : i32
    %87 = arith.index_cast %86 : i32 to index
    %c0_32 = arith.constant 0 : index
    %88 = vector.load %arg11[%87, %c0_32] : memref<128x512xf32, #tpu.memory_space<vmem>>, vector<16x512xf32>
    %89 = arith.truncf %57 : vector<16x128xf32> to vector<16x128xbf16>
    %cst_33 = arith.constant dense<0.000000e+00> : vector<16x512xf32>
    %90 = tpu.matmul %89, %11, %cst_33 {dimension_numbers = #tpu.dot_dimension_numbers<[1], [0], [0], [1], [0, 0, 1, 1], [], []>} : vector<16x128xbf16>, vector<128x512xbf16>, vector<16x512xf32> -> vector<16x512xf32>
    %91 = arith.addf %88, %90 : vector<16x512xf32>
    %92 = vector.extract_strided_slice %91 {offsets = [0, 0], sizes = [16, 128], strides = [1, 1]} : vector<16x512xf32> to vector<16x128xf32>
    %93 = arith.negf %92 : vector<16x128xf32>
    %94 = math.exp %93 : vector<16x128xf32>
    %cst_34 = arith.constant 1.000000e+00 : f32
    %95 = vector.broadcast %cst_34 : f32 to vector<16x128xf32>
    %96 = arith.addf %95, %94 : vector<16x128xf32>
    %97 = arith.divf %95, %96 : vector<16x128xf32>
    %98 = vector.extract_strided_slice %91 {offsets = [0, 128], sizes = [16, 128], strides = [1, 1]} : vector<16x512xf32> to vector<16x128xf32>
    %99 = arith.negf %98 : vector<16x128xf32>
    %100 = math.exp %99 : vector<16x128xf32>
    %cst_35 = arith.constant 1.000000e+00 : f32
    %101 = vector.broadcast %cst_35 : f32 to vector<16x128xf32>
    %102 = arith.addf %101, %100 : vector<16x128xf32>
    %103 = arith.divf %101, %102 : vector<16x128xf32>
    %104 = vector.extract_strided_slice %91 {offsets = [0, 256], sizes = [16, 128], strides = [1, 1]} : vector<16x512xf32> to vector<16x128xf32>
    %105 = math.tanh %104 : vector<16x128xf32>
    %106 = vector.extract_strided_slice %91 {offsets = [0, 384], sizes = [16, 128], strides = [1, 1]} : vector<16x512xf32> to vector<16x128xf32>
    %107 = arith.negf %106 : vector<16x128xf32>
    %108 = math.exp %107 : vector<16x128xf32>
    %cst_36 = arith.constant 1.000000e+00 : f32
    %109 = vector.broadcast %cst_36 : f32 to vector<16x128xf32>
    %110 = arith.addf %109, %108 : vector<16x128xf32>
    %111 = arith.divf %109, %110 : vector<16x128xf32>
    %112 = arith.mulf %103, %56 : vector<16x128xf32>
    %113 = arith.mulf %97, %105 : vector<16x128xf32>
    %114 = arith.addf %112, %113 : vector<16x128xf32>
    %115 = math.tanh %114 : vector<16x128xf32>
    %116 = arith.mulf %111, %115 : vector<16x128xf32>
    %117 = arith.addi %19, %c1_i32 : i32
    %c11_i32_37 = arith.constant 11 : i32
    %118 = arith.cmpi slt, %117, %c11_i32_37 : i32
    %119 = arith.select %118, %114, %56 : vector<16x128xf32>
    %120 = arith.select %118, %116, %57 : vector<16x128xf32>
    %cst_38 = arith.constant dense<0.000000e+00> : vector<16xf32>
    %121 = vector.multi_reduction <add>, %120, %cst_38 [1] : vector<16x128xf32> to vector<16xf32>
    %122 = vector.shape_cast %121 : vector<16xf32> to vector<16x1xf32>
    %123 = vector.broadcast %cst_19 : f32 to vector<16x1xf32>
    %124 = arith.mulf %122, %123 : vector<16x1xf32>
    %125 = vector.broadcast %124 : vector<16x1xf32> to vector<16x128xf32>
    %126 = arith.subf %120, %125 : vector<16x128xf32>
    %127 = vector.broadcast %18 : vector<1x128xf32> to vector<16x128xf32>
    %128 = arith.mulf %126, %127 : vector<16x128xf32>
    %129 = arith.mulf %128, %128 : vector<16x128xf32>
    %cst_39 = arith.constant dense<0.000000e+00> : vector<16xf32>
    %130 = vector.multi_reduction <add>, %129, %cst_39 [1] : vector<16x128xf32> to vector<16xf32>
    %131 = vector.shape_cast %130 : vector<16xf32> to vector<16x1xf32>
    %132 = vector.broadcast %cst_19 : f32 to vector<16x1xf32>
    %133 = arith.mulf %131, %132 : vector<16x1xf32>
    %cst_40 = arith.constant 9.99999974E-6 : f32
    %134 = vector.broadcast %cst_40 : f32 to vector<16x1xf32>
    %135 = arith.addf %133, %134 : vector<16x1xf32>
    %136 = math.rsqrt %135 : vector<16x1xf32>
    %137 = vector.broadcast %136 : vector<16x1xf32> to vector<16x128xf32>
    %138 = arith.mulf %128, %137 : vector<16x128xf32>
    %139 = vector.broadcast %12 : vector<1x128xf32> to vector<16x128xf32>
    %140 = arith.mulf %138, %139 : vector<16x128xf32>
    %141 = vector.broadcast %13 : vector<1x128xf32> to vector<16x128xf32>
    %142 = arith.addf %140, %141 : vector<16x128xf32>
    %143 = arith.truncf %142 : vector<16x128xf32> to vector<16x128xbf16>
    %144 = arith.index_cast %c1_i32 : i32 to index
    %c0_41 = arith.constant 0 : index
    %c0_42 = arith.constant 0 : index
    %145 = vector.load %arg8[%144, %c0_41, %c0_42] : memref<8x16x128xbf16, #tpu.memory_space<vmem>>, vector<1x16x128xbf16>
    %146 = vector.shape_cast %145 : vector<1x16x128xbf16> to vector<16x128xbf16>
    %147 = vector.shape_cast %143 : vector<16x128xbf16> to vector<1x16x128xbf16>
    tpu.vector_store %arg8[%144, %c0_41, %c0_42], %147 {strides = array<i32>} : memref<8x16x128xbf16, #tpu.memory_space<vmem>>, vector<1x16x128xbf16>,
    %c2_i32 = arith.constant 2 : i32
    %c16_i32_43 = arith.constant 16 : i32
    %148 = arith.muli %c2_i32, %c16_i32_43 : i32
    %149 = tpu.assume_multiple %148, 16 : i32
    %150 = arith.index_cast %149 : i32 to index
    %c0_44 = arith.constant 0 : index
    %151 = vector.load %arg11[%150, %c0_44] : memref<128x512xf32, #tpu.memory_space<vmem>>, vector<16x512xf32>
    %152 = arith.truncf %120 : vector<16x128xf32> to vector<16x128xbf16>
    %cst_45 = arith.constant dense<0.000000e+00> : vector<16x512xf32>
    %153 = tpu.matmul %152, %11, %cst_45 {dimension_numbers = #tpu.dot_dimension_numbers<[1], [0], [0], [1], [0, 0, 1, 1], [], []>} : vector<16x128xbf16>, vector<128x512xbf16>, vector<16x512xf32> -> vector<16x512xf32>
    %154 = arith.addf %151, %153 : vector<16x512xf32>
    %155 = vector.extract_strided_slice %154 {offsets = [0, 0], sizes = [16, 128], strides = [1, 1]} : vector<16x512xf32> to vector<16x128xf32>
    %156 = arith.negf %155 : vector<16x128xf32>
    %157 = math.exp %156 : vector<16x128xf32>
    %cst_46 = arith.constant 1.000000e+00 : f32
    %158 = vector.broadcast %cst_46 : f32 to vector<16x128xf32>
    %159 = arith.addf %158, %157 : vector<16x128xf32>
    %160 = arith.divf %158, %159 : vector<16x128xf32>
    %161 = vector.extract_strided_slice %154 {offsets = [0, 128], sizes = [16, 128], strides = [1, 1]} : vector<16x512xf32> to vector<16x128xf32>
    %162 = arith.negf %161 : vector<16x128xf32>
    %163 = math.exp %162 : vector<16x128xf32>
    %cst_47 = arith.constant 1.000000e+00 : f32
    %164 = vector.broadcast %cst_47 : f32 to vector<16x128xf32>
    %165 = arith.addf %164, %163 : vector<16x128xf32>
    %166 = arith.divf %164, %165 : vector<16x128xf32>
    %167 = vector.extract_strided_slice %154 {offsets = [0, 256], sizes = [16, 128], strides = [1, 1]} : vector<16x512xf32> to vector<16x128xf32>
    %168 = math.tanh %167 : vector<16x128xf32>
    %169 = vector.extract_strided_slice %154 {offsets = [0, 384], sizes = [16, 128], strides = [1, 1]} : vector<16x512xf32> to vector<16x128xf32>
    %170 = arith.negf %169 : vector<16x128xf32>
    %171 = math.exp %170 : vector<16x128xf32>
    %cst_48 = arith.constant 1.000000e+00 : f32
    %172 = vector.broadcast %cst_48 : f32 to vector<16x128xf32>
    %173 = arith.addf %172, %171 : vector<16x128xf32>
    %174 = arith.divf %172, %173 : vector<16x128xf32>
    %175 = arith.mulf %166, %119 : vector<16x128xf32>
    %176 = arith.mulf %160, %168 : vector<16x128xf32>
    %177 = arith.addf %175, %176 : vector<16x128xf32>
    %178 = math.tanh %177 : vector<16x128xf32>
    %179 = arith.mulf %174, %178 : vector<16x128xf32>
    %180 = arith.addi %19, %c2_i32 : i32
    %c11_i32_49 = arith.constant 11 : i32
    %181 = arith.cmpi slt, %180, %c11_i32_49 : i32
    %182 = arith.select %181, %177, %119 : vector<16x128xf32>
    %183 = arith.select %181, %179, %120 : vector<16x128xf32>
    %cst_50 = arith.constant dense<0.000000e+00> : vector<16xf32>
    %184 = vector.multi_reduction <add>, %183, %cst_50 [1] : vector<16x128xf32> to vector<16xf32>
    %185 = vector.shape_cast %184 : vector<16xf32> to vector<16x1xf32>
    %186 = vector.broadcast %cst_19 : f32 to vector<16x1xf32>
    %187 = arith.mulf %185, %186 : vector<16x1xf32>
    %188 = vector.broadcast %187 : vector<16x1xf32> to vector<16x128xf32>
    %189 = arith.subf %183, %188 : vector<16x128xf32>
    %190 = vector.broadcast %18 : vector<1x128xf32> to vector<16x128xf32>
    %191 = arith.mulf %189, %190 : vector<16x128xf32>
    %192 = arith.mulf %191, %191 : vector<16x128xf32>
    %cst_51 = arith.constant dense<0.000000e+00> : vector<16xf32>
    %193 = vector.multi_reduction <add>, %192, %cst_51 [1] : vector<16x128xf32> to vector<16xf32>
    %194 = vector.shape_cast %193 : vector<16xf32> to vector<16x1xf32>
    %195 = vector.broadcast %cst_19 : f32 to vector<16x1xf32>
    %196 = arith.mulf %194, %195 : vector<16x1xf32>
    %cst_52 = arith.constant 9.99999974E-6 : f32
    %197 = vector.broadcast %cst_52 : f32 to vector<16x1xf32>
    %198 = arith.addf %196, %197 : vector<16x1xf32>
    %199 = math.rsqrt %198 : vector<16x1xf32>
    %200 = vector.broadcast %199 : vector<16x1xf32> to vector<16x128xf32>
    %201 = arith.mulf %191, %200 : vector<16x128xf32>
    %202 = vector.broadcast %12 : vector<1x128xf32> to vector<16x128xf32>
    %203 = arith.mulf %201, %202 : vector<16x128xf32>
    %204 = vector.broadcast %13 : vector<1x128xf32> to vector<16x128xf32>
    %205 = arith.addf %203, %204 : vector<16x128xf32>
    %206 = arith.truncf %205 : vector<16x128xf32> to vector<16x128xbf16>
    %207 = arith.index_cast %c2_i32 : i32 to index
    %c0_53 = arith.constant 0 : index
    %c0_54 = arith.constant 0 : index
    %208 = vector.load %arg8[%207, %c0_53, %c0_54] : memref<8x16x128xbf16, #tpu.memory_space<vmem>>, vector<1x16x128xbf16>
    %209 = vector.shape_cast %208 : vector<1x16x128xbf16> to vector<16x128xbf16>
    %210 = vector.shape_cast %206 : vector<16x128xbf16> to vector<1x16x128xbf16>
    tpu.vector_store %arg8[%207, %c0_53, %c0_54], %210 {strides = array<i32>} : memref<8x16x128xbf16, #tpu.memory_space<vmem>>, vector<1x16x128xbf16>,
    %c3_i32 = arith.constant 3 : i32
    %c16_i32_55 = arith.constant 16 : i32
    %211 = arith.muli %c3_i32, %c16_i32_55 : i32
    %212 = tpu.assume_multiple %211, 16 : i32
    %213 = arith.index_cast %212 : i32 to index
    %c0_56 = arith.constant 0 : index
    %214 = vector.load %arg11[%213, %c0_56] : memref<128x512xf32, #tpu.memory_space<vmem>>, vector<16x512xf32>
    %215 = arith.truncf %183 : vector<16x128xf32> to vector<16x128xbf16>
    %cst_57 = arith.constant dense<0.000000e+00> : vector<16x512xf32>
    %216 = tpu.matmul %215, %11, %cst_57 {dimension_numbers = #tpu.dot_dimension_numbers<[1], [0], [0], [1], [0, 0, 1, 1], [], []>} : vector<16x128xbf16>, vector<128x512xbf16>, vector<16x512xf32> -> vector<16x512xf32>
    %217 = arith.addf %214, %216 : vector<16x512xf32>
    %218 = vector.extract_strided_slice %217 {offsets = [0, 0], sizes = [16, 128], strides = [1, 1]} : vector<16x512xf32> to vector<16x128xf32>
    %219 = arith.negf %218 : vector<16x128xf32>
    %220 = math.exp %219 : vector<16x128xf32>
    %cst_58 = arith.constant 1.000000e+00 : f32
    %221 = vector.broadcast %cst_58 : f32 to vector<16x128xf32>
    %222 = arith.addf %221, %220 : vector<16x128xf32>
    %223 = arith.divf %221, %222 : vector<16x128xf32>
    %224 = vector.extract_strided_slice %217 {offsets = [0, 128], sizes = [16, 128], strides = [1, 1]} : vector<16x512xf32> to vector<16x128xf32>
    %225 = arith.negf %224 : vector<16x128xf32>
    %226 = math.exp %225 : vector<16x128xf32>
    %cst_59 = arith.constant 1.000000e+00 : f32
    %227 = vector.broadcast %cst_59 : f32 to vector<16x128xf32>
    %228 = arith.addf %227, %226 : vector<16x128xf32>
    %229 = arith.divf %227, %228 : vector<16x128xf32>
    %230 = vector.extract_strided_slice %217 {offsets = [0, 256], sizes = [16, 128], strides = [1, 1]} : vector<16x512xf32> to vector<16x128xf32>
    %231 = math.tanh %230 : vector<16x128xf32>
    %232 = vector.extract_strided_slice %217 {offsets = [0, 384], sizes = [16, 128], strides = [1, 1]} : vector<16x512xf32> to vector<16x128xf32>
    %233 = arith.negf %232 : vector<16x128xf32>
    %234 = math.exp %233 : vector<16x128xf32>
    %cst_60 = arith.constant 1.000000e+00 : f32
    %235 = vector.broadcast %cst_60 : f32 to vector<16x128xf32>
    %236 = arith.addf %235, %234 : vector<16x128xf32>
    %237 = arith.divf %235, %236 : vector<16x128xf32>
    %238 = arith.mulf %229, %182 : vector<16x128xf32>
    %239 = arith.mulf %223, %231 : vector<16x128xf32>
    %240 = arith.addf %238, %239 : vector<16x128xf32>
    %241 = math.tanh %240 : vector<16x128xf32>
    %242 = arith.mulf %237, %241 : vector<16x128xf32>
    %243 = arith.addi %19, %c3_i32 : i32
    %c11_i32_61 = arith.constant 11 : i32
    %244 = arith.cmpi slt, %243, %c11_i32_61 : i32
    %245 = arith.select %244, %240, %182 : vector<16x128xf32>
    %246 = arith.select %244, %242, %183 : vector<16x128xf32>
    %cst_62 = arith.constant dense<0.000000e+00> : vector<16xf32>
    %247 = vector.multi_reduction <add>, %246, %cst_62 [1] : vector<16x128xf32> to vector<16xf32>
    %248 = vector.shape_cast %247 : vector<16xf32> to vector<16x1xf32>
    %249 = vector.broadcast %cst_19 : f32 to vector<16x1xf32>
    %250 = arith.mulf %248, %249 : vector<16x1xf32>
    %251 = vector.broadcast %250 : vector<16x1xf32> to vector<16x128xf32>
    %252 = arith.subf %246, %251 : vector<16x128xf32>
    %253 = vector.broadcast %18 : vector<1x128xf32> to vector<16x128xf32>
    %254 = arith.mulf %252, %253 : vector<16x128xf32>
    %255 = arith.mulf %254, %254 : vector<16x128xf32>
    %cst_63 = arith.constant dense<0.000000e+00> : vector<16xf32>
    %256 = vector.multi_reduction <add>, %255, %cst_63 [1] : vector<16x128xf32> to vector<16xf32>
    %257 = vector.shape_cast %256 : vector<16xf32> to vector<16x1xf32>
    %258 = vector.broadcast %cst_19 : f32 to vector<16x1xf32>
    %259 = arith.mulf %257, %258 : vector<16x1xf32>
    %cst_64 = arith.constant 9.99999974E-6 : f32
    %260 = vector.broadcast %cst_64 : f32 to vector<16x1xf32>
    %261 = arith.addf %259, %260 : vector<16x1xf32>
    %262 = math.rsqrt %261 : vector<16x1xf32>
    %263 = vector.broadcast %262 : vector<16x1xf32> to vector<16x128xf32>
    %264 = arith.mulf %254, %263 : vector<16x128xf32>
    %265 = vector.broadcast %12 : vector<1x128xf32> to vector<16x128xf32>
    %266 = arith.mulf %264, %265 : vector<16x128xf32>
    %267 = vector.broadcast %13 : vector<1x128xf32> to vector<16x128xf32>
    %268 = arith.addf %266, %267 : vector<16x128xf32>
    %269 = arith.truncf %268 : vector<16x128xf32> to vector<16x128xbf16>
    %270 = arith.index_cast %c3_i32 : i32 to index
    %c0_65 = arith.constant 0 : index
    %c0_66 = arith.constant 0 : index
    %271 = vector.load %arg8[%270, %c0_65, %c0_66] : memref<8x16x128xbf16, #tpu.memory_space<vmem>>, vector<1x16x128xbf16>
    %272 = vector.shape_cast %271 : vector<1x16x128xbf16> to vector<16x128xbf16>
    %273 = vector.shape_cast %269 : vector<16x128xbf16> to vector<1x16x128xbf16>
    tpu.vector_store %arg8[%270, %c0_65, %c0_66], %273 {strides = array<i32>} : memref<8x16x128xbf16, #tpu.memory_space<vmem>>, vector<1x16x128xbf16>,
    %c4_i32 = arith.constant 4 : i32
    %c16_i32_67 = arith.constant 16 : i32
    %274 = arith.muli %c4_i32, %c16_i32_67 : i32
    %275 = tpu.assume_multiple %274, 16 : i32
    %276 = arith.index_cast %275 : i32 to index
    %c0_68 = arith.constant 0 : index
    %277 = vector.load %arg11[%276, %c0_68] : memref<128x512xf32, #tpu.memory_space<vmem>>, vector<16x512xf32>
    %278 = arith.truncf %246 : vector<16x128xf32> to vector<16x128xbf16>
    %cst_69 = arith.constant dense<0.000000e+00> : vector<16x512xf32>
    %279 = tpu.matmul %278, %11, %cst_69 {dimension_numbers = #tpu.dot_dimension_numbers<[1], [0], [0], [1], [0, 0, 1, 1], [], []>} : vector<16x128xbf16>, vector<128x512xbf16>, vector<16x512xf32> -> vector<16x512xf32>
    %280 = arith.addf %277, %279 : vector<16x512xf32>
    %281 = vector.extract_strided_slice %280 {offsets = [0, 0], sizes = [16, 128], strides = [1, 1]} : vector<16x512xf32> to vector<16x128xf32>
    %282 = arith.negf %281 : vector<16x128xf32>
    %283 = math.exp %282 : vector<16x128xf32>
    %cst_70 = arith.constant 1.000000e+00 : f32
    %284 = vector.broadcast %cst_70 : f32 to vector<16x128xf32>
    %285 = arith.addf %284, %283 : vector<16x128xf32>
    %286 = arith.divf %284, %285 : vector<16x128xf32>
    %287 = vector.extract_strided_slice %280 {offsets = [0, 128], sizes = [16, 128], strides = [1, 1]} : vector<16x512xf32> to vector<16x128xf32>
    %288 = arith.negf %287 : vector<16x128xf32>
    %289 = math.exp %288 : vector<16x128xf32>
    %cst_71 = arith.constant 1.000000e+00 : f32
    %290 = vector.broadcast %cst_71 : f32 to vector<16x128xf32>
    %291 = arith.addf %290, %289 : vector<16x128xf32>
    %292 = arith.divf %290, %291 : vector<16x128xf32>
    %293 = vector.extract_strided_slice %280 {offsets = [0, 256], sizes = [16, 128], strides = [1, 1]} : vector<16x512xf32> to vector<16x128xf32>
    %294 = math.tanh %293 : vector<16x128xf32>
    %295 = vector.extract_strided_slice %280 {offsets = [0, 384], sizes = [16, 128], strides = [1, 1]} : vector<16x512xf32> to vector<16x128xf32>
    %296 = arith.negf %295 : vector<16x128xf32>
    %297 = math.exp %296 : vector<16x128xf32>
    %cst_72 = arith.constant 1.000000e+00 : f32
    %298 = vector.broadcast %cst_72 : f32 to vector<16x128xf32>
    %299 = arith.addf %298, %297 : vector<16x128xf32>
    %300 = arith.divf %298, %299 : vector<16x128xf32>
    %301 = arith.mulf %292, %245 : vector<16x128xf32>
    %302 = arith.mulf %286, %294 : vector<16x128xf32>
    %303 = arith.addf %301, %302 : vector<16x128xf32>
    %304 = math.tanh %303 : vector<16x128xf32>
    %305 = arith.mulf %300, %304 : vector<16x128xf32>
    %306 = arith.addi %19, %c4_i32 : i32
    %c11_i32_73 = arith.constant 11 : i32
    %307 = arith.cmpi slt, %306, %c11_i32_73 : i32
    %308 = arith.select %307, %303, %245 : vector<16x128xf32>
    %309 = arith.select %307, %305, %246 : vector<16x128xf32>
    %cst_74 = arith.constant dense<0.000000e+00> : vector<16xf32>
    %310 = vector.multi_reduction <add>, %309, %cst_74 [1] : vector<16x128xf32> to vector<16xf32>
    %311 = vector.shape_cast %310 : vector<16xf32> to vector<16x1xf32>
    %312 = vector.broadcast %cst_19 : f32 to vector<16x1xf32>
    %313 = arith.mulf %311, %312 : vector<16x1xf32>
    %314 = vector.broadcast %313 : vector<16x1xf32> to vector<16x128xf32>
    %315 = arith.subf %309, %314 : vector<16x128xf32>
    %316 = vector.broadcast %18 : vector<1x128xf32> to vector<16x128xf32>
    %317 = arith.mulf %315, %316 : vector<16x128xf32>
    %318 = arith.mulf %317, %317 : vector<16x128xf32>
    %cst_75 = arith.constant dense<0.000000e+00> : vector<16xf32>
    %319 = vector.multi_reduction <add>, %318, %cst_75 [1] : vector<16x128xf32> to vector<16xf32>
    %320 = vector.shape_cast %319 : vector<16xf32> to vector<16x1xf32>
    %321 = vector.broadcast %cst_19 : f32 to vector<16x1xf32>
    %322 = arith.mulf %320, %321 : vector<16x1xf32>
    %cst_76 = arith.constant 9.99999974E-6 : f32
    %323 = vector.broadcast %cst_76 : f32 to vector<16x1xf32>
    %324 = arith.addf %322, %323 : vector<16x1xf32>
    %325 = math.rsqrt %324 : vector<16x1xf32>
    %326 = vector.broadcast %325 : vector<16x1xf32> to vector<16x128xf32>
    %327 = arith.mulf %317, %326 : vector<16x128xf32>
    %328 = vector.broadcast %12 : vector<1x128xf32> to vector<16x128xf32>
    %329 = arith.mulf %327, %328 : vector<16x128xf32>
    %330 = vector.broadcast %13 : vector<1x128xf32> to vector<16x128xf32>
    %331 = arith.addf %329, %330 : vector<16x128xf32>
    %332 = arith.truncf %331 : vector<16x128xf32> to vector<16x128xbf16>
    %333 = arith.index_cast %c4_i32 : i32 to index
    %c0_77 = arith.constant 0 : index
    %c0_78 = arith.constant 0 : index
    %334 = vector.load %arg8[%333, %c0_77, %c0_78] : memref<8x16x128xbf16, #tpu.memory_space<vmem>>, vector<1x16x128xbf16>
    %335 = vector.shape_cast %334 : vector<1x16x128xbf16> to vector<16x128xbf16>
    %336 = vector.shape_cast %332 : vector<16x128xbf16> to vector<1x16x128xbf16>
    tpu.vector_store %arg8[%333, %c0_77, %c0_78], %336 {strides = array<i32>} : memref<8x16x128xbf16, #tpu.memory_space<vmem>>, vector<1x16x128xbf16>,
    %c5_i32 = arith.constant 5 : i32
    %c16_i32_79 = arith.constant 16 : i32
    %337 = arith.muli %c5_i32, %c16_i32_79 : i32
    %338 = tpu.assume_multiple %337, 16 : i32
    %339 = arith.index_cast %338 : i32 to index
    %c0_80 = arith.constant 0 : index
    %340 = vector.load %arg11[%339, %c0_80] : memref<128x512xf32, #tpu.memory_space<vmem>>, vector<16x512xf32>
    %341 = arith.truncf %309 : vector<16x128xf32> to vector<16x128xbf16>
    %cst_81 = arith.constant dense<0.000000e+00> : vector<16x512xf32>
    %342 = tpu.matmul %341, %11, %cst_81 {dimension_numbers = #tpu.dot_dimension_numbers<[1], [0], [0], [1], [0, 0, 1, 1], [], []>} : vector<16x128xbf16>, vector<128x512xbf16>, vector<16x512xf32> -> vector<16x512xf32>
    %343 = arith.addf %340, %342 : vector<16x512xf32>
    %344 = vector.extract_strided_slice %343 {offsets = [0, 0], sizes = [16, 128], strides = [1, 1]} : vector<16x512xf32> to vector<16x128xf32>
    %345 = arith.negf %344 : vector<16x128xf32>
    %346 = math.exp %345 : vector<16x128xf32>
    %cst_82 = arith.constant 1.000000e+00 : f32
    %347 = vector.broadcast %cst_82 : f32 to vector<16x128xf32>
    %348 = arith.addf %347, %346 : vector<16x128xf32>
    %349 = arith.divf %347, %348 : vector<16x128xf32>
    %350 = vector.extract_strided_slice %343 {offsets = [0, 128], sizes = [16, 128], strides = [1, 1]} : vector<16x512xf32> to vector<16x128xf32>
    %351 = arith.negf %350 : vector<16x128xf32>
    %352 = math.exp %351 : vector<16x128xf32>
    %cst_83 = arith.constant 1.000000e+00 : f32
    %353 = vector.broadcast %cst_83 : f32 to vector<16x128xf32>
    %354 = arith.addf %353, %352 : vector<16x128xf32>
    %355 = arith.divf %353, %354 : vector<16x128xf32>
    %356 = vector.extract_strided_slice %343 {offsets = [0, 256], sizes = [16, 128], strides = [1, 1]} : vector<16x512xf32> to vector<16x128xf32>
    %357 = math.tanh %356 : vector<16x128xf32>
    %358 = vector.extract_strided_slice %343 {offsets = [0, 384], sizes = [16, 128], strides = [1, 1]} : vector<16x512xf32> to vector<16x128xf32>
    %359 = arith.negf %358 : vector<16x128xf32>
    %360 = math.exp %359 : vector<16x128xf32>
    %cst_84 = arith.constant 1.000000e+00 : f32
    %361 = vector.broadcast %cst_84 : f32 to vector<16x128xf32>
    %362 = arith.addf %361, %360 : vector<16x128xf32>
    %363 = arith.divf %361, %362 : vector<16x128xf32>
    %364 = arith.mulf %355, %308 : vector<16x128xf32>
    %365 = arith.mulf %349, %357 : vector<16x128xf32>
    %366 = arith.addf %364, %365 : vector<16x128xf32>
    %367 = math.tanh %366 : vector<16x128xf32>
    %368 = arith.mulf %363, %367 : vector<16x128xf32>
    %369 = arith.addi %19, %c5_i32 : i32
    %c11_i32_85 = arith.constant 11 : i32
    %370 = arith.cmpi slt, %369, %c11_i32_85 : i32
    %371 = arith.select %370, %366, %308 : vector<16x128xf32>
    %372 = arith.select %370, %368, %309 : vector<16x128xf32>
    %cst_86 = arith.constant dense<0.000000e+00> : vector<16xf32>
    %373 = vector.multi_reduction <add>, %372, %cst_86 [1] : vector<16x128xf32> to vector<16xf32>
    %374 = vector.shape_cast %373 : vector<16xf32> to vector<16x1xf32>
    %375 = vector.broadcast %cst_19 : f32 to vector<16x1xf32>
    %376 = arith.mulf %374, %375 : vector<16x1xf32>
    %377 = vector.broadcast %376 : vector<16x1xf32> to vector<16x128xf32>
    %378 = arith.subf %372, %377 : vector<16x128xf32>
    %379 = vector.broadcast %18 : vector<1x128xf32> to vector<16x128xf32>
    %380 = arith.mulf %378, %379 : vector<16x128xf32>
    %381 = arith.mulf %380, %380 : vector<16x128xf32>
    %cst_87 = arith.constant dense<0.000000e+00> : vector<16xf32>
    %382 = vector.multi_reduction <add>, %381, %cst_87 [1] : vector<16x128xf32> to vector<16xf32>
    %383 = vector.shape_cast %382 : vector<16xf32> to vector<16x1xf32>
    %384 = vector.broadcast %cst_19 : f32 to vector<16x1xf32>
    %385 = arith.mulf %383, %384 : vector<16x1xf32>
    %cst_88 = arith.constant 9.99999974E-6 : f32
    %386 = vector.broadcast %cst_88 : f32 to vector<16x1xf32>
    %387 = arith.addf %385, %386 : vector<16x1xf32>
    %388 = math.rsqrt %387 : vector<16x1xf32>
    %389 = vector.broadcast %388 : vector<16x1xf32> to vector<16x128xf32>
    %390 = arith.mulf %380, %389 : vector<16x128xf32>
    %391 = vector.broadcast %12 : vector<1x128xf32> to vector<16x128xf32>
    %392 = arith.mulf %390, %391 : vector<16x128xf32>
    %393 = vector.broadcast %13 : vector<1x128xf32> to vector<16x128xf32>
    %394 = arith.addf %392, %393 : vector<16x128xf32>
    %395 = arith.truncf %394 : vector<16x128xf32> to vector<16x128xbf16>
    %396 = arith.index_cast %c5_i32 : i32 to index
    %c0_89 = arith.constant 0 : index
    %c0_90 = arith.constant 0 : index
    %397 = vector.load %arg8[%396, %c0_89, %c0_90] : memref<8x16x128xbf16, #tpu.memory_space<vmem>>, vector<1x16x128xbf16>
    %398 = vector.shape_cast %397 : vector<1x16x128xbf16> to vector<16x128xbf16>
    %399 = vector.shape_cast %395 : vector<16x128xbf16> to vector<1x16x128xbf16>
    tpu.vector_store %arg8[%396, %c0_89, %c0_90], %399 {strides = array<i32>} : memref<8x16x128xbf16, #tpu.memory_space<vmem>>, vector<1x16x128xbf16>,
    %c6_i32 = arith.constant 6 : i32
    %c16_i32_91 = arith.constant 16 : i32
    %400 = arith.muli %c6_i32, %c16_i32_91 : i32
    %401 = tpu.assume_multiple %400, 16 : i32
    %402 = arith.index_cast %401 : i32 to index
    %c0_92 = arith.constant 0 : index
    %403 = vector.load %arg11[%402, %c0_92] : memref<128x512xf32, #tpu.memory_space<vmem>>, vector<16x512xf32>
    %404 = arith.truncf %372 : vector<16x128xf32> to vector<16x128xbf16>
    %cst_93 = arith.constant dense<0.000000e+00> : vector<16x512xf32>
    %405 = tpu.matmul %404, %11, %cst_93 {dimension_numbers = #tpu.dot_dimension_numbers<[1], [0], [0], [1], [0, 0, 1, 1], [], []>} : vector<16x128xbf16>, vector<128x512xbf16>, vector<16x512xf32> -> vector<16x512xf32>
    %406 = arith.addf %403, %405 : vector<16x512xf32>
    %407 = vector.extract_strided_slice %406 {offsets = [0, 0], sizes = [16, 128], strides = [1, 1]} : vector<16x512xf32> to vector<16x128xf32>
    %408 = arith.negf %407 : vector<16x128xf32>
    %409 = math.exp %408 : vector<16x128xf32>
    %cst_94 = arith.constant 1.000000e+00 : f32
    %410 = vector.broadcast %cst_94 : f32 to vector<16x128xf32>
    %411 = arith.addf %410, %409 : vector<16x128xf32>
    %412 = arith.divf %410, %411 : vector<16x128xf32>
    %413 = vector.extract_strided_slice %406 {offsets = [0, 128], sizes = [16, 128], strides = [1, 1]} : vector<16x512xf32> to vector<16x128xf32>
    %414 = arith.negf %413 : vector<16x128xf32>
    %415 = math.exp %414 : vector<16x128xf32>
    %cst_95 = arith.constant 1.000000e+00 : f32
    %416 = vector.broadcast %cst_95 : f32 to vector<16x128xf32>
    %417 = arith.addf %416, %415 : vector<16x128xf32>
    %418 = arith.divf %416, %417 : vector<16x128xf32>
    %419 = vector.extract_strided_slice %406 {offsets = [0, 256], sizes = [16, 128], strides = [1, 1]} : vector<16x512xf32> to vector<16x128xf32>
    %420 = math.tanh %419 : vector<16x128xf32>
    %421 = vector.extract_strided_slice %406 {offsets = [0, 384], sizes = [16, 128], strides = [1, 1]} : vector<16x512xf32> to vector<16x128xf32>
    %422 = arith.negf %421 : vector<16x128xf32>
    %423 = math.exp %422 : vector<16x128xf32>
    %cst_96 = arith.constant 1.000000e+00 : f32
    %424 = vector.broadcast %cst_96 : f32 to vector<16x128xf32>
    %425 = arith.addf %424, %423 : vector<16x128xf32>
    %426 = arith.divf %424, %425 : vector<16x128xf32>
    %427 = arith.mulf %418, %371 : vector<16x128xf32>
    %428 = arith.mulf %412, %420 : vector<16x128xf32>
    %429 = arith.addf %427, %428 : vector<16x128xf32>
    %430 = math.tanh %429 : vector<16x128xf32>
    %431 = arith.mulf %426, %430 : vector<16x128xf32>
    %432 = arith.addi %19, %c6_i32 : i32
    %c11_i32_97 = arith.constant 11 : i32
    %433 = arith.cmpi slt, %432, %c11_i32_97 : i32
    %434 = arith.select %433, %429, %371 : vector<16x128xf32>
    %435 = arith.select %433, %431, %372 : vector<16x128xf32>
    %cst_98 = arith.constant dense<0.000000e+00> : vector<16xf32>
    %436 = vector.multi_reduction <add>, %435, %cst_98 [1] : vector<16x128xf32> to vector<16xf32>
    %437 = vector.shape_cast %436 : vector<16xf32> to vector<16x1xf32>
    %438 = vector.broadcast %cst_19 : f32 to vector<16x1xf32>
    %439 = arith.mulf %437, %438 : vector<16x1xf32>
    %440 = vector.broadcast %439 : vector<16x1xf32> to vector<16x128xf32>
    %441 = arith.subf %435, %440 : vector<16x128xf32>
    %442 = vector.broadcast %18 : vector<1x128xf32> to vector<16x128xf32>
    %443 = arith.mulf %441, %442 : vector<16x128xf32>
    %444 = arith.mulf %443, %443 : vector<16x128xf32>
    %cst_99 = arith.constant dense<0.000000e+00> : vector<16xf32>
    %445 = vector.multi_reduction <add>, %444, %cst_99 [1] : vector<16x128xf32> to vector<16xf32>
    %446 = vector.shape_cast %445 : vector<16xf32> to vector<16x1xf32>
    %447 = vector.broadcast %cst_19 : f32 to vector<16x1xf32>
    %448 = arith.mulf %446, %447 : vector<16x1xf32>
    %cst_100 = arith.constant 9.99999974E-6 : f32
    %449 = vector.broadcast %cst_100 : f32 to vector<16x1xf32>
    %450 = arith.addf %448, %449 : vector<16x1xf32>
    %451 = math.rsqrt %450 : vector<16x1xf32>
    %452 = vector.broadcast %451 : vector<16x1xf32> to vector<16x128xf32>
    %453 = arith.mulf %443, %452 : vector<16x128xf32>
    %454 = vector.broadcast %12 : vector<1x128xf32> to vector<16x128xf32>
    %455 = arith.mulf %453, %454 : vector<16x128xf32>
    %456 = vector.broadcast %13 : vector<1x128xf32> to vector<16x128xf32>
    %457 = arith.addf %455, %456 : vector<16x128xf32>
    %458 = arith.truncf %457 : vector<16x128xf32> to vector<16x128xbf16>
    %459 = arith.index_cast %c6_i32 : i32 to index
    %c0_101 = arith.constant 0 : index
    %c0_102 = arith.constant 0 : index
    %460 = vector.load %arg8[%459, %c0_101, %c0_102] : memref<8x16x128xbf16, #tpu.memory_space<vmem>>, vector<1x16x128xbf16>
    %461 = vector.shape_cast %460 : vector<1x16x128xbf16> to vector<16x128xbf16>
    %462 = vector.shape_cast %458 : vector<16x128xbf16> to vector<1x16x128xbf16>
    tpu.vector_store %arg8[%459, %c0_101, %c0_102], %462 {strides = array<i32>} : memref<8x16x128xbf16, #tpu.memory_space<vmem>>, vector<1x16x128xbf16>,
    %c7_i32 = arith.constant 7 : i32
    %c16_i32_103 = arith.constant 16 : i32
    %463 = arith.muli %c7_i32, %c16_i32_103 : i32
    %464 = tpu.assume_multiple %463, 16 : i32
    %465 = arith.index_cast %464 : i32 to index
    %c0_104 = arith.constant 0 : index
    %466 = vector.load %arg11[%465, %c0_104] : memref<128x512xf32, #tpu.memory_space<vmem>>, vector<16x512xf32>
    %467 = arith.truncf %435 : vector<16x128xf32> to vector<16x128xbf16>
    %cst_105 = arith.constant dense<0.000000e+00> : vector<16x512xf32>
    %468 = tpu.matmul %467, %11, %cst_105 {dimension_numbers = #tpu.dot_dimension_numbers<[1], [0], [0], [1], [0, 0, 1, 1], [], []>} : vector<16x128xbf16>, vector<128x512xbf16>, vector<16x512xf32> -> vector<16x512xf32>
    %469 = arith.addf %466, %468 : vector<16x512xf32>
    %470 = vector.extract_strided_slice %469 {offsets = [0, 0], sizes = [16, 128], strides = [1, 1]} : vector<16x512xf32> to vector<16x128xf32>
    %471 = arith.negf %470 : vector<16x128xf32>
    %472 = math.exp %471 : vector<16x128xf32>
    %cst_106 = arith.constant 1.000000e+00 : f32
    %473 = vector.broadcast %cst_106 : f32 to vector<16x128xf32>
    %474 = arith.addf %473, %472 : vector<16x128xf32>
    %475 = arith.divf %473, %474 : vector<16x128xf32>
    %476 = vector.extract_strided_slice %469 {offsets = [0, 128], sizes = [16, 128], strides = [1, 1]} : vector<16x512xf32> to vector<16x128xf32>
    %477 = arith.negf %476 : vector<16x128xf32>
    %478 = math.exp %477 : vector<16x128xf32>
    %cst_107 = arith.constant 1.000000e+00 : f32
    %479 = vector.broadcast %cst_107 : f32 to vector<16x128xf32>
    %480 = arith.addf %479, %478 : vector<16x128xf32>
    %481 = arith.divf %479, %480 : vector<16x128xf32>
    %482 = vector.extract_strided_slice %469 {offsets = [0, 256], sizes = [16, 128], strides = [1, 1]} : vector<16x512xf32> to vector<16x128xf32>
    %483 = math.tanh %482 : vector<16x128xf32>
    %484 = vector.extract_strided_slice %469 {offsets = [0, 384], sizes = [16, 128], strides = [1, 1]} : vector<16x512xf32> to vector<16x128xf32>
    %485 = arith.negf %484 : vector<16x128xf32>
    %486 = math.exp %485 : vector<16x128xf32>
    %cst_108 = arith.constant 1.000000e+00 : f32
    %487 = vector.broadcast %cst_108 : f32 to vector<16x128xf32>
    %488 = arith.addf %487, %486 : vector<16x128xf32>
    %489 = arith.divf %487, %488 : vector<16x128xf32>
    %490 = arith.mulf %481, %434 : vector<16x128xf32>
    %491 = arith.mulf %475, %483 : vector<16x128xf32>
    %492 = arith.addf %490, %491 : vector<16x128xf32>
    %493 = math.tanh %492 : vector<16x128xf32>
    %494 = arith.mulf %489, %493 : vector<16x128xf32>
    %495 = arith.addi %19, %c7_i32 : i32
    %c11_i32_109 = arith.constant 11 : i32
    %496 = arith.cmpi slt, %495, %c11_i32_109 : i32
    %497 = arith.select %496, %492, %434 : vector<16x128xf32>
    %498 = arith.select %496, %494, %435 : vector<16x128xf32>
    %cst_110 = arith.constant dense<0.000000e+00> : vector<16xf32>
    %499 = vector.multi_reduction <add>, %498, %cst_110 [1] : vector<16x128xf32> to vector<16xf32>
    %500 = vector.shape_cast %499 : vector<16xf32> to vector<16x1xf32>
    %501 = vector.broadcast %cst_19 : f32 to vector<16x1xf32>
    %502 = arith.mulf %500, %501 : vector<16x1xf32>
    %503 = vector.broadcast %502 : vector<16x1xf32> to vector<16x128xf32>
    %504 = arith.subf %498, %503 : vector<16x128xf32>
    %505 = vector.broadcast %18 : vector<1x128xf32> to vector<16x128xf32>
    %506 = arith.mulf %504, %505 : vector<16x128xf32>
    %507 = arith.mulf %506, %506 : vector<16x128xf32>
    %cst_111 = arith.constant dense<0.000000e+00> : vector<16xf32>
    %508 = vector.multi_reduction <add>, %507, %cst_111 [1] : vector<16x128xf32> to vector<16xf32>
    %509 = vector.shape_cast %508 : vector<16xf32> to vector<16x1xf32>
    %510 = vector.broadcast %cst_19 : f32 to vector<16x1xf32>
    %511 = arith.mulf %509, %510 : vector<16x1xf32>
    %cst_112 = arith.constant 9.99999974E-6 : f32
    %512 = vector.broadcast %cst_112 : f32 to vector<16x1xf32>
    %513 = arith.addf %511, %512 : vector<16x1xf32>
    %514 = math.rsqrt %513 : vector<16x1xf32>
    %515 = vector.broadcast %514 : vector<16x1xf32> to vector<16x128xf32>
    %516 = arith.mulf %506, %515 : vector<16x128xf32>
    %517 = vector.broadcast %12 : vector<1x128xf32> to vector<16x128xf32>
    %518 = arith.mulf %516, %517 : vector<16x128xf32>
    %519 = vector.broadcast %13 : vector<1x128xf32> to vector<16x128xf32>
    %520 = arith.addf %518, %519 : vector<16x128xf32>
    %521 = arith.truncf %520 : vector<16x128xf32> to vector<16x128xbf16>
    %522 = arith.index_cast %c7_i32 : i32 to index
    %c0_113 = arith.constant 0 : index
    %c0_114 = arith.constant 0 : index
    %523 = vector.load %arg8[%522, %c0_113, %c0_114] : memref<8x16x128xbf16, #tpu.memory_space<vmem>>, vector<1x16x128xbf16>
    %524 = vector.shape_cast %523 : vector<1x16x128xbf16> to vector<16x128xbf16>
    %525 = vector.shape_cast %521 : vector<16x128xbf16> to vector<1x16x128xbf16>
    tpu.vector_store %arg8[%522, %c0_113, %c0_114], %525 {strides = array<i32>} : memref<8x16x128xbf16, #tpu.memory_space<vmem>>, vector<1x16x128xbf16>,
    %c8_i32_115 = arith.constant 8 : i32
    %c0_116 = arith.constant 0 : index
    %c0_117 = arith.constant 0 : index
    %526 = vector.load %arg12[%c0_116, %c0_117] : memref<16x128xf32, #tpu.memory_space<vmem>>, vector<16x128xf32>
    tpu.vector_store %arg12[%c0_116, %c0_117], %498 {strides = array<i32>} : memref<16x128xf32, #tpu.memory_space<vmem>>, vector<16x128xf32>,
    %c0_118 = arith.constant 0 : index
    %c0_119 = arith.constant 0 : index
    %527 = vector.load %arg13[%c0_118, %c0_119] : memref<16x128xf32, #tpu.memory_space<vmem>>, vector<16x128xf32>
    tpu.vector_store %arg13[%c0_118, %c0_119], %497 {strides = array<i32>} : memref<16x128xf32, #tpu.memory_space<vmem>>, vector<16x128xf32>,
    %c0_120 = arith.constant 0 : index
    %c0_121 = arith.constant 0 : index
    %528 = vector.load %arg9[%c0_120, %c0_121] : memref<16x128xf32, #tpu.memory_space<vmem>>, vector<16x128xf32>
    tpu.vector_store %arg9[%c0_120, %c0_121], %498 {strides = array<i32>} : memref<16x128xf32, #tpu.memory_space<vmem>>, vector<16x128xf32>,
    %c0_122 = arith.constant 0 : index
    %c0_123 = arith.constant 0 : index
    %529 = vector.load %arg10[%c0_122, %c0_123] : memref<16x128xf32, #tpu.memory_space<vmem>>, vector<16x128xf32>
    tpu.vector_store %arg10[%c0_122, %c0_123], %497 {strides = array<i32>} : memref<16x128xf32, #tpu.memory_space<vmem>>, vector<16x128xf32>,
    return
  }
  func.func @transform_0(%arg0: i32, %arg1: i32) -> (i32, i32, i32) {
    %c0_i32 = arith.constant 0 : i32
    %c0_i32_0 = arith.constant 0 : i32
    return %arg1, %arg0, %c0_i32 : i32, i32, i32
  }
  func.func @transform_1(%arg0: i32, %arg1: i32) -> (i32, i32) {
    %c0_i32 = arith.constant 0 : i32
    %c0_i32_0 = arith.constant 0 : i32
    %c0_i32_1 = arith.constant 0 : i32
    return %c0_i32, %c0_i32_0 : i32, i32
  }
  func.func @transform_2(%arg0: i32, %arg1: i32) -> (i32, i32) {
    %c0_i32 = arith.constant 0 : i32
    %c0_i32_0 = arith.constant 0 : i32
    %c0_i32_1 = arith.constant 0 : i32
    return %c0_i32, %c0_i32_0 : i32, i32
  }
  func.func @transform_3(%arg0: i32, %arg1: i32) -> (i32, i32) {
    %c0_i32 = arith.constant 0 : i32
    %c0_i32_0 = arith.constant 0 : i32
    %c0_i32_1 = arith.constant 0 : i32
    return %c0_i32, %c0_i32_0 : i32, i32
  }
  func.func @transform_4(%arg0: i32, %arg1: i32) -> (i32, i32) {
    %c0_i32 = arith.constant 0 : i32
    %c0_i32_0 = arith.constant 0 : i32
    %c0_i32_1 = arith.constant 0 : i32
    return %c0_i32, %c0_i32_0 : i32, i32
  }
  func.func @transform_5(%arg0: i32, %arg1: i32) -> (i32, i32) {
    %c0_i32 = arith.constant 0 : i32
    %c0_i32_0 = arith.constant 0 : i32
    %c0_i32_1 = arith.constant 0 : i32
    return %c0_i32, %c0_i32_0 : i32, i32
  }
  func.func @transform_6(%arg0: i32, %arg1: i32) -> (i32, i32, i32) {
    %c0_i32 = arith.constant 0 : i32
    %c0_i32_0 = arith.constant 0 : i32
    return %arg1, %arg0, %c0_i32 : i32, i32, i32
  }
  func.func @transform_7(%arg0: i32, %arg1: i32) -> (i32, i32) {
    %c0_i32 = arith.constant 0 : i32
    %c0_i32_0 = arith.constant 0 : i32
    return %arg0, %c0_i32 : i32, i32
  }
  func.func @transform_8(%arg0: i32, %arg1: i32) -> (i32, i32) {
    %c0_i32 = arith.constant 0 : i32
    %c0_i32_0 = arith.constant 0 : i32
    return %arg0, %c0_i32 : i32, i32
  }
}

module attributes {stable_mosaic.version = 11 : i64} {
  func.func @logsoftmax_linear_kernel(%arg0: i32, %arg1: memref<256x128xbf16, #tpu.memory_space<vmem>>, %arg2: memref<128x128xbf16, #tpu.memory_space<vmem>>, %arg3: memref<1x128xf32, #tpu.memory_space<vmem>>, %arg4: memref<256x128xf32, #tpu.memory_space<vmem>>) attributes {dimension_semantics = [#tpu.dimension_semantics<parallel>], iteration_bounds = array<i64: 1>, scalar_prefetch = 0 : i64, scratch_operands = 0 : i64, tpu.core_type = #tpu.core_type<tc>, window_params = [{transform_indices = @transform_0, window_bounds = array<i64: 256, 128>}, {pipeline_mode = #tpu.pipeline_mode<synchronous>, transform_indices = @transform_1, window_bounds = array<i64: 128, 128>}, {pipeline_mode = #tpu.pipeline_mode<synchronous>, transform_indices = @transform_2, window_bounds = array<i64: 1, 128>}, {transform_indices = @transform_3, window_bounds = array<i64: 256, 128>}]} {
    %c0 = arith.constant 0 : index
    %c0_0 = arith.constant 0 : index
    %0 = vector.load %arg1[%c0, %c0_0] : memref<256x128xbf16, #tpu.memory_space<vmem>>, vector<256x128xbf16>
    %c0_1 = arith.constant 0 : index
    %c0_2 = arith.constant 0 : index
    %1 = vector.load %arg2[%c0_1, %c0_2] : memref<128x128xbf16, #tpu.memory_space<vmem>>, vector<128x128xbf16>
    %cst = arith.constant dense<0.000000e+00> : vector<256x128xf32>
    %2 = tpu.matmul %0, %1, %cst {dimension_numbers = #tpu.dot_dimension_numbers<[1], [0], [0], [1], [0, 0, 1, 1], [], []>} : vector<256x128xbf16>, vector<128x128xbf16>, vector<256x128xf32> -> vector<256x128xf32>
    %c0_3 = arith.constant 0 : index
    %c0_4 = arith.constant 0 : index
    %3 = vector.load %arg3[%c0_3, %c0_4] : memref<1x128xf32, #tpu.memory_space<vmem>>, vector<1x128xf32>
    %4 = vector.broadcast %3 : vector<1x128xf32> to vector<256x128xf32>
    %5 = arith.addf %2, %4 : vector<256x128xf32>
    %6 = tpu.iota {dimensions = array<i32: 1>} : vector<1x128xi32>
    %c8_i32 = arith.constant 8 : i32
    %7 = vector.broadcast %c8_i32 : i32 to vector<1x128xi32>
    %8 = arith.cmpi slt, %6, %7 : vector<1x128xi32>
    %cst_5 = arith.constant -1.000000e+30 : f32
    %9 = vector.shape_cast %8 : vector<1x128xi1> to vector<1x128xi1>
    %10 = vector.broadcast %9 : vector<1x128xi1> to vector<256x128xi1>
    %11 = vector.broadcast %cst_5 : f32 to vector<256x128xf32>
    %12 = arith.select %10, %5, %11 : vector<256x128xi1>, vector<256x128xf32>
    %cst_6 = arith.constant dense<0xFF800000> : vector<256xf32>
    %13 = vector.multi_reduction <maximumf>, %12, %cst_6 [1] : vector<256x128xf32> to vector<256xf32>
    %14 = vector.shape_cast %13 : vector<256xf32> to vector<256x1xf32>
    %15 = vector.broadcast %14 : vector<256x1xf32> to vector<256x128xf32>
    %16 = arith.subf %12, %15 : vector<256x128xf32>
    %17 = math.exp %16 : vector<256x128xf32>
    %cst_7 = arith.constant 0.000000e+00 : f32
    %18 = vector.shape_cast %8 : vector<1x128xi1> to vector<1x128xi1>
    %19 = vector.broadcast %18 : vector<1x128xi1> to vector<256x128xi1>
    %20 = vector.broadcast %cst_7 : f32 to vector<256x128xf32>
    %21 = arith.select %19, %17, %20 : vector<256x128xi1>, vector<256x128xf32>
    %cst_8 = arith.constant dense<0.000000e+00> : vector<256xf32>
    %22 = vector.multi_reduction <add>, %21, %cst_8 [1] : vector<256x128xf32> to vector<256xf32>
    %23 = vector.shape_cast %22 : vector<256xf32> to vector<256x1xf32>
    %24 = math.log %23 : vector<256x1xf32>
    %25 = vector.broadcast %24 : vector<256x1xf32> to vector<256x128xf32>
    %26 = arith.subf %16, %25 : vector<256x128xf32>
    %c0_9 = arith.constant 0 : index
    %c0_10 = arith.constant 0 : index
    %27 = vector.load %arg4[%c0_9, %c0_10] : memref<256x128xf32, #tpu.memory_space<vmem>>, vector<256x128xf32>
    tpu.vector_store %arg4[%c0_9, %c0_10], %26 {strides = array<i32>} : memref<256x128xf32, #tpu.memory_space<vmem>>, vector<256x128xf32>,
    return
  }
  func.func @transform_0(%arg0: i32) -> (i32, i32) {
    %c0_i32 = arith.constant 0 : i32
    %c0_i32_0 = arith.constant 0 : i32
    return %arg0, %c0_i32 : i32, i32
  }
  func.func @transform_1(%arg0: i32) -> (i32, i32) {
    %c0_i32 = arith.constant 0 : i32
    %c0_i32_0 = arith.constant 0 : i32
    %c0_i32_1 = arith.constant 0 : i32
    return %c0_i32, %c0_i32_0 : i32, i32
  }
  func.func @transform_2(%arg0: i32) -> (i32, i32) {
    %c0_i32 = arith.constant 0 : i32
    %c0_i32_0 = arith.constant 0 : i32
    %c0_i32_1 = arith.constant 0 : i32
    return %c0_i32, %c0_i32_0 : i32, i32
  }
  func.func @transform_3(%arg0: i32) -> (i32, i32) {
    %c0_i32 = arith.constant 0 : i32
    %c0_i32_0 = arith.constant 0 : i32
    return %arg0, %c0_i32 : i32, i32
  }
}

module attributes {stable_mosaic.version = 11 : i64} {
  func.func @lstm_ln_chunk_kernel(%arg0: i32, %arg1: i32, %arg2: memref<8x16x128xbf16, #tpu.memory_space<vmem>>, %arg3: memref<128x512xbf16, #tpu.memory_space<vmem>>, %arg4: memref<128x512xbf16, #tpu.memory_space<vmem>>, %arg5: memref<1x512xf32, #tpu.memory_space<vmem>>, %arg6: memref<1x128xf32, #tpu.memory_space<vmem>>, %arg7: memref<1x128xf32, #tpu.memory_space<vmem>>, %arg8: memref<8x16x128xbf16, #tpu.memory_space<vmem>>, %arg9: memref<16x128xf32, #tpu.memory_space<vmem>>, %arg10: memref<16x128xf32, #tpu.memory_space<vmem>>, %arg11: memref<128x512xf32, #tpu.memory_space<vmem>>, %arg12: memref<16x128xf32, #tpu.memory_space<vmem>>, %arg13: memref<16x128xf32, #tpu.memory_space<vmem>>) attributes {dimension_semantics = [#tpu.dimension_semantics<parallel>, #tpu.dimension_semantics<arbitrary>], iteration_bounds = array<i64: 1, 2>, scalar_prefetch = 0 : i64, scratch_operands = 3 : i64, tpu.core_type = #tpu.core_type<tc>, window_params = [{transform_indices = @transform_0, window_bounds = array<i64: 8, 16, 128>}, {pipeline_mode = #tpu.pipeline_mode<synchronous>, transform_indices = @transform_1, window_bounds = array<i64: 128, 512>}, {pipeline_mode = #tpu.pipeline_mode<synchronous>, transform_indices = @transform_2, window_bounds = array<i64: 128, 512>}, {pipeline_mode = #tpu.pipeline_mode<synchronous>, transform_indices = @transform_3, window_bounds = array<i64: 1, 512>}, {pipeline_mode = #tpu.pipeline_mode<synchronous>, transform_indices = @transform_4, window_bounds = array<i64: 1, 128>}, {pipeline_mode = #tpu.pipeline_mode<synchronous>, transform_indices = @transform_5, window_bounds = array<i64: 1, 128>}, {transform_indices = @transform_6, window_bounds = array<i64: 8, 16, 128>}, {transform_indices = @transform_7, window_bounds = array<i64: 16, 128>}, {transform_indices = @transform_8, window_bounds = array<i64: 16, 128>}]} {
    %c0 = arith.constant 0 : index
    %c0_0 = arith.constant 0 : index
    %c0_1 = arith.constant 0 : index
    %0 = vector.load %arg2[%c0, %c0_0, %c0_1] : memref<8x16x128xbf16, #tpu.memory_space<vmem>>, vector<8x16x128xbf16>
    %1 = vector.shape_cast %0 : vector<8x16x128xbf16> to vector<128x128xbf16>
    %c0_2 = arith.constant 0 : index
    %c0_3 = arith.constant 0 : index
    %2 = vector.load %arg3[%c0_2, %c0_3] : memref<128x512xbf16, #tpu.memory_space<vmem>>, vector<128x512xbf16>
    %cst = arith.constant dense<0.000000e+00> : vector<128x512xf32>
    %3 = tpu.matmul %1, %2, %cst {dimension_numbers = #tpu.dot_dimension_numbers<[1], [0], [0], [1], [0, 0, 1, 1], [], []>} : vector<128x128xbf16>, vector<128x512xbf16>, vector<128x512xf32> -> vector<128x512xf32>
    %c0_4 = arith.constant 0 : index
    %c0_5 = arith.constant 0 : index
    %4 = vector.load %arg5[%c0_4, %c0_5] : memref<1x512xf32, #tpu.memory_space<vmem>>, vector<1x512xf32>
    %5 = vector.broadcast %4 : vector<1x512xf32> to vector<128x512xf32>
    %6 = arith.addf %3, %5 : vector<128x512xf32>
    %c0_6 = arith.constant 0 : index
    %c0_7 = arith.constant 0 : index
    %7 = vector.load %arg11[%c0_6, %c0_7] : memref<128x512xf32, #tpu.memory_space<vmem>>, vector<128x512xf32>
    tpu.vector_store %arg11[%c0_6, %c0_7], %6 {strides = array<i32>} : memref<128x512xf32, #tpu.memory_space<vmem>>, vector<128x512xf32>,
    %c0_i32 = arith.constant 0 : i32
    %8 = arith.cmpi eq, %arg1, %c0_i32 : i32
    %9 = arith.extui %8 : i1 to i32
    %c0_i32_8 = arith.constant 0 : i32
    %10 = arith.cmpi ne, %9, %c0_i32_8 : i32
    scf.if %10 {
      %cst_124 = arith.constant 0.000000e+00 : f32
      %530 = vector.broadcast %cst_124 : f32 to vector<16x128xf32>
      %c0_125 = arith.constant 0 : index
      %c0_126 = arith.constant 0 : index
      %531 = vector.load %arg12[%c0_125, %c0_126] : memref<16x128xf32, #tpu.memory_space<vmem>>, vector<16x128xf32>
      tpu.vector_store %arg12[%c0_125, %c0_126], %530 {strides = array<i32>} : memref<16x128xf32, #tpu.memory_space<vmem>>, vector<16x128xf32>,
      %cst_127 = arith.constant 0.000000e+00 : f32
      %532 = vector.broadcast %cst_127 : f32 to vector<16x128xf32>
      %c0_128 = arith.constant 0 : index
      %c0_129 = arith.constant 0 : index
      %533 = vector.load %arg13[%c0_128, %c0_129] : memref<16x128xf32, #tpu.memory_space<vmem>>, vector<16x128xf32>
      tpu.vector_store %arg13[%c0_128, %c0_129], %532 {strides = array<i32>} : memref<16x128xf32, #tpu.memory_space<vmem>>, vector<16x128xf32>,
    } else {
    }
    %c0_9 = arith.constant 0 : index
    %c0_10 = arith.constant 0 : index
    %11 = vector.load %arg4[%c0_9, %c0_10] : memref<128x512xbf16, #tpu.memory_space<vmem>>, vector<128x512xbf16>
    %c0_11 = arith.constant 0 : index
    %c0_12 = arith.constant 0 : index
    %12 = vector.load %arg6[%c0_11, %c0_12] : memref<1x128xf32, #tpu.memory_space<vmem>>, vector<1x128xf32>
    %c0_13 = arith.constant 0 : index
    %c0_14 = arith.constant 0 : index
    %13 = vector.load %arg7[%c0_13, %c0_14] : memref<1x128xf32, #tpu.memory_space<vmem>>, vector<1x128xf32>
    %14 = tpu.iota {dimensions = array<i32: 1>} : vector<1x128xi32>
    %c32_i32 = arith.constant 32 : i32
    %15 = vector.broadcast %c32_i32 : i32 to vector<1x128xi32>
    %16 = arith.cmpi slt, %14, %15 : vector<1x128xi32>
    %17 = arith.extui %16 : vector<1x128xi1> to vector<1x128xi32>
    %18 = arith.sitofp %17 : vector<1x128xi32> to vector<1x128xf32>
    %c8_i32 = arith.constant 8 : i32
    %19 = arith.muli %arg1, %c8_i32 : i32
    %c0_15 = arith.constant 0 : index
    %c0_16 = arith.constant 0 : index
    %20 = vector.load %arg12[%c0_15, %c0_16] : memref<16x128xf32, #tpu.memory_space<vmem>>, vector<16x128xf32>
    %c0_17 = arith.constant 0 : index
    %c0_18 = arith.constant 0 : index
    %21 = vector.load %arg13[%c0_17, %c0_18] : memref<16x128xf32, #tpu.memory_space<vmem>>, vector<16x128xf32>
    %cst_19 = arith.constant 3.125000e-02 : f32
    %c0_i32_20 = arith.constant 0 : i32
    %c16_i32 = arith.constant 16 : i32
    %22 = arith.muli %c0_i32_20, %c16_i32 : i32
    %23 = tpu.assume_multiple %22, 16 : i32
    %24 = arith.index_cast %23 : i32 to index
    %c0_21 = arith.constant 0 : index
    %25 = vector.load %arg11[%24, %c0_21] : memref<128x512xf32, #tpu.memory_space<vmem>>, vector<16x512xf32>
    %26 = arith.truncf %20 : vector<16x128xf32> to vector<16x128xbf16>
    %cst_22 = arith.constant dense<0.000000e+00> : vector<16x512xf32>
    %27 = tpu.matmul %26, %11, %cst_22 {dimension_numbers = #tpu.dot_dimension_numbers<[1], [0], [0], [1], [0, 0, 1, 1], [], []>} : vector<16x128xbf16>, vector<128x512xbf16>, vector<16x512xf32> -> vector<16x512xf32>
    %28 = arith.addf %25, %27 : vector<16x512xf32>
    %29 = vector.extract_strided_slice %28 {offsets = [0, 0], sizes = [16, 128], strides = [1, 1]} : vector<16x512xf32> to vector<16x128xf32>
    %30 = arith.negf %29 : vector<16x128xf32>
    %31 = math.exp %30 : vector<16x128xf32>
    %cst_23 = arith.constant 1.000000e+00 : f32
    %32 = vector.broadcast %cst_23 : f32 to vector<16x128xf32>
    %33 = arith.addf %32, %31 : vector<16x128xf32>
    %34 = arith.divf %32, %33 : vector<16x128xf32>
    %35 = vector.extract_strided_slice %28 {offsets = [0, 128], sizes = [16, 128], strides = [1, 1]} : vector<16x512xf32> to vector<16x128xf32>
    %36 = arith.negf %35 : vector<16x128xf32>
    %37 = math.exp %36 : vector<16x128xf32>
    %cst_24 = arith.constant 1.000000e+00 : f32
    %38 = vector.broadcast %cst_24 : f32 to vector<16x128xf32>
    %39 = arith.addf %38, %37 : vector<16x128xf32>
    %40 = arith.divf %38, %39 : vector<16x128xf32>
    %41 = vector.extract_strided_slice %28 {offsets = [0, 256], sizes = [16, 128], strides = [1, 1]} : vector<16x512xf32> to vector<16x128xf32>
    %42 = math.tanh %41 : vector<16x128xf32>
    %43 = vector.extract_strided_slice %28 {offsets = [0, 384], sizes = [16, 128], strides = [1, 1]} : vector<16x512xf32> to vector<16x128xf32>
    %44 = arith.negf %43 : vector<16x128xf32>
    %45 = math.exp %44 : vector<16x128xf32>
    %cst_25 = arith.constant 1.000000e+00 : f32
    %46 = vector.broadcast %cst_25 : f32 to vector<16x128xf32>
    %47 = arith.addf %46, %45 : vector<16x128xf32>
    %48 = arith.divf %46, %47 : vector<16x128xf32>
    %49 = arith.mulf %40, %21 : vector<16x128xf32>
    %50 = arith.mulf %34, %42 : vector<16x128xf32>
    %51 = arith.addf %49, %50 : vector<16x128xf32>
    %52 = math.tanh %51 : vector<16x128xf32>
    %53 = arith.mulf %48, %52 : vector<16x128xf32>
    %54 = arith.addi %19, %c0_i32_20 : i32
    %c11_i32 = arith.constant 11 : i32
    %55 = arith.cmpi slt, %54, %c11_i32 : i32
    %56 = arith.select %55, %51, %21 : vector<16x128xf32>
    %57 = arith.select %55, %53, %20 : vector<16x128xf32>
    %cst_26 = arith.constant dense<0.000000e+00> : vector<16xf32>
    %58 = vector.multi_reduction <add>, %57, %cst_26 [1] : vector<16x128xf32> to vector<16xf32>
    %59 = vector.shape_cast %58 : vector<16xf32> to vector<16x1xf32>
    %60 = vector.broadcast %cst_19 : f32 to vector<16x1xf32>
    %61 = arith.mulf %59, %60 : vector<16x1xf32>
    %62 = vector.broadcast %61 : vector<16x1xf32> to vector<16x128xf32>
    %63 = arith.subf %57, %62 : vector<16x128xf32>
    %64 = vector.broadcast %18 : vector<1x128xf32> to vector<16x128xf32>
    %65 = arith.mulf %63, %64 : vector<16x128xf32>
    %66 = arith.mulf %65, %65 : vector<16x128xf32>
    %cst_27 = arith.constant dense<0.000000e+00> : vector<16xf32>
    %67 = vector.multi_reduction <add>, %66, %cst_27 [1] : vector<16x128xf32> to vector<16xf32>
    %68 = vector.shape_cast %67 : vector<16xf32> to vector<16x1xf32>
    %69 = vector.broadcast %cst_19 : f32 to vector<16x1xf32>
    %70 = arith.mulf %68, %69 : vector<16x1xf32>
    %cst_28 = arith.constant 9.99999974E-6 : f32
    %71 = vector.broadcast %cst_28 : f32 to vector<16x1xf32>
    %72 = arith.addf %70, %71 : vector<16x1xf32>
    %73 = math.rsqrt %72 : vector<16x1xf32>
    %74 = vector.broadcast %73 : vector<16x1xf32> to vector<16x128xf32>
    %75 = arith.mulf %65, %74 : vector<16x128xf32>
    %76 = vector.broadcast %12 : vector<1x128xf32> to vector<16x128xf32>
    %77 = arith.mulf %75, %76 : vector<16x128xf32>
    %78 = vector.broadcast %13 : vector<1x128xf32> to vector<16x128xf32>
    %79 = arith.addf %77, %78 : vector<16x128xf32>
    %80 = arith.truncf %79 : vector<16x128xf32> to vector<16x128xbf16>
    %81 = arith.index_cast %c0_i32_20 : i32 to index
    %c0_29 = arith.constant 0 : index
    %c0_30 = arith.constant 0 : index
    %82 = vector.load %arg8[%81, %c0_29, %c0_30] : memref<8x16x128xbf16, #tpu.memory_space<vmem>>, vector<1x16x128xbf16>
    %83 = vector.shape_cast %82 : vector<1x16x128xbf16> to vector<16x128xbf16>
    %84 = vector.shape_cast %80 : vector<16x128xbf16> to vector<1x16x128xbf16>
    tpu.vector_store %arg8[%81, %c0_29, %c0_30], %84 {strides = array<i32>} : memref<8x16x128xbf16, #tpu.memory_space<vmem>>, vector<1x16x128xbf16>,
    %c1_i32 = arith.constant 1 : i32
    %c16_i32_31 = arith.constant 16 : i32
    %85 = arith.muli %c1_i32, %c16_i32_31 : i32
    %86 = tpu.assume_multiple %85, 16 : i32
    %87 = arith.index_cast %86 : i32 to index
    %c0_32 = arith.constant 0 : index
    %88 = vector.load %arg11[%87, %c0_32] : memref<128x512xf32, #tpu.memory_space<vmem>>, vector<16x512xf32>
    %89 = arith.truncf %57 : vector<16x128xf32> to vector<16x128xbf16>
    %cst_33 = arith.constant dense<0.000000e+00> : vector<16x512xf32>
    %90 = tpu.matmul %89, %11, %cst_33 {dimension_numbers = #tpu.dot_dimension_numbers<[1], [0], [0], [1], [0, 0, 1, 1], [], []>} : vector<16x128xbf16>, vector<128x512xbf16>, vector<16x512xf32> -> vector<16x512xf32>
    %91 = arith.addf %88, %90 : vector<16x512xf32>
    %92 = vector.extract_strided_slice %91 {offsets = [0, 0], sizes = [16, 128], strides = [1, 1]} : vector<16x512xf32> to vector<16x128xf32>
    %93 = arith.negf %92 : vector<16x128xf32>
    %94 = math.exp %93 : vector<16x128xf32>
    %cst_34 = arith.constant 1.000000e+00 : f32
    %95 = vector.broadcast %cst_34 : f32 to vector<16x128xf32>
    %96 = arith.addf %95, %94 : vector<16x128xf32>
    %97 = arith.divf %95, %96 : vector<16x128xf32>
    %98 = vector.extract_strided_slice %91 {offsets = [0, 128], sizes = [16, 128], strides = [1, 1]} : vector<16x512xf32> to vector<16x128xf32>
    %99 = arith.negf %98 : vector<16x128xf32>
    %100 = math.exp %99 : vector<16x128xf32>
    %cst_35 = arith.constant 1.000000e+00 : f32
    %101 = vector.broadcast %cst_35 : f32 to vector<16x128xf32>
    %102 = arith.addf %101, %100 : vector<16x128xf32>
    %103 = arith.divf %101, %102 : vector<16x128xf32>
    %104 = vector.extract_strided_slice %91 {offsets = [0, 256], sizes = [16, 128], strides = [1, 1]} : vector<16x512xf32> to vector<16x128xf32>
    %105 = math.tanh %104 : vector<16x128xf32>
    %106 = vector.extract_strided_slice %91 {offsets = [0, 384], sizes = [16, 128], strides = [1, 1]} : vector<16x512xf32> to vector<16x128xf32>
    %107 = arith.negf %106 : vector<16x128xf32>
    %108 = math.exp %107 : vector<16x128xf32>
    %cst_36 = arith.constant 1.000000e+00 : f32
    %109 = vector.broadcast %cst_36 : f32 to vector<16x128xf32>
    %110 = arith.addf %109, %108 : vector<16x128xf32>
    %111 = arith.divf %109, %110 : vector<16x128xf32>
    %112 = arith.mulf %103, %56 : vector<16x128xf32>
    %113 = arith.mulf %97, %105 : vector<16x128xf32>
    %114 = arith.addf %112, %113 : vector<16x128xf32>
    %115 = math.tanh %114 : vector<16x128xf32>
    %116 = arith.mulf %111, %115 : vector<16x128xf32>
    %117 = arith.addi %19, %c1_i32 : i32
    %c11_i32_37 = arith.constant 11 : i32
    %118 = arith.cmpi slt, %117, %c11_i32_37 : i32
    %119 = arith.select %118, %114, %56 : vector<16x128xf32>
    %120 = arith.select %118, %116, %57 : vector<16x128xf32>
    %cst_38 = arith.constant dense<0.000000e+00> : vector<16xf32>
    %121 = vector.multi_reduction <add>, %120, %cst_38 [1] : vector<16x128xf32> to vector<16xf32>
    %122 = vector.shape_cast %121 : vector<16xf32> to vector<16x1xf32>
    %123 = vector.broadcast %cst_19 : f32 to vector<16x1xf32>
    %124 = arith.mulf %122, %123 : vector<16x1xf32>
    %125 = vector.broadcast %124 : vector<16x1xf32> to vector<16x128xf32>
    %126 = arith.subf %120, %125 : vector<16x128xf32>
    %127 = vector.broadcast %18 : vector<1x128xf32> to vector<16x128xf32>
    %128 = arith.mulf %126, %127 : vector<16x128xf32>
    %129 = arith.mulf %128, %128 : vector<16x128xf32>
    %cst_39 = arith.constant dense<0.000000e+00> : vector<16xf32>
    %130 = vector.multi_reduction <add>, %129, %cst_39 [1] : vector<16x128xf32> to vector<16xf32>
    %131 = vector.shape_cast %130 : vector<16xf32> to vector<16x1xf32>
    %132 = vector.broadcast %cst_19 : f32 to vector<16x1xf32>
    %133 = arith.mulf %131, %132 : vector<16x1xf32>
    %cst_40 = arith.constant 9.99999974E-6 : f32
    %134 = vector.broadcast %cst_40 : f32 to vector<16x1xf32>
    %135 = arith.addf %133, %134 : vector<16x1xf32>
    %136 = math.rsqrt %135 : vector<16x1xf32>
    %137 = vector.broadcast %136 : vector<16x1xf32> to vector<16x128xf32>
    %138 = arith.mulf %128, %137 : vector<16x128xf32>
    %139 = vector.broadcast %12 : vector<1x128xf32> to vector<16x128xf32>
    %140 = arith.mulf %138, %139 : vector<16x128xf32>
    %141 = vector.broadcast %13 : vector<1x128xf32> to vector<16x128xf32>
    %142 = arith.addf %140, %141 : vector<16x128xf32>
    %143 = arith.truncf %142 : vector<16x128xf32> to vector<16x128xbf16>
    %144 = arith.index_cast %c1_i32 : i32 to index
    %c0_41 = arith.constant 0 : index
    %c0_42 = arith.constant 0 : index
    %145 = vector.load %arg8[%144, %c0_41, %c0_42] : memref<8x16x128xbf16, #tpu.memory_space<vmem>>, vector<1x16x128xbf16>
    %146 = vector.shape_cast %145 : vector<1x16x128xbf16> to vector<16x128xbf16>
    %147 = vector.shape_cast %143 : vector<16x128xbf16> to vector<1x16x128xbf16>
    tpu.vector_store %arg8[%144, %c0_41, %c0_42], %147 {strides = array<i32>} : memref<8x16x128xbf16, #tpu.memory_space<vmem>>, vector<1x16x128xbf16>,
    %c2_i32 = arith.constant 2 : i32
    %c16_i32_43 = arith.constant 16 : i32
    %148 = arith.muli %c2_i32, %c16_i32_43 : i32
    %149 = tpu.assume_multiple %148, 16 : i32
    %150 = arith.index_cast %149 : i32 to index
    %c0_44 = arith.constant 0 : index
    %151 = vector.load %arg11[%150, %c0_44] : memref<128x512xf32, #tpu.memory_space<vmem>>, vector<16x512xf32>
    %152 = arith.truncf %120 : vector<16x128xf32> to vector<16x128xbf16>
    %cst_45 = arith.constant dense<0.000000e+00> : vector<16x512xf32>
    %153 = tpu.matmul %152, %11, %cst_45 {dimension_numbers = #tpu.dot_dimension_numbers<[1], [0], [0], [1], [0, 0, 1, 1], [], []>} : vector<16x128xbf16>, vector<128x512xbf16>, vector<16x512xf32> -> vector<16x512xf32>
    %154 = arith.addf %151, %153 : vector<16x512xf32>
    %155 = vector.extract_strided_slice %154 {offsets = [0, 0], sizes = [16, 128], strides = [1, 1]} : vector<16x512xf32> to vector<16x128xf32>
    %156 = arith.negf %155 : vector<16x128xf32>
    %157 = math.exp %156 : vector<16x128xf32>
    %cst_46 = arith.constant 1.000000e+00 : f32
    %158 = vector.broadcast %cst_46 : f32 to vector<16x128xf32>
    %159 = arith.addf %158, %157 : vector<16x128xf32>
    %160 = arith.divf %158, %159 : vector<16x128xf32>
    %161 = vector.extract_strided_slice %154 {offsets = [0, 128], sizes = [16, 128], strides = [1, 1]} : vector<16x512xf32> to vector<16x128xf32>
    %162 = arith.negf %161 : vector<16x128xf32>
    %163 = math.exp %162 : vector<16x128xf32>
    %cst_47 = arith.constant 1.000000e+00 : f32
    %164 = vector.broadcast %cst_47 : f32 to vector<16x128xf32>
    %165 = arith.addf %164, %163 : vector<16x128xf32>
    %166 = arith.divf %164, %165 : vector<16x128xf32>
    %167 = vector.extract_strided_slice %154 {offsets = [0, 256], sizes = [16, 128], strides = [1, 1]} : vector<16x512xf32> to vector<16x128xf32>
    %168 = math.tanh %167 : vector<16x128xf32>
    %169 = vector.extract_strided_slice %154 {offsets = [0, 384], sizes = [16, 128], strides = [1, 1]} : vector<16x512xf32> to vector<16x128xf32>
    %170 = arith.negf %169 : vector<16x128xf32>
    %171 = math.exp %170 : vector<16x128xf32>
    %cst_48 = arith.constant 1.000000e+00 : f32
    %172 = vector.broadcast %cst_48 : f32 to vector<16x128xf32>
    %173 = arith.addf %172, %171 : vector<16x128xf32>
    %174 = arith.divf %172, %173 : vector<16x128xf32>
    %175 = arith.mulf %166, %119 : vector<16x128xf32>
    %176 = arith.mulf %160, %168 : vector<16x128xf32>
    %177 = arith.addf %175, %176 : vector<16x128xf32>
    %178 = math.tanh %177 : vector<16x128xf32>
    %179 = arith.mulf %174, %178 : vector<16x128xf32>
    %180 = arith.addi %19, %c2_i32 : i32
    %c11_i32_49 = arith.constant 11 : i32
    %181 = arith.cmpi slt, %180, %c11_i32_49 : i32
    %182 = arith.select %181, %177, %119 : vector<16x128xf32>
    %183 = arith.select %181, %179, %120 : vector<16x128xf32>
    %cst_50 = arith.constant dense<0.000000e+00> : vector<16xf32>
    %184 = vector.multi_reduction <add>, %183, %cst_50 [1] : vector<16x128xf32> to vector<16xf32>
    %185 = vector.shape_cast %184 : vector<16xf32> to vector<16x1xf32>
    %186 = vector.broadcast %cst_19 : f32 to vector<16x1xf32>
    %187 = arith.mulf %185, %186 : vector<16x1xf32>
    %188 = vector.broadcast %187 : vector<16x1xf32> to vector<16x128xf32>
    %189 = arith.subf %183, %188 : vector<16x128xf32>
    %190 = vector.broadcast %18 : vector<1x128xf32> to vector<16x128xf32>
    %191 = arith.mulf %189, %190 : vector<16x128xf32>
    %192 = arith.mulf %191, %191 : vector<16x128xf32>
    %cst_51 = arith.constant dense<0.000000e+00> : vector<16xf32>
    %193 = vector.multi_reduction <add>, %192, %cst_51 [1] : vector<16x128xf32> to vector<16xf32>
    %194 = vector.shape_cast %193 : vector<16xf32> to vector<16x1xf32>
    %195 = vector.broadcast %cst_19 : f32 to vector<16x1xf32>
    %196 = arith.mulf %194, %195 : vector<16x1xf32>
    %cst_52 = arith.constant 9.99999974E-6 : f32
    %197 = vector.broadcast %cst_52 : f32 to vector<16x1xf32>
    %198 = arith.addf %196, %197 : vector<16x1xf32>
    %199 = math.rsqrt %198 : vector<16x1xf32>
    %200 = vector.broadcast %199 : vector<16x1xf32> to vector<16x128xf32>
    %201 = arith.mulf %191, %200 : vector<16x128xf32>
    %202 = vector.broadcast %12 : vector<1x128xf32> to vector<16x128xf32>
    %203 = arith.mulf %201, %202 : vector<16x128xf32>
    %204 = vector.broadcast %13 : vector<1x128xf32> to vector<16x128xf32>
    %205 = arith.addf %203, %204 : vector<16x128xf32>
    %206 = arith.truncf %205 : vector<16x128xf32> to vector<16x128xbf16>
    %207 = arith.index_cast %c2_i32 : i32 to index
    %c0_53 = arith.constant 0 : index
    %c0_54 = arith.constant 0 : index
    %208 = vector.load %arg8[%207, %c0_53, %c0_54] : memref<8x16x128xbf16, #tpu.memory_space<vmem>>, vector<1x16x128xbf16>
    %209 = vector.shape_cast %208 : vector<1x16x128xbf16> to vector<16x128xbf16>
    %210 = vector.shape_cast %206 : vector<16x128xbf16> to vector<1x16x128xbf16>
    tpu.vector_store %arg8[%207, %c0_53, %c0_54], %210 {strides = array<i32>} : memref<8x16x128xbf16, #tpu.memory_space<vmem>>, vector<1x16x128xbf16>,
    %c3_i32 = arith.constant 3 : i32
    %c16_i32_55 = arith.constant 16 : i32
    %211 = arith.muli %c3_i32, %c16_i32_55 : i32
    %212 = tpu.assume_multiple %211, 16 : i32
    %213 = arith.index_cast %212 : i32 to index
    %c0_56 = arith.constant 0 : index
    %214 = vector.load %arg11[%213, %c0_56] : memref<128x512xf32, #tpu.memory_space<vmem>>, vector<16x512xf32>
    %215 = arith.truncf %183 : vector<16x128xf32> to vector<16x128xbf16>
    %cst_57 = arith.constant dense<0.000000e+00> : vector<16x512xf32>
    %216 = tpu.matmul %215, %11, %cst_57 {dimension_numbers = #tpu.dot_dimension_numbers<[1], [0], [0], [1], [0, 0, 1, 1], [], []>} : vector<16x128xbf16>, vector<128x512xbf16>, vector<16x512xf32> -> vector<16x512xf32>
    %217 = arith.addf %214, %216 : vector<16x512xf32>
    %218 = vector.extract_strided_slice %217 {offsets = [0, 0], sizes = [16, 128], strides = [1, 1]} : vector<16x512xf32> to vector<16x128xf32>
    %219 = arith.negf %218 : vector<16x128xf32>
    %220 = math.exp %219 : vector<16x128xf32>
    %cst_58 = arith.constant 1.000000e+00 : f32
    %221 = vector.broadcast %cst_58 : f32 to vector<16x128xf32>
    %222 = arith.addf %221, %220 : vector<16x128xf32>
    %223 = arith.divf %221, %222 : vector<16x128xf32>
    %224 = vector.extract_strided_slice %217 {offsets = [0, 128], sizes = [16, 128], strides = [1, 1]} : vector<16x512xf32> to vector<16x128xf32>
    %225 = arith.negf %224 : vector<16x128xf32>
    %226 = math.exp %225 : vector<16x128xf32>
    %cst_59 = arith.constant 1.000000e+00 : f32
    %227 = vector.broadcast %cst_59 : f32 to vector<16x128xf32>
    %228 = arith.addf %227, %226 : vector<16x128xf32>
    %229 = arith.divf %227, %228 : vector<16x128xf32>
    %230 = vector.extract_strided_slice %217 {offsets = [0, 256], sizes = [16, 128], strides = [1, 1]} : vector<16x512xf32> to vector<16x128xf32>
    %231 = math.tanh %230 : vector<16x128xf32>
    %232 = vector.extract_strided_slice %217 {offsets = [0, 384], sizes = [16, 128], strides = [1, 1]} : vector<16x512xf32> to vector<16x128xf32>
    %233 = arith.negf %232 : vector<16x128xf32>
    %234 = math.exp %233 : vector<16x128xf32>
    %cst_60 = arith.constant 1.000000e+00 : f32
    %235 = vector.broadcast %cst_60 : f32 to vector<16x128xf32>
    %236 = arith.addf %235, %234 : vector<16x128xf32>
    %237 = arith.divf %235, %236 : vector<16x128xf32>
    %238 = arith.mulf %229, %182 : vector<16x128xf32>
    %239 = arith.mulf %223, %231 : vector<16x128xf32>
    %240 = arith.addf %238, %239 : vector<16x128xf32>
    %241 = math.tanh %240 : vector<16x128xf32>
    %242 = arith.mulf %237, %241 : vector<16x128xf32>
    %243 = arith.addi %19, %c3_i32 : i32
    %c11_i32_61 = arith.constant 11 : i32
    %244 = arith.cmpi slt, %243, %c11_i32_61 : i32
    %245 = arith.select %244, %240, %182 : vector<16x128xf32>
    %246 = arith.select %244, %242, %183 : vector<16x128xf32>
    %cst_62 = arith.constant dense<0.000000e+00> : vector<16xf32>
    %247 = vector.multi_reduction <add>, %246, %cst_62 [1] : vector<16x128xf32> to vector<16xf32>
    %248 = vector.shape_cast %247 : vector<16xf32> to vector<16x1xf32>
    %249 = vector.broadcast %cst_19 : f32 to vector<16x1xf32>
    %250 = arith.mulf %248, %249 : vector<16x1xf32>
    %251 = vector.broadcast %250 : vector<16x1xf32> to vector<16x128xf32>
    %252 = arith.subf %246, %251 : vector<16x128xf32>
    %253 = vector.broadcast %18 : vector<1x128xf32> to vector<16x128xf32>
    %254 = arith.mulf %252, %253 : vector<16x128xf32>
    %255 = arith.mulf %254, %254 : vector<16x128xf32>
    %cst_63 = arith.constant dense<0.000000e+00> : vector<16xf32>
    %256 = vector.multi_reduction <add>, %255, %cst_63 [1] : vector<16x128xf32> to vector<16xf32>
    %257 = vector.shape_cast %256 : vector<16xf32> to vector<16x1xf32>
    %258 = vector.broadcast %cst_19 : f32 to vector<16x1xf32>
    %259 = arith.mulf %257, %258 : vector<16x1xf32>
    %cst_64 = arith.constant 9.99999974E-6 : f32
    %260 = vector.broadcast %cst_64 : f32 to vector<16x1xf32>
    %261 = arith.addf %259, %260 : vector<16x1xf32>
    %262 = math.rsqrt %261 : vector<16x1xf32>
    %263 = vector.broadcast %262 : vector<16x1xf32> to vector<16x128xf32>
    %264 = arith.mulf %254, %263 : vector<16x128xf32>
    %265 = vector.broadcast %12 : vector<1x128xf32> to vector<16x128xf32>
    %266 = arith.mulf %264, %265 : vector<16x128xf32>
    %267 = vector.broadcast %13 : vector<1x128xf32> to vector<16x128xf32>
    %268 = arith.addf %266, %267 : vector<16x128xf32>
    %269 = arith.truncf %268 : vector<16x128xf32> to vector<16x128xbf16>
    %270 = arith.index_cast %c3_i32 : i32 to index
    %c0_65 = arith.constant 0 : index
    %c0_66 = arith.constant 0 : index
    %271 = vector.load %arg8[%270, %c0_65, %c0_66] : memref<8x16x128xbf16, #tpu.memory_space<vmem>>, vector<1x16x128xbf16>
    %272 = vector.shape_cast %271 : vector<1x16x128xbf16> to vector<16x128xbf16>
    %273 = vector.shape_cast %269 : vector<16x128xbf16> to vector<1x16x128xbf16>
    tpu.vector_store %arg8[%270, %c0_65, %c0_66], %273 {strides = array<i32>} : memref<8x16x128xbf16, #tpu.memory_space<vmem>>, vector<1x16x128xbf16>,
    %c4_i32 = arith.constant 4 : i32
    %c16_i32_67 = arith.constant 16 : i32
    %274 = arith.muli %c4_i32, %c16_i32_67 : i32
    %275 = tpu.assume_multiple %274, 16 : i32
    %276 = arith.index_cast %275 : i32 to index
    %c0_68 = arith.constant 0 : index
    %277 = vector.load %arg11[%276, %c0_68] : memref<128x512xf32, #tpu.memory_space<vmem>>, vector<16x512xf32>
    %278 = arith.truncf %246 : vector<16x128xf32> to vector<16x128xbf16>
    %cst_69 = arith.constant dense<0.000000e+00> : vector<16x512xf32>
    %279 = tpu.matmul %278, %11, %cst_69 {dimension_numbers = #tpu.dot_dimension_numbers<[1], [0], [0], [1], [0, 0, 1, 1], [], []>} : vector<16x128xbf16>, vector<128x512xbf16>, vector<16x512xf32> -> vector<16x512xf32>
    %280 = arith.addf %277, %279 : vector<16x512xf32>
    %281 = vector.extract_strided_slice %280 {offsets = [0, 0], sizes = [16, 128], strides = [1, 1]} : vector<16x512xf32> to vector<16x128xf32>
    %282 = arith.negf %281 : vector<16x128xf32>
    %283 = math.exp %282 : vector<16x128xf32>
    %cst_70 = arith.constant 1.000000e+00 : f32
    %284 = vector.broadcast %cst_70 : f32 to vector<16x128xf32>
    %285 = arith.addf %284, %283 : vector<16x128xf32>
    %286 = arith.divf %284, %285 : vector<16x128xf32>
    %287 = vector.extract_strided_slice %280 {offsets = [0, 128], sizes = [16, 128], strides = [1, 1]} : vector<16x512xf32> to vector<16x128xf32>
    %288 = arith.negf %287 : vector<16x128xf32>
    %289 = math.exp %288 : vector<16x128xf32>
    %cst_71 = arith.constant 1.000000e+00 : f32
    %290 = vector.broadcast %cst_71 : f32 to vector<16x128xf32>
    %291 = arith.addf %290, %289 : vector<16x128xf32>
    %292 = arith.divf %290, %291 : vector<16x128xf32>
    %293 = vector.extract_strided_slice %280 {offsets = [0, 256], sizes = [16, 128], strides = [1, 1]} : vector<16x512xf32> to vector<16x128xf32>
    %294 = math.tanh %293 : vector<16x128xf32>
    %295 = vector.extract_strided_slice %280 {offsets = [0, 384], sizes = [16, 128], strides = [1, 1]} : vector<16x512xf32> to vector<16x128xf32>
    %296 = arith.negf %295 : vector<16x128xf32>
    %297 = math.exp %296 : vector<16x128xf32>
    %cst_72 = arith.constant 1.000000e+00 : f32
    %298 = vector.broadcast %cst_72 : f32 to vector<16x128xf32>
    %299 = arith.addf %298, %297 : vector<16x128xf32>
    %300 = arith.divf %298, %299 : vector<16x128xf32>
    %301 = arith.mulf %292, %245 : vector<16x128xf32>
    %302 = arith.mulf %286, %294 : vector<16x128xf32>
    %303 = arith.addf %301, %302 : vector<16x128xf32>
    %304 = math.tanh %303 : vector<16x128xf32>
    %305 = arith.mulf %300, %304 : vector<16x128xf32>
    %306 = arith.addi %19, %c4_i32 : i32
    %c11_i32_73 = arith.constant 11 : i32
    %307 = arith.cmpi slt, %306, %c11_i32_73 : i32
    %308 = arith.select %307, %303, %245 : vector<16x128xf32>
    %309 = arith.select %307, %305, %246 : vector<16x128xf32>
    %cst_74 = arith.constant dense<0.000000e+00> : vector<16xf32>
    %310 = vector.multi_reduction <add>, %309, %cst_74 [1] : vector<16x128xf32> to vector<16xf32>
    %311 = vector.shape_cast %310 : vector<16xf32> to vector<16x1xf32>
    %312 = vector.broadcast %cst_19 : f32 to vector<16x1xf32>
    %313 = arith.mulf %311, %312 : vector<16x1xf32>
    %314 = vector.broadcast %313 : vector<16x1xf32> to vector<16x128xf32>
    %315 = arith.subf %309, %314 : vector<16x128xf32>
    %316 = vector.broadcast %18 : vector<1x128xf32> to vector<16x128xf32>
    %317 = arith.mulf %315, %316 : vector<16x128xf32>
    %318 = arith.mulf %317, %317 : vector<16x128xf32>
    %cst_75 = arith.constant dense<0.000000e+00> : vector<16xf32>
    %319 = vector.multi_reduction <add>, %318, %cst_75 [1] : vector<16x128xf32> to vector<16xf32>
    %320 = vector.shape_cast %319 : vector<16xf32> to vector<16x1xf32>
    %321 = vector.broadcast %cst_19 : f32 to vector<16x1xf32>
    %322 = arith.mulf %320, %321 : vector<16x1xf32>
    %cst_76 = arith.constant 9.99999974E-6 : f32
    %323 = vector.broadcast %cst_76 : f32 to vector<16x1xf32>
    %324 = arith.addf %322, %323 : vector<16x1xf32>
    %325 = math.rsqrt %324 : vector<16x1xf32>
    %326 = vector.broadcast %325 : vector<16x1xf32> to vector<16x128xf32>
    %327 = arith.mulf %317, %326 : vector<16x128xf32>
    %328 = vector.broadcast %12 : vector<1x128xf32> to vector<16x128xf32>
    %329 = arith.mulf %327, %328 : vector<16x128xf32>
    %330 = vector.broadcast %13 : vector<1x128xf32> to vector<16x128xf32>
    %331 = arith.addf %329, %330 : vector<16x128xf32>
    %332 = arith.truncf %331 : vector<16x128xf32> to vector<16x128xbf16>
    %333 = arith.index_cast %c4_i32 : i32 to index
    %c0_77 = arith.constant 0 : index
    %c0_78 = arith.constant 0 : index
    %334 = vector.load %arg8[%333, %c0_77, %c0_78] : memref<8x16x128xbf16, #tpu.memory_space<vmem>>, vector<1x16x128xbf16>
    %335 = vector.shape_cast %334 : vector<1x16x128xbf16> to vector<16x128xbf16>
    %336 = vector.shape_cast %332 : vector<16x128xbf16> to vector<1x16x128xbf16>
    tpu.vector_store %arg8[%333, %c0_77, %c0_78], %336 {strides = array<i32>} : memref<8x16x128xbf16, #tpu.memory_space<vmem>>, vector<1x16x128xbf16>,
    %c5_i32 = arith.constant 5 : i32
    %c16_i32_79 = arith.constant 16 : i32
    %337 = arith.muli %c5_i32, %c16_i32_79 : i32
    %338 = tpu.assume_multiple %337, 16 : i32
    %339 = arith.index_cast %338 : i32 to index
    %c0_80 = arith.constant 0 : index
    %340 = vector.load %arg11[%339, %c0_80] : memref<128x512xf32, #tpu.memory_space<vmem>>, vector<16x512xf32>
    %341 = arith.truncf %309 : vector<16x128xf32> to vector<16x128xbf16>
    %cst_81 = arith.constant dense<0.000000e+00> : vector<16x512xf32>
    %342 = tpu.matmul %341, %11, %cst_81 {dimension_numbers = #tpu.dot_dimension_numbers<[1], [0], [0], [1], [0, 0, 1, 1], [], []>} : vector<16x128xbf16>, vector<128x512xbf16>, vector<16x512xf32> -> vector<16x512xf32>
    %343 = arith.addf %340, %342 : vector<16x512xf32>
    %344 = vector.extract_strided_slice %343 {offsets = [0, 0], sizes = [16, 128], strides = [1, 1]} : vector<16x512xf32> to vector<16x128xf32>
    %345 = arith.negf %344 : vector<16x128xf32>
    %346 = math.exp %345 : vector<16x128xf32>
    %cst_82 = arith.constant 1.000000e+00 : f32
    %347 = vector.broadcast %cst_82 : f32 to vector<16x128xf32>
    %348 = arith.addf %347, %346 : vector<16x128xf32>
    %349 = arith.divf %347, %348 : vector<16x128xf32>
    %350 = vector.extract_strided_slice %343 {offsets = [0, 128], sizes = [16, 128], strides = [1, 1]} : vector<16x512xf32> to vector<16x128xf32>
    %351 = arith.negf %350 : vector<16x128xf32>
    %352 = math.exp %351 : vector<16x128xf32>
    %cst_83 = arith.constant 1.000000e+00 : f32
    %353 = vector.broadcast %cst_83 : f32 to vector<16x128xf32>
    %354 = arith.addf %353, %352 : vector<16x128xf32>
    %355 = arith.divf %353, %354 : vector<16x128xf32>
    %356 = vector.extract_strided_slice %343 {offsets = [0, 256], sizes = [16, 128], strides = [1, 1]} : vector<16x512xf32> to vector<16x128xf32>
    %357 = math.tanh %356 : vector<16x128xf32>
    %358 = vector.extract_strided_slice %343 {offsets = [0, 384], sizes = [16, 128], strides = [1, 1]} : vector<16x512xf32> to vector<16x128xf32>
    %359 = arith.negf %358 : vector<16x128xf32>
    %360 = math.exp %359 : vector<16x128xf32>
    %cst_84 = arith.constant 1.000000e+00 : f32
    %361 = vector.broadcast %cst_84 : f32 to vector<16x128xf32>
    %362 = arith.addf %361, %360 : vector<16x128xf32>
    %363 = arith.divf %361, %362 : vector<16x128xf32>
    %364 = arith.mulf %355, %308 : vector<16x128xf32>
    %365 = arith.mulf %349, %357 : vector<16x128xf32>
    %366 = arith.addf %364, %365 : vector<16x128xf32>
    %367 = math.tanh %366 : vector<16x128xf32>
    %368 = arith.mulf %363, %367 : vector<16x128xf32>
    %369 = arith.addi %19, %c5_i32 : i32
    %c11_i32_85 = arith.constant 11 : i32
    %370 = arith.cmpi slt, %369, %c11_i32_85 : i32
    %371 = arith.select %370, %366, %308 : vector<16x128xf32>
    %372 = arith.select %370, %368, %309 : vector<16x128xf32>
    %cst_86 = arith.constant dense<0.000000e+00> : vector<16xf32>
    %373 = vector.multi_reduction <add>, %372, %cst_86 [1] : vector<16x128xf32> to vector<16xf32>
    %374 = vector.shape_cast %373 : vector<16xf32> to vector<16x1xf32>
    %375 = vector.broadcast %cst_19 : f32 to vector<16x1xf32>
    %376 = arith.mulf %374, %375 : vector<16x1xf32>
    %377 = vector.broadcast %376 : vector<16x1xf32> to vector<16x128xf32>
    %378 = arith.subf %372, %377 : vector<16x128xf32>
    %379 = vector.broadcast %18 : vector<1x128xf32> to vector<16x128xf32>
    %380 = arith.mulf %378, %379 : vector<16x128xf32>
    %381 = arith.mulf %380, %380 : vector<16x128xf32>
    %cst_87 = arith.constant dense<0.000000e+00> : vector<16xf32>
    %382 = vector.multi_reduction <add>, %381, %cst_87 [1] : vector<16x128xf32> to vector<16xf32>
    %383 = vector.shape_cast %382 : vector<16xf32> to vector<16x1xf32>
    %384 = vector.broadcast %cst_19 : f32 to vector<16x1xf32>
    %385 = arith.mulf %383, %384 : vector<16x1xf32>
    %cst_88 = arith.constant 9.99999974E-6 : f32
    %386 = vector.broadcast %cst_88 : f32 to vector<16x1xf32>
    %387 = arith.addf %385, %386 : vector<16x1xf32>
    %388 = math.rsqrt %387 : vector<16x1xf32>
    %389 = vector.broadcast %388 : vector<16x1xf32> to vector<16x128xf32>
    %390 = arith.mulf %380, %389 : vector<16x128xf32>
    %391 = vector.broadcast %12 : vector<1x128xf32> to vector<16x128xf32>
    %392 = arith.mulf %390, %391 : vector<16x128xf32>
    %393 = vector.broadcast %13 : vector<1x128xf32> to vector<16x128xf32>
    %394 = arith.addf %392, %393 : vector<16x128xf32>
    %395 = arith.truncf %394 : vector<16x128xf32> to vector<16x128xbf16>
    %396 = arith.index_cast %c5_i32 : i32 to index
    %c0_89 = arith.constant 0 : index
    %c0_90 = arith.constant 0 : index
    %397 = vector.load %arg8[%396, %c0_89, %c0_90] : memref<8x16x128xbf16, #tpu.memory_space<vmem>>, vector<1x16x128xbf16>
    %398 = vector.shape_cast %397 : vector<1x16x128xbf16> to vector<16x128xbf16>
    %399 = vector.shape_cast %395 : vector<16x128xbf16> to vector<1x16x128xbf16>
    tpu.vector_store %arg8[%396, %c0_89, %c0_90], %399 {strides = array<i32>} : memref<8x16x128xbf16, #tpu.memory_space<vmem>>, vector<1x16x128xbf16>,
    %c6_i32 = arith.constant 6 : i32
    %c16_i32_91 = arith.constant 16 : i32
    %400 = arith.muli %c6_i32, %c16_i32_91 : i32
    %401 = tpu.assume_multiple %400, 16 : i32
    %402 = arith.index_cast %401 : i32 to index
    %c0_92 = arith.constant 0 : index
    %403 = vector.load %arg11[%402, %c0_92] : memref<128x512xf32, #tpu.memory_space<vmem>>, vector<16x512xf32>
    %404 = arith.truncf %372 : vector<16x128xf32> to vector<16x128xbf16>
    %cst_93 = arith.constant dense<0.000000e+00> : vector<16x512xf32>
    %405 = tpu.matmul %404, %11, %cst_93 {dimension_numbers = #tpu.dot_dimension_numbers<[1], [0], [0], [1], [0, 0, 1, 1], [], []>} : vector<16x128xbf16>, vector<128x512xbf16>, vector<16x512xf32> -> vector<16x512xf32>
    %406 = arith.addf %403, %405 : vector<16x512xf32>
    %407 = vector.extract_strided_slice %406 {offsets = [0, 0], sizes = [16, 128], strides = [1, 1]} : vector<16x512xf32> to vector<16x128xf32>
    %408 = arith.negf %407 : vector<16x128xf32>
    %409 = math.exp %408 : vector<16x128xf32>
    %cst_94 = arith.constant 1.000000e+00 : f32
    %410 = vector.broadcast %cst_94 : f32 to vector<16x128xf32>
    %411 = arith.addf %410, %409 : vector<16x128xf32>
    %412 = arith.divf %410, %411 : vector<16x128xf32>
    %413 = vector.extract_strided_slice %406 {offsets = [0, 128], sizes = [16, 128], strides = [1, 1]} : vector<16x512xf32> to vector<16x128xf32>
    %414 = arith.negf %413 : vector<16x128xf32>
    %415 = math.exp %414 : vector<16x128xf32>
    %cst_95 = arith.constant 1.000000e+00 : f32
    %416 = vector.broadcast %cst_95 : f32 to vector<16x128xf32>
    %417 = arith.addf %416, %415 : vector<16x128xf32>
    %418 = arith.divf %416, %417 : vector<16x128xf32>
    %419 = vector.extract_strided_slice %406 {offsets = [0, 256], sizes = [16, 128], strides = [1, 1]} : vector<16x512xf32> to vector<16x128xf32>
    %420 = math.tanh %419 : vector<16x128xf32>
    %421 = vector.extract_strided_slice %406 {offsets = [0, 384], sizes = [16, 128], strides = [1, 1]} : vector<16x512xf32> to vector<16x128xf32>
    %422 = arith.negf %421 : vector<16x128xf32>
    %423 = math.exp %422 : vector<16x128xf32>
    %cst_96 = arith.constant 1.000000e+00 : f32
    %424 = vector.broadcast %cst_96 : f32 to vector<16x128xf32>
    %425 = arith.addf %424, %423 : vector<16x128xf32>
    %426 = arith.divf %424, %425 : vector<16x128xf32>
    %427 = arith.mulf %418, %371 : vector<16x128xf32>
    %428 = arith.mulf %412, %420 : vector<16x128xf32>
    %429 = arith.addf %427, %428 : vector<16x128xf32>
    %430 = math.tanh %429 : vector<16x128xf32>
    %431 = arith.mulf %426, %430 : vector<16x128xf32>
    %432 = arith.addi %19, %c6_i32 : i32
    %c11_i32_97 = arith.constant 11 : i32
    %433 = arith.cmpi slt, %432, %c11_i32_97 : i32
    %434 = arith.select %433, %429, %371 : vector<16x128xf32>
    %435 = arith.select %433, %431, %372 : vector<16x128xf32>
    %cst_98 = arith.constant dense<0.000000e+00> : vector<16xf32>
    %436 = vector.multi_reduction <add>, %435, %cst_98 [1] : vector<16x128xf32> to vector<16xf32>
    %437 = vector.shape_cast %436 : vector<16xf32> to vector<16x1xf32>
    %438 = vector.broadcast %cst_19 : f32 to vector<16x1xf32>
    %439 = arith.mulf %437, %438 : vector<16x1xf32>
    %440 = vector.broadcast %439 : vector<16x1xf32> to vector<16x128xf32>
    %441 = arith.subf %435, %440 : vector<16x128xf32>
    %442 = vector.broadcast %18 : vector<1x128xf32> to vector<16x128xf32>
    %443 = arith.mulf %441, %442 : vector<16x128xf32>
    %444 = arith.mulf %443, %443 : vector<16x128xf32>
    %cst_99 = arith.constant dense<0.000000e+00> : vector<16xf32>
    %445 = vector.multi_reduction <add>, %444, %cst_99 [1] : vector<16x128xf32> to vector<16xf32>
    %446 = vector.shape_cast %445 : vector<16xf32> to vector<16x1xf32>
    %447 = vector.broadcast %cst_19 : f32 to vector<16x1xf32>
    %448 = arith.mulf %446, %447 : vector<16x1xf32>
    %cst_100 = arith.constant 9.99999974E-6 : f32
    %449 = vector.broadcast %cst_100 : f32 to vector<16x1xf32>
    %450 = arith.addf %448, %449 : vector<16x1xf32>
    %451 = math.rsqrt %450 : vector<16x1xf32>
    %452 = vector.broadcast %451 : vector<16x1xf32> to vector<16x128xf32>
    %453 = arith.mulf %443, %452 : vector<16x128xf32>
    %454 = vector.broadcast %12 : vector<1x128xf32> to vector<16x128xf32>
    %455 = arith.mulf %453, %454 : vector<16x128xf32>
    %456 = vector.broadcast %13 : vector<1x128xf32> to vector<16x128xf32>
    %457 = arith.addf %455, %456 : vector<16x128xf32>
    %458 = arith.truncf %457 : vector<16x128xf32> to vector<16x128xbf16>
    %459 = arith.index_cast %c6_i32 : i32 to index
    %c0_101 = arith.constant 0 : index
    %c0_102 = arith.constant 0 : index
    %460 = vector.load %arg8[%459, %c0_101, %c0_102] : memref<8x16x128xbf16, #tpu.memory_space<vmem>>, vector<1x16x128xbf16>
    %461 = vector.shape_cast %460 : vector<1x16x128xbf16> to vector<16x128xbf16>
    %462 = vector.shape_cast %458 : vector<16x128xbf16> to vector<1x16x128xbf16>
    tpu.vector_store %arg8[%459, %c0_101, %c0_102], %462 {strides = array<i32>} : memref<8x16x128xbf16, #tpu.memory_space<vmem>>, vector<1x16x128xbf16>,
    %c7_i32 = arith.constant 7 : i32
    %c16_i32_103 = arith.constant 16 : i32
    %463 = arith.muli %c7_i32, %c16_i32_103 : i32
    %464 = tpu.assume_multiple %463, 16 : i32
    %465 = arith.index_cast %464 : i32 to index
    %c0_104 = arith.constant 0 : index
    %466 = vector.load %arg11[%465, %c0_104] : memref<128x512xf32, #tpu.memory_space<vmem>>, vector<16x512xf32>
    %467 = arith.truncf %435 : vector<16x128xf32> to vector<16x128xbf16>
    %cst_105 = arith.constant dense<0.000000e+00> : vector<16x512xf32>
    %468 = tpu.matmul %467, %11, %cst_105 {dimension_numbers = #tpu.dot_dimension_numbers<[1], [0], [0], [1], [0, 0, 1, 1], [], []>} : vector<16x128xbf16>, vector<128x512xbf16>, vector<16x512xf32> -> vector<16x512xf32>
    %469 = arith.addf %466, %468 : vector<16x512xf32>
    %470 = vector.extract_strided_slice %469 {offsets = [0, 0], sizes = [16, 128], strides = [1, 1]} : vector<16x512xf32> to vector<16x128xf32>
    %471 = arith.negf %470 : vector<16x128xf32>
    %472 = math.exp %471 : vector<16x128xf32>
    %cst_106 = arith.constant 1.000000e+00 : f32
    %473 = vector.broadcast %cst_106 : f32 to vector<16x128xf32>
    %474 = arith.addf %473, %472 : vector<16x128xf32>
    %475 = arith.divf %473, %474 : vector<16x128xf32>
    %476 = vector.extract_strided_slice %469 {offsets = [0, 128], sizes = [16, 128], strides = [1, 1]} : vector<16x512xf32> to vector<16x128xf32>
    %477 = arith.negf %476 : vector<16x128xf32>
    %478 = math.exp %477 : vector<16x128xf32>
    %cst_107 = arith.constant 1.000000e+00 : f32
    %479 = vector.broadcast %cst_107 : f32 to vector<16x128xf32>
    %480 = arith.addf %479, %478 : vector<16x128xf32>
    %481 = arith.divf %479, %480 : vector<16x128xf32>
    %482 = vector.extract_strided_slice %469 {offsets = [0, 256], sizes = [16, 128], strides = [1, 1]} : vector<16x512xf32> to vector<16x128xf32>
    %483 = math.tanh %482 : vector<16x128xf32>
    %484 = vector.extract_strided_slice %469 {offsets = [0, 384], sizes = [16, 128], strides = [1, 1]} : vector<16x512xf32> to vector<16x128xf32>
    %485 = arith.negf %484 : vector<16x128xf32>
    %486 = math.exp %485 : vector<16x128xf32>
    %cst_108 = arith.constant 1.000000e+00 : f32
    %487 = vector.broadcast %cst_108 : f32 to vector<16x128xf32>
    %488 = arith.addf %487, %486 : vector<16x128xf32>
    %489 = arith.divf %487, %488 : vector<16x128xf32>
    %490 = arith.mulf %481, %434 : vector<16x128xf32>
    %491 = arith.mulf %475, %483 : vector<16x128xf32>
    %492 = arith.addf %490, %491 : vector<16x128xf32>
    %493 = math.tanh %492 : vector<16x128xf32>
    %494 = arith.mulf %489, %493 : vector<16x128xf32>
    %495 = arith.addi %19, %c7_i32 : i32
    %c11_i32_109 = arith.constant 11 : i32
    %496 = arith.cmpi slt, %495, %c11_i32_109 : i32
    %497 = arith.select %496, %492, %434 : vector<16x128xf32>
    %498 = arith.select %496, %494, %435 : vector<16x128xf32>
    %cst_110 = arith.constant dense<0.000000e+00> : vector<16xf32>
    %499 = vector.multi_reduction <add>, %498, %cst_110 [1] : vector<16x128xf32> to vector<16xf32>
    %500 = vector.shape_cast %499 : vector<16xf32> to vector<16x1xf32>
    %501 = vector.broadcast %cst_19 : f32 to vector<16x1xf32>
    %502 = arith.mulf %500, %501 : vector<16x1xf32>
    %503 = vector.broadcast %502 : vector<16x1xf32> to vector<16x128xf32>
    %504 = arith.subf %498, %503 : vector<16x128xf32>
    %505 = vector.broadcast %18 : vector<1x128xf32> to vector<16x128xf32>
    %506 = arith.mulf %504, %505 : vector<16x128xf32>
    %507 = arith.mulf %506, %506 : vector<16x128xf32>
    %cst_111 = arith.constant dense<0.000000e+00> : vector<16xf32>
    %508 = vector.multi_reduction <add>, %507, %cst_111 [1] : vector<16x128xf32> to vector<16xf32>
    %509 = vector.shape_cast %508 : vector<16xf32> to vector<16x1xf32>
    %510 = vector.broadcast %cst_19 : f32 to vector<16x1xf32>
    %511 = arith.mulf %509, %510 : vector<16x1xf32>
    %cst_112 = arith.constant 9.99999974E-6 : f32
    %512 = vector.broadcast %cst_112 : f32 to vector<16x1xf32>
    %513 = arith.addf %511, %512 : vector<16x1xf32>
    %514 = math.rsqrt %513 : vector<16x1xf32>
    %515 = vector.broadcast %514 : vector<16x1xf32> to vector<16x128xf32>
    %516 = arith.mulf %506, %515 : vector<16x128xf32>
    %517 = vector.broadcast %12 : vector<1x128xf32> to vector<16x128xf32>
    %518 = arith.mulf %516, %517 : vector<16x128xf32>
    %519 = vector.broadcast %13 : vector<1x128xf32> to vector<16x128xf32>
    %520 = arith.addf %518, %519 : vector<16x128xf32>
    %521 = arith.truncf %520 : vector<16x128xf32> to vector<16x128xbf16>
    %522 = arith.index_cast %c7_i32 : i32 to index
    %c0_113 = arith.constant 0 : index
    %c0_114 = arith.constant 0 : index
    %523 = vector.load %arg8[%522, %c0_113, %c0_114] : memref<8x16x128xbf16, #tpu.memory_space<vmem>>, vector<1x16x128xbf16>
    %524 = vector.shape_cast %523 : vector<1x16x128xbf16> to vector<16x128xbf16>
    %525 = vector.shape_cast %521 : vector<16x128xbf16> to vector<1x16x128xbf16>
    tpu.vector_store %arg8[%522, %c0_113, %c0_114], %525 {strides = array<i32>} : memref<8x16x128xbf16, #tpu.memory_space<vmem>>, vector<1x16x128xbf16>,
    %c8_i32_115 = arith.constant 8 : i32
    %c0_116 = arith.constant 0 : index
    %c0_117 = arith.constant 0 : index
    %526 = vector.load %arg12[%c0_116, %c0_117] : memref<16x128xf32, #tpu.memory_space<vmem>>, vector<16x128xf32>
    tpu.vector_store %arg12[%c0_116, %c0_117], %498 {strides = array<i32>} : memref<16x128xf32, #tpu.memory_space<vmem>>, vector<16x128xf32>,
    %c0_118 = arith.constant 0 : index
    %c0_119 = arith.constant 0 : index
    %527 = vector.load %arg13[%c0_118, %c0_119] : memref<16x128xf32, #tpu.memory_space<vmem>>, vector<16x128xf32>
    tpu.vector_store %arg13[%c0_118, %c0_119], %497 {strides = array<i32>} : memref<16x128xf32, #tpu.memory_space<vmem>>, vector<16x128xf32>,
    %c0_120 = arith.constant 0 : index
    %c0_121 = arith.constant 0 : index
    %528 = vector.load %arg9[%c0_120, %c0_121] : memref<16x128xf32, #tpu.memory_space<vmem>>, vector<16x128xf32>
    tpu.vector_store %arg9[%c0_120, %c0_121], %498 {strides = array<i32>} : memref<16x128xf32, #tpu.memory_space<vmem>>, vector<16x128xf32>,
    %c0_122 = arith.constant 0 : index
    %c0_123 = arith.constant 0 : index
    %529 = vector.load %arg10[%c0_122, %c0_123] : memref<16x128xf32, #tpu.memory_space<vmem>>, vector<16x128xf32>
    tpu.vector_store %arg10[%c0_122, %c0_123], %497 {strides = array<i32>} : memref<16x128xf32, #tpu.memory_space<vmem>>, vector<16x128xf32>,
    return
  }
  func.func @transform_0(%arg0: i32, %arg1: i32) -> (i32, i32, i32) {
    %c0_i32 = arith.constant 0 : i32
    %c0_i32_0 = arith.constant 0 : i32
    return %arg1, %arg0, %c0_i32 : i32, i32, i32
  }
  func.func @transform_1(%arg0: i32, %arg1: i32) -> (i32, i32) {
    %c0_i32 = arith.constant 0 : i32
    %c0_i32_0 = arith.constant 0 : i32
    %c0_i32_1 = arith.constant 0 : i32
    return %c0_i32, %c0_i32_0 : i32, i32
  }
  func.func @transform_2(%arg0: i32, %arg1: i32) -> (i32, i32) {
    %c0_i32 = arith.constant 0 : i32
    %c0_i32_0 = arith.constant 0 : i32
    %c0_i32_1 = arith.constant 0 : i32
    return %c0_i32, %c0_i32_0 : i32, i32
  }
  func.func @transform_3(%arg0: i32, %arg1: i32) -> (i32, i32) {
    %c0_i32 = arith.constant 0 : i32
    %c0_i32_0 = arith.constant 0 : i32
    %c0_i32_1 = arith.constant 0 : i32
    return %c0_i32, %c0_i32_0 : i32, i32
  }
  func.func @transform_4(%arg0: i32, %arg1: i32) -> (i32, i32) {
    %c0_i32 = arith.constant 0 : i32
    %c0_i32_0 = arith.constant 0 : i32
    %c0_i32_1 = arith.constant 0 : i32
    return %c0_i32, %c0_i32_0 : i32, i32
  }
  func.func @transform_5(%arg0: i32, %arg1: i32) -> (i32, i32) {
    %c0_i32 = arith.constant 0 : i32
    %c0_i32_0 = arith.constant 0 : i32
    %c0_i32_1 = arith.constant 0 : i32
    return %c0_i32, %c0_i32_0 : i32, i32
  }
  func.func @transform_6(%arg0: i32, %arg1: i32) -> (i32, i32, i32) {
    %c0_i32 = arith.constant 0 : i32
    %c0_i32_0 = arith.constant 0 : i32
    return %arg1, %arg0, %c0_i32 : i32, i32, i32
  }
  func.func @transform_7(%arg0: i32, %arg1: i32) -> (i32, i32) {
    %c0_i32 = arith.constant 0 : i32
    %c0_i32_0 = arith.constant 0 : i32
    return %arg0, %c0_i32 : i32, i32
  }
  func.func @transform_8(%arg0: i32, %arg1: i32) -> (i32, i32) {
    %c0_i32 = arith.constant 0 : i32
    %c0_i32_0 = arith.constant 0 : i32
    return %arg0, %c0_i32 : i32, i32
  }
}

</mosaic_0001>

<bundles_post_ra>
// kernel: deepspeech2_forward.5
= control target key start
LH: loop header
LB: loop body
LE: loop exit
PB: predicated region body
PF: predicated region fallthrough
CT: control target
= control target key end

     0   :  { %vm234_vm0 = vcmask 1043456   ;;  %vm235_vm1 = vcmask 1044480   ;;  %v731_v2 = vmov 65535   ;;  %vm170_vm2 = vcmask 72704   ;;  %s951_s1 = inlined_call_operand.vmem [shape: bf16[9,128], index: 1, kind: input, shape index: {}]   ;;  %s952_s0 = inlined_call_operand.vmem [shape: bf16[322,9], index: 0, kind: input, shape index: {}]   ;;  %s953_s2 = inlined_call_operand.vmem [shape: f32[1,128], index: 2, kind: input, shape index: {}]   ;;  %s954_s3 = inlined_call_operand.vmem [shape: bf16[322,128], index: 3, kind: output, shape index: {}]  }
   0x1   :  { %v563_v0 = vld [vmem:[%s951_s1] sm:$0xf]  ;;  %v606_v1 = vld [vmem:[%s951_s1] sm:$0x10]  ;;  %v236_v3 = vsel %vm234_vm0, 4294967295, %v731_v2  ;;  %v592_v8 = vld [vmem:[%s952_s0 + $0x30] sm:$0xff] }
   0x2   :  { %v564_v4 = vor.u32 %v606_v1, %v563_v0  ;;  %v237_v5 = vsel %vm235_vm1, %v236_v3, 0  ;;  %v586_v7 = vld [vmem:[%s952_s0] sm:$0xff]  ;;  %v604_v10 = vld [vmem:[%s952_s0 + $0x90] sm:$0xff]  ;;  %v587_v11 = vld [vmem:[%s952_s0 + $0x8] sm:$0xff] }
   0x3   :  { %v598_v9 = vld [vmem:[%s952_s0 + $0x60] sm:$0xff]  ;;  %v593_v12 = vld [vmem:[%s952_s0 + $0x38] sm:$0xff]  ;;  %v599_v13 = vld [vmem:[%s952_s0 + $0x68] sm:$0xff] }
   0x4   :  { %v239_v6 = vand.u32 %v564_v4, %v237_v5  ;;  %v605_v14 = vld [vmem:[%s952_s0 + $0x98] sm:$0xff]  ;;  %v588_v15 = vld [vmem:[%s952_s0 + $0x10] sm:$0xff]  ;;  %v594_v16 = vld [vmem:[%s952_s0 + $0x40] sm:$0xff] }
   0x5   :  { %v600_v17 = vld [vmem:[%s952_s0 + $0x70] sm:$0xff]  ;;  %v55_v18 = vld [vmem:[%s952_s0 + $0xa0] sm:$0x1]  ;;  %v589_v21 = vld [vmem:[%s952_s0 + $0x18] sm:$0xff] }
   0x6   :  { %248 = vmatpush.bf16.msra.mxu0 %v239_v6  ;;  %726 = vmatpush.bf16.msra.mxu1 %v239_v6  ;;  %v143_v19 = vunpack.c.l.b16 %v55_v18  ;;  %v595_v22 = vld [vmem:[%s952_s0 + $0x48] sm:$0xff]  ;;  %v601_v23 = vld [vmem:[%s952_s0 + $0x78] sm:$0xff]  ;;  %v590_v24 = vld [vmem:[%s952_s0 + $0x20] sm:$0xff] }
   0x7   :  { %727 = vmatpush.bf16.msra.mxu2 %v239_v6  ;;  %728 = vmatpush.bf16.msra.mxu3 %v239_v6  ;;  %v596_v25 = vld [vmem:[%s952_s0 + $0x50] sm:$0xff]  ;;  %v602_v26 = vld [vmem:[%s952_s0 + $0x80] sm:$0xff]  ;;  %v591_v27 = vld [vmem:[%s952_s0 + $0x28] sm:$0xff] }
   0x8   :  { %v164_v20 = vpack.c.b16 %v143_v19, %v143_v19  ;;  %v597_v28 = vld [vmem:[%s952_s0 + $0x58] sm:$0xff]  ;;  %v603_v29 = vld [vmem:[%s952_s0 + $0x88] sm:$0xff]  ;;  %v845_v32 = vld [vmem:[%s953_s2] ss:$0 sm:$0xff] }
   0x9   :  { %565 = vmatmul.msk.bf16.vlgmr.msra.gmra.mxu0 %vm170_vm2, %v586_v7  ;;  %571 = vmatmul.msk.bf16.vlgmr.msra.gmra.mxu1 %vm170_vm2, %v592_v8 }
   0xa   :  { %577 = vmatmul.msk.bf16.vlgmr.msra.gmra.mxu2 %vm170_vm2, %v598_v9  ;;  %583 = vmatmul.msk.bf16.vlgmr.msra.gmra.mxu3 %vm170_vm2, %v604_v10 }
  0x19   :  { %566 = vmatmul.msk.bf16.gmra.mxu0 %vm170_vm2, %v587_v11  ;;  %572 = vmatmul.msk.bf16.gmra.mxu1 %vm170_vm2, %v593_v12 }
  0x1a   :  { %578 = vmatmul.msk.bf16.gmra.mxu2 %vm170_vm2, %v599_v13  ;;  %584 = vmatmul.msk.bf16.gmra.mxu3 %vm170_vm2, %v605_v14 }
  0x29   :  { %567 = vmatmul.msk.bf16.gmra.mxu0 %vm170_vm2, %v588_v15  ;;  %573 = vmatmul.msk.bf16.gmra.mxu1 %vm170_vm2, %v594_v16 }
  0x2a   :  { %579 = vmatmul.msk.bf16.gmra.mxu2 %vm170_vm2, %v600_v17  ;;  %585 = vmatmul.msk.bf16.gmra.mxu3 %vm170_vm2, %v164_v20 }
  0x39   :  { %568 = vmatmul.msk.bf16.gmra.mxu0 %vm170_vm2, %v589_v21  ;;  %574 = vmatmul.msk.bf16.gmra.mxu1 %vm170_vm2, %v595_v22 }
  0x3a   :  { %580 = vmatmul.msk.bf16.gmra.mxu2 %vm170_vm2, %v601_v23 }
  0x49   :  { %569 = vmatmul.msk.bf16.gmra.mxu0 %vm170_vm2, %v590_v24  ;;  %575 = vmatmul.msk.bf16.gmra.mxu1 %vm170_vm2, %v596_v25 }
  0x4a   :  { %581 = vmatmul.msk.bf16.gmra.mxu2 %vm170_vm2, %v602_v26 }
  0x59   :  { %570 = vmatmul.msk.bf16.gmra.mxu0 %vm170_vm2, %v591_v27  ;;  %576 = vmatmul.msk.bf16.gmra.mxu1 %vm170_vm2, %v597_v28 }
  0x5a   :  { %582 = vmatmul.msk.bf16.gmra.mxu2 %vm170_vm2, %v603_v29 }
  0x86   :  { %v250_v30 = vpop.f32.mrf.mxu0  ;;  %v280_v31 = vpop.f32.mrf.mxu1 }
  0x87   :  { %v251_v33 = vadd.f32 %v845_v32, %v250_v30  ;;  %v281_v34 = vadd.f32 %v845_v32, %v280_v31 }
  0x89   :  { %v354_v40 = vmax.f32 %v251_v33, 0.0  ;;  %v366_v41 = vmax.f32 %v281_v34, 0.0 }
  0x8d   :  { %v310_v35 = vpop.f32.mrf.mxu2  ;;  %v340_v55 = vpop.f32.mrf.mxu3 }
  0x8e   :  { %v252_v36 = vpop.f32.mrf.mxu0  ;;  %v282_v37 = vpop.f32.mrf.mxu1  ;;  %v311_v46 = vadd.f32 %v845_v32, %v310_v35  ;;  %v341_v2 = vadd.f32 %v845_v32, %v340_v55 }
  0x8f   :  { %v253_v38 = vadd.f32 %v845_v32, %v252_v36  ;;  %v283_v39 = vadd.f32 %v845_v32, %v282_v37 }
  0x90   :  { %v378_v51 = vmax.f32 %v311_v46, 0.0  ;;  %v390_v8 = vmax.f32 %v341_v2, 0.0 }
  0x91   :  { %v355_v42 = vmax.f32 %v253_v38, 0.0  ;;  %v367_v43 = vmax.f32 %v283_v39, 0.0 }
  0x93   :  { %v610_v44 = vpack.c.bf16 %v355_v42, %v354_v40  ;;  %v640_v45 = vpack.c.bf16 %v367_v43, %v366_v41 }
  0x95   :  { %611 = vst [vmem:[%s954_s3] sm:$0xff] %v610_v44   ;;  %v312_v47 = vpop.f32.mrf.mxu2  ;;  %v342_v6 = vpop.f32.mrf.mxu3 }
  0x96   :  { %712 = vst [vmem:[%s954_s3 + $0x30] sm:$0xff] %v640_v45   ;;  %v313_v48 = vadd.f32 %v845_v32, %v312_v47  ;;  %v255_v49 = vpop.f32.mrf.mxu0  ;;  %v285_v50 = vpop.f32.mrf.mxu1  ;;  %v343_v9 = vadd.f32 %v845_v32, %v342_v6 }
  0x97   :  { %v256_v54 = vadd.f32 %v845_v32, %v255_v49  ;;  %v286_v56 = vadd.f32 %v845_v32, %v285_v50 }
  0x98   :  { %v379_v52 = vmax.f32 %v313_v48, 0.0  ;;  %v391_v13 = vmax.f32 %v343_v9, 0.0 }
  0x99   :  { %v356_v62 = vmax.f32 %v256_v54, 0.0  ;;  %v368_v63 = vmax.f32 %v286_v56, 0.0 }
  0x9a   :  { %v670_v53 = vpack.c.bf16 %v379_v52, %v378_v51  ;;  %v700_v16 = vpack.c.bf16 %v391_v13, %v390_v8 }
  0x9c   :  { %718 = vst [vmem:[%s954_s3 + $0x60] sm:$0xff] %v670_v53  }
  0x9d   :  { %v315_v57 = vpop.f32.mrf.mxu2  ;;  %724 = vst [vmem:[%s954_s3 + $0x90] sm:$0xff] %v700_v16   ;;  %v345_v19 = vpop.f32.mrf.mxu3 }
  0x9e   :  { %v257_v58 = vpop.f32.mrf.mxu0  ;;  %v287_v59 = vpop.f32.mrf.mxu1  ;;  %v316_v5 = vadd.f32 %v845_v32, %v315_v57  ;;  %v346_v30 = vadd.f32 %v845_v32, %v345_v19 }
  0x9f   :  { %v258_v60 = vadd.f32 %v845_v32, %v257_v58  ;;  %v288_v61 = vadd.f32 %v845_v32, %v287_v59 }
  0xa0   :  { %v380_v14 = vmax.f32 %v316_v5, 0.0  ;;  %v392_v37 = vmax.f32 %v346_v30, 0.0 }
  0xa1   :  { %v357_v0 = vmax.f32 %v258_v60, 0.0  ;;  %v369_v1 = vmax.f32 %v288_v61, 0.0 }
  0xa3   :  { %v615_v3 = vpack.c.bf16 %v357_v0, %v356_v62  ;;  %v645_v4 = vpack.c.bf16 %v369_v1, %v368_v63 }
  0xa5   :  { %707 = vst [vmem:[%s954_s3 + $0x8] sm:$0xff] %v615_v3   ;;  %v317_v7 = vpop.f32.mrf.mxu2  ;;  %v347_v35 = vpop.f32.mrf.mxu3 }
  0xa6   :  { %713 = vst [vmem:[%s954_s3 + $0x38] sm:$0xff] %v645_v4   ;;  %v318_v10 = vadd.f32 %v845_v32, %v317_v7  ;;  %v260_v11 = vpop.f32.mrf.mxu0  ;;  %v290_v12 = vpop.f32.mrf.mxu1  ;;  %v348_v38 = vadd.f32 %v845_v32, %v347_v35 }
  0xa7   :  { %v261_v18 = vadd.f32 %v845_v32, %v260_v11  ;;  %v291_v20 = vadd.f32 %v845_v32, %v290_v12 }
  0xa8   :  { %v381_v15 = vmax.f32 %v318_v10, 0.0  ;;  %v393_v42 = vmax.f32 %v348_v38, 0.0 }
  0xa9   :  { %v358_v26 = vmax.f32 %v261_v18, 0.0  ;;  %v370_v27 = vmax.f32 %v291_v20, 0.0 }
  0xaa   :  { %v675_v17 = vpack.c.bf16 %v381_v15, %v380_v14  ;;  %v705_v45 = vpack.c.bf16 %v393_v42, %v392_v37 }
  0xac   :  { %719 = vst [vmem:[%s954_s3 + $0x68] sm:$0xff] %v675_v17  }
  0xad   :  { %v320_v21 = vpop.f32.mrf.mxu2  ;;  %725 = vst [vmem:[%s954_s3 + $0x98] sm:$0xff] %v705_v45   ;;  %v350_v48 = vpop.f32.mrf.mxu3 }
  0xae   :  { %v262_v22 = vpop.f32.mrf.mxu0  ;;  %v292_v23 = vpop.f32.mrf.mxu1  ;;  %v321_v34 = vadd.f32 %v845_v32, %v320_v21  ;;  %v351_v51 = vadd.f32 %v845_v32, %v350_v48 }
  0xaf   :  { %v263_v24 = vadd.f32 %v845_v32, %v262_v22  ;;  %v293_v25 = vadd.f32 %v845_v32, %v292_v23 }
  0xb0   :  { %v382_v43 = vmax.f32 %v321_v34, 0.0  ;;  %v394_v56 = vmax.f32 %v351_v51, 0.0 }
  0xb1   :  { %v359_v28 = vmax.f32 %v263_v24, 0.0  ;;  %v371_v29 = vmax.f32 %v293_v25, 0.0 }
  0xb2   :  { %v435_v61 = vpack.c.bf16 %v394_v56, %v394_v56 }
  0xb3   :  { %v620_v31 = vpack.c.bf16 %v359_v28, %v358_v26  ;;  %v650_v33 = vpack.c.bf16 %v371_v29, %v370_v27 }
  0xb4   :  { %476 = vst [vmem:[%s954_s3 + $0xa0] sm:$0x1] %v435_v61 }
  0xb5   :  { %708 = vst [vmem:[%s954_s3 + $0x10] sm:$0xff] %v620_v31   ;;  %v322_v36 = vpop.f32.mrf.mxu2  ;;  %v352_v1 = vpop.f32.mrf.mxu3 }
  0xb6   :  { %714 = vst [vmem:[%s954_s3 + $0x40] sm:$0xff] %v650_v33   ;;  %v323_v39 = vadd.f32 %v845_v32, %v322_v36  ;;  %v265_v40 = vpop.f32.mrf.mxu0  ;;  %v295_v41 = vpop.f32.mrf.mxu1 }
  0xb7   :  { %v266_v47 = vadd.f32 %v845_v32, %v265_v40  ;;  %v296_v49 = vadd.f32 %v845_v32, %v295_v41 }
  0xb8   :  { %v383_v44 = vmax.f32 %v323_v39, 0.0 }
  0xb9   :  { %v360_v57 = vmax.f32 %v266_v47, 0.0  ;;  %v372_v58 = vmax.f32 %v296_v49, 0.0 }
  0xba   :  { %v680_v46 = vpack.c.bf16 %v383_v44, %v382_v43 }
  0xbc   :  { %720 = vst [vmem:[%s954_s3 + $0x70] sm:$0xff] %v680_v46  }
  0xbd   :  { %v325_v50 = vpop.f32.mrf.mxu2 }
  0xbe   :  { %v267_v52 = vpop.f32.mrf.mxu0  ;;  %v297_v53 = vpop.f32.mrf.mxu1  ;;  %v326_v0 = vadd.f32 %v845_v32, %v325_v50 }
  0xbf   :  { %v268_v54 = vadd.f32 %v845_v32, %v267_v52  ;;  %v298_v55 = vadd.f32 %v845_v32, %v297_v53 }
  0xc0   :  { %v384_v6 = vmax.f32 %v326_v0, 0.0 }
  0xc1   :  { %v361_v59 = vmax.f32 %v268_v54, 0.0  ;;  %v373_v60 = vmax.f32 %v298_v55, 0.0 }
  0xc3   :  { %v625_v62 = vpack.c.bf16 %v361_v59, %v360_v57  ;;  %v655_v63 = vpack.c.bf16 %v373_v60, %v372_v58 }
  0xc5   :  { %709 = vst [vmem:[%s954_s3 + $0x18] sm:$0xff] %v625_v62   ;;  %v327_v2 = vpop.f32.mrf.mxu2 }
  0xc6   :  { %715 = vst [vmem:[%s954_s3 + $0x48] sm:$0xff] %v655_v63   ;;  %v328_v3 = vadd.f32 %v845_v32, %v327_v2  ;;  %v270_v4 = vpop.f32.mrf.mxu0  ;;  %v300_v5 = vpop.f32.mrf.mxu1 }
  0xc7   :  { %v271_v9 = vadd.f32 %v845_v32, %v270_v4  ;;  %v301_v10 = vadd.f32 %v845_v32, %v300_v5 }
  0xc8   :  { %v385_v7 = vmax.f32 %v328_v3, 0.0 }
  0xc9   :  { %v362_v16 = vmax.f32 %v271_v9, 0.0  ;;  %v374_v17 = vmax.f32 %v301_v10, 0.0 }
  0xca   :  { %v685_v8 = vpack.c.bf16 %v385_v7, %v384_v6 }
  0xcc   :  { %721 = vst [vmem:[%s954_s3 + $0x78] sm:$0xff] %v685_v8  }
  0xcd   :  { %v330_v11 = vpop.f32.mrf.mxu2 }
  0xce   :  { %v272_v12 = vpop.f32.mrf.mxu0  ;;  %v302_v13 = vpop.f32.mrf.mxu1  ;;  %v331_v22 = vadd.f32 %v845_v32, %v330_v11 }
  0xcf   :  { %v273_v14 = vadd.f32 %v845_v32, %v272_v12  ;;  %v303_v15 = vadd.f32 %v845_v32, %v302_v13 }
  0xd0   :  { %v386_v27 = vmax.f32 %v331_v22, 0.0 }
  0xd1   :  { %v363_v18 = vmax.f32 %v273_v14, 0.0  ;;  %v375_v19 = vmax.f32 %v303_v15, 0.0 }
  0xd3   :  { %v630_v20 = vpack.c.bf16 %v363_v18, %v362_v16  ;;  %v660_v21 = vpack.c.bf16 %v375_v19, %v374_v17 }
  0xd5   :  { %710 = vst [vmem:[%s954_s3 + $0x20] sm:$0xff] %v630_v20   ;;  %v332_v23 = vpop.f32.mrf.mxu2 }
  0xd6   :  { %716 = vst [vmem:[%s954_s3 + $0x50] sm:$0xff] %v660_v21   ;;  %v333_v24 = vadd.f32 %v845_v32, %v332_v23  ;;  %v275_v25 = vpop.f32.mrf.mxu0  ;;  %v305_v26 = vpop.f32.mrf.mxu1 }
  0xd7   :  { %v276_v30 = vadd.f32 %v845_v32, %v275_v25  ;;  %v306_v31 = vadd.f32 %v845_v32, %v305_v26 }
  0xd8   :  { %v387_v28 = vmax.f32 %v333_v24, 0.0 }
  0xd9   :  { %v364_v38 = vmax.f32 %v276_v30, 0.0  ;;  %v376_v39 = vmax.f32 %v306_v31, 0.0 }
  0xda   :  { %v690_v29 = vpack.c.bf16 %v387_v28, %v386_v27 }
  0xdc   :  { %722 = vst [vmem:[%s954_s3 + $0x80] sm:$0xff] %v690_v29  }
  0xdd   :  { %v335_v33 = vpop.f32.mrf.mxu2 }
  0xde   :  { %v277_v34 = vpop.f32.mrf.mxu0  ;;  %v307_v35 = vpop.f32.mrf.mxu1  ;;  %v336_v44 = vadd.f32 %v845_v32, %v335_v33 }
  0xdf   :  { %v278_v36 = vadd.f32 %v845_v32, %v277_v34  ;;  %v308_v37 = vadd.f32 %v845_v32, %v307_v35 }
  0xe0   :  { %v388_v47 = vmax.f32 %v336_v44, 0.0 }
  0xe1   :  { %v365_v40 = vmax.f32 %v278_v36, 0.0  ;;  %v377_v41 = vmax.f32 %v308_v37, 0.0 }
  0xe3   :  { %v635_v42 = vpack.c.bf16 %v365_v40, %v364_v38  ;;  %v665_v43 = vpack.c.bf16 %v377_v41, %v376_v39 }
  0xe5   :  { %711 = vst [vmem:[%s954_s3 + $0x28] sm:$0xff] %v635_v42   ;;  %v337_v45 = vpop.f32.mrf.mxu2 }
  0xe6   :  { %717 = vst [vmem:[%s954_s3 + $0x58] sm:$0xff] %v665_v43   ;;  %v338_v46 = vadd.f32 %v845_v32, %v337_v45 }
  0xe8   :  { %v389_v48 = vmax.f32 %v338_v46, 0.0 }
  0xea   :  { %v695_v49 = vpack.c.bf16 %v389_v48, %v388_v47 }
  0xec   :  { %723 = vst [vmem:[%s954_s3 + $0x88] sm:$0xff] %v695_v49  }

// kernel: deepspeech2_forward.6
= control target key start
LH: loop header
LB: loop body
LE: loop exit
PB: predicated region body
PF: predicated region fallthrough
CT: control target
= control target key end

     0   :  { %vm251_vm0 = vcmask 261120   ;;  %s778_s1 = inlined_call_operand.vmem [shape: bf16[288,128], index: 1, kind: input, shape index: {}]   ;;  %s779_s0 = inlined_call_operand.vmem [shape: bf16[66,288], index: 0, kind: input, shape index: {}]   ;;  %s780_s2 = inlined_call_operand.vmem [shape: f32[1,128], index: 2, kind: input, shape index: {}]   ;;  %s781_s3 = inlined_call_operand.vmem [shape: bf16[66,128], index: 3, kind: output, shape index: {}]  }
   0x1   :  { %v541_v0 = vld [vmem:[%s778_s1 + $0x38] sm:$0xff]  ;;  %v551_v2 = vld [vmem:[%s778_s1 + $0x88] sm:$0xff]  ;;  %v540_v3 = vld [vmem:[%s778_s1 + $0x30] sm:$0xff] }
   0x2   :  { %v549_v1 = vld [vmem:[%s778_s1 + $0x78] sm:$0xff]  ;;  %267 = vmatpush.bf16.msra.mxu0 %v541_v0  ;;  %575 = vmatpush.bf16.msra.mxu3 %v541_v0  ;;  %v548_v4 = vld [vmem:[%s778_s1 + $0x70] sm:$0xff]  ;;  %v550_v5 = vld [vmem:[%s778_s1 + $0x80] sm:$0xff] }
   0x3   :  { %583 = vmatpush.bf16.msra.mxu1 %v549_v1  ;;  %339 = vmatpush.bf16.msra.mxu2 %v551_v2  ;;  %v407_v6 = vld [vmem:[%s779_s0 + $0x8] sm:$0xf]  ;;  %v524_v7 = vld [vmem:[%s779_s0 + $0x10] sm:$0xf0]  ;;  %v538_v11 = vld [vmem:[%s778_s1 + $0x20] sm:$0xff] }
   0x4   :  { %v539_v8 = vld [vmem:[%s778_s1 + $0x28] sm:$0xff]  ;;  %v408_v10 = vor.u32 %v524_v7, %v407_v6  ;;  %v546_v12 = vld [vmem:[%s778_s1 + $0x60] sm:$0xff]  ;;  %v537_v13 = vld [vmem:[%s778_s1 + $0x18] sm:$0xff] }
   0x5   :  { %v547_v9 = vld [vmem:[%s778_s1 + $0x68] sm:$0xff]  ;;  %v545_v14 = vld [vmem:[%s778_s1 + $0x58] sm:$0xff]  ;;  %v536_v15 = vld [vmem:[%s778_s1 + $0x10] sm:$0xff] }
   0x6   :  { %268 = vmatpush.bf16.msra.mxu0 %v540_v3  ;;  %576 = vmatpush.bf16.msra.mxu3 %v540_v3  ;;  %v544_v16 = vld [vmem:[%s778_s1 + $0x50] sm:$0xff]  ;;  %v419_v17 = vld [vmem:[%s779_s0 + $0x20] sm:$0xf]  ;;  %v527_v18 = vld [vmem:[%s779_s0 + $0x28] sm:$0xf0] }
   0x7   :  { %584 = vmatpush.bf16.msra.mxu1 %v548_v4  ;;  %340 = vmatpush.bf16.msra.mxu2 %v550_v5  ;;  %v535_v19 = vld [vmem:[%s778_s1 + $0x8] sm:$0xff]  ;;  %v420_v21 = vor.u32 %v527_v18, %v419_v17  ;;  %v534_v22 = vld [vmem:[%s778_s1] sm:$0xff]  ;;  %v411_v23 = vld [vmem:[%s779_s0 + $0x18] sm:$0xf] }
   0x8   :  { %v543_v20 = vld [vmem:[%s778_s1 + $0x48] sm:$0xff]  ;;  %v526_v24 = vld [vmem:[%s779_s0 + $0x20] sm:$0xf0]  ;;  %v399_v25 = vld [vmem:[%s779_s0] sm:$0xf] }
   0x9   :  { %v523_v26 = vld [vmem:[%s779_s0 + $0x8] sm:$0xf0]  ;;  %v542_v27 = vld [vmem:[%s778_s1 + $0x40] sm:$0xff]  ;;  %v525_v28 = vld [vmem:[%s779_s0 + $0x1c] sm:$0xf]  ;;  %v412_v30 = vor.u32 %v526_v24, %v411_v23 }
   0xa   :  { %269 = vmatpush.bf16.msra.mxu0 %v539_v8  ;;  %577 = vmatpush.bf16.msra.mxu3 %v539_v8  ;;  %v413_v29 = vld [vmem:[%s779_s0 + $0x24] sm:$0xf0]  ;;  %v400_v31 = vor.u32 %v523_v26, %v399_v25  ;;  %v431_v33 = vld [vmem:[%s779_s0 + $0x38] sm:$0xf]  ;;  %v530_v34 = vld [vmem:[%s779_s0 + $0x40] sm:$0xf0] }
   0xb   :  { %585 = vmatpush.bf16.msra.mxu1 %v547_v9  ;;  %517 = vmatmul.msk.bf16.vlgmr.msra.gmra.mxu2 %vm251_vm0, %v408_v10  ;;  %v416_v32 = vor.u32 %v525_v28, %v413_v29  ;;  %v432_v35 = vor.u32 %v530_v34, %v431_v33  ;;  %v423_v36 = vld [vmem:[%s779_s0 + $0x30] sm:$0xf]  ;;  %v529_v37 = vld [vmem:[%s779_s0 + $0x38] sm:$0xf0]  ;;  %v528_v38 = vld [vmem:[%s779_s0 + $0x34] sm:$0xf] }
   0xc   :  { %v425_v39 = vld [vmem:[%s779_s0 + $0x3c] sm:$0xf0]  ;;  %v424_v40 = vor.u32 %v529_v37, %v423_v36  ;;  %v443_v42 = vld [vmem:[%s779_s0 + $0x50] sm:$0xf]  ;;  %v533_v43 = vld [vmem:[%s779_s0 + $0x58] sm:$0xf0] }
   0xd   :  { %v428_v41 = vor.u32 %v528_v38, %v425_v39  ;;  %v444_v44 = vor.u32 %v533_v43, %v443_v42  ;;  %v522_v45 = vld [vmem:[%s779_s0 + $0x4] sm:$0xf]  ;;  %v401_v46 = vld [vmem:[%s779_s0 + $0xc] sm:$0xf0]  ;;  %v435_v48 = vld [vmem:[%s779_s0 + $0x48] sm:$0xf] }
   0xe   :  { %270 = vmatpush.bf16.msra.mxu0 %v538_v11  ;;  %578 = vmatpush.bf16.msra.mxu3 %v538_v11  ;;  %v404_v47 = vor.u32 %v522_v45, %v401_v46  ;;  %v532_v49 = vld [vmem:[%s779_s0 + $0x50] sm:$0xf0]  ;;  %v531_v50 = vld [vmem:[%s779_s0 + $0x4c] sm:$0xf]  ;;  %v437_v51 = vld [vmem:[%s779_s0 + $0x54] sm:$0xf0] }
   0xf   :  { %586 = vmatpush.bf16.msra.mxu1 %v546_v12  ;;  %v436_v52 = vor.u32 %v532_v49, %v435_v48  ;;  %v440_v53 = vor.u32 %v531_v50, %v437_v51  ;;  %v32_v54 = vld [vmem:[%s779_s0 + $0x68] sm:$0x1]  ;;  %v31_v56 = vld [vmem:[%s779_s0 + $0x60] sm:$0x11] }
  0x10   :  { %v117_v55 = vunpack.c.l.b16 %v32_v54  ;;  %v115_v58 = vunpack.c.l.b16 %v31_v56  ;;  %v116_v59 = vunpack.c.h.b16 %v31_v56  ;;  %v752_v2 = vld [vmem:[%s780_s2] ss:$0 sm:$0xff] }
  0x12   :  { %271 = vmatpush.bf16.msra.mxu0 %v537_v13  ;;  %579 = vmatpush.bf16.msra.mxu3 %v537_v13  ;;  %v132_v57 = vpack.c.b16 %v117_v55, %v117_v55  ;;  %v130_v60 = vpack.c.b16 %v115_v58, %v115_v58  ;;  %v131_v61 = vpack.c.b16 %v116_v59, %v116_v59 }
  0x13   :  { %587 = vmatpush.bf16.msra.mxu1 %v545_v14 }
  0x16   :  { %272 = vmatpush.bf16.msra.mxu0 %v536_v15  ;;  %580 = vmatpush.bf16.msra.mxu3 %v536_v15 }
  0x17   :  { %588 = vmatpush.bf16.msra.mxu1 %v544_v16 }
  0x1a   :  { %273 = vmatpush.bf16.msra.mxu0 %v535_v19  ;;  %581 = vmatpush.bf16.msra.mxu3 %v535_v19 }
  0x1b   :  { %589 = vmatpush.bf16.msra.mxu1 %v543_v20  ;;  %518 = vmatmul.msk.bf16.gmra.mxu2 %vm251_vm0, %v420_v21 }
  0x1e   :  { %274 = vmatpush.bf16.msra.mxu0 %v534_v22  ;;  %582 = vmatpush.bf16.msra.mxu3 %v534_v22 }
  0x1f   :  { %590 = vmatpush.bf16.msra.mxu1 %v542_v27 }
  0x21   :  { %280 = vmatmul.bf16.vlgmr.msra.gmra.mxu3 %v412_v30  ;;  %275 = vmatmul.bf16.vlgmr.msra.gmra.mxu0 %v400_v31 }
  0x22   :  { %300 = vmatpush.bf16.msrb.mxu0 %v549_v1  ;;  %313 = vmatmul.bf16.vlgmr.msra.gmra.mxu1 %v416_v32 }
  0x26   :  { %301 = vmatpush.bf16.msrb.mxu0 %v548_v4 }
  0x2a   :  { %302 = vmatpush.bf16.msrb.mxu0 %v547_v9 }
  0x2b   :  { %519 = vmatmul.msk.bf16.gmra.mxu2 %vm251_vm0, %v432_v35 }
  0x2e   :  { %303 = vmatpush.bf16.msrb.mxu0 %v546_v12 }
  0x31   :  { %285 = vmatmul.bf16.gmra.mxu3 %v424_v40 }
  0x32   :  { %304 = vmatpush.bf16.msrb.mxu0 %v545_v14  ;;  %318 = vmatmul.bf16.gmra.mxu1 %v428_v41 }
  0x36   :  { %305 = vmatpush.bf16.msrb.mxu0 %v544_v16 }
  0x3a   :  { %306 = vmatpush.bf16.msrb.mxu0 %v543_v20 }
  0x3b   :  { %520 = vmatmul.msk.bf16.gmra.mxu2 %vm251_vm0, %v444_v44 }
  0x3e   :  { %307 = vmatpush.bf16.msrb.mxu0 %v542_v27 }
  0x41   :  { %308 = vmatmul.bf16.vlgmr.msrb.gmra.mxu0 %v404_v47  ;;  %290 = vmatmul.bf16.gmra.mxu3 %v436_v52 }
  0x42   :  { %323 = vmatmul.bf16.gmra.mxu1 %v440_v53 }
  0x4b   :  { %521 = vmatmul.msk.bf16.gmra.mxu2 %vm251_vm0, %v132_v57 }
  0x51   :  { %295 = vmatmul.bf16.gmra.mxu3 %v130_v60 }
  0x52   :  { %328 = vmatmul.bf16.gmra.mxu1 %v131_v61 }
  0x8e   :  { %v342_v62 = vpop.f32.mrf.mxu2 }
  0x96   :  { %v344_v63 = vpop.f32.mrf.mxu2 }
  0x9e   :  { %v347_v0 = vpop.f32.mrf.mxu2  ;;  %v276_v7 = vpop.f32.mrf.mxu0 }
  0x9f   :  { %v314_v1 = vpop.f32.mrf.mxu1  ;;  %v277_v26 = vadd.f32 %v752_v2, %v276_v7 }
  0xa4   :  { %v281_v3 = vpop.f32.mrf.mxu3 }
  0xa5   :  { %v282_v5 = vadd.f32 %v752_v2, %v281_v3 }
  0xa6   :  { %v349_v4 = vpop.f32.mrf.mxu2  ;;  %v278_v16 = vpop.f32.mrf.mxu0 }
  0xa7   :  { %v316_v6 = vpop.f32.mrf.mxu1  ;;  %v315_v8 = vadd.f32 %v314_v1, %v282_v5  ;;  %v279_v35 = vadd.f32 %v752_v2, %v278_v16 }
  0xa9   :  { %v348_v12 = vadd.f32 %v347_v0, %v315_v8 }
  0xab   :  { %v368_v17 = vmax.f32 %v348_v12, 0.0 }
  0xac   :  { %v283_v9 = vpop.f32.mrf.mxu3 }
  0xad   :  { %v284_v10 = vadd.f32 %v752_v2, %v283_v9 }
  0xae   :  { %v352_v11 = vpop.f32.mrf.mxu2 }
  0xaf   :  { %v317_v13 = vadd.f32 %v316_v6, %v284_v10  ;;  %v319_v14 = vpop.f32.mrf.mxu1 }
  0xb1   :  { %v350_v15 = vadd.f32 %v349_v4, %v317_v13 }
  0xb3   :  { %v369_v18 = vmax.f32 %v350_v15, 0.0 }
  0xb4   :  { %v286_v19 = vpop.f32.mrf.mxu3 }
  0xb5   :  { %v560_v20 = vpack.c.bf16 %v369_v18, %v368_v17  ;;  %v287_v22 = vadd.f32 %v752_v2, %v286_v19 }
  0xb6   :  { %v354_v21 = vpop.f32.mrf.mxu2 }
  0xb7   :  { %572 = vst [vmem:[%s781_s3 + $0x8] sm:$0xff] %v560_v20   ;;  %v321_v23 = vpop.f32.mrf.mxu1  ;;  %v320_v24 = vadd.f32 %v319_v14, %v287_v22 }
  0xb9   :  { %v353_v30 = vadd.f32 %v352_v11, %v320_v24 }
  0xbb   :  { %v370_v36 = vmax.f32 %v353_v30, 0.0 }
  0xbc   :  { %v288_v27 = vpop.f32.mrf.mxu3 }
  0xbd   :  { %v289_v28 = vadd.f32 %v752_v2, %v288_v27 }
  0xbe   :  { %v309_v25 = vpop.f32.mrf.mxu0  ;;  %v357_v29 = vpop.f32.mrf.mxu2 }
  0xbf   :  { %v322_v31 = vadd.f32 %v321_v23, %v289_v28  ;;  %v324_v32 = vpop.f32.mrf.mxu1  ;;  %v310_v33 = vadd.f32 %v309_v25, %v277_v26 }
  0xc1   :  { %v355_v34 = vadd.f32 %v354_v21, %v322_v31  ;;  %v343_v39 = vadd.f32 %v342_v62, %v310_v33 }
  0xc3   :  { %v371_v37 = vmax.f32 %v355_v34, 0.0  ;;  %v366_v47 = vmax.f32 %v343_v39, 0.0 }
  0xc4   :  { %v291_v41 = vpop.f32.mrf.mxu3 }
  0xc5   :  { %v565_v42 = vpack.c.bf16 %v371_v37, %v370_v36  ;;  %v292_v45 = vadd.f32 %v752_v2, %v291_v41 }
  0xc6   :  { %v311_v38 = vpop.f32.mrf.mxu0  ;;  %v359_v44 = vpop.f32.mrf.mxu2 }
  0xc7   :  { %v312_v40 = vadd.f32 %v311_v38, %v279_v35  ;;  %573 = vst [vmem:[%s781_s3 + $0x10] sm:$0xff] %v565_v42   ;;  %v326_v46 = vpop.f32.mrf.mxu1  ;;  %v325_v50 = vadd.f32 %v324_v32, %v292_v45 }
  0xc9   :  { %v345_v43 = vadd.f32 %v344_v63, %v312_v40  ;;  %v358_v54 = vadd.f32 %v357_v29, %v325_v50 }
  0xcb   :  { %v367_v48 = vmax.f32 %v345_v43, 0.0  ;;  %v372_v58 = vmax.f32 %v358_v54, 0.0 }
  0xcc   :  { %v293_v51 = vpop.f32.mrf.mxu3 }
  0xcd   :  { %v555_v49 = vpack.c.bf16 %v367_v48, %v366_v47  ;;  %v294_v52 = vadd.f32 %v752_v2, %v293_v51 }
  0xce   :  { %v362_v53 = vpop.f32.mrf.mxu2 }
  0xcf   :  { %556 = vst [vmem:[%s781_s3] sm:$0xff] %v555_v49   ;;  %v327_v55 = vadd.f32 %v326_v46, %v294_v52  ;;  %v329_v56 = vpop.f32.mrf.mxu1 }
  0xd1   :  { %v360_v57 = vadd.f32 %v359_v44, %v327_v55 }
  0xd3   :  { %v373_v59 = vmax.f32 %v360_v57, 0.0 }
  0xd4   :  { %v296_v60 = vpop.f32.mrf.mxu3 }
  0xd5   :  { %v570_v61 = vpack.c.bf16 %v373_v59, %v372_v58  ;;  %v297_v62 = vadd.f32 %v752_v2, %v296_v60 }
  0xd6   :  { %v364_v63 = vpop.f32.mrf.mxu2 }
  0xd7   :  { %574 = vst [vmem:[%s781_s3 + $0x18] sm:$0xff] %v570_v61   ;;  %v330_v0 = vadd.f32 %v329_v56, %v297_v62  ;;  %v331_v1 = vpop.f32.mrf.mxu1 }
  0xd9   :  { %v363_v3 = vadd.f32 %v362_v53, %v330_v0 }
  0xdb   :  { %v374_v4 = vmax.f32 %v363_v3, 0.0 }
  0xdc   :  { %v298_v5 = vpop.f32.mrf.mxu3 }
  0xdd   :  { %v383_v6 = vpack.c.bf16 %v374_v4, %v374_v4 }
  0xdf   :  { %392 = vst [vmem:[%s781_s3 + $0x20] sm:$0x1] %v383_v6 }

// kernel: deepspeech2_forward.9
= control target key start
LH: loop header
LB: loop body
LE: loop exit
PB: predicated region body
PF: predicated region fallthrough
CT: control target
= control target key end

     0   :  { %v299_v24 = vlaneseq  ;;  %s1609_s1 = inlined_call_operand.vmem [shape: bf16[128,128], index: 1, kind: input, shape index: {}]   ;;  %s1610_s2 = inlined_call_operand.vmem [shape: f32[1,128], index: 2, kind: input, shape index: {}]   ;;  %s1611_s0 = inlined_call_operand.vmem [shape: bf16[256,128], index: 0, kind: input, shape index: {}]   ;;  %s1612_s3 = inlined_call_operand.vmem [shape: f32[256,128], index: 3, kind: output, shape index: {}]  }
   0x1   :  { %v843_v0 = vld [vmem:[%s1609_s1 + $0x38] sm:$0xff]  ;;  %v842_v1 = vld [vmem:[%s1609_s1 + $0x30] sm:$0xff]  ;;  %v841_v2 = vld [vmem:[%s1609_s1 + $0x28] sm:$0xff] }
   0x2   :  { %210 = vmatpush.bf16.msra.mxu0 %v843_v0  ;;  %844 = vmatpush.bf16.msra.mxu1 %v843_v0  ;;  %v840_v3 = vld [vmem:[%s1609_s1 + $0x20] sm:$0xff]  ;;  %v839_v4 = vld [vmem:[%s1609_s1 + $0x18] sm:$0xff]  ;;  %v838_v5 = vld [vmem:[%s1609_s1 + $0x10] sm:$0xff]  ;;  %v1089_v25 = vand.u32 127, %v299_v24 }
   0x3   :  { %845 = vmatpush.bf16.msra.mxu2 %v843_v0  ;;  %846 = vmatpush.bf16.msra.mxu3 %v843_v0  ;;  %v837_v6 = vld [vmem:[%s1609_s1 + $0x8] sm:$0xff]  ;;  %v836_v7 = vld [vmem:[%s1609_s1] sm:$0xff]  ;;  %v822_v16 = vld [vmem:[%s1611_s0 + $0x10] sm:$0xff] }
   0x4   :  { %v820_v8 = vld [vmem:[%s1611_s0] sm:$0xff]  ;;  %v821_v12 = vld [vmem:[%s1611_s0 + $0x8] sm:$0xff]  ;;  %v826_v17 = vld [vmem:[%s1611_s0 + $0x30] sm:$0xff]  ;;  %vm301_vm0 = vcmp.lt.s32.totalorder %v1089_v25, 8 }
   0x5   :  { %v824_v9 = vld [vmem:[%s1611_s0 + $0x20] sm:$0xff]  ;;  %v825_v13 = vld [vmem:[%s1611_s0 + $0x28] sm:$0xff]  ;;  %v830_v18 = vld [vmem:[%s1611_s0 + $0x50] sm:$0xff] }
   0x6   :  { %211 = vmatpush.bf16.msra.mxu0 %v842_v1  ;;  %847 = vmatpush.bf16.msra.mxu1 %v842_v1  ;;  %v828_v10 = vld [vmem:[%s1611_s0 + $0x40] sm:$0xff]  ;;  %v833_v14 = vld [vmem:[%s1611_s0 + $0x68] sm:$0xff]  ;;  %v834_v19 = vld [vmem:[%s1611_s0 + $0x70] sm:$0xff] }
   0x7   :  { %848 = vmatpush.bf16.msra.mxu2 %v842_v1  ;;  %849 = vmatpush.bf16.msra.mxu3 %v842_v1  ;;  %v832_v11 = vld [vmem:[%s1611_s0 + $0x60] sm:$0xff]  ;;  %v829_v15 = vld [vmem:[%s1611_s0 + $0x48] sm:$0xff]  ;;  %v823_v20 = vld [vmem:[%s1611_s0 + $0x18] sm:$0xff] }
   0x8   :  { %v827_v21 = vld [vmem:[%s1611_s0 + $0x38] sm:$0xff]  ;;  %v1094_v26 = vld [vmem:[%s1610_s2] ss:$0 sm:$0xff] }
   0x9   :  { %v831_v22 = vld [vmem:[%s1611_s0 + $0x58] sm:$0xff] }
   0xa   :  { %212 = vmatpush.bf16.msra.mxu0 %v841_v2  ;;  %850 = vmatpush.bf16.msra.mxu1 %v841_v2  ;;  %v835_v23 = vld [vmem:[%s1611_s0 + $0x78] sm:$0xff] }
   0xb   :  { %851 = vmatpush.bf16.msra.mxu2 %v841_v2  ;;  %852 = vmatpush.bf16.msra.mxu3 %v841_v2 }
   0xe   :  { %213 = vmatpush.bf16.msra.mxu0 %v840_v3  ;;  %853 = vmatpush.bf16.msra.mxu1 %v840_v3 }
   0xf   :  { %854 = vmatpush.bf16.msra.mxu2 %v840_v3  ;;  %855 = vmatpush.bf16.msra.mxu3 %v840_v3 }
  0x12   :  { %214 = vmatpush.bf16.msra.mxu0 %v839_v4  ;;  %856 = vmatpush.bf16.msra.mxu1 %v839_v4 }
  0x13   :  { %857 = vmatpush.bf16.msra.mxu2 %v839_v4  ;;  %858 = vmatpush.bf16.msra.mxu3 %v839_v4 }
  0x16   :  { %215 = vmatpush.bf16.msra.mxu0 %v838_v5  ;;  %859 = vmatpush.bf16.msra.mxu1 %v838_v5 }
  0x17   :  { %860 = vmatpush.bf16.msra.mxu2 %v838_v5  ;;  %861 = vmatpush.bf16.msra.mxu3 %v838_v5 }
  0x1a   :  { %216 = vmatpush.bf16.msra.mxu0 %v837_v6  ;;  %862 = vmatpush.bf16.msra.mxu1 %v837_v6 }
  0x1b   :  { %863 = vmatpush.bf16.msra.mxu2 %v837_v6  ;;  %864 = vmatpush.bf16.msra.mxu3 %v837_v6 }
  0x1e   :  { %217 = vmatpush.bf16.msra.mxu0 %v836_v7  ;;  %865 = vmatpush.bf16.msra.mxu1 %v836_v7 }
  0x1f   :  { %866 = vmatpush.bf16.msra.mxu2 %v836_v7  ;;  %867 = vmatpush.bf16.msra.mxu3 %v836_v7 }
  0x21   :  { %218 = vmatmul.bf16.vlgmr.msra.gmra.mxu0 %v820_v8  ;;  %238 = vmatmul.bf16.vlgmr.msra.gmra.mxu1 %v824_v9 }
  0x22   :  { %258 = vmatmul.bf16.vlgmr.msra.gmra.mxu2 %v828_v10  ;;  %278 = vmatmul.bf16.vlgmr.msra.gmra.mxu3 %v832_v11 }
  0x31   :  { %223 = vmatmul.bf16.gmra.mxu0 %v821_v12  ;;  %243 = vmatmul.bf16.gmra.mxu1 %v825_v13 }
  0x32   :  { %283 = vmatmul.bf16.gmra.mxu3 %v833_v14  ;;  %263 = vmatmul.bf16.gmra.mxu2 %v829_v15 }
  0x41   :  { %228 = vmatmul.bf16.gmra.mxu0 %v822_v16  ;;  %248 = vmatmul.bf16.gmra.mxu1 %v826_v17 }
  0x42   :  { %268 = vmatmul.bf16.gmra.mxu2 %v830_v18  ;;  %288 = vmatmul.bf16.gmra.mxu3 %v834_v19 }
  0x51   :  { %233 = vmatmul.bf16.gmra.mxu0 %v823_v20  ;;  %253 = vmatmul.bf16.gmra.mxu1 %v827_v21 }
  0x52   :  { %273 = vmatmul.bf16.gmra.mxu2 %v831_v22  ;;  %293 = vmatmul.bf16.gmra.mxu3 %v835_v23 }
  0x9e   :  { %v219_v27 = vpop.f32.mrf.mxu0  ;;  %v239_v28 = vpop.f32.mrf.mxu1 }
  0x9f   :  { %v220_v29 = vadd.f32 %v1094_v26, %v219_v27  ;;  %v240_v30 = vadd.f32 %v1094_v26, %v239_v28 }
  0xa1   :  { %v1101_v31 = vsel %vm301_vm0, %v240_v30, -1e+30  ;;  %v1105_v32 = vsel %vm301_vm0, %v220_v29, -1e+30 }
  0xa2   :  { %352 = vmax.xlane.f32.xlu2 %v1101_v31  ;;  %336 = vmax.xlane.f32.xlu0 %v1105_v32 }
  0xa5   :  { %v259_v33 = vpop.f32.mrf.mxu2  ;;  %v279_v34 = vpop.f32.mrf.mxu3 }
  0xa6   :  { %v260_v35 = vadd.f32 %v1094_v26, %v259_v33  ;;  %v280_v36 = vadd.f32 %v1094_v26, %v279_v34  ;;  %v221_v37 = vpop.f32.mrf.mxu0  ;;  %v241_v38 = vpop.f32.mrf.mxu1 }
  0xa7   :  { %v222_v41 = vadd.f32 %v1094_v26, %v221_v37  ;;  %v242_v52 = vadd.f32 %v1094_v26, %v241_v38 }
  0xa8   :  { %v1113_v39 = vsel %vm301_vm0, %v260_v35, -1e+30  ;;  %v1118_v40 = vsel %vm301_vm0, %v280_v36, -1e+30 }
  0xa9   :  { %368 = vmax.xlane.f32.xlu1 %v1113_v39  ;;  %v1136_v50 = vsel %vm301_vm0, %v222_v41, -1e+30  ;;  %v1154_v60 = vsel %vm301_vm0, %v242_v52, -1e+30 }
  0xaa   :  { %384 = vmax.xlane.f32.xlu0 %v1118_v40 }
  0xad   :  { %v261_v42 = vpop.f32.mrf.mxu2  ;;  %v281_v43 = vpop.f32.mrf.mxu3 }
  0xae   :  { %v262_v44 = vadd.f32 %v1094_v26, %v261_v42  ;;  %v282_v45 = vadd.f32 %v1094_v26, %v281_v43  ;;  %v224_v46 = vpop.f32.mrf.mxu0  ;;  %v244_v47 = vpop.f32.mrf.mxu1 }
  0xaf   :  { %v225_v51 = vadd.f32 %v1094_v26, %v224_v46  ;;  %v245_v61 = vadd.f32 %v1094_v26, %v244_v47 }
  0xb0   :  { %v1126_v48 = vsel %vm301_vm0, %v282_v45, -1e+30  ;;  %v1130_v49 = vsel %vm301_vm0, %v262_v44, -1e+30 }
  0xb1   :  { %386 = vmax.xlane.f32.xlu1 %v1126_v48  ;;  %370 = vmax.xlane.f32.xlu2 %v1130_v49  ;;  %v1144_v56 = vsel %vm301_vm0, %v225_v51, -1e+30  ;;  %v1166_v2 = vsel %vm301_vm0, %v245_v61, -1e+30 }
  0xb2   :  { %338 = vmax.xlane.f32.xlu0 %v1136_v50 }
  0xb5   :  { %v284_v53 = vpop.f32.mrf.mxu3  ;;  %v264_v54 = vpop.f32.mrf.mxu2 }
  0xb6   :  { %v285_v55 = vadd.f32 %v1094_v26, %v284_v53  ;;  %v226_v57 = vpop.f32.mrf.mxu0  ;;  %v246_v58 = vpop.f32.mrf.mxu1  ;;  %v265_v63 = vadd.f32 %v1094_v26, %v264_v54 }
  0xb7   :  { %v247_v62 = vadd.f32 %v1094_v26, %v246_v58  ;;  %v227_v7 = vadd.f32 %v1094_v26, %v226_v57 }
  0xb8   :  { %v1148_v59 = vsel %vm301_vm0, %v285_v55, -1e+30  ;;  %v1170_v3 = vsel %vm301_vm0, %v265_v63, -1e+30 }
  0xb9   :  { %388 = vmax.xlane.f32.xlu2 %v1148_v59  ;;  %340 = vmax.xlane.f32.xlu1 %v1144_v56  ;;  %v1162_v1 = vsel %vm301_vm0, %v247_v62, -1e+30  ;;  %v1184_v11 = vsel %vm301_vm0, %v227_v7, -1e+30 }
  0xba   :  { %354 = vmax.xlane.f32.xlu0 %v1154_v60 }
  0xbd   :  { %v266_v0 = vpop.f32.mrf.mxu2  ;;  %v286_v5 = vpop.f32.mrf.mxu3 }
  0xbe   :  { %v229_v4 = vpop.f32.mrf.mxu0  ;;  %v287_v8 = vadd.f32 %v1094_v26, %v286_v5  ;;  %v249_v13 = vpop.f32.mrf.mxu1  ;;  %v267_v16 = vadd.f32 %v1094_v26, %v266_v0 }
  0xbf   :  { %v230_v6 = vadd.f32 %v1094_v26, %v229_v4  ;;  %v250_v15 = vadd.f32 %v1094_v26, %v249_v13 }
  0xc0   :  { %v1190_v12 = vsel %vm301_vm0, %v287_v8, -1e+30  ;;  %v1206_v20 = vsel %vm301_vm0, %v267_v16, -1e+30 }
  0xc1   :  { %358 = vmax.xlane.f32.xlu2 %v1162_v1  ;;  %356 = vmax.xlane.f32.xlu1 %v1166_v2  ;;  %v1180_v9 = vsel %vm301_vm0, %v230_v6, -1e+30  ;;  %v1202_v19 = vsel %vm301_vm0, %v250_v15, -1e+30 }
  0xc2   :  { %372 = vmax.xlane.f32.xlu0 %v1170_v3 }
  0xc5   :  { %v269_v10 = vpop.f32.mrf.mxu2  ;;  %v289_v17 = vpop.f32.mrf.mxu3 }
  0xc6   :  { %v270_v14 = vadd.f32 %v1094_v26, %v269_v10  ;;  %v231_v21 = vpop.f32.mrf.mxu0  ;;  %v290_v23 = vadd.f32 %v1094_v26, %v289_v17  ;;  %v251_v29 = vpop.f32.mrf.mxu1 }
  0xc7   :  { %v232_v24 = vadd.f32 %v1094_v26, %v231_v21  ;;  %v252_v38 = vadd.f32 %v1094_v26, %v251_v29 }
  0xc8   :  { %v1198_v18 = vsel %vm301_vm0, %v270_v14, -1e+30  ;;  %v1216_v28 = vsel %vm301_vm0, %v290_v23, -1e+30 }
  0xc9   :  { %344 = vmax.xlane.f32.xlu2 %v1180_v9  ;;  %342 = vmax.xlane.f32.xlu1 %v1184_v11  ;;  %v1220_v33 = vsel %vm301_vm0, %v232_v24, -1e+30  ;;  %v1242_v45 = vsel %vm301_vm0, %v252_v38, -1e+30 }
  0xca   :  { %390 = vmax.xlane.f32.xlu0 %v1190_v12 }
  0xcd   :  { %v271_v22 = vpop.f32.mrf.mxu2  ;;  %v291_v30 = vpop.f32.mrf.mxu3 }
  0xce   :  { %v272_v27 = vadd.f32 %v1094_v26, %v271_v22  ;;  %v234_v35 = vpop.f32.mrf.mxu0  ;;  %v292_v36 = vadd.f32 %v1094_v26, %v291_v30  ;;  %v254_v44 = vpop.f32.mrf.mxu1 }
  0xcf   :  { %v235_v37 = vadd.f32 %v1094_v26, %v234_v35  ;;  %v255_v46 = vadd.f32 %v1094_v26, %v254_v44 }
  0xd0   :  { %v1226_v34 = vsel %vm301_vm0, %v272_v27, -1e+30  ;;  %v1234_v42 = vsel %vm301_vm0, %v292_v36, -1e+30 }
  0xd1   :  { %376 = vmax.xlane.f32.xlu2 %v1198_v18  ;;  %374 = vmax.xlane.f32.xlu1 %v1206_v20  ;;  %v1238_v43 = vsel %vm301_vm0, %v235_v37, -1e+30  ;;  %v1252_v53 = vsel %vm301_vm0, %v255_v46, -1e+30 }
  0xd2   :  { %360 = vmax.xlane.f32.xlu0 %v1202_v19 }
  0xd5   :  { %v274_v41 = vpop.f32.mrf.mxu2  ;;  %v294_v51 = vpop.f32.mrf.mxu3 }
  0xd6   :  { %v275_v47 = vadd.f32 %v1094_v26, %v274_v41  ;;  %v295_v52 = vadd.f32 %v1094_v26, %v294_v51  ;;  %v236_v58 = vpop.f32.mrf.mxu0  ;;  %v256_v61 = vpop.f32.mrf.mxu1 }
  0xd7   :  { %v237_v63 = vadd.f32 %v1094_v26, %v236_v58  ;;  %v257_v0 = vadd.f32 %v1094_v26, %v256_v61 }
  0xd8   :  { %v1256_v54 = vsel %vm301_vm0, %v275_v47, -1e+30  ;;  %v1260_v55 = vsel %vm301_vm0, %v295_v52, -1e+30 }
  0xd9   :  { %346 = vmax.xlane.f32.xlu2 %v1220_v33  ;;  %392 = vmax.xlane.f32.xlu1 %v1216_v28  ;;  %v1274_v5 = vsel %vm301_vm0, %v237_v63, -1e+30  ;;  %v1280_v7 = vsel %vm301_vm0, %v257_v0, -1e+30 }
  0xda   :  { %378 = vmax.xlane.f32.xlu0 %v1226_v34 }
  0xdd   :  { %v276_v57 = vpop.f32.mrf.mxu2  ;;  %v296_v6 = vpop.f32.mrf.mxu3 }
  0xde   :  { %v277_v62 = vadd.f32 %v1094_v26, %v276_v57  ;;  %v297_v8 = vadd.f32 %v1094_v26, %v296_v6 }
  0xe0   :  { %v1270_v4 = vsel %vm301_vm0, %v277_v62, -1e+30  ;;  %v1286_v10 = vsel %vm301_vm0, %v297_v8, -1e+30 }
  0xe1   :  { %394 = vmax.xlane.f32.xlu2 %v1234_v42  ;;  %362 = vmax.xlane.f32.xlu1 %v1242_v45 }
  0xe2   :  { %348 = vmax.xlane.f32.xlu0 %v1238_v43 }
  0xe9   :  { %364 = vmax.xlane.f32.xlu2 %v1252_v53  ;;  %380 = vmax.xlane.f32.xlu1 %v1256_v54 }
  0xea   :  { %396 = vmax.xlane.f32.xlu0 %v1260_v55 }
  0xf1   :  { %382 = vmax.xlane.f32.xlu2 %v1270_v4  ;;  %350 = vmax.xlane.f32.xlu1 %v1274_v5 }
  0xf2   :  { %366 = vmax.xlane.f32.xlu0 %v1280_v7 }
  0xf9   :  { %398 = vmax.xlane.f32.xlu1 %v1286_v10 }
 0x115   :  { %v353_v13 = vpop.xlane.xlu2 %352  ;;  %v337_v14 = vpop.xlane.xlu0 %336 }
 0x116   :  { %v1290_v15 = vsub.f32 %v1101_v31, %v353_v13  ;;  %v1293_v16 = vsub.f32 %v1105_v32, %v337_v14 }
 0x118   :  { %v448_v17 = vmul.f32 1.442695, %v1290_v15  ;;  %v432_v21 = vmul.f32 1.442695, %v1293_v16 }
 0x11a   :  { %869 = vpow2.f32 %v448_v17 }
 0x11b   :  { %871 = vpow2.f32 %v432_v21 }
 0x11c   :  { %v369_v26 = vpop.xlane.xlu1 %368 }
 0x11d   :  { %v1298_v22 = vsub.f32 %v1113_v39, %v369_v26  ;;  %v385_v23 = vpop.xlane.xlu0 %384 }
 0x11e   :  { %v1301_v24 = vsub.f32 %v1118_v40, %v385_v23 }
 0x11f   :  { %v464_v31 = vmul.f32 1.442695, %v1298_v22 }
 0x120   :  { %v870_v27 = vpop.eup %869  ;;  %v480_v32 = vmul.f32 1.442695, %v1301_v24 }
 0x121   :  { %v872_v29 = vpop.eup %871  ;;  %873 = vpow2.f32 %v464_v31  ;;  %v504_v30 = vsel %vm301_vm0, %v870_v27, 0.0 }
 0x122   :  { %875 = vpow2.f32 %v480_v32  ;;  %544 = vadd.xlane.f32.xlu1 %v504_v30  ;;  %v496_v39 = vsel %vm301_vm0, %v872_v29, 0.0 }
 0x123   :  { %528 = vadd.xlane.f32.xlu2 %v496_v39 }
 0x124   :  { %v387_v35 = vpop.xlane.xlu1 %386  ;;  %v371_v36 = vpop.xlane.xlu2 %370 }
 0x125   :  { %v1310_v40 = vsub.f32 %v1130_v49, %v371_v36  ;;  %v339_v37 = vpop.xlane.xlu0 %338  ;;  %v1320_v52 = vsub.f32 %v1126_v48, %v387_v35 }
 0x126   :  { %v1313_v38 = vsub.f32 %v1136_v50, %v339_v37 }
 0x127   :  { %v874_v41 = vpop.eup %873  ;;  %v466_v44 = vmul.f32 1.442695, %v1310_v40  ;;  %v482_v58 = vmul.f32 1.442695, %v1320_v52 }
 0x128   :  { %v876_v46 = vpop.eup %875  ;;  %v434_v47 = vmul.f32 1.442695, %v1313_v38  ;;  %v512_v51 = vsel %vm301_vm0, %v874_v41, 0.0 }
 0x129   :  { %560 = vadd.xlane.f32.xlu0 %v512_v51  ;;  %v520_v49 = vsel %vm301_vm0, %v876_v46, 0.0  ;;  %877 = vpow2.f32 %v466_v44 }
 0x12a   :  { %879 = vpow2.f32 %v434_v47 }
 0x12b   :  { %576 = vadd.xlane.f32.xlu2 %v520_v49  ;;  %881 = vpow2.f32 %v482_v58 }
 0x12c   :  { %v389_v50 = vpop.xlane.xlu2 %388  ;;  %v341_v57 = vpop.xlane.xlu1 %340 }
 0x12d   :  { %v1326_v61 = vsub.f32 %v1144_v56, %v341_v57  ;;  %v355_v62 = vpop.xlane.xlu0 %354  ;;  %v1333_v6 = vsub.f32 %v1148_v59, %v389_v50 }
 0x12e   :  { %v1329_v63 = vsub.f32 %v1154_v60, %v355_v62 }
 0x12f   :  { %v436_v48 = vmul.f32 1.442695, %v1326_v61  ;;  %v878_v0 = vpop.eup %877  ;;  %v484_v60 = vmul.f32 1.442695, %v1333_v6 }
 0x130   :  { %v450_v8 = vmul.f32 1.442695, %v1329_v63  ;;  %v880_v13 = vpop.eup %879  ;;  %v513_v14 = vsel %vm301_vm0, %v878_v0, 0.0 }
 0x131   :  { %883 = vpow2.f32 %v436_v48  ;;  %562 = vadd.xlane.f32.xlu1 %v513_v14  ;;  %v497_v56 = vsel %vm301_vm0, %v880_v13, 0.0  ;;  %v882_v31 = vpop.eup %881 }
 0x132   :  { %885 = vpow2.f32 %v450_v8  ;;  %530 = vadd.xlane.f32.xlu0 %v497_v56 }
 0x133   :  { %887 = vpow2.f32 %v484_v60 }
 0x134   :  { %v359_v17 = vpop.xlane.xlu2 %358  ;;  %v357_v21 = vpop.xlane.xlu1 %356 }
 0x135   :  { %v1342_v59 = vsub.f32 %v1166_v2, %v357_v21  ;;  %v373_v26 = vpop.xlane.xlu0 %372  ;;  %v1349_v29 = vsub.f32 %v1162_v1, %v359_v17  ;;  %v521_v2 = vsel %vm301_vm0, %v882_v31, 0.0 }
 0x136   :  { %v1345_v23 = vsub.f32 %v1170_v3, %v373_v26 }
 0x137   :  { %v452_v27 = vmul.f32 1.442695, %v1342_v59  ;;  %v884_v32 = vpop.eup %883  ;;  %v454_v1 = vmul.f32 1.442695, %v1349_v29 }
 0x138   :  { %v468_v30 = vmul.f32 1.442695, %v1345_v23  ;;  %v886_v39 = vpop.eup %885  ;;  %v498_v35 = vsel %vm301_vm0, %v884_v32, 0.0 }
 0x139   :  { %889 = vpow2.f32 %v452_v27  ;;  %532 = vadd.xlane.f32.xlu1 %v498_v35  ;;  %v505_v3 = vsel %vm301_vm0, %v886_v39, 0.0  ;;  %v888_v46 = vpop.eup %887 }
 0x13a   :  { %891 = vpow2.f32 %v468_v30  ;;  %578 = vadd.xlane.f32.xlu0 %v521_v2  ;;  %546 = vadd.xlane.f32.xlu2 %v505_v3  ;;  %v522_v57 = vsel %vm301_vm0, %v888_v46, 0.0 }
 0x13b   :  { %893 = vpow2.f32 %v454_v1 }
 0x13c   :  { %v345_v36 = vpop.xlane.xlu2 %344  ;;  %v343_v37 = vpop.xlane.xlu1 %342 }
 0x13d   :  { %v1360_v41 = vsub.f32 %v1184_v11, %v343_v37  ;;  %v391_v44 = vpop.xlane.xlu0 %390  ;;  %v1380_v56 = vsub.f32 %v1180_v9, %v345_v36 }
 0x13e   :  { %v1364_v49 = vsub.f32 %v1190_v12, %v391_v44 }
 0x13f   :  { %v438_v47 = vmul.f32 1.442695, %v1360_v41  ;;  %v890_v51 = vpop.eup %889  ;;  %v440_v9 = vmul.f32 1.442695, %v1380_v56 }
 0x140   :  { %v892_v50 = vpop.eup %891  ;;  %v506_v58 = vsel %vm301_vm0, %v890_v51, 0.0  ;;  %v486_v62 = vmul.f32 1.442695, %v1364_v49 }
 0x141   :  { %895 = vpow2.f32 %v438_v47  ;;  %580 = vadd.xlane.f32.xlu1 %v522_v57  ;;  %v514_v11 = vsel %vm301_vm0, %v892_v50, 0.0  ;;  %v894_v14 = vpop.eup %893 }
 0x142   :  { %548 = vadd.xlane.f32.xlu0 %v506_v58  ;;  %564 = vadd.xlane.f32.xlu2 %v514_v11  ;;  %897 = vpow2.f32 %v486_v62 }
 0x144   :  { %v377_v48 = vpop.xlane.xlu2 %376  ;;  %v375_v0 = vpop.xlane.xlu1 %374 }
 0x145   :  { %v1374_v12 = vsub.f32 %v1198_v18, %v377_v48  ;;  %v1377_v8 = vsub.f32 %v1206_v20, %v375_v0  ;;  %v361_v13 = vpop.xlane.xlu0 %360  ;;  %v507_v18 = vsel %vm301_vm0, %v894_v14, 0.0 }
 0x146   :  { %v1385_v26 = vsub.f32 %v1202_v19, %v361_v13 }
 0x147   :  { %v472_v60 = vmul.f32 1.442695, %v1374_v12  ;;  %v470_v17 = vmul.f32 1.442695, %v1377_v8  ;;  %v896_v21 = vpop.eup %895 }
 0x148   :  { %v499_v20 = vsel %vm301_vm0, %v896_v21, 0.0  ;;  %v456_v31 = vmul.f32 1.442695, %v1385_v26  ;;  %v898_v39 = vpop.eup %897 }
 0x149   :  { %899 = vpow2.f32 %v472_v60  ;;  %550 = vadd.xlane.f32.xlu1 %v507_v18  ;;  %v523_v44 = vsel %vm301_vm0, %v898_v39, 0.0 }
 0x14a   :  { %901 = vpow2.f32 %v470_v17  ;;  %534 = vadd.xlane.f32.xlu2 %v499_v20 }
 0x14b   :  { %903 = vpow2.f32 %v440_v9 }
 0x14c   :  { %v347_v27 = vpop.xlane.xlu2 %346  ;;  %v393_v32 = vpop.xlane.xlu1 %392  ;;  %905 = vpow2.f32 %v456_v31 }
 0x14d   :  { %v1394_v30 = vsub.f32 %v1220_v33, %v347_v27  ;;  %v379_v19 = vpop.xlane.xlu0 %378  ;;  %v1398_v1 = vsub.f32 %v1216_v28, %v393_v32 }
 0x14e   :  { %v1403_v37 = vsub.f32 %v1226_v34, %v379_v19 }
 0x14f   :  { %v900_v35 = vpop.eup %899  ;;  %v442_v2 = vmul.f32 1.442695, %v1394_v30  ;;  %v488_v46 = vmul.f32 1.442695, %v1398_v1 }
 0x150   :  { %v902_v3 = vpop.eup %901  ;;  %v516_v36 = vsel %vm301_vm0, %v900_v35, 0.0  ;;  %v474_v50 = vmul.f32 1.442695, %v1403_v37 }
 0x151   :  { %907 = vpow2.f32 %v442_v2  ;;  %v515_v33 = vsel %vm301_vm0, %v902_v3, 0.0  ;;  %568 = vadd.xlane.f32.xlu1 %v516_v36  ;;  %v904_v51 = vpop.eup %903 }
 0x152   :  { %566 = vadd.xlane.f32.xlu0 %v515_v33  ;;  %582 = vadd.xlane.f32.xlu2 %v523_v44  ;;  %v906_v58 = vpop.eup %905  ;;  %909 = vpow2.f32 %v488_v46  ;;  %v500_v0 = vsel %vm301_vm0, %v904_v51, 0.0 }
 0x153   :  { %911 = vpow2.f32 %v474_v50  ;;  %v508_v13 = vsel %vm301_vm0, %v906_v58, 0.0 }
 0x154   :  { %v395_v28 = vpop.xlane.xlu2 %394  ;;  %v363_v47 = vpop.xlane.xlu1 %362 }
 0x155   :  { %v349_v57 = vpop.xlane.xlu0 %348  ;;  %v1412_v11 = vsub.f32 %v1242_v45, %v363_v47  ;;  %v1444_v44 = vsub.f32 %v1234_v42, %v395_v28 }
 0x156   :  { %v1415_v62 = vsub.f32 %v1238_v43, %v349_v57 }
 0x157   :  { %v908_v34 = vpop.eup %907  ;;  %v458_v14 = vmul.f32 1.442695, %v1412_v11 }
 0x158   :  { %v501_v48 = vsel %vm301_vm0, %v908_v34, 0.0  ;;  %v444_v45 = vmul.f32 1.442695, %v1415_v62  ;;  %v910_v18 = vpop.eup %909 }
 0x159   :  { %538 = vadd.xlane.f32.xlu1 %v501_v48  ;;  %v912_v20 = vpop.eup %911  ;;  %913 = vpow2.f32 %v458_v14  ;;  %v524_v27 = vsel %vm301_vm0, %v910_v18, 0.0 }
 0x15a   :  { %536 = vadd.xlane.f32.xlu0 %v500_v0  ;;  %552 = vadd.xlane.f32.xlu2 %v508_v13  ;;  %915 = vpow2.f32 %v444_v45  ;;  %v517_v32 = vsel %vm301_vm0, %v912_v20, 0.0 }
 0x15c   :  { %v365_v60 = vpop.xlane.xlu2 %364  ;;  %v381_v43 = vpop.xlane.xlu1 %380 }
 0x15d   :  { %v1426_v17 = vsub.f32 %v1252_v53, %v365_v60  ;;  %v397_v21 = vpop.xlane.xlu0 %396  ;;  %v1430_v31 = vsub.f32 %v1256_v54, %v381_v43 }
 0x15e   :  { %v1454_v50 = vsub.f32 %v1260_v55, %v397_v21 }
 0x15f   :  { %v460_v9 = vmul.f32 1.442695, %v1426_v17  ;;  %v476_v53 = vmul.f32 1.442695, %v1430_v31  ;;  %v914_v35 = vpop.eup %913 }
 0x160   :  { %v916_v54 = vpop.eup %915  ;;  %v509_v42 = vsel %vm301_vm0, %v914_v35, 0.0  ;;  %v492_v57 = vmul.f32 1.442695, %v1454_v50 }
 0x161   :  { %917 = vpow2.f32 %v460_v9 }
 0x162   :  { %584 = vadd.xlane.f32.xlu0 %v524_v27  ;;  %570 = vadd.xlane.f32.xlu2 %v517_v32  ;;  %919 = vpow2.f32 %v476_v53 }
 0x164   :  { %v383_v19 = vpop.xlane.xlu2 %382  ;;  %v351_v39 = vpop.xlane.xlu1 %350 }
 0x165   :  { %v1438_v2 = vsub.f32 %v1270_v4, %v383_v19  ;;  %v367_v3 = vpop.xlane.xlu0 %366  ;;  %v1448_v47 = vsub.f32 %v1274_v5, %v351_v39  ;;  %v490_v5 = vmul.f32 1.442695, %v1444_v44 }
 0x166   :  { %v1441_v36 = vsub.f32 %v1280_v7, %v367_v3  ;;  %v502_v7 = vsel %vm301_vm0, %v916_v54, 0.0 }
 0x167   :  { %v918_v33 = vpop.eup %917  ;;  %v478_v46 = vmul.f32 1.442695, %v1438_v2  ;;  %v446_v28 = vmul.f32 1.442695, %v1448_v47 }
 0x168   :  { %v462_v51 = vmul.f32 1.442695, %v1441_v36  ;;  %v510_v4 = vsel %vm301_vm0, %v918_v33, 0.0  ;;  %v920_v55 = vpop.eup %919 }
 0x169   :  { %921 = vpow2.f32 %v478_v46  ;;  %556 = vadd.xlane.f32.xlu1 %v510_v4  ;;  %v518_v14 = vsel %vm301_vm0, %v920_v55, 0.0 }
 0x16a   :  { %554 = vadd.xlane.f32.xlu0 %v509_v42  ;;  %923 = vpow2.f32 %v462_v51  ;;  %540 = vadd.xlane.f32.xlu2 %v502_v7 }
 0x16b   :  { %925 = vpow2.f32 %v490_v5 }
 0x16c   :  { %v399_v58 = vpop.xlane.xlu1 %398  ;;  %927 = vpow2.f32 %v446_v28 }
 0x16d   :  { %v1464_v48 = vsub.f32 %v1286_v10, %v399_v58  ;;  %929 = vpow2.f32 %v492_v57 }
 0x16f   :  { %v922_v34 = vpop.eup %921  ;;  %v494_v60 = vmul.f32 1.442695, %v1464_v48 }
 0x170   :  { %v519_v0 = vsel %vm301_vm0, %v922_v34, 0.0  ;;  %v924_v13 = vpop.eup %923 }
 0x171   :  { %574 = vadd.xlane.f32.xlu1 %v519_v0  ;;  %v511_v45 = vsel %vm301_vm0, %v924_v13, 0.0  ;;  %v926_v43 = vpop.eup %925  ;;  %931 = vpow2.f32 %v494_v60 }
 0x172   :  { %572 = vadd.xlane.f32.xlu0 %v518_v14  ;;  %558 = vadd.xlane.f32.xlu2 %v511_v45  ;;  %v928_v21 = vpop.eup %927  ;;  %v525_v18 = vsel %vm301_vm0, %v926_v43, 0.0 }
 0x173   :  { %v930_v10 = vpop.eup %929  ;;  %v503_v20 = vsel %vm301_vm0, %v928_v21, 0.0 }
 0x174   :  { %v526_v9 = vsel %vm301_vm0, %v930_v10, 0.0 }
 0x177   :  { %v932_v27 = vpop.eup %931 }
 0x178   :  { %v527_v32 = vsel %vm301_vm0, %v932_v27, 0.0 }
 0x179   :  { %586 = vadd.xlane.f32.xlu1 %v525_v18 }
 0x17a   :  { %542 = vadd.xlane.f32.xlu0 %v503_v20  ;;  %588 = vadd.xlane.f32.xlu2 %v526_v9 }
 0x182   :  { %590 = vadd.xlane.f32.xlu0 %v527_v32 }
 0x195   :  { %v545_v53 = vpop.xlane.xlu1 %544 }
 0x196   :  { %933 = vlog2.f32 %v545_v53  ;;  %v529_v19 = vpop.xlane.xlu2 %528 }
 0x197   :  { %935 = vlog2.f32 %v529_v19 }
 0x19c   :  { %v934_v39 = vpop.eup %933  ;;  %v561_v35 = vpop.xlane.xlu0 %560 }
 0x19d   :  { %v936_v3 = vpop.eup %935  ;;  %v609_v54 = vmul.f32 0.6931472, %v934_v39  ;;  %937 = vlog2.f32 %v561_v35 }
 0x19e   :  { %v593_v33 = vmul.f32 0.6931472, %v936_v3  ;;  %v577_v46 = vpop.xlane.xlu2 %576 }
 0x19f   :  { %v664_v51 = vsub.f32 %v1290_v15, %v609_v54  ;;  %939 = vlog2.f32 %v577_v46 }
 0x1a0   :  { %v656_v4 = vsub.f32 %v1293_v16, %v593_v33 }
 0x1a1   :  { %696 = vst [vmem:[%s1612_s3 + $0x40] sm:$0xff] %v664_v51 }
 0x1a2   :  { %688 = vst [vmem:[%s1612_s3] sm:$0xff] %v656_v4 }
 0x1a3   :  { %v938_v25 = vpop.eup %937 }
 0x1a4   :  { %v625_v42 = vmul.f32 0.6931472, %v938_v25  ;;  %v563_v5 = vpop.xlane.xlu1 %562 }
 0x1a5   :  { %v940_v7 = vpop.eup %939  ;;  %941 = vlog2.f32 %v563_v5  ;;  %v531_v15 = vpop.xlane.xlu0 %530 }
 0x1a6   :  { %v672_v28 = vsub.f32 %v1298_v22, %v625_v42  ;;  %v641_v57 = vmul.f32 0.6931472, %v940_v7  ;;  %943 = vlog2.f32 %v531_v15 }
 0x1a8   :  { %704 = vst [vmem:[%s1612_s3 + $0x80] sm:$0xff] %v672_v28  ;;  %v680_v16 = vsub.f32 %v1301_v24, %v641_v57 }
 0x1aa   :  { %712 = vst [vmem:[%s1612_s3 + $0xc0] sm:$0xff] %v680_v16 }
 0x1ab   :  { %v942_v58 = vpop.eup %941 }
 0x1ac   :  { %v944_v55 = vpop.eup %943  ;;  %v627_v34 = vmul.f32 0.6931472, %v942_v58  ;;  %v533_v0 = vpop.xlane.xlu1 %532 }
 0x1ad   :  { %v595_v13 = vmul.f32 0.6931472, %v944_v55  ;;  %945 = vlog2.f32 %v533_v0  ;;  %v547_v22 = vpop.xlane.xlu2 %546  ;;  %v579_v14 = vpop.xlane.xlu0 %578 }
 0x1ae   :  { %v673_v45 = vsub.f32 %v1310_v40, %v627_v34  ;;  %947 = vlog2.f32 %v547_v22 }
 0x1af   :  { %v657_v60 = vsub.f32 %v1313_v38, %v595_v13  ;;  %949 = vlog2.f32 %v579_v14 }
 0x1b0   :  { %705 = vst [vmem:[%s1612_s3 + $0x88] sm:$0xff] %v673_v45 }
 0x1b1   :  { %689 = vst [vmem:[%s1612_s3 + $0x8] sm:$0xff] %v657_v60 }
 0x1b3   :  { %v946_v24 = vpop.eup %945 }
 0x1b4   :  { %v948_v43 = vpop.eup %947  ;;  %v597_v21 = vmul.f32 0.6931472, %v946_v24  ;;  %v581_v10 = vpop.xlane.xlu1 %580 }
 0x1b5   :  { %v950_v18 = vpop.eup %949  ;;  %v611_v20 = vmul.f32 0.6931472, %v948_v43  ;;  %951 = vlog2.f32 %v581_v10  ;;  %v565_v40 = vpop.xlane.xlu2 %564 }
 0x1b6   :  { %v549_v9 = vpop.xlane.xlu0 %548  ;;  %v658_v38 = vsub.f32 %v1326_v61, %v597_v21  ;;  %v643_v27 = vmul.f32 0.6931472, %v950_v18  ;;  %953 = vlog2.f32 %v565_v40 }
 0x1b7   :  { %v665_v32 = vsub.f32 %v1329_v63, %v611_v20  ;;  %955 = vlog2.f32 %v549_v9 }
 0x1b8   :  { %690 = vst [vmem:[%s1612_s3 + $0x10] sm:$0xff] %v658_v38  ;;  %v681_v53 = vsub.f32 %v1320_v52, %v643_v27 }
 0x1b9   :  { %697 = vst [vmem:[%s1612_s3 + $0x48] sm:$0xff] %v665_v32 }
 0x1ba   :  { %713 = vst [vmem:[%s1612_s3 + $0xc8] sm:$0xff] %v681_v53 }
 0x1bb   :  { %v952_v61 = vpop.eup %951 }
 0x1bc   :  { %v954_v19 = vpop.eup %953  ;;  %v645_v39 = vmul.f32 0.6931472, %v952_v61  ;;  %v551_v35 = vpop.xlane.xlu1 %550 }
 0x1bd   :  { %v956_v63 = vpop.eup %955  ;;  %v629_v3 = vmul.f32 0.6931472, %v954_v19  ;;  %957 = vlog2.f32 %v551_v35  ;;  %v535_v54 = vpop.xlane.xlu2 %534 }
 0x1be   :  { %v682_v33 = vsub.f32 %v1333_v6, %v645_v39  ;;  %v613_v46 = vmul.f32 0.6931472, %v956_v63  ;;  %959 = vlog2.f32 %v535_v54 }
 0x1bf   :  { %v674_v52 = vsub.f32 %v1345_v23, %v629_v3 }
 0x1c0   :  { %714 = vst [vmem:[%s1612_s3 + $0xd0] sm:$0xff] %v682_v33  ;;  %v666_v51 = vsub.f32 %v1342_v59, %v613_v46 }
 0x1c1   :  { %706 = vst [vmem:[%s1612_s3 + $0x90] sm:$0xff] %v674_v52 }
 0x1c2   :  { %698 = vst [vmem:[%s1612_s3 + $0x50] sm:$0xff] %v666_v51 }
 0x1c3   :  { %v958_v4 = vpop.eup %957 }
 0x1c4   :  { %v960_v6 = vpop.eup %959  ;;  %v615_v25 = vmul.f32 0.6931472, %v958_v4  ;;  %v569_v42 = vpop.xlane.xlu1 %568 }
 0x1c5   :  { %v567_v7 = vpop.xlane.xlu0 %566  ;;  %v599_v23 = vmul.f32 0.6931472, %v960_v6  ;;  %961 = vlog2.f32 %v569_v42  ;;  %v583_v5 = vpop.xlane.xlu2 %582 }
 0x1c6   :  { %v667_v28 = vsub.f32 %v1349_v29, %v615_v25  ;;  %963 = vlog2.f32 %v567_v7 }
 0x1c7   :  { %v659_v59 = vsub.f32 %v1360_v41, %v599_v23  ;;  %965 = vlog2.f32 %v583_v5 }
 0x1c8   :  { %699 = vst [vmem:[%s1612_s3 + $0x58] sm:$0xff] %v667_v28 }
 0x1c9   :  { %691 = vst [vmem:[%s1612_s3 + $0x18] sm:$0xff] %v659_v59 }
 0x1cb   :  { %v962_v57 = vpop.eup %961 }
 0x1cc   :  { %v964_v15 = vpop.eup %963  ;;  %v633_v16 = vmul.f32 0.6931472, %v962_v57  ;;  %v539_v58 = vpop.xlane.xlu1 %538 }
 0x1cd   :  { %v537_v55 = vpop.xlane.xlu0 %536  ;;  %v966_v34 = vpop.eup %965  ;;  %v631_v0 = vmul.f32 0.6931472, %v964_v15  ;;  %967 = vlog2.f32 %v539_v58 }
 0x1ce   :  { %v553_v29 = vpop.xlane.xlu2 %552  ;;  %v676_v41 = vsub.f32 %v1374_v12, %v633_v16  ;;  %v647_v13 = vmul.f32 0.6931472, %v966_v34  ;;  %969 = vlog2.f32 %v537_v55 }
 0x1cf   :  { %v675_v22 = vsub.f32 %v1377_v8, %v631_v0  ;;  %971 = vlog2.f32 %v553_v29 }
 0x1d0   :  { %708 = vst [vmem:[%s1612_s3 + $0xa0] sm:$0xff] %v676_v41  ;;  %v683_v14 = vsub.f32 %v1364_v49, %v647_v13 }
 0x1d1   :  { %707 = vst [vmem:[%s1612_s3 + $0x98] sm:$0xff] %v675_v22 }
 0x1d2   :  { %715 = vst [vmem:[%s1612_s3 + $0xd8] sm:$0xff] %v683_v14 }
 0x1d3   :  { %v968_v12 = vpop.eup %967 }
 0x1d4   :  { %v970_v45 = vpop.eup %969  ;;  %v603_v60 = vmul.f32 0.6931472, %v968_v12 }
 0x1d5   :  { %v585_v24 = vpop.xlane.xlu0 %584  ;;  %v972_v8 = vpop.eup %971  ;;  %v601_v43 = vmul.f32 0.6931472, %v970_v45 }
 0x1d6   :  { %973 = vlog2.f32 %v585_v24  ;;  %v571_v21 = vpop.xlane.xlu2 %570  ;;  %v661_v10 = vsub.f32 %v1394_v30, %v603_v60  ;;  %v617_v18 = vmul.f32 0.6931472, %v972_v8 }
 0x1d7   :  { %975 = vlog2.f32 %v571_v21  ;;  %v660_v49 = vsub.f32 %v1380_v56, %v601_v43 }
 0x1d8   :  { %693 = vst [vmem:[%s1612_s3 + $0x28] sm:$0xff] %v661_v10  ;;  %v668_v20 = vsub.f32 %v1385_v26, %v617_v18 }
 0x1d9   :  { %692 = vst [vmem:[%s1612_s3 + $0x20] sm:$0xff] %v660_v49 }
 0x1da   :  { %700 = vst [vmem:[%s1612_s3 + $0x60] sm:$0xff] %v668_v20 }
 0x1dc   :  { %v974_v40 = vpop.eup %973  ;;  %v557_v30 = vpop.xlane.xlu1 %556 }
 0x1dd   :  { %v976_v9 = vpop.eup %975  ;;  %v649_v38 = vmul.f32 0.6931472, %v974_v40  ;;  %977 = vlog2.f32 %v557_v30  ;;  %v555_v56 = vpop.xlane.xlu0 %554 }
 0x1de   :  { %v635_v27 = vmul.f32 0.6931472, %v976_v9  ;;  %979 = vlog2.f32 %v555_v56  ;;  %v541_v32 = vpop.xlane.xlu2 %540 }
 0x1df   :  { %v684_v53 = vsub.f32 %v1398_v1, %v649_v38  ;;  %981 = vlog2.f32 %v541_v32 }
 0x1e0   :  { %v677_v26 = vsub.f32 %v1403_v37, %v635_v27 }
 0x1e1   :  { %716 = vst [vmem:[%s1612_s3 + $0xe0] sm:$0xff] %v684_v53 }
 0x1e2   :  { %709 = vst [vmem:[%s1612_s3 + $0xa8] sm:$0xff] %v677_v26 }
 0x1e3   :  { %v978_v61 = vpop.eup %977 }
 0x1e4   :  { %v980_v19 = vpop.eup %979  ;;  %v621_v39 = vmul.f32 0.6931472, %v978_v61  ;;  %v575_v35 = vpop.xlane.xlu1 %574 }
 0x1e5   :  { %v982_v63 = vpop.eup %981  ;;  %v619_v3 = vmul.f32 0.6931472, %v980_v19  ;;  %983 = vlog2.f32 %v575_v35  ;;  %v573_v54 = vpop.xlane.xlu0 %572 }
 0x1e6   :  { %v670_v1 = vsub.f32 %v1426_v17, %v621_v39  ;;  %v605_v33 = vmul.f32 0.6931472, %v982_v63  ;;  %985 = vlog2.f32 %v573_v54  ;;  %v559_v37 = vpop.xlane.xlu2 %558 }
 0x1e7   :  { %v669_v46 = vsub.f32 %v1412_v11, %v619_v3  ;;  %987 = vlog2.f32 %v559_v37 }
 0x1e8   :  { %702 = vst [vmem:[%s1612_s3 + $0x70] sm:$0xff] %v670_v1  ;;  %v662_v52 = vsub.f32 %v1415_v62, %v605_v33 }
 0x1e9   :  { %701 = vst [vmem:[%s1612_s3 + $0x68] sm:$0xff] %v669_v46 }
 0x1ea   :  { %694 = vst [vmem:[%s1612_s3 + $0x30] sm:$0xff] %v662_v52 }
 0x1eb   :  { %v984_v17 = vpop.eup %983 }
 0x1ec   :  { %v986_v51 = vpop.eup %985  ;;  %v639_v4 = vmul.f32 0.6931472, %v984_v17  ;;  %v587_v6 = vpop.xlane.xlu1 %586 }
 0x1ed   :  { %v988_v11 = vpop.eup %987  ;;  %v637_v25 = vmul.f32 0.6931472, %v986_v51  ;;  %989 = vlog2.f32 %v587_v6  ;;  %v543_v42 = vpop.xlane.xlu0 %542 }
 0x1ee   :  { %v679_v7 = vsub.f32 %v1438_v2, %v639_v4  ;;  %v623_v23 = vmul.f32 0.6931472, %v988_v11  ;;  %991 = vlog2.f32 %v543_v42  ;;  %v589_v62 = vpop.xlane.xlu2 %588 }
 0x1ef   :  { %v678_v5 = vsub.f32 %v1430_v31, %v637_v25  ;;  %993 = vlog2.f32 %v589_v62 }
 0x1f0   :  { %711 = vst [vmem:[%s1612_s3 + $0xb8] sm:$0xff] %v679_v7  ;;  %v671_v28 = vsub.f32 %v1441_v36, %v623_v23 }
 0x1f1   :  { %710 = vst [vmem:[%s1612_s3 + $0xb0] sm:$0xff] %v678_v5 }
 0x1f2   :  { %703 = vst [vmem:[%s1612_s3 + $0x78] sm:$0xff] %v671_v28 }
 0x1f3   :  { %v990_v2 = vpop.eup %989 }
 0x1f4   :  { %v992_v59 = vpop.eup %991  ;;  %v651_v57 = vmul.f32 0.6931472, %v990_v2 }
 0x1f5   :  { %v994_v15 = vpop.eup %993  ;;  %v607_v31 = vmul.f32 0.6931472, %v992_v59  ;;  %v591_v16 = vpop.xlane.xlu0 %590 }
 0x1f6   :  { %v685_v58 = vsub.f32 %v1444_v44, %v651_v57  ;;  %v653_v55 = vmul.f32 0.6931472, %v994_v15  ;;  %995 = vlog2.f32 %v591_v16 }
 0x1f7   :  { %v663_v36 = vsub.f32 %v1448_v47, %v607_v31 }
 0x1f8   :  { %717 = vst [vmem:[%s1612_s3 + $0xe8] sm:$0xff] %v685_v58  ;;  %v686_v34 = vsub.f32 %v1454_v50, %v653_v55 }
 0x1f9   :  { %695 = vst [vmem:[%s1612_s3 + $0x38] sm:$0xff] %v663_v36 }
 0x1fa   :  { %718 = vst [vmem:[%s1612_s3 + $0xf0] sm:$0xff] %v686_v34 }
 0x1fc   :  { %v996_v0 = vpop.eup %995 }
 0x1fd   :  { %v655_v44 = vmul.f32 0.6931472, %v996_v0 }
 0x1ff   :  { %v687_v29 = vsub.f32 %v1464_v48, %v655_v44 }
 0x201   :  { %719 = vst [vmem:[%s1612_s3 + $0xf8] sm:$0xff] %v687_v29 }

// kernel: deepspeech2_forward.7
= control target key start
LH: loop header
LB: loop body
LE: loop exit
PB: predicated region body
PF: predicated region fallthrough
CT: control target
= control target key end

     0   :  { %14 = vsyncpa [#allocation6], 0  ;;  %s6111_s0 = inlined_call_operand.vmem [shape: bf16[16,16,96], index: 0, kind: input, shape index: {}]   ;;  %s6112_s1 = inlined_call_operand.vmem [shape: bf16[96,512], index: 1, kind: input, shape index: {}]   ;;  %s6113_s2 = inlined_call_operand.vmem [shape: bf16[128,512], index: 2, kind: input, shape index: {}]   ;;  %s6114_s3 = inlined_call_operand.vmem [shape: f32[1,512], index: 3, kind: input, shape index: {}]   ;;  %s6115_s4 = inlined_call_operand.vmem [shape: f32[1,128], index: 4, kind: input, shape index: {}]   ;;  %s6116_s5 = inlined_call_operand.vmem [shape: f32[1,128], index: 5, kind: input, shape index: {}]   ;;  %s6117_s6 = inlined_call_operand.vmem [shape: bf16[16,16,128], index: 6, kind: output, shape index: {0}]   ;;  %s6118_s7 = inlined_call_operand.hbm [shape: f32[16,128], index: 7, kind: output, shape index: {1}]   ;;  %s6119_s8 = inlined_call_operand.hbm [shape: f32[16,128], index: 8, kind: output, shape index: {2}]  }
   0x1   :  { %15 = vsyncpa [#allocation8], 0  ;;  %s4293_s27 = smov 0   ;;  %s4295_s28 = smov 0  }
   0x2   :  { %s4297_s29 = smov 0  }
   0x3 LB: > { %s3339_s30 = sadd.s32 4294967295, %s4240_s29   ;;  %s30_s9 = sadd.s32 1, %s4236_s28  ;;  %s4240_s29 = sphi %s4297_s29, %s21_s29   ;;  %s4236_s28 = sphi %s4295_s28, %s6190_s28   ;;  %s4232_s27 = sphi %s4293_s27, %s6189_s27  }
   0x4   : > { %p31_p0 = scmp.ge.s32.totalorder %s30_s9, 2  ;;  %p3343_p1 = scmp.ge.s32.totalorder %s4240_s29, 1 }
   0x5   : > { %p292_p2 = scmp.lt.s32.totalorder %s4240_s29, 3 }
   0x6   : > { %s6192_s9 = smov (%p31_p0, %s30_s9), 0 }
   0x7   : > { %p293_p3 = pnand %p3343_p1, %p292_p2 }
   0x9   : > { %296 = sbr.rel (%p293_p3) target bundleno = 2076 (0x81c), region = 44 }
   0xe   : > { %v3464_v0 = vld [vmem:[%s6112_s1 + $0xa0] sm:$0xf]  ;;  %v3741_v1 = vld [vmem:[%s6112_s1 + $0xac] sm:$0xf0]  ;;  %v3739_v2 = vld [vmem:[%s6112_s1 + $0xa4] sm:$0xf] }
   0xf   : > { %v3465_v3 = vor.u32 %v3741_v1, %v3464_v0  ;;  %v3466_v4 = vld [vmem:[%s6112_s1 + $0xb0] sm:$0xf0]  ;;  %v3472_v5 = vld [vmem:[%s6112_s1 + $0xa8] sm:$0xf]  ;;  %v3742_v6 = vld [vmem:[%s6112_s1 + $0xb4] sm:$0xf0] }
  0x10   : > { %v3469_v7 = vor.u32 %v3739_v2, %v3466_v4  ;;  %v3473_v8 = vor.u32 %v3742_v6, %v3472_v5  ;;  %v3740_v9 = vld [vmem:[%s6112_s1 + $0xac] sm:$0xf]  ;;  %v3474_v10 = vld [vmem:[%s6112_s1 + $0xb8] sm:$0xf0]  ;;  %v3448_v11 = vld [vmem:[%s6112_s1 + $0x80] sm:$0xf] }
  0x11   : > { %600 = vmatpush.bf16.msra.mxu0 %v3465_v3  ;;  %v3477_v12 = vor.u32 %v3740_v9, %v3474_v10  ;;  %v3737_v13 = vld [vmem:[%s6112_s1 + $0x8c] sm:$0xf0]  ;;  %v3735_v14 = vld [vmem:[%s6112_s1 + $0x84] sm:$0xf]  ;;  %v3450_v15 = vld [vmem:[%s6112_s1 + $0x90] sm:$0xf0] }
  0x12   : > { %649 = vmatpush.bf16.msra.mxu1 %v3469_v7  ;;  %698 = vmatpush.bf16.msra.mxu2 %v3473_v8  ;;  %v3449_v16 = vor.u32 %v3737_v13, %v3448_v11  ;;  %v3453_v17 = vor.u32 %v3735_v14, %v3450_v15  ;;  %v3456_v18 = vld [vmem:[%s6112_s1 + $0x88] sm:$0xf]  ;;  %v3738_v19 = vld [vmem:[%s6112_s1 + $0x94] sm:$0xf0]  ;;  %v3736_v20 = vld [vmem:[%s6112_s1 + $0x8c] sm:$0xf] }
  0x13   : > { %747 = vmatpush.bf16.msra.mxu3 %v3477_v12  ;;  %v3457_v21 = vor.u32 %v3738_v19, %v3456_v18  ;;  %v3458_v22 = vld [vmem:[%s6112_s1 + $0x98] sm:$0xf0]  ;;  %v3432_v23 = vld [vmem:[%s6112_s1 + $0x60] sm:$0xf]  ;;  %v3733_v24 = vld [vmem:[%s6112_s1 + $0x6c] sm:$0xf0] }
  0x14   : > { %v3461_v25 = vor.u32 %v3736_v20, %v3458_v22  ;;  %v3731_v26 = vld [vmem:[%s6112_s1 + $0x64] sm:$0xf]  ;;  %v3434_v27 = vld [vmem:[%s6112_s1 + $0x70] sm:$0xf0]  ;;  %v3440_v28 = vld [vmem:[%s6112_s1 + $0x68] sm:$0xf]  ;;  %v3433_v29 = vor.u32 %v3733_v24, %v3432_v23 }
  0x15   : > { %601 = vmatpush.bf16.msra.mxu0 %v3449_v16  ;;  %v3734_v30 = vld [vmem:[%s6112_s1 + $0x74] sm:$0xf0]  ;;  %v3732_v31 = vld [vmem:[%s6112_s1 + $0x6c] sm:$0xf]  ;;  %v3442_v32 = vld [vmem:[%s6112_s1 + $0x78] sm:$0xf0]  ;;  %v3437_v33 = vor.u32 %v3731_v26, %v3434_v27 }
  0x16   : > { %650 = vmatpush.bf16.msra.mxu1 %v3453_v17  ;;  %699 = vmatpush.bf16.msra.mxu2 %v3457_v21  ;;  %v3441_v34 = vor.u32 %v3734_v30, %v3440_v28  ;;  %v3416_v35 = vld [vmem:[%s6112_s1 + $0x40] sm:$0xf]  ;;  %v3729_v36 = vld [vmem:[%s6112_s1 + $0x4c] sm:$0xf0]  ;;  %v3727_v37 = vld [vmem:[%s6112_s1 + $0x44] sm:$0xf]  ;;  %v3445_v38 = vor.u32 %v3732_v31, %v3442_v32 }
  0x17   : > { %748 = vmatpush.bf16.msra.mxu3 %v3461_v25  ;;  %v3418_v39 = vld [vmem:[%s6112_s1 + $0x50] sm:$0xf0]  ;;  %v3424_v40 = vld [vmem:[%s6112_s1 + $0x48] sm:$0xf]  ;;  %v3730_v41 = vld [vmem:[%s6112_s1 + $0x54] sm:$0xf0]  ;;  %v3417_v44 = vor.u32 %v3729_v36, %v3416_v35 }
  0x18   : > { %v3728_v42 = vld [vmem:[%s6112_s1 + $0x4c] sm:$0xf]  ;;  %v3426_v43 = vld [vmem:[%s6112_s1 + $0x58] sm:$0xf0]  ;;  %v3421_v45 = vor.u32 %v3727_v37, %v3418_v39  ;;  %v3425_v46 = vor.u32 %v3730_v41, %v3424_v40  ;;  %v3400_v47 = vld [vmem:[%s6112_s1 + $0x20] sm:$0xf] }
  0x19   : > { %602 = vmatpush.bf16.msra.mxu0 %v3433_v29  ;;  %v3725_v48 = vld [vmem:[%s6112_s1 + $0x2c] sm:$0xf0]  ;;  %v3723_v49 = vld [vmem:[%s6112_s1 + $0x24] sm:$0xf]  ;;  %v3429_v50 = vor.u32 %v3728_v42, %v3426_v43  ;;  %v3402_v51 = vld [vmem:[%s6112_s1 + $0x30] sm:$0xf0] }
  0x1a   : > { %651 = vmatpush.bf16.msra.mxu1 %v3437_v33  ;;  %700 = vmatpush.bf16.msra.mxu2 %v3441_v34  ;;  %v3408_v52 = vld [vmem:[%s6112_s1 + $0x28] sm:$0xf]  ;;  %v3726_v53 = vld [vmem:[%s6112_s1 + $0x34] sm:$0xf0]  ;;  %v3724_v54 = vld [vmem:[%s6112_s1 + $0x2c] sm:$0xf]  ;;  %v3401_v56 = vor.u32 %v3725_v48, %v3400_v47  ;;  %v3405_v59 = vor.u32 %v3723_v49, %v3402_v51 }
  0x1b   : > { %749 = vmatpush.bf16.msra.mxu3 %v3445_v38  ;;  %v3410_v55 = vld [vmem:[%s6112_s1 + $0x38] sm:$0xf0]  ;;  %v3384_v57 = vld [vmem:[%s6112_s1] sm:$0xf]  ;;  %v3721_v58 = vld [vmem:[%s6112_s1 + $0xc] sm:$0xf0]  ;;  %v3409_v60 = vor.u32 %v3726_v53, %v3408_v52 }
  0x1c   : > { %v3719_v61 = vld [vmem:[%s6112_s1 + $0x4] sm:$0xf]  ;;  %v3386_v62 = vld [vmem:[%s6112_s1 + $0x10] sm:$0xf0]  ;;  %s4447_s13 = sshll.u32 %s4232_s27, 3  ;;  %v3413_v63 = vor.u32 %v3724_v54, %v3410_v55  ;;  %v3385_v4 = vor.u32 %v3721_v58, %v3384_v57  ;;  %vm573_vm0 = vcmask 785408  }
  0x1d   : > { %603 = vmatpush.bf16.msra.mxu0 %v3417_v44  ;;  %v3392_v0 = vld [vmem:[%s6112_s1 + $0x8] sm:$0xf]  ;;  %v3722_v1 = vld [vmem:[%s6112_s1 + $0x14] sm:$0xf0]  ;;  %p338_p4 = scmp.lt.s32.totalorder %s4447_s13, 15  ;;  %v3389_v5 = vor.u32 %v3719_v61, %v3386_v62  ;;  %p3510_p5 = scmp.ne.s32.totalorder %s4232_s27, 0 }
  0x1e   : > { %652 = vmatpush.bf16.msra.mxu1 %v3421_v45  ;;  %701 = vmatpush.bf16.msra.mxu2 %v3425_v46  ;;  %v3720_v2 = vld [vmem:[%s6112_s1 + $0xc] sm:$0xf]  ;;  %v3394_v3 = vld [vmem:[%s6112_s1 + $0x18] sm:$0xf0]  ;;  %v3393_v6 = vor.u32 %v3722_v1, %v3392_v0  ;;  %v403_v16 = vld [vmem:[%s6114_s3] sm:$0xf] }
  0x1f   : > { %750 = vmatpush.bf16.msra.mxu3 %v3429_v50  ;;  %s339_s22 = scalar_select %p338_p4, %s4447_s13, 15  ;;  %v3397_v7 = vor.u32 %v3720_v2, %v3394_v3  ;;  %v4516_v17 = vperm.slane %v403_v16, 0  ;;  %v4518_v18 = vperm.slane %v403_v16, 1  ;;  %v4522_v23 = vperm.slane %v403_v16, 2 }
  0x20   : > { %v4524_v24 = vperm.slane %v403_v16, 3 }
  0x21   : > { %604 = vmatpush.bf16.msra.mxu0 %v3401_v56  ;;  %s3709_s23 = sshll.u32 %s339_s22, 3 }
  0x22   : > { %653 = vmatpush.bf16.msra.mxu1 %v3405_v59  ;;  %702 = vmatpush.bf16.msra.mxu2 %v3409_v60  ;;  %s4466_s26 = scalar_lea.vmem %s6111_s0, %s3709_s23  ;;  %s4471_s12 = scalar_lea.vmem %s6117_s6, %s3709_s23 }
  0x23   : > { %751 = vmatpush.bf16.msra.mxu3 %v3413_v63  ;;  %v3711_v8 = vld [vmem:[%s4466_s26] sm:$0xff]  ;;  %v3712_v9 = vld [vmem:[%s4466_s26 + $0x8] sm:$0xff]  ;;  %v3713_v10 = vld [vmem:[%s4466_s26 + $0x10] sm:$0xff] }
  0x24   : > { %v3714_v11 = vld [vmem:[%s4466_s26 + $0x18] sm:$0xff]  ;;  %v3715_v12 = vld [vmem:[%s4466_s26 + $0x20] sm:$0xff]  ;;  %v3716_v13 = vld [vmem:[%s4466_s26 + $0x28] sm:$0xff] }
  0x25   : > { %605 = vmatpush.bf16.msra.mxu0 %v3385_v4  ;;  %v3717_v14 = vld [vmem:[%s4466_s26 + $0x30] sm:$0xff]  ;;  %v3718_v15 = vld [vmem:[%s4466_s26 + $0x38] sm:$0xff] }
  0x26   : > { %654 = vmatpush.bf16.msra.mxu1 %v3389_v5  ;;  %703 = vmatpush.bf16.msra.mxu2 %v3393_v6 }
  0x27   : > { %752 = vmatpush.bf16.msra.mxu3 %v3397_v7 }
  0x28   : > { %3478 = vmatmul.msk.bf16.vlgmr.msra.gmra.mxu0 %vm573_vm0, %v3711_v8 }
  0x29   : > { %3486 = vmatmul.msk.bf16.vlgmr.msra.gmra.mxu1 %vm573_vm0, %v3711_v8  ;;  %3494 = vmatmul.msk.bf16.vlgmr.msra.gmra.mxu2 %vm573_vm0, %v3711_v8 }
  0x2a   : > { %3502 = vmatmul.msk.bf16.vlgmr.msra.gmra.mxu3 %vm573_vm0, %v3711_v8 }
  0x38   : > { %3479 = vmatmul.msk.bf16.gmra.mxu0 %vm573_vm0, %v3712_v9 }
  0x39   : > { %3487 = vmatmul.msk.bf16.gmra.mxu1 %vm573_vm0, %v3712_v9  ;;  %3495 = vmatmul.msk.bf16.gmra.mxu2 %vm573_vm0, %v3712_v9 }
  0x3a   : > { %3503 = vmatmul.msk.bf16.gmra.mxu3 %vm573_vm0, %v3712_v9 }
  0x48   : > { %3480 = vmatmul.msk.bf16.gmra.mxu0 %vm573_vm0, %v3713_v10 }
  0x49   : > { %3488 = vmatmul.msk.bf16.gmra.mxu1 %vm573_vm0, %v3713_v10  ;;  %3496 = vmatmul.msk.bf16.gmra.mxu2 %vm573_vm0, %v3713_v10 }
  0x4a   : > { %3504 = vmatmul.msk.bf16.gmra.mxu3 %vm573_vm0, %v3713_v10 }
  0x58   : > { %3481 = vmatmul.msk.bf16.gmra.mxu0 %vm573_vm0, %v3714_v11 }
  0x59   : > { %3489 = vmatmul.msk.bf16.gmra.mxu1 %vm573_vm0, %v3714_v11  ;;  %3497 = vmatmul.msk.bf16.gmra.mxu2 %vm573_vm0, %v3714_v11 }
  0x5a   : > { %3505 = vmatmul.msk.bf16.gmra.mxu3 %vm573_vm0, %v3714_v11 }
  0x68   : > { %3482 = vmatmul.msk.bf16.gmra.mxu0 %vm573_vm0, %v3715_v12 }
  0x69   : > { %3490 = vmatmul.msk.bf16.gmra.mxu1 %vm573_vm0, %v3715_v12  ;;  %3498 = vmatmul.msk.bf16.gmra.mxu2 %vm573_vm0, %v3715_v12 }
  0x6a   : > { %3506 = vmatmul.msk.bf16.gmra.mxu3 %vm573_vm0, %v3715_v12 }
  0x78   : > { %3483 = vmatmul.msk.bf16.gmra.mxu0 %vm573_vm0, %v3716_v13 }
  0x79   : > { %3491 = vmatmul.msk.bf16.gmra.mxu1 %vm573_vm0, %v3716_v13  ;;  %3499 = vmatmul.msk.bf16.gmra.mxu2 %vm573_vm0, %v3716_v13 }
  0x7a   : > { %3507 = vmatmul.msk.bf16.gmra.mxu3 %vm573_vm0, %v3716_v13 }
  0x88   : > { %3484 = vmatmul.msk.bf16.gmra.mxu0 %vm573_vm0, %v3717_v14 }
  0x89   : > { %3492 = vmatmul.msk.bf16.gmra.mxu1 %vm573_vm0, %v3717_v14  ;;  %3500 = vmatmul.msk.bf16.gmra.mxu2 %vm573_vm0, %v3717_v14 }
  0x8a   : > { %3508 = vmatmul.msk.bf16.gmra.mxu3 %vm573_vm0, %v3717_v14 }
  0x98   : > { %3485 = vmatmul.msk.bf16.gmra.mxu0 %vm573_vm0, %v3718_v15 }
  0x99   : > { %3493 = vmatmul.msk.bf16.gmra.mxu1 %vm573_vm0, %v3718_v15  ;;  %3501 = vmatmul.msk.bf16.gmra.mxu2 %vm573_vm0, %v3718_v15 }
  0x9a   : > { %3509 = vmatmul.msk.bf16.gmra.mxu3 %vm573_vm0, %v3718_v15 }
  0xa5   : > { %v607_v19 = vpop.f32.mrf.mxu0 }
  0xa6   : > { %v608_v20 = vadd.f32 %v607_v19, %v4516_v17  ;;  %v656_v21 = vpop.f32.mrf.mxu1 }
  0xa7   : > { %v657_v22 = vadd.f32 %v656_v21, %v4518_v18 }
  0xa8   : > { %794 = vst [vmem:[#allocation2 + $0xb0] sm:$0xff] %v608_v20 }
  0xa9   : > { %795 = vst [vmem:[#allocation2 + $0x1b0] sm:$0xff] %v657_v22 }
  0xac   : > { %v705_v25 = vpop.f32.mrf.mxu2 }
  0xad   : > { %v706_v26 = vadd.f32 %v705_v25, %v4522_v23  ;;  %v754_v27 = vpop.f32.mrf.mxu3  ;;  %v609_v28 = vpop.f32.mrf.mxu0 }
  0xae   : > { %v755_v29 = vadd.f32 %v754_v27, %v4524_v24  ;;  %v610_v30 = vadd.f32 %v609_v28, %v4516_v17  ;;  %v658_v31 = vpop.f32.mrf.mxu1 }
  0xaf   : > { %796 = vst [vmem:[#allocation2 + $0xd8] sm:$0xff] %v706_v26  ;;  %v659_v32 = vadd.f32 %v658_v31, %v4518_v18 }
  0xb0   : > { %797 = vst [vmem:[#allocation2 + $0x18] sm:$0xff] %v755_v29 }
  0xb1   : > { %798 = vst [vmem:[#allocation2 + $0x50] sm:$0xff] %v610_v30 }
  0xb2   : > { %799 = vst [vmem:[#allocation2 + $0x168] sm:$0xff] %v659_v32 }
  0xb4   : > { %v707_v33 = vpop.f32.mrf.mxu2 }
  0xb5   : > { %v708_v34 = vadd.f32 %v707_v33, %v4522_v23  ;;  %v756_v35 = vpop.f32.mrf.mxu3  ;;  %v612_v36 = vpop.f32.mrf.mxu0 }
  0xb6   : > { %v757_v37 = vadd.f32 %v756_v35, %v4524_v24  ;;  %v613_v38 = vadd.f32 %v612_v36, %v4516_v17  ;;  %v661_v39 = vpop.f32.mrf.mxu1 }
  0xb7   : > { %800 = vst [vmem:[#allocation2 + $0x130] sm:$0xff] %v708_v34  ;;  %v662_v40 = vadd.f32 %v661_v39, %v4518_v18 }
  0xb8   : > { %801 = vst [vmem:[#allocation2 + $0x48] sm:$0xff] %v757_v37 }
  0xb9   : > { %802 = vst [vmem:[#allocation2 + $0x180] sm:$0xff] %v613_v38 }
  0xba   : > { %803 = vst [vmem:[#allocation2 + $0x110] sm:$0xff] %v662_v40 }
  0xbc   : > { %v710_v41 = vpop.f32.mrf.mxu2 }
  0xbd   : > { %v711_v42 = vadd.f32 %v710_v41, %v4522_v23  ;;  %v759_v43 = vpop.f32.mrf.mxu3  ;;  %v614_v44 = vpop.f32.mrf.mxu0 }
  0xbe   : > { %v760_v45 = vadd.f32 %v759_v43, %v4524_v24  ;;  %v615_v46 = vadd.f32 %v614_v44, %v4516_v17  ;;  %v663_v47 = vpop.f32.mrf.mxu1 }
  0xbf   : > { %804 = vst [vmem:[#allocation2 + $0x118] sm:$0xff] %v711_v42  ;;  %v664_v48 = vadd.f32 %v663_v47, %v4518_v18 }
  0xc0   : > { %805 = vst [vmem:[#allocation2 + $0x98] sm:$0xff] %v760_v45 }
  0xc1   : > { %806 = vst [vmem:[#allocation2 + $0x120] sm:$0xff] %v615_v46 }
  0xc2   : > { %807 = vst [vmem:[#allocation2 + $0x150] sm:$0xff] %v664_v48 }
  0xc4   : > { %v712_v49 = vpop.f32.mrf.mxu2 }
  0xc5   : > { %v713_v50 = vadd.f32 %v712_v49, %v4522_v23  ;;  %v761_v51 = vpop.f32.mrf.mxu3  ;;  %v617_v52 = vpop.f32.mrf.mxu0 }
  0xc6   : > { %v762_v53 = vadd.f32 %v761_v51, %v4524_v24  ;;  %v618_v54 = vadd.f32 %v617_v52, %v4516_v17  ;;  %v666_v55 = vpop.f32.mrf.mxu1 }
  0xc7   : > { %808 = vst [vmem:[#allocation2 + $0x108] sm:$0xff] %v713_v50  ;;  %v667_v56 = vadd.f32 %v666_v55, %v4518_v18 }
  0xc8   : > { %809 = vst [vmem:[#allocation2 + $0x60] sm:$0xff] %v762_v53 }
  0xc9   : > { %810 = vst [vmem:[#allocation2 + $0xe0] sm:$0xff] %v618_v54 }
  0xca   : > { %811 = vst [vmem:[#allocation2 + $0x188] sm:$0xff] %v667_v56 }
  0xcc   : > { %v715_v57 = vpop.f32.mrf.mxu2 }
  0xcd   : > { %v716_v58 = vadd.f32 %v715_v57, %v4522_v23  ;;  %v764_v59 = vpop.f32.mrf.mxu3  ;;  %v619_v60 = vpop.f32.mrf.mxu0 }
  0xce   : > { %v765_v61 = vadd.f32 %v764_v59, %v4524_v24  ;;  %v620_v62 = vadd.f32 %v619_v60, %v4516_v17  ;;  %v668_v63 = vpop.f32.mrf.mxu1 }
  0xcf   : > { %812 = vst [vmem:[#allocation2 + $0x138] sm:$0xff] %v716_v58  ;;  %v669_v0 = vadd.f32 %v668_v63, %v4518_v18 }
  0xd0   : > { %813 = vst [vmem:[#allocation2 + $0x140] sm:$0xff] %v765_v61 }
  0xd1   : > { %814 = vst [vmem:[#allocation2 + $0x80] sm:$0xff] %v620_v62 }
  0xd2   : > { %815 = vst [vmem:[#allocation2 + $0x1a8] sm:$0xff] %v669_v0 }
  0xd4   : > { %v717_v1 = vpop.f32.mrf.mxu2 }
  0xd5   : > { %v718_v2 = vadd.f32 %v717_v1, %v4522_v23  ;;  %v766_v3 = vpop.f32.mrf.mxu3  ;;  %v622_v4 = vpop.f32.mrf.mxu0 }
  0xd6   : > { %v767_v5 = vadd.f32 %v766_v3, %v4524_v24  ;;  %v623_v6 = vadd.f32 %v622_v4, %v4516_v17  ;;  %v671_v7 = vpop.f32.mrf.mxu1 }
  0xd7   : > { %816 = vst [vmem:[#allocation2 + $0x1b8] sm:$0xff] %v718_v2  ;;  %v672_v8 = vadd.f32 %v671_v7, %v4518_v18 }
  0xd8   : > { %817 = vst [vmem:[#allocation2 + $0x28] sm:$0xff] %v767_v5 }
  0xd9   : > { %818 = vst [vmem:[#allocation2 + $0x1e8] sm:$0xff] %v623_v6 }
  0xda   : > { %819 = vst [vmem:[#allocation2 + $0xf8] sm:$0xff] %v672_v8 }
  0xdc   : > { %v720_v9 = vpop.f32.mrf.mxu2 }
  0xdd   : > { %v721_v10 = vadd.f32 %v720_v9, %v4522_v23  ;;  %v769_v11 = vpop.f32.mrf.mxu3  ;;  %v624_v12 = vpop.f32.mrf.mxu0 }
  0xde   : > { %v770_v13 = vadd.f32 %v769_v11, %v4524_v24  ;;  %v625_v14 = vadd.f32 %v624_v12, %v4516_v17  ;;  %v673_v15 = vpop.f32.mrf.mxu1 }
  0xdf   : > { %820 = vst [vmem:[#allocation2 + $0x160] sm:$0xff] %v721_v10  ;;  %v674_v16 = vadd.f32 %v673_v15, %v4518_v18 }
  0xe0   : > { %821 = vst [vmem:[#allocation2 + $0x30] sm:$0xff] %v770_v13 }
  0xe1   : > { %822 = vst [vmem:[#allocation2 + $0x1e0] sm:$0xff] %v625_v14 }
  0xe2   : > { %823 = vst [vmem:[#allocation2] sm:$0xff] %v674_v16 }
  0xe4   : > { %v722_v19 = vpop.f32.mrf.mxu2 }
  0xe5   : > { %v723_v20 = vadd.f32 %v722_v19, %v4522_v23  ;;  %v771_v21 = vpop.f32.mrf.mxu3  ;;  %v627_v22 = vpop.f32.mrf.mxu0 }
  0xe6   : > { %v772_v25 = vadd.f32 %v771_v21, %v4524_v24  ;;  %v628_v26 = vadd.f32 %v627_v22, %v4516_v17  ;;  %v676_v27 = vpop.f32.mrf.mxu1 }
  0xe7   : > { %824 = vst [vmem:[#allocation2 + $0xf0] sm:$0xff] %v723_v20  ;;  %v677_v28 = vadd.f32 %v676_v27, %v4518_v18 }
  0xe8   : > { %825 = vst [vmem:[#allocation2 + $0x8] sm:$0xff] %v772_v25 }
  0xe9   : > { %826 = vst [vmem:[#allocation2 + $0x148] sm:$0xff] %v628_v26 }
  0xea   : > { %827 = vst [vmem:[#allocation2 + $0x1d0] sm:$0xff] %v677_v28 }
  0xec   : > { %v725_v29 = vpop.f32.mrf.mxu2 }
  0xed   : > { %v726_v30 = vadd.f32 %v725_v29, %v4522_v23  ;;  %v774_v31 = vpop.f32.mrf.mxu3  ;;  %v629_v32 = vpop.f32.mrf.mxu0 }
  0xee   : > { %v775_v33 = vadd.f32 %v774_v31, %v4524_v24  ;;  %v630_v34 = vadd.f32 %v629_v32, %v4516_v17  ;;  %v678_v35 = vpop.f32.mrf.mxu1 }
  0xef   : > { %828 = vst [vmem:[#allocation2 + $0x100] sm:$0xff] %v726_v30  ;;  %v679_v36 = vadd.f32 %v678_v35, %v4518_v18 }
  0xf0   : > { %829 = vst [vmem:[#allocation2 + $0xc8] sm:$0xff] %v775_v33 }
  0xf1   : > { %830 = vst [vmem:[#allocation2 + $0x40] sm:$0xff] %v630_v34 }
  0xf2   : > { %831 = vst [vmem:[#allocation2 + $0x1f8] sm:$0xff] %v679_v36 }
  0xf4   : > { %v727_v37 = vpop.f32.mrf.mxu2 }
  0xf5   : > { %v728_v38 = vadd.f32 %v727_v37, %v4522_v23  ;;  %v776_v39 = vpop.f32.mrf.mxu3  ;;  %v632_v40 = vpop.f32.mrf.mxu0 }
  0xf6   : > { %v777_v41 = vadd.f32 %v776_v39, %v4524_v24  ;;  %v633_v42 = vadd.f32 %v632_v40, %v4516_v17  ;;  %v681_v43 = vpop.f32.mrf.mxu1 }
  0xf7   : > { %832 = vst [vmem:[#allocation2 + $0x20] sm:$0xff] %v728_v38  ;;  %v682_v44 = vadd.f32 %v681_v43, %v4518_v18 }
  0xf8   : > { %833 = vst [vmem:[#allocation2 + $0x128] sm:$0xff] %v777_v41 }
  0xf9   : > { %834 = vst [vmem:[#allocation2 + $0x1a0] sm:$0xff] %v633_v42 }
  0xfa   : > { %835 = vst [vmem:[#allocation2 + $0x1f0] sm:$0xff] %v682_v44 }
  0xfc   : > { %v730_v45 = vpop.f32.mrf.mxu2 }
  0xfd   : > { %v731_v46 = vadd.f32 %v730_v45, %v4522_v23  ;;  %v779_v47 = vpop.f32.mrf.mxu3  ;;  %v634_v48 = vpop.f32.mrf.mxu0 }
  0xfe   : > { %v780_v49 = vadd.f32 %v779_v47, %v4524_v24  ;;  %v635_v50 = vadd.f32 %v634_v48, %v4516_v17  ;;  %v683_v51 = vpop.f32.mrf.mxu1 }
  0xff   : > { %836 = vst [vmem:[#allocation2 + $0xe8] sm:$0xff] %v731_v46  ;;  %v684_v52 = vadd.f32 %v683_v51, %v4518_v18 }
 0x100   : > { %837 = vst [vmem:[#allocation2 + $0x78] sm:$0xff] %v780_v49 }
 0x101   : > { %838 = vst [vmem:[#allocation2 + $0x70] sm:$0xff] %v635_v50 }
 0x102   : > { %839 = vst [vmem:[#allocation2 + $0x90] sm:$0xff] %v684_v52 }
 0x104   : > { %v732_v53 = vpop.f32.mrf.mxu2 }
 0x105   : > { %v733_v54 = vadd.f32 %v732_v53, %v4522_v23  ;;  %v781_v55 = vpop.f32.mrf.mxu3  ;;  %v637_v56 = vpop.f32.mrf.mxu0 }
 0x106   : > { %v782_v57 = vadd.f32 %v781_v55, %v4524_v24  ;;  %v638_v58 = vadd.f32 %v637_v56, %v4516_v17  ;;  %v686_v59 = vpop.f32.mrf.mxu1 }
 0x107   : > { %840 = vst [vmem:[#allocation2 + $0x1d8] sm:$0xff] %v733_v54  ;;  %v687_v60 = vadd.f32 %v686_v59, %v4518_v18 }
 0x108   : > { %841 = vst [vmem:[#allocation2 + $0xd0] sm:$0xff] %v782_v57 }
 0x109   : > { %842 = vst [vmem:[#allocation2 + $0xb8] sm:$0xff] %v638_v58 }
 0x10a   : > { %843 = vst [vmem:[#allocation2 + $0x88] sm:$0xff] %v687_v60 }
 0x10c   : > { %v735_v61 = vpop.f32.mrf.mxu2 }
 0x10d   : > { %v736_v62 = vadd.f32 %v735_v61, %v4522_v23  ;;  %v784_v63 = vpop.f32.mrf.mxu3  ;;  %v639_v0 = vpop.f32.mrf.mxu0 }
 0x10e   : > { %v785_v1 = vadd.f32 %v784_v63, %v4524_v24  ;;  %v640_v2 = vadd.f32 %v639_v0, %v4516_v17  ;;  %v688_v3 = vpop.f32.mrf.mxu1 }
 0x10f   : > { %844 = vst [vmem:[#allocation2 + $0xa8] sm:$0xff] %v736_v62  ;;  %v689_v4 = vadd.f32 %v688_v3, %v4518_v18 }
 0x110   : > { %845 = vst [vmem:[#allocation2 + $0x1c8] sm:$0xff] %v785_v1 }
 0x111   : > { %846 = vst [vmem:[#allocation2 + $0x170] sm:$0xff] %v640_v2 }
 0x112   : > { %847 = vst [vmem:[#allocation2 + $0x178] sm:$0xff] %v689_v4 }
 0x114   : > { %v737_v5 = vpop.f32.mrf.mxu2 }
 0x115   : > { %v738_v6 = vadd.f32 %v737_v5, %v4522_v23  ;;  %v786_v7 = vpop.f32.mrf.mxu3  ;;  %v642_v8 = vpop.f32.mrf.mxu0 }
 0x116   : > { %v787_v9 = vadd.f32 %v786_v7, %v4524_v24  ;;  %v643_v10 = vadd.f32 %v642_v8, %v4516_v17  ;;  %v691_v11 = vpop.f32.mrf.mxu1 }
 0x117   : > { %848 = vst [vmem:[#allocation2 + $0x68] sm:$0xff] %v738_v6  ;;  %v692_v12 = vadd.f32 %v691_v11, %v4518_v18 }
 0x118   : > { %849 = vst [vmem:[#allocation2 + $0x190] sm:$0xff] %v787_v9 }
 0x119   : > { %850 = vst [vmem:[#allocation2 + $0x198] sm:$0xff] %v643_v10 }
 0x11a   : > { %851 = vst [vmem:[#allocation2 + $0x38] sm:$0xff] %v692_v12 }
 0x11c   : > { %v740_v13 = vpop.f32.mrf.mxu2 }
 0x11d   : > { %v741_v14 = vadd.f32 %v740_v13, %v4522_v23  ;;  %v789_v15 = vpop.f32.mrf.mxu3  ;;  %v644_v16 = vpop.f32.mrf.mxu0 }
 0x11e   : > { %v790_v19 = vadd.f32 %v789_v15, %v4524_v24  ;;  %v645_v20 = vadd.f32 %v644_v16, %v4516_v17  ;;  %v693_v21 = vpop.f32.mrf.mxu1 }
 0x11f   : > { %852 = vst [vmem:[#allocation2 + $0xc0] sm:$0xff] %v741_v14  ;;  %v694_v22 = vadd.f32 %v693_v21, %v4518_v18 }
 0x120   : > { %853 = vst [vmem:[#allocation2 + $0x1c0] sm:$0xff] %v790_v19 }
 0x121   : > { %854 = vst [vmem:[#allocation2 + $0x158] sm:$0xff] %v645_v20 }
 0x122   : > { %855 = vst [vmem:[#allocation2 + $0x10] sm:$0xff] %v694_v22 }
 0x124   : > { %v742_v25 = vpop.f32.mrf.mxu2  ;;  %861 = sbr.rel (%p3510_p5) target bundleno = 302 (0x12e), region = 48 }
 0x125   : > { %v743_v26 = vadd.f32 %v742_v25, %v4522_v23  ;;  %v791_v27 = vpop.f32.mrf.mxu3 }
 0x126   : > { %v792_v28 = vadd.f32 %v791_v27, %v4524_v24 }
 0x127   : > { %856 = vst [vmem:[#allocation2 + $0x58] sm:$0xff] %v743_v26 }
 0x128   : > { %857 = vst [vmem:[#allocation2 + $0xa0] sm:$0xff] %v792_v28 }
 0x129   : > { %v4242_v29 = vmov 0.0  }
 0x12a   : > { %862 = vst [vmem:[#allocation3 + $0x8] sm:$0xff] %v4242_v29 }
 0x12b   : > { %863 = vst [vmem:[#allocation3] sm:$0xff] %v4242_v29 }
 0x12c   : > { %864 = vst [vmem:[#allocation4 + $0x8] sm:$0xff] %v4242_v29 }
 0x12d   : > { %865 = vst [vmem:[#allocation4] sm:$0xff] %v4242_v29 }
 0x12e PF: > { %v3627_v17 = vld [vmem:[%s6113_s2 + $0xe0] sm:$0xf]  ;;  %v3773_v18 = vld [vmem:[%s6113_s2 + $0xec] sm:$0xf0]  ;;  %v3771_v23 = vld [vmem:[%s6113_s2 + $0xe4] sm:$0xf] }
 0x12f   : > { %v4598_v24 = vor.u32 %v3773_v18, %v3627_v17  ;;  %v3629_v30 = vld [vmem:[%s6113_s2 + $0xf0] sm:$0xf0]  ;;  %v3772_v31 = vld [vmem:[%s6113_s2 + $0xec] sm:$0xf]  ;;  %v3637_v32 = vld [vmem:[%s6113_s2 + $0xf8] sm:$0xf0] }
 0x130   : > { %v4609_v33 = vor.u32 %v3771_v23, %v3629_v30  ;;  %v4611_v34 = vor.u32 %v3772_v31, %v3637_v32  ;;  %v3611_v35 = vld [vmem:[%s6113_s2 + $0xc0] sm:$0xf]  ;;  %v3769_v36 = vld [vmem:[%s6113_s2 + $0xcc] sm:$0xf0]  ;;  %v3767_v37 = vld [vmem:[%s6113_s2 + $0xc4] sm:$0xf] }
 0x131   : > { %1082 = vmatpush.bf16.msrb.mxu0 %v4598_v24  ;;  %v4623_v38 = vor.u32 %v3769_v36, %v3611_v35  ;;  %v3613_v39 = vld [vmem:[%s6113_s2 + $0xd0] sm:$0xf0]  ;;  %v3768_v40 = vld [vmem:[%s6113_s2 + $0xcc] sm:$0xf]  ;;  %v3621_v41 = vld [vmem:[%s6113_s2 + $0xd8] sm:$0xf0] }
 0x132   : > { %1096 = vmatpush.bf16.msrb.mxu1 %v4609_v33  ;;  %1124 = vmatpush.bf16.msrb.mxu3 %v4611_v34  ;;  %v4636_v42 = vor.u32 %v3767_v37, %v3613_v39  ;;  %v4638_v43 = vor.u32 %v3768_v40, %v3621_v41  ;;  %v3635_v44 = vld [vmem:[%s6113_s2 + $0xe8] sm:$0xf]  ;;  %v3774_v45 = vld [vmem:[%s6113_s2 + $0xf4] sm:$0xf0]  ;;  %v3595_v46 = vld [vmem:[%s6113_s2 + $0xa0] sm:$0xf] }
 0x133   : > { %v4649_v47 = vor.u32 %v3774_v45, %v3635_v44  ;;  %v3765_v48 = vld [vmem:[%s6113_s2 + $0xac] sm:$0xf0]  ;;  %v3763_v49 = vld [vmem:[%s6113_s2 + $0xa4] sm:$0xf]  ;;  %v3597_v50 = vld [vmem:[%s6113_s2 + $0xb0] sm:$0xf0] }
 0x134   : > { %v3764_v51 = vld [vmem:[%s6113_s2 + $0xac] sm:$0xf]  ;;  %v3605_v52 = vld [vmem:[%s6113_s2 + $0xb8] sm:$0xf0]  ;;  %v3619_v53 = vld [vmem:[%s6113_s2 + $0xc8] sm:$0xf]  ;;  %v4671_v54 = vor.u32 %v3765_v48, %v3595_v46  ;;  %v4684_v58 = vor.u32 %v3763_v49, %v3597_v50 }
 0x135   : > { %1083 = vmatpush.bf16.msrb.mxu0 %v4623_v38  ;;  %1110 = vmatpush.bf16.msrb.mxu2 %v4649_v47  ;;  %v3770_v55 = vld [vmem:[%s6113_s2 + $0xd4] sm:$0xf0]  ;;  %v3579_v56 = vld [vmem:[%s6113_s2 + $0x80] sm:$0xf]  ;;  %v3761_v57 = vld [vmem:[%s6113_s2 + $0x8c] sm:$0xf0]  ;;  %v4686_v59 = vor.u32 %v3764_v51, %v3605_v52 }
 0x136   : > { %1097 = vmatpush.bf16.msrb.mxu1 %v4636_v42  ;;  %1125 = vmatpush.bf16.msrb.mxu3 %v4638_v43  ;;  %v4688_v60 = vor.u32 %v3770_v55, %v3619_v53  ;;  %v3759_v61 = vld [vmem:[%s6113_s2 + $0x84] sm:$0xf]  ;;  %v3581_v62 = vld [vmem:[%s6113_s2 + $0x90] sm:$0xf0]  ;;  %v3760_v63 = vld [vmem:[%s6113_s2 + $0x8c] sm:$0xf]  ;;  %v4710_v3 = vor.u32 %v3761_v57, %v3579_v56 }
 0x137   : > { %v3589_v0 = vld [vmem:[%s6113_s2 + $0x98] sm:$0xf0]  ;;  %v3603_v1 = vld [vmem:[%s6113_s2 + $0xa8] sm:$0xf]  ;;  %v3766_v2 = vld [vmem:[%s6113_s2 + $0xb4] sm:$0xf0]  ;;  %v4722_v7 = vor.u32 %v3759_v61, %v3581_v62 }
 0x138   : > { %v4712_v4 = vor.u32 %v3766_v2, %v3603_v1  ;;  %v3563_v5 = vld [vmem:[%s6113_s2 + $0x60] sm:$0xf]  ;;  %v3757_v6 = vld [vmem:[%s6113_s2 + $0x6c] sm:$0xf0]  ;;  %v4724_v8 = vor.u32 %v3760_v63, %v3589_v0  ;;  %v3755_v9 = vld [vmem:[%s6113_s2 + $0x64] sm:$0xf] }
 0x139   : > { %1084 = vmatpush.bf16.msrb.mxu0 %v4671_v54  ;;  %1111 = vmatpush.bf16.msrb.mxu2 %v4688_v60  ;;  %v3587_v10 = vld [vmem:[%s6113_s2 + $0x88] sm:$0xf]  ;;  %v3762_v11 = vld [vmem:[%s6113_s2 + $0x94] sm:$0xf0]  ;;  %v3565_v12 = vld [vmem:[%s6113_s2 + $0x70] sm:$0xf0]  ;;  %v4746_v15 = vor.u32 %v3757_v6, %v3563_v5 }
 0x13a   : > { %1098 = vmatpush.bf16.msrb.mxu1 %v4684_v58  ;;  %1126 = vmatpush.bf16.msrb.mxu3 %v4686_v59  ;;  %v3756_v13 = vld [vmem:[%s6113_s2 + $0x6c] sm:$0xf]  ;;  %v3573_v14 = vld [vmem:[%s6113_s2 + $0x78] sm:$0xf0]  ;;  %v4748_v16 = vor.u32 %v3762_v11, %v3587_v10  ;;  %v3547_v19 = vld [vmem:[%s6113_s2 + $0x40] sm:$0xf]  ;;  %v4758_v21 = vor.u32 %v3755_v9, %v3565_v12 }
 0x13b   : > { %v3753_v20 = vld [vmem:[%s6113_s2 + $0x4c] sm:$0xf0]  ;;  %v4760_v22 = vor.u32 %v3756_v13, %v3573_v14  ;;  %v3751_v25 = vld [vmem:[%s6113_s2 + $0x44] sm:$0xf]  ;;  %v3571_v26 = vld [vmem:[%s6113_s2 + $0x68] sm:$0xf] }
 0x13c   : > { %v3758_v27 = vld [vmem:[%s6113_s2 + $0x74] sm:$0xf0]  ;;  %v3549_v28 = vld [vmem:[%s6113_s2 + $0x50] sm:$0xf0]  ;;  %v3752_v29 = vld [vmem:[%s6113_s2 + $0x4c] sm:$0xf]  ;;  %v4782_v18 = vor.u32 %v3753_v20, %v3547_v19 }
 0x13d   : > { %1085 = vmatpush.bf16.msrb.mxu0 %v4710_v3  ;;  %1112 = vmatpush.bf16.msrb.mxu2 %v4712_v4  ;;  %v3557_v17 = vld [vmem:[%s6113_s2 + $0x58] sm:$0xf0]  ;;  %v4784_v23 = vor.u32 %v3758_v27, %v3571_v26  ;;  %v3531_v30 = vld [vmem:[%s6113_s2 + $0x20] sm:$0xf]  ;;  %v3749_v31 = vld [vmem:[%s6113_s2 + $0x2c] sm:$0xf0]  ;;  %v4797_v35 = vor.u32 %v3751_v25, %v3549_v28 }
 0x13e   : > { %1099 = vmatpush.bf16.msrb.mxu1 %v4722_v7  ;;  %1127 = vmatpush.bf16.msrb.mxu3 %v4724_v8  ;;  %v3747_v32 = vld [vmem:[%s6113_s2 + $0x24] sm:$0xf]  ;;  %v4799_v36 = vor.u32 %v3752_v29, %v3557_v17  ;;  %v3555_v37 = vld [vmem:[%s6113_s2 + $0x48] sm:$0xf]  ;;  %v3754_v39 = vld [vmem:[%s6113_s2 + $0x54] sm:$0xf0]  ;;  %v4818_v45 = vor.u32 %v3749_v31, %v3531_v30 }
 0x13f   : > { %v3533_v40 = vld [vmem:[%s6113_s2 + $0x30] sm:$0xf0]  ;;  %v3748_v41 = vld [vmem:[%s6113_s2 + $0x2c] sm:$0xf]  ;;  %v3541_v44 = vld [vmem:[%s6113_s2 + $0x38] sm:$0xf0]  ;;  %v4820_v46 = vor.u32 %v3754_v39, %v3555_v37 }
 0x140   : > { %v3515_v48 = vld [vmem:[%s6113_s2] sm:$0xf]  ;;  %v3745_v49 = vld [vmem:[%s6113_s2 + $0xc] sm:$0xf0]  ;;  %v4830_v50 = vor.u32 %v3747_v32, %v3533_v40  ;;  %v4832_v51 = vor.u32 %v3748_v41, %v3541_v44  ;;  %v3743_v52 = vld [vmem:[%s6113_s2 + $0x4] sm:$0xf] }
 0x141   : > { %1086 = vmatpush.bf16.msrb.mxu0 %v4746_v15  ;;  %1113 = vmatpush.bf16.msrb.mxu2 %v4748_v16  ;;  %v3539_v53 = vld [vmem:[%s6113_s2 + $0x28] sm:$0xf]  ;;  %v3750_v55 = vld [vmem:[%s6113_s2 + $0x34] sm:$0xf0]  ;;  %v3517_v56 = vld [vmem:[%s6113_s2 + $0x10] sm:$0xf0]  ;;  %v4854_v62 = vor.u32 %v3745_v49, %v3515_v48 }
 0x142   : > { %1100 = vmatpush.bf16.msrb.mxu1 %v4758_v21  ;;  %1128 = vmatpush.bf16.msrb.mxu3 %v4760_v22  ;;  %v3744_v57 = vld [vmem:[%s6113_s2 + $0xc] sm:$0xf]  ;;  %v3525_v61 = vld [vmem:[%s6113_s2 + $0x18] sm:$0xf0]  ;;  %v4858_v0 = vld [vmem:[#allocation3] sm:$0xff]  ;;  %v4860_v1 = vor.u32 %v3750_v55, %v3539_v53  ;;  %v4864_v2 = vor.u32 %v3743_v52, %v3517_v56  ;;  %p1272_p6 = scmp.lt.s32.totalorder %s4447_s13, 11 }
 0x143   : > { %v4856_v63 = vld [vmem:[#allocation3 + $0x8] sm:$0xff]  ;;  %v4866_v5 = vor.u32 %v3744_v57, %v3525_v61  ;;  %v3746_v9 = vld [vmem:[%s6113_s2 + $0x14] sm:$0xf0]  ;;  %v913_v12 = vld [vmem:[#allocation2 + $0xb0] sm:$0xff]  ;;  %s1538_s17 = sadd.s32 1, %s4447_s13  ;;  %s1800_s20 = sadd.s32 2, %s4447_s13 }
 0x144   : > { %v3523_v6 = vld [vmem:[%s6113_s2 + $0x8] sm:$0xf]  ;;  %v921_v10 = vpack.c.bf16 %v4858_v0, %v4856_v63  ;;  %v914_v13 = vld [vmem:[#allocation2 + $0x1b0] sm:$0xff]  ;;  %v916_v28 = vld [vmem:[#allocation2 + $0x18] sm:$0xff]  ;;  %s4948_s16 = scalar_select %p1272_p6, 1, 0 }
 0x145   : > { %1087 = vmatpush.bf16.msrb.mxu0 %v4782_v18  ;;  %1114 = vmatpush.bf16.msrb.mxu2 %v4784_v23  ;;  %6128 = vst [vmem:[#allocation11_spill] sm:$0xff] %v4866_v5  ;;  %v4880_v11 = vor.u32 %v3746_v9, %v3523_v6  ;;  %v917_v29 = vld [vmem:[#allocation2 + $0x50] sm:$0xff]  ;;  %v918_v30 = vld [vmem:[#allocation2 + $0x168] sm:$0xff]  ;;  %v915_v55 = vld [vmem:[#allocation2 + $0xd8] sm:$0xff]  ;;  %p5065_p7 = scmp.lt.s32.totalorder %s1538_s17, 11  ;;  %p5171_p8 = scmp.lt.s32.totalorder %s1800_s20, 11 }
 0x146   : > { %1101 = vmatpush.bf16.msrb.mxu1 %v4797_v35  ;;  %1129 = vmatpush.bf16.msrb.mxu3 %v4799_v36  ;;  %v920_v57 = vld [vmem:[#allocation2 + $0x48] sm:$0xff]  ;;  %s2062_s22 = sadd.s32 3, %s4447_s13  ;;  %s2324_s25 = sadd.s32 4, %s4447_s13 }
 0x147   : > { %s1540_s19 = scalar_select %p5065_p7, 1, 0 }
 0x148   : > { %s1802_s27 = scalar_select %p5171_p8, 1, 0 }
 0x149   : > { %1088 = vmatpush.bf16.msrb.mxu0 %v4818_v45  ;;  %1115 = vmatpush.bf16.msrb.mxu2 %v4820_v46  ;;  %p5277_p9 = scmp.lt.s32.totalorder %s2062_s22, 11  ;;  %p5383_p10 = scmp.lt.s32.totalorder %s2324_s25, 11 }
 0x14a   : > { %1102 = vmatpush.bf16.msrb.mxu1 %v4830_v50  ;;  %1130 = vmatpush.bf16.msrb.mxu3 %v4832_v51  ;;  %s2586_s11 = sadd.s32 5, %s4447_s13  ;;  %p5946_p0 = scmp.eq.s32.totalorder %s3339_s30, 1 }
 0x14b   : > { %s2064_s24 = scalar_select %p5277_p9, 1, 0 }
 0x14c   : > { %s2326_s10 = scalar_select %p5383_p10, 1, 0 }
 0x14d   : > { %1089 = vmatpush.bf16.msrb.mxu0 %v4854_v62  ;;  %1116 = vmatpush.bf16.msrb.mxu2 %v4860_v1  ;;  %p5489_p11 = scmp.lt.s32.totalorder %s2586_s11, 11  ;;  %s4244_s25 = smov [#allocation5]  }
 0x14e   : > { %1103 = vmatpush.bf16.msrb.mxu1 %v4864_v2  ;;  %1131 = vmatpush.bf16.msrb.mxu3 %v4866_v5  ;;  %s3201_s26 = sshll.u32 %s4244_s25, 4  ;;  %s3203_s14 = sshll.u32 %s6118_s7, 4  ;;  %s3202_s26 = int_to_ptr.vmem [resolvable:$true] %s3201_s26  ;;  %s3204_s14 = int_to_ptr.hbm [resolvable:$true] %s3203_s14 }
 0x14f   : > { %s2588_s15 = scalar_select %p5489_p11, 1, 0 }
 0x150   : > { %1090 = vmatmul.bf16.vlgmr.msrb.gmra.mxu0 %v921_v10  ;;  %s4245_s30 = smov 128  }
 0x151   : > { %1348 = vmatpush.bf16.msra.mxu0 %v4598_v24  ;;  %1104 = vmatmul.bf16.vlgmr.msrb.gmra.mxu1 %v921_v10 }
 0x152   : > { %1362 = vmatpush.bf16.msra.mxu1 %v4609_v33  ;;  %1390 = vmatpush.bf16.msra.mxu3 %v4611_v34 }
 0x153   : > { %1132 = vmatmul.bf16.vlgmr.msrb.gmra.mxu3 %v921_v10  ;;  %1117 = vmatpush.bf16.msrb.mxu2 %v4880_v11 }
 0x155   : > { %1349 = vmatpush.bf16.msra.mxu0 %v4623_v38 }
 0x156   : > { %1363 = vmatpush.bf16.msra.mxu1 %v4636_v42  ;;  %1391 = vmatpush.bf16.msra.mxu3 %v4638_v43 }
 0x157   : > { %1376 = vmatpush.bf16.msra.mxu2 %v4649_v47 }
 0x158   : > { %1118 = vmatmul.bf16.vlgmr.msrb.gmra.mxu2 %v921_v10 }
 0x159   : > { %1350 = vmatpush.bf16.msra.mxu0 %v4671_v54 }
 0x15a   : > { %1364 = vmatpush.bf16.msra.mxu1 %v4684_v58  ;;  %1392 = vmatpush.bf16.msra.mxu3 %v4686_v59 }
 0x15b   : > { %1377 = vmatpush.bf16.msra.mxu2 %v4688_v60 }
 0x15d   : > { %1351 = vmatpush.bf16.msra.mxu0 %v4710_v3 }
 0x15e   : > { %1365 = vmatpush.bf16.msra.mxu1 %v4722_v7  ;;  %1393 = vmatpush.bf16.msra.mxu3 %v4724_v8 }
 0x15f   : > { %1378 = vmatpush.bf16.msra.mxu2 %v4712_v4 }
 0x161   : > { %1352 = vmatpush.bf16.msra.mxu0 %v4746_v15 }
 0x162   : > { %1366 = vmatpush.bf16.msra.mxu1 %v4758_v21  ;;  %1394 = vmatpush.bf16.msra.mxu3 %v4760_v22 }
 0x163   : > { %1379 = vmatpush.bf16.msra.mxu2 %v4748_v16 }
 0x165   : > { %1353 = vmatpush.bf16.msra.mxu0 %v4782_v18 }
 0x166   : > { %1367 = vmatpush.bf16.msra.mxu1 %v4797_v35  ;;  %1395 = vmatpush.bf16.msra.mxu3 %v4799_v36 }
 0x167   : > { %1380 = vmatpush.bf16.msra.mxu2 %v4784_v23 }
 0x169   : > { %1354 = vmatpush.bf16.msra.mxu0 %v4818_v45 }
 0x16a   : > { %1368 = vmatpush.bf16.msra.mxu1 %v4830_v50  ;;  %1396 = vmatpush.bf16.msra.mxu3 %v4832_v51 }
 0x16b   : > { %1381 = vmatpush.bf16.msra.mxu2 %v4820_v46 }
 0x16d   : > { %1355 = vmatpush.bf16.msra.mxu0 %v4854_v62 }
 0x16e   : > { %1369 = vmatpush.bf16.msra.mxu1 %v4864_v2  ;;  %1397 = vmatpush.bf16.msra.mxu3 %v4866_v5 }
 0x16f   : > { %1382 = vmatpush.bf16.msra.mxu2 %v4860_v1 }
 0x171   : > { %1610 = vmatpush.bf16.msrb.mxu0 %v4598_v24 }
 0x172   : > { %1624 = vmatpush.bf16.msrb.mxu1 %v4609_v33  ;;  %1652 = vmatpush.bf16.msrb.mxu3 %v4611_v34 }
 0x173   : > { %1383 = vmatpush.bf16.msra.mxu2 %v4880_v11 }
 0x175   : > { %1611 = vmatpush.bf16.msrb.mxu0 %v4623_v38 }
 0x176   : > { %1625 = vmatpush.bf16.msrb.mxu1 %v4636_v42  ;;  %1653 = vmatpush.bf16.msrb.mxu3 %v4638_v43 }
 0x177   : > { %1638 = vmatpush.bf16.msrb.mxu2 %v4649_v47 }
 0x179   : > { %1612 = vmatpush.bf16.msrb.mxu0 %v4671_v54 }
 0x17a   : > { %1626 = vmatpush.bf16.msrb.mxu1 %v4684_v58  ;;  %1654 = vmatpush.bf16.msrb.mxu3 %v4686_v59 }
 0x17b   : > { %1639 = vmatpush.bf16.msrb.mxu2 %v4688_v60 }
 0x17d   : > { %1613 = vmatpush.bf16.msrb.mxu0 %v4710_v3 }
 0x17e   : > { %1627 = vmatpush.bf16.msrb.mxu1 %v4722_v7  ;;  %1655 = vmatpush.bf16.msrb.mxu3 %v4724_v8 }
 0x17f   : > { %1640 = vmatpush.bf16.msrb.mxu2 %v4712_v4 }
 0x181   : > { %1614 = vmatpush.bf16.msrb.mxu0 %v4746_v15 }
 0x182   : > { %1628 = vmatpush.bf16.msrb.mxu1 %v4758_v21  ;;  %1656 = vmatpush.bf16.msrb.mxu3 %v4760_v22 }
 0x183   : > { %1641 = vmatpush.bf16.msrb.mxu2 %v4748_v16 }
 0x185   : > { %1615 = vmatpush.bf16.msrb.mxu0 %v4782_v18 }
 0x186   : > { %1629 = vmatpush.bf16.msrb.mxu1 %v4797_v35  ;;  %1657 = vmatpush.bf16.msrb.mxu3 %v4799_v36 }
 0x187   : > { %1642 = vmatpush.bf16.msrb.mxu2 %v4784_v23 }
 0x189   : > { %1616 = vmatpush.bf16.msrb.mxu0 %v4818_v45 }
 0x18a   : > { %1630 = vmatpush.bf16.msrb.mxu1 %v4830_v50  ;;  %1658 = vmatpush.bf16.msrb.mxu3 %v4832_v51 }
 0x18b   : > { %1643 = vmatpush.bf16.msrb.mxu2 %v4820_v46 }
 0x18d   : > { %1617 = vmatpush.bf16.msrb.mxu0 %v4854_v62 }
 0x18e   : > { %1631 = vmatpush.bf16.msrb.mxu1 %v4864_v2  ;;  %1659 = vmatpush.bf16.msrb.mxu3 %v4866_v5 }
 0x18f   : > { %1644 = vmatpush.bf16.msrb.mxu2 %v4860_v1 }
 0x193   : > { %1645 = vmatpush.bf16.msrb.mxu2 %v4880_v11 }
 0x1cd   : > { %v1091_v14 = vpop.f32.mrf.mxu0 }
 0x1ce   : > { %v1138_v19 = vadd.f32 %v1091_v14, %v913_v12  ;;  %v1105_v20 = vpop.f32.mrf.mxu1 }
 0x1cf   : > { %v1139_v25 = vadd.f32 %v1105_v20, %v914_v13 }
 0x1d0   : > { %v3641_v26 = vmul.f32 -1.442695, %v1138_v19 }
 0x1d1   : > { %v3643_v27 = vmul.f32 -1.442695, %v1139_v25 }
 0x1d2   : > { %3866 = vpow2.f32 %v3641_v26 }
 0x1d3   : > { %3868 = vpow2.f32 %v3643_v27 }
 0x1d5   : > { %v1093_v32 = vpop.f32.mrf.mxu0 }
 0x1d6   : > { %v1133_v17 = vpop.f32.mrf.mxu3  ;;  %v1142_v37 = vadd.f32 %v1093_v32, %v917_v29  ;;  %v1107_v39 = vpop.f32.mrf.mxu1 }
 0x1d7   : > { %v1141_v31 = vadd.f32 %v1133_v17, %v916_v28  ;;  %v1143_v41 = vadd.f32 %v1107_v39, %v918_v30  ;;  %v1274_v30 = vstv %s4948_s16  ;;  %s2848_s16 = sadd.s32 6, %s4447_s13 }
 0x1d8   : > { %v3867_v44 = vpop.eup %3866  ;;  %v3642_v48 = vmul.f32 -1.442695, %v1142_v37  ;;  %vm4964_vm6 = vcmp.eq.s32.totalorder %v1274_v30, 1  ;;  %p5563_p12 = scmp.lt.s32.totalorder %s2848_s16, 11 }
 0x1d9   : > { %v3645_v40 = vmul.f32 -1.442695, %v1141_v31  ;;  %v3869_v49 = vpop.eup %3868  ;;  %v1152_v52 = vadd.f32 1.0, %v3867_v44  ;;  %v3644_v53 = vmul.f32 -1.442695, %v1143_v41 }
 0x1da   : > { %v1190_v56 = vadd.f32 1.0, %v3869_v49  ;;  %v919_v49 = vld [vmem:[#allocation2 + $0x130] sm:$0xff]  ;;  %s2850_s18 = scalar_select %p5563_p12, 1, 0 }
 0x1db   : > { %3870 = vpow2.f32 %v3645_v40  ;;  %v1119_v61 = vpop.f32.mrf.mxu2  ;;  %v1163_v17 = vand.u32 2147483647, %v1152_v52  ;;  %v1165_v39 = vand.u32 2147483648, %v1152_v52  ;;  %vm1159_vm1 = vweird.f32 %v1152_v52 }
 0x1dc   : > { %3872 = vpow2.f32 %v3642_v48  ;;  %v1140_v6 = vadd.f32 %v1119_v61, %v915_v55  ;;  %v1203_v32 = vand.u32 2147483648, %v1190_v56  ;;  %v1201_v41 = vand.u32 2147483647, %v1190_v56 }
 0x1dd   : > { %3874 = vrcp.f32 %v1152_v52  ;;  %vm1197_vm3 = vweird.f32 %v1190_v56  ;;  %vm4960_vm5 = vcmp.eq.f32.partialorder %v1163_v17, 8.507059e+37 }
 0x1de   : > { %3876 = vrcp.f32 %v1190_v56  ;;  %v1135_v9 = vpop.f32.mrf.mxu3  ;;  %vm1202_vm8 = vcmp.eq.f32.partialorder %v1201_v41, 8.507059e+37 }
 0x1df   : > { %3878 = vpow2.f32 %v3644_v53  ;;  %v1145_v10 = vadd.f32 %v1135_v9, %v920_v57 }
 0x1e0   : > { %3880 = vtanh.f32 %v1140_v6  ;;  %v1340_v6 = vld [vmem:[#allocation2 + $0x110] sm:$0xff] }
 0x1e1   : > { %v3871_v12 = vpop.eup %3870  ;;  %v3646_v13 = vmul.f32 -1.442695, %v1145_v10  ;;  %v1204_v10 = vor.u32 1.1754944e-38, %v1203_v32 }
 0x1e2   : > { %v3873_v14 = vpop.eup %3872  ;;  %v4950_v19 = vadd.f32 1.0, %v3871_v12 }
 0x1e3   : > { %v3875_v20 = vpop.eup %3874  ;;  %v4952_v25 = vadd.f32 1.0, %v3873_v14  ;;  %3882 = vpow2.f32 %v3646_v13  ;;  %v1121_v53 = vpop.f32.mrf.mxu2  ;;  %v1166_v13 = vor.u32 1.1754944e-38, %v1165_v39 }
 0x1e4   : > { %v3877_v26 = vpop.eup %3876  ;;  %v1155_v27 = vmul.f32 %v3875_v20, %v1152_v52  ;;  %3884 = vrcp.f32 %v4950_v19  ;;  %vm1160_vm2 = vweird.f32 %v3875_v20  ;;  %v1144_v17 = vadd.f32 %v1121_v53, %v919_v49 }
 0x1e5   : > { %v3879_v28 = vpop.eup %3878  ;;  %v1193_v29 = vmul.f32 %v3877_v26, %v1190_v56  ;;  %3886 = vrcp.f32 %v4952_v25  ;;  %vm1198_vm4 = vweird.f32 %v3877_v26  ;;  %vm1161_vm7 = vmor %vm1159_vm1, %vm1160_vm2  ;;  %vm1237_vm10 = vweird.f32 %v4950_v19 }
 0x1e6   : > { %v1156_v31 = vsub.f32 1.0, %v1155_v27  ;;  %v4957_v37 = vadd.f32 1.0, %v3879_v28  ;;  %v3881_v44 = vpop.eup %3880  ;;  %vm1199_vm9 = vmor %vm1197_vm3, %vm1198_vm4  ;;  %v1180_v52 = vand.u32 2147483648, %v4952_v25  ;;  %vm1174_vm11 = vweird.f32 %v4952_v25 }
 0x1e7   : > { %v1194_v40 = vsub.f32 1.0, %v1193_v29 }
 0x1e8   : > { %3888 = vrcp.f32 %v4957_v37  ;;  %v1157_v48 = vmul.f32 %v3875_v20, %v1156_v31  ;;  %v908_v31 = vld [vmem:[#allocation4 + $0x8] sm:$0xff]  ;;  %vm1212_vm1 = vweird.f32 %v4957_v37 }
 0x1e9   : > { %v3883_v55 = vpop.eup %3882  ;;  %v1195_v57 = vmul.f32 %v3877_v26, %v1194_v40 }
 0x1ea   : > { %v4968_v9 = vpop.eup %3884  ;;  %v1158_v12 = vadd.f32 %v3875_v20, %v1157_v48  ;;  %v4970_v14 = vadd.f32 1.0, %v3883_v55 }
 0x1eb   : > { %v3887_v27 = vpop.eup %3886  ;;  %v1233_v28 = vmul.f32 %v4968_v9, %v4950_v19  ;;  %v1196_v29 = vadd.f32 %v3877_v26, %v1195_v57  ;;  %v1178_v57 = vand.u32 2147483647, %v4952_v25  ;;  %vm1238_vm13 = vweird.f32 %v4968_v9 }
 0x1ec   : > { %v1170_v30 = vmul.f32 %v3887_v27, %v4952_v25  ;;  %v1162_v32 = vsel %vm1161_vm7, %v3875_v20, %v1158_v12  ;;  %3890 = vrcp.f32 %v4970_v14  ;;  %vm1175_vm12 = vweird.f32 %v3887_v27  ;;  %vm5004_vm2 = vmor %vm1237_vm10, %vm1238_vm13 }
 0x1ed   : > { %v1234_v39 = vsub.f32 1.0, %v1233_v28  ;;  %v1167_v40 = vsel %vm4960_vm5, %v1166_v13, %v1162_v32  ;;  %v1200_v48 = vsel %vm1199_vm9, %v3877_v26, %v1196_v29  ;;  %3892 = vtanh.f32 %v1144_v17  ;;  %vm1176_vm15 = vmor %vm1174_vm11, %vm1175_vm12 }
 0x1ee   : > { %v3889_v55 = vpop.eup %3888  ;;  %v1171_v41 = vsub.f32 1.0, %v1170_v30  ;;  %v1205_v49 = vsel %vm1202_vm8, %v1204_v10, %v1200_v48  ;;  %v1264_v56 = vmul.f32 %v3881_v44, %v1167_v40  ;;  %v1243_v26 = vand.u32 2147483648, %v4950_v19 }
 0x1ef   : > { %v1208_v53 = vmul.f32 %v3889_v55, %v4957_v37  ;;  %v1262_v20 = vmul.f32 %v1205_v49, %v908_v31  ;;  %v1235_v12 = vmul.f32 %v4968_v9, %v1234_v39  ;;  %v1218_v13 = vand.u32 2147483648, %v4957_v37 }
 0x1f0   : > { %v1172_v28 = vmul.f32 %v3887_v27, %v1171_v41  ;;  %v1181_v10 = vor.u32 1.1754944e-38, %v1180_v52  ;;  %v1216_v32 = vand.u32 2147483647, %v4957_v37  ;;  %vm1213_vm14 = vweird.f32 %v3889_v55 }
 0x1f1   : > { %v1209_v61 = vsub.f32 1.0, %v1208_v53  ;;  %v1266_v29 = vadd.f32 %v1264_v56, %v1262_v20  ;;  %v1236_v40 = vadd.f32 %v4968_v9, %v1235_v12  ;;  %vm1179_vm0 = vcmp.eq.f32.partialorder %v1178_v57, 8.507059e+37  ;;  %vm1214_vm3 = vmor %vm1212_vm1, %vm1213_vm14  ;;  %v909_v57 = vld [vmem:[#allocation4] sm:$0xff] }
 0x1f2   : > { %v3891_v44 = vpop.eup %3890  ;;  %v1173_v30 = vadd.f32 %v3887_v27, %v1172_v28  ;;  %v1241_v52 = vand.u32 2147483647, %v4950_v19  ;;  %vm1217_vm4 = vcmp.eq.f32.partialorder %v1216_v32, 8.507059e+37  ;;  %v1244_v28 = vor.u32 1.1754944e-38, %v1243_v26 }
 0x1f3   : > { %v1210_v48 = vmul.f32 %v3889_v55, %v1209_v61  ;;  %3894 = vtanh.f32 %v1266_v29  ;;  %v1248_v17 = vmul.f32 %v3891_v44, %v4970_v14  ;;  %v4999_v41 = vsel %vm4964_vm6, %v1266_v29, %v908_v31  ;;  %v3893_v25 = vpop.eup %3892 }
 0x1f4   : > { %v1177_v39 = vsel %vm1176_vm15, %v3887_v27, %v1173_v30  ;;  %v1219_v27 = vor.u32 1.1754944e-38, %v1218_v13  ;;  %v1240_v31 = vsel %vm5004_vm2, %v4968_v9, %v1236_v40  ;;  %vm1242_vm5 = vcmp.eq.f32.partialorder %v1241_v52, 8.507059e+37 }
 0x1f5   : > { %v1249_v49 = vsub.f32 1.0, %v1248_v17  ;;  %v1182_v56 = vsel %vm1179_vm0, %v1181_v10, %v1177_v39  ;;  %v1211_v53 = vadd.f32 %v3889_v55, %v1210_v48  ;;  %v1245_v30 = vsel %vm1242_vm5, %v1244_v28, %v1240_v31  ;;  %v1342_v31 = vld [vmem:[#allocation2 + $0x98] sm:$0xff] }
 0x1f6   : > { %v1265_v37 = vmul.f32 %v3893_v25, %v1182_v56  ;;  %vm1253_vm7 = vweird.f32 %v3891_v44  ;;  %vm1252_vm8 = vweird.f32 %v4970_v14  ;;  %v1256_v26 = vand.u32 2147483647, %v4970_v14 }
 0x1f7   : > { %v1215_v12 = vsel %vm1214_vm3, %v3889_v55, %v1211_v53  ;;  %v1250_v29 = vmul.f32 %v3891_v44, %v1249_v49  ;;  %v1258_v55 = vand.u32 2147483648, %v4970_v14  ;;  %vm1254_vm9 = vmor %vm1252_vm8, %vm1253_vm7 }
 0x1f8   : > { %v1220_v61 = vsel %vm1217_vm4, %v1219_v27, %v1215_v12  ;;  %vm1257_vm10 = vcmp.eq.f32.partialorder %v1256_v26, 8.507059e+37  ;;  %v1343_v12 = vld [vmem:[#allocation2 + $0x120] sm:$0xff] }
 0x1f9   : > { %v3895_v19 = vpop.eup %3894  ;;  %v1263_v10 = vmul.f32 %v1220_v61, %v909_v57  ;;  %v1251_v39 = vadd.f32 %v3891_v44, %v1250_v29  ;;  %v1259_v40 = vor.u32 1.1754944e-38, %v1258_v55 }
 0x1fa   : > { %v1270_v48 = vmul.f32 %v3895_v19, %v1245_v30 }
 0x1fb   : > { %v1267_v17 = vadd.f32 %v1265_v37, %v1263_v10  ;;  %v1255_v32 = vsel %vm1254_vm9, %v3891_v44, %v1251_v39  ;;  %v1344_v37 = vld [vmem:[#allocation2 + $0x150] sm:$0xff] }
 0x1fc   : > { %v5014_v13 = vsel %vm4964_vm6, %v1270_v48, %v4856_v63  ;;  %v1260_v52 = vsel %vm1257_vm10, %v1259_v40, %v1255_v32 }
 0x1fd   : > { %6135 = vst [vmem:[#allocation12_spill] sm:$0xff] %v5014_v13  ;;  %3896 = vtanh.f32 %v1267_v17  ;;  %1280 = vadd.xlane.f32.xlu0 %v5014_v13  ;;  %v5019_v9 = vsel %vm4964_vm6, %v1267_v17, %v909_v57 }
 0x203   : > { %v3897_v63 = vpop.eup %3896 }
 0x204   : > { %v1271_v49 = vmul.f32 %v3897_v63, %v1260_v52  ;;  %v1341_v52 = vld [vmem:[#allocation2 + $0x118] sm:$0xff] }
 0x206   : > { %v5027_v56 = vsel %vm4964_vm6, %v1271_v49, %v4858_v0  ;;  %v1339_v0 = vld [vmem:[#allocation2 + $0x180] sm:$0xff] }
 0x207   : > { %6136 = vst [vmem:[#allocation13_spill] sm:$0xff] %v5027_v56  ;;  %1282 = vadd.xlane.f32.xlu0 %v5027_v56  ;;  %v1347_v53 = vpack.c.bf16 %v5027_v56, %v5014_v13  ;;  %v1346_v49 = vld [vmem:[#allocation2 + $0x60] sm:$0xff] }
 0x209   : > { %1356 = vmatmul.bf16.vlgmr.msra.gmra.mxu0 %v1347_v53  ;;  %1370 = vmatmul.bf16.vlgmr.msra.gmra.mxu1 %v1347_v53 }
 0x20a   : > { %1384 = vmatmul.bf16.vlgmr.msra.gmra.mxu2 %v1347_v53  ;;  %1398 = vmatmul.bf16.vlgmr.msra.gmra.mxu3 %v1347_v53 }
 0x20b   : > { %1872 = vmatpush.bf16.msra.mxu0 %v4598_v24  ;;  %1886 = vmatpush.bf16.msra.mxu1 %v4609_v33 }
 0x20c   : > { %1900 = vmatpush.bf16.msra.mxu2 %v4649_v47  ;;  %1914 = vmatpush.bf16.msra.mxu3 %v4611_v34 }
 0x20f   : > { %1873 = vmatpush.bf16.msra.mxu0 %v4623_v38  ;;  %1887 = vmatpush.bf16.msra.mxu1 %v4636_v42 }
 0x210   : > { %1901 = vmatpush.bf16.msra.mxu2 %v4688_v60  ;;  %1915 = vmatpush.bf16.msra.mxu3 %v4638_v43 }
 0x213   : > { %1874 = vmatpush.bf16.msra.mxu0 %v4671_v54  ;;  %1888 = vmatpush.bf16.msra.mxu1 %v4684_v58 }
 0x214   : > { %1902 = vmatpush.bf16.msra.mxu2 %v4712_v4  ;;  %1916 = vmatpush.bf16.msra.mxu3 %v4686_v59 }
 0x217   : > { %1875 = vmatpush.bf16.msra.mxu0 %v4710_v3  ;;  %1889 = vmatpush.bf16.msra.mxu1 %v4722_v7 }
 0x218   : > { %1903 = vmatpush.bf16.msra.mxu2 %v4748_v16  ;;  %1917 = vmatpush.bf16.msra.mxu3 %v4724_v8 }
 0x21b   : > { %1876 = vmatpush.bf16.msra.mxu0 %v4746_v15  ;;  %1890 = vmatpush.bf16.msra.mxu1 %v4758_v21 }
 0x21c   : > { %1904 = vmatpush.bf16.msra.mxu2 %v4784_v23  ;;  %1918 = vmatpush.bf16.msra.mxu3 %v4760_v22 }
 0x21f   : > { %1877 = vmatpush.bf16.msra.mxu0 %v4782_v18  ;;  %1891 = vmatpush.bf16.msra.mxu1 %v4797_v35 }
 0x220   : > { %1905 = vmatpush.bf16.msra.mxu2 %v4820_v46  ;;  %1919 = vmatpush.bf16.msra.mxu3 %v4799_v36 }
 0x223   : > { %1878 = vmatpush.bf16.msra.mxu0 %v4818_v45  ;;  %1892 = vmatpush.bf16.msra.mxu1 %v4830_v50 }
 0x224   : > { %1906 = vmatpush.bf16.msra.mxu2 %v4860_v1  ;;  %1920 = vmatpush.bf16.msra.mxu3 %v4832_v51 }
 0x227   : > { %1879 = vmatpush.bf16.msra.mxu0 %v4854_v62  ;;  %1893 = vmatpush.bf16.msra.mxu1 %v4864_v2 }
 0x228   : > { %1907 = vmatpush.bf16.msra.mxu2 %v4880_v11  ;;  %1921 = vmatpush.bf16.msra.mxu3 %v4866_v5 }
 0x286   : > { %v1357_v14 = vpop.f32.mrf.mxu0  ;;  %v1371_v44 = vpop.f32.mrf.mxu1 }
 0x287   : > { %v1404_v20 = vadd.f32 %v1357_v14, %v1339_v0  ;;  %v1405_v25 = vadd.f32 %v1371_v44, %v1340_v6 }
 0x289   : > { %v3647_v27 = vmul.f32 -1.442695, %v1404_v20  ;;  %v3649_v57 = vmul.f32 -1.442695, %v1405_v25 }
 0x28b   : > { %3898 = vpow2.f32 %v3647_v27 }
 0x28c   : > { %3900 = vpow2.f32 %v3649_v57 }
 0x28d   : > { %v1399_v28 = vpop.f32.mrf.mxu3  ;;  %v1385_v32 = vpop.f32.mrf.mxu2 }
 0x28e   : > { %v1407_v61 = vadd.f32 %v1399_v28, %v1342_v31  ;;  %v1359_v29 = vpop.f32.mrf.mxu0  ;;  %v1373_v19 = vpop.f32.mrf.mxu1  ;;  %v1406_v0 = vadd.f32 %v1385_v32, %v1341_v52 }
 0x28f   : > { %v1408_v10 = vadd.f32 %v1359_v29, %v1343_v12  ;;  %v1409_v30 = vadd.f32 %v1373_v19, %v1344_v37  ;;  %v5077_v19 = vstv %s1540_s19  ;;  %s3110_s19 = sadd.s32 7, %s4447_s13 }
 0x290   : > { %v3651_v48 = vmul.f32 -1.442695, %v1407_v61  ;;  %v1345_v61 = vld [vmem:[#allocation2 + $0x108] sm:$0xff]  ;;  %vm1542_vm13 = vcmp.eq.s32.totalorder %v5077_v19, 1  ;;  %v6142_v19 = vld [vmem:[#allocation11_spill] sm:$0xff]  ;;  %p5699_p13 = scmp.lt.s32.totalorder %s3110_s19, 11 }
 0x291   : > { %v3899_v17 = vpop.eup %3898  ;;  %v3648_v39 = vmul.f32 -1.442695, %v1408_v10  ;;  %v3650_v40 = vmul.f32 -1.442695, %v1409_v30  ;;  %s4247_s19 = smov [#allocation7]  }
 0x292   : > { %v3901_v55 = vpop.eup %3900  ;;  %v1418_v26 = vadd.f32 1.0, %v3899_v17  ;;  %3902 = vpow2.f32 %v3651_v48  ;;  %s3112_s13 = scalar_select %p5699_p13, 1, 0 }
 0x293   : > { %v1456_v63 = vadd.f32 1.0, %v3901_v55  ;;  %3904 = vpow2.f32 %v3648_v39  ;;  %s3218_s20 = sshll.u32 %s4247_s19, 4  ;;  %s3219_s20 = int_to_ptr.vmem [resolvable:$true] %s3218_s20 }
 0x294   : > { %3906 = vrcp.f32 %v1418_v26  ;;  %v1429_v30 = vand.u32 2147483647, %v1418_v26  ;;  %v1431_v48 = vand.u32 2147483648, %v1418_v26  ;;  %vm1425_vm12 = vweird.f32 %v1418_v26 }
 0x295   : > { %3908 = vrcp.f32 %v1456_v63  ;;  %v1401_v53 = vpop.f32.mrf.mxu3  ;;  %v1387_v29 = vpop.f32.mrf.mxu2  ;;  %v1469_v55 = vand.u32 2147483648, %v1456_v63  ;;  %v1467_v32 = vand.u32 2147483647, %v1456_v63  ;;  %vm1463_vm14 = vweird.f32 %v1456_v63 }
 0x296   : > { %3910 = vpow2.f32 %v3650_v40  ;;  %v1411_v6 = vadd.f32 %v1401_v53, %v1346_v49  ;;  %v1410_v52 = vadd.f32 %v1387_v29, %v1345_v61  ;;  %vm1430_vm15 = vcmp.eq.f32.partialorder %v1429_v30, 8.507059e+37 }
 0x297   : > { %3912 = vtanh.f32 %v1406_v0  ;;  %vm1468_vm1 = vcmp.eq.f32.partialorder %v1467_v32, 8.507059e+37 }
 0x298   : > { %v3903_v14 = vpop.eup %3902  ;;  %v3652_v57 = vmul.f32 -1.442695, %v1411_v6 }
 0x299   : > { %v3905_v44 = vpop.eup %3904  ;;  %v5071_v20 = vadd.f32 1.0, %v3903_v14  ;;  %v1432_v14 = vor.u32 1.1754944e-38, %v1431_v48 }
 0x29a   : > { %v3907_v25 = vpop.eup %3906  ;;  %v5073_v27 = vadd.f32 1.0, %v3905_v44 }
 0x29b   : > { %v3909_v31 = vpop.eup %3908  ;;  %v1421_v12 = vmul.f32 %v3907_v25, %v1418_v26  ;;  %3914 = vrcp.f32 %v5071_v20  ;;  %vm1426_vm6 = vweird.f32 %v3907_v25  ;;  %vm1503_vm10 = vweird.f32 %v5071_v20 }
 0x29c   : > { %v3911_v37 = vpop.eup %3910  ;;  %v1459_v28 = vmul.f32 %v3909_v31, %v1456_v63  ;;  %3916 = vrcp.f32 %v5073_v27  ;;  %vm1464_vm11 = vweird.f32 %v3909_v31  ;;  %vm1427_vm0 = vmor %vm1425_vm12, %vm1426_vm6  ;;  %vm1440_vm3 = vweird.f32 %v5073_v27 }
 0x29d   : > { %v1422_v10 = vsub.f32 1.0, %v1421_v12  ;;  %v5079_v17 = vadd.f32 1.0, %v3911_v37  ;;  %3918 = vpow2.f32 %v3652_v57  ;;  %v3913_v49 = vpop.eup %3912  ;;  %v1470_v12 = vor.u32 1.1754944e-38, %v1469_v55  ;;  %vm1465_vm2 = vmor %vm1463_vm14, %vm1464_vm11 }
 0x29e   : > { %v1460_v39 = vsub.f32 1.0, %v1459_v28  ;;  %v1446_v30 = vand.u32 2147483648, %v5073_v27 }
 0x29f   : > { %v1423_v40 = vmul.f32 %v3907_v25, %v1422_v10  ;;  %3920 = vrcp.f32 %v5079_v17  ;;  %vm1478_vm6 = vweird.f32 %v5079_v17 }
 0x2a0   : > { %v1461_v53 = vmul.f32 %v3909_v31, %v1460_v39  ;;  %3922 = vtanh.f32 %v1410_v52 }
 0x2a1   : > { %v5083_v0 = vpop.eup %3914  ;;  %v1424_v6 = vadd.f32 %v3907_v25, %v1423_v40 }
 0x2a2   : > { %v3917_v44 = vpop.eup %3916  ;;  %v1462_v57 = vadd.f32 %v3909_v31, %v1461_v53  ;;  %v1499_v37 = vmul.f32 %v5083_v0, %v5071_v20  ;;  %vm1504_vm5 = vweird.f32 %v5083_v0 }
 0x2a3   : > { %v1428_v28 = vsel %vm1427_vm0, %v3907_v25, %v1424_v6  ;;  %v1436_v26 = vmul.f32 %v3917_v44, %v5073_v27  ;;  %v3919_v63 = vpop.eup %3918  ;;  %v1444_v6 = vand.u32 2147483647, %v5073_v27  ;;  %vm1441_vm4 = vweird.f32 %v3917_v44  ;;  %vm5111_vm11 = vmor %vm1503_vm10, %vm1504_vm5 }
 0x2a4   : > { %v1433_v61 = vsel %vm1430_vm15, %v1432_v14, %v1428_v28  ;;  %v1466_v29 = vsel %vm1465_vm2, %v3909_v31, %v1462_v57  ;;  %v1500_v10 = vsub.f32 1.0, %v1499_v37  ;;  %v1497_v40 = vadd.f32 1.0, %v3919_v63  ;;  %vm1442_vm8 = vmor %vm1440_vm3, %vm1441_vm4 }
 0x2a5   : > { %v3921_v48 = vpop.eup %3920  ;;  %v1471_v39 = vsel %vm1468_vm1, %v1470_v12, %v1466_v29  ;;  %v1530_v55 = vmul.f32 %v3913_v49, %v1433_v61  ;;  %v1437_v32 = vsub.f32 1.0, %v1436_v26  ;;  %v1509_v31 = vand.u32 2147483648, %v5071_v20 }
 0x2a6   : > { %v1528_v53 = vmul.f32 %v1471_v39, %v4999_v41  ;;  %v1474_v25 = vmul.f32 %v3921_v48, %v5079_v17  ;;  %v1501_v5 = vmul.f32 %v5083_v0, %v1500_v10  ;;  %3924 = vrcp.f32 %v1497_v40  ;;  %v3923_v37 = vpop.eup %3922 }
 0x2a7   : > { %v1438_v52 = vmul.f32 %v3917_v44, %v1437_v32  ;;  %v1484_v12 = vand.u32 2147483648, %v5079_v17  ;;  %v1447_v49 = vor.u32 1.1754944e-38, %v1446_v30  ;;  %v1482_v26 = vand.u32 2147483647, %v5079_v17 }
 0x2a8   : > { %v1532_v14 = vadd.f32 %v1530_v55, %v1528_v53  ;;  %v1475_v57 = vsub.f32 1.0, %v1474_v25  ;;  %v1502_v63 = vadd.f32 %v5083_v0, %v1501_v5  ;;  %vm1479_vm7 = vweird.f32 %v3921_v48  ;;  %v1602_v55 = vld [vmem:[#allocation2 + $0x188] sm:$0xff] }
 0x2a9   : > { %v1439_v28 = vadd.f32 %v3917_v44, %v1438_v52  ;;  %vm1445_vm9 = vcmp.eq.f32.partialorder %v1444_v6, 8.507059e+37  ;;  %v1507_v5 = vand.u32 2147483647, %v5071_v20  ;;  %vm1480_vm12 = vmor %vm1478_vm6, %vm1479_vm7  ;;  %v1485_v32 = vor.u32 1.1754944e-38, %v1484_v12 }
 0x2aa   : > { %3926 = vtanh.f32 %v1532_v14  ;;  %v1476_v61 = vmul.f32 %v3921_v48, %v1475_v57  ;;  %v5106_v29 = vsel %vm1542_vm13, %v1532_v14, %v4999_v41  ;;  %v1506_v41 = vsel %vm5111_vm11, %v5083_v0, %v1502_v63 }
 0x2ab   : > { %v1443_v10 = vsel %vm1442_vm8, %v3917_v44, %v1439_v28  ;;  %v1510_v44 = vor.u32 1.1754944e-38, %v1509_v31  ;;  %vm1483_vm14 = vcmp.eq.f32.partialorder %v1482_v26, 8.507059e+37  ;;  %vm1508_vm15 = vcmp.eq.f32.partialorder %v1507_v5, 8.507059e+37 }
 0x2ac   : > { %v1448_v30 = vsel %vm1445_vm9, %v1447_v49, %v1443_v10  ;;  %v1477_v39 = vadd.f32 %v3921_v48, %v1476_v61  ;;  %v3925_v27 = vpop.eup %3924  ;;  %v1524_v31 = vand.u32 2147483648, %v1497_v40  ;;  %vm1518_vm1 = vweird.f32 %v1497_v40 }
 0x2ad   : > { %v1531_v25 = vmul.f32 %v3923_v37, %v1448_v30  ;;  %v1514_v20 = vmul.f32 %v3925_v27, %v1497_v40  ;;  %v1511_v57 = vsel %vm1508_vm15, %v1510_v44, %v1506_v41  ;;  %vm1519_vm0 = vweird.f32 %v3925_v27 }
 0x2ae   : > { %v1481_v53 = vsel %vm1480_vm12, %v3921_v48, %v1477_v39  ;;  %v1522_v37 = vand.u32 2147483647, %v1497_v40  ;;  %vm1520_vm2 = vmor %vm1518_vm1, %vm1519_vm0  ;;  %v1525_v63 = vor.u32 1.1754944e-38, %v1524_v31  ;;  %v1601_v40 = vld [vmem:[#allocation2 + $0xe0] sm:$0xff] }
 0x2af   : > { %v1486_v6 = vsel %vm1483_vm14, %v1485_v32, %v1481_v53  ;;  %v1515_v14 = vsub.f32 1.0, %v1514_v20  ;;  %v1604_v20 = vld [vmem:[#allocation2 + $0x140] sm:$0xff] }
 0x2b0   : > { %v3927_v17 = vpop.eup %3926  ;;  %v1529_v52 = vmul.f32 %v1486_v6, %v5019_v9  ;;  %vm1523_vm3 = vcmp.eq.f32.partialorder %v1522_v37, 8.507059e+37  ;;  %v1605_v6 = vld [vmem:[#allocation2 + $0x80] sm:$0xff] }
 0x2b1   : > { %v1536_v49 = vmul.f32 %v3927_v17, %v1511_v57  ;;  %v1516_v61 = vmul.f32 %v3925_v27, %v1515_v14  ;;  %v1606_v17 = vld [vmem:[#allocation2 + $0x1a8] sm:$0xff] }
 0x2b2   : > { %v1533_v28 = vadd.f32 %v1531_v25, %v1529_v52 }
 0x2b3   : > { %v5122_v12 = vsel %vm1542_vm13, %v1536_v49, %v5014_v13  ;;  %v1517_v48 = vadd.f32 %v3925_v27, %v1516_v61 }
 0x2b4   : > { %6140 = vst [vmem:[#allocation14_spill] sm:$0xff] %v5122_v12  ;;  %3928 = vtanh.f32 %v1533_v28  ;;  %1547 = vadd.xlane.f32.xlu1 %v5122_v12  ;;  %v5128_v0 = vsel %vm1542_vm13, %v1533_v28, %v5019_v9 }
 0x2b5   : > { %v1521_v26 = vsel %vm1520_vm2, %v3925_v27, %v1517_v48 }
 0x2b6   : > { %v1526_v5 = vsel %vm1523_vm3, %v1525_v63, %v1521_v26 }
 0x2ba   : > { %v3929_v10 = vpop.eup %3928 }
 0x2bb   : > { %v1537_v30 = vmul.f32 %v3929_v10, %v1526_v5 }
 0x2bd   : > { %v5133_v39 = vsel %vm1542_vm13, %v1537_v30, %v5027_v56 }
 0x2be   : > { %6141 = vst [vmem:[#allocation15_spill] sm:$0xff] %v5133_v39  ;;  %1549 = vadd.xlane.f32.xlu1 %v5133_v39  ;;  %v1609_v9 = vpack.c.bf16 %v5133_v39, %v5122_v12 }
 0x2c0   : > { %1618 = vmatmul.bf16.vlgmr.msrb.gmra.mxu0 %v1609_v9  ;;  %1632 = vmatmul.bf16.vlgmr.msrb.gmra.mxu1 %v1609_v9 }
 0x2c1   : > { %1646 = vmatmul.bf16.vlgmr.msrb.gmra.mxu2 %v1609_v9  ;;  %1660 = vmatmul.bf16.vlgmr.msrb.gmra.mxu3 %v1609_v9  ;;  %v1603_v9 = vld [vmem:[#allocation2 + $0x138] sm:$0xff] }
 0x2c2   : > { %2134 = vmatpush.bf16.msrb.mxu0 %v4598_v24  ;;  %2148 = vmatpush.bf16.msrb.mxu1 %v4609_v33 }
 0x2c3   : > { %2162 = vmatpush.bf16.msrb.mxu2 %v4649_v47  ;;  %2176 = vmatpush.bf16.msrb.mxu3 %v4611_v34 }
 0x2c6   : > { %2135 = vmatpush.bf16.msrb.mxu0 %v4623_v38  ;;  %2149 = vmatpush.bf16.msrb.mxu1 %v4636_v42 }
 0x2c7   : > { %2163 = vmatpush.bf16.msrb.mxu2 %v4688_v60  ;;  %2177 = vmatpush.bf16.msrb.mxu3 %v4638_v43 }
 0x2ca   : > { %2136 = vmatpush.bf16.msrb.mxu0 %v4671_v54  ;;  %2150 = vmatpush.bf16.msrb.mxu1 %v4684_v58 }
 0x2cb   : > { %2164 = vmatpush.bf16.msrb.mxu2 %v4712_v4  ;;  %2178 = vmatpush.bf16.msrb.mxu3 %v4686_v59 }
 0x2ce   : > { %2137 = vmatpush.bf16.msrb.mxu0 %v4710_v3  ;;  %2151 = vmatpush.bf16.msrb.mxu1 %v4722_v7 }
 0x2cf   : > { %2165 = vmatpush.bf16.msrb.mxu2 %v4748_v16  ;;  %2179 = vmatpush.bf16.msrb.mxu3 %v4724_v8 }
 0x2d2   : > { %2138 = vmatpush.bf16.msrb.mxu0 %v4746_v15  ;;  %2152 = vmatpush.bf16.msrb.mxu1 %v4758_v21 }
 0x2d3   : > { %2166 = vmatpush.bf16.msrb.mxu2 %v4784_v23  ;;  %2180 = vmatpush.bf16.msrb.mxu3 %v4760_v22 }
 0x2d6   : > { %2139 = vmatpush.bf16.msrb.mxu0 %v4782_v18  ;;  %2153 = vmatpush.bf16.msrb.mxu1 %v4797_v35 }
 0x2d7   : > { %2167 = vmatpush.bf16.msrb.mxu2 %v4820_v46  ;;  %2181 = vmatpush.bf16.msrb.mxu3 %v4799_v36 }
 0x2da   : > { %2140 = vmatpush.bf16.msrb.mxu0 %v4818_v45  ;;  %2154 = vmatpush.bf16.msrb.mxu1 %v4830_v50 }
 0x2db   : > { %2168 = vmatpush.bf16.msrb.mxu2 %v4860_v1  ;;  %2182 = vmatpush.bf16.msrb.mxu3 %v4832_v51 }
 0x2de   : > { %2141 = vmatpush.bf16.msrb.mxu0 %v4854_v62  ;;  %2155 = vmatpush.bf16.msrb.mxu1 %v4864_v2 }
 0x2df   : > { %2169 = vmatpush.bf16.msrb.mxu2 %v4880_v11  ;;  %2183 = vmatpush.bf16.msrb.mxu3 %v6142_v19 }
 0x33d   : > { %v1619_v27 = vpop.f32.mrf.mxu0  ;;  %v1633_v32 = vpop.f32.mrf.mxu1 }
 0x33e   : > { %v1666_v41 = vadd.f32 %v1619_v27, %v1601_v40  ;;  %v1667_v44 = vadd.f32 %v1633_v32, %v1602_v55  ;;  %v1608_v40 = vld [vmem:[#allocation2 + $0x28] sm:$0xff] }
 0x340   : > { %v3655_v53 = vmul.f32 -1.442695, %v1666_v41  ;;  %v3657_v25 = vmul.f32 -1.442695, %v1667_v44 }
 0x342   : > { %3930 = vpow2.f32 %v3655_v53 }
 0x343   : > { %3932 = vpow2.f32 %v3657_v25 }
 0x344   : > { %v1661_v52 = vpop.f32.mrf.mxu3  ;;  %v1647_v10 = vpop.f32.mrf.mxu2 }
 0x345   : > { %v1669_v14 = vadd.f32 %v1661_v52, %v1604_v20  ;;  %v1621_v57 = vpop.f32.mrf.mxu0  ;;  %v1635_v49 = vpop.f32.mrf.mxu1  ;;  %v1668_v27 = vadd.f32 %v1647_v10, %v1603_v9 }
 0x346   : > { %v1670_v28 = vadd.f32 %v1621_v57, %v1605_v6  ;;  %v1671_v61 = vadd.f32 %v1635_v49, %v1606_v17  ;;  %v1607_v49 = vld [vmem:[#allocation2 + $0x1b8] sm:$0xff] }
 0x347   : > { %v3659_v48 = vmul.f32 -1.442695, %v1669_v14 }
 0x348   : > { %v3931_v31 = vpop.eup %3930  ;;  %v3656_v37 = vmul.f32 -1.442695, %v1670_v28  ;;  %v3658_v5 = vmul.f32 -1.442695, %v1671_v61  ;;  %v5183_v61 = vstv %s1802_s27 }
 0x349   : > { %v3933_v26 = vpop.eup %3932  ;;  %v1680_v63 = vadd.f32 1.0, %v3931_v31  ;;  %3934 = vpow2.f32 %v3659_v48  ;;  %vm1804_vm7 = vcmp.eq.s32.totalorder %v5183_v61, 1  ;;  %v1863_v61 = vld [vmem:[#allocation2 + $0x1e8] sm:$0xff] }
 0x34a   : > { %v1718_v30 = vadd.f32 1.0, %v3933_v26  ;;  %3936 = vpow2.f32 %v3656_v37 }
 0x34b   : > { %3938 = vrcp.f32 %v1680_v63  ;;  %v1691_v31 = vand.u32 2147483647, %v1680_v63  ;;  %v1693_v37 = vand.u32 2147483648, %v1680_v63  ;;  %vm1687_vm5 = vweird.f32 %v1680_v63 }
 0x34c   : > { %3940 = vrcp.f32 %v1718_v30  ;;  %v1663_v55 = vpop.f32.mrf.mxu3  ;;  %v1649_v28 = vpop.f32.mrf.mxu2  ;;  %v1729_v9 = vand.u32 2147483647, %v1718_v30  ;;  %vm1725_vm8 = vweird.f32 %v1718_v30 }
 0x34d   : > { %3942 = vpow2.f32 %v3658_v5  ;;  %v1673_v32 = vadd.f32 %v1663_v55, %v1608_v40  ;;  %v1731_v5 = vand.u32 2147483648, %v1718_v30  ;;  %v1672_v55 = vadd.f32 %v1649_v28, %v1607_v49 }
 0x34e   : > { %3944 = vtanh.f32 %v1668_v27  ;;  %vm1692_vm9 = vcmp.eq.f32.partialorder %v1691_v31, 8.507059e+37  ;;  %vm1730_vm6 = vcmp.eq.f32.partialorder %v1729_v9, 8.507059e+37 }
 0x34f   : > { %v3935_v41 = vpop.eup %3934  ;;  %v3660_v6 = vmul.f32 -1.442695, %v1673_v32 }
 0x350   : > { %v3937_v44 = vpop.eup %3936  ;;  %v5177_v53 = vadd.f32 1.0, %v3935_v41 }
 0x351   : > { %v3939_v25 = vpop.eup %3938  ;;  %v5179_v20 = vadd.f32 1.0, %v3937_v44 }
 0x352   : > { %v3941_v17 = vpop.eup %3940  ;;  %v1683_v52 = vmul.f32 %v3939_v25, %v1680_v63  ;;  %3946 = vrcp.f32 %v5177_v53  ;;  %vm1688_vm13 = vweird.f32 %v3939_v25  ;;  %vm1765_vm3 = vweird.f32 %v5177_v53 }
 0x353   : > { %v3943_v14 = vpop.eup %3942  ;;  %v1721_v57 = vmul.f32 %v3941_v17, %v1718_v30  ;;  %3948 = vrcp.f32 %v5179_v20  ;;  %vm1726_vm4 = vweird.f32 %v3941_v17  ;;  %vm1689_vm10 = vmor %vm1687_vm5, %vm1688_vm13  ;;  %vm1702_vm12 = vweird.f32 %v5179_v20 }
 0x354   : > { %v1684_v48 = vsub.f32 1.0, %v1683_v52  ;;  %v5185_v26 = vadd.f32 1.0, %v3943_v14  ;;  %3950 = vpow2.f32 %v3660_v6  ;;  %v3945_v27 = vpop.eup %3944  ;;  %v1694_v52 = vor.u32 1.1754944e-38, %v1693_v37  ;;  %vm1727_vm11 = vmor %vm1725_vm8, %vm1726_vm4 }
 0x355   : > { %v1722_v10 = vsub.f32 1.0, %v1721_v57  ;;  %v1732_v57 = vor.u32 1.1754944e-38, %v1731_v5 }
 0x356   : > { %v1685_v40 = vmul.f32 %v3939_v25, %v1684_v48  ;;  %3952 = vrcp.f32 %v5185_v26  ;;  %vm1740_vm13 = vweird.f32 %v5185_v26 }
 0x357   : > { %v1723_v32 = vmul.f32 %v3941_v17, %v1722_v10  ;;  %3954 = vtanh.f32 %v1672_v55  ;;  %v1708_v10 = vand.u32 2147483648, %v5179_v20 }
 0x358   : > { %v5189_v41 = vpop.eup %3946  ;;  %v1686_v44 = vadd.f32 %v3939_v25, %v1685_v40 }
 0x359   : > { %v3949_v14 = vpop.eup %3948  ;;  %v1724_v6 = vadd.f32 %v3941_v17, %v1723_v32  ;;  %v1761_v49 = vmul.f32 %v5189_v41, %v5177_v53  ;;  %vm1766_vm15 = vweird.f32 %v5189_v41 }
 0x35a   : > { %v1690_v28 = vsel %vm1689_vm10, %v3939_v25, %v1686_v44  ;;  %v1698_v63 = vmul.f32 %v3949_v14, %v5179_v20  ;;  %v3951_v30 = vpop.eup %3950  ;;  %v1706_v44 = vand.u32 2147483647, %v5179_v20  ;;  %vm1703_vm14 = vweird.f32 %v3949_v14  ;;  %vm5217_vm4 = vmor %vm1765_vm3, %vm1766_vm15 }
 0x35b   : > { %v1695_v48 = vsel %vm1692_vm9, %v1694_v52, %v1690_v28  ;;  %v1728_v31 = vsel %vm1727_vm11, %v3941_v17, %v1724_v6  ;;  %v1762_v37 = vsub.f32 1.0, %v1761_v49  ;;  %v1759_v56 = vadd.f32 1.0, %v3951_v30  ;;  %vm1704_vm1 = vmor %vm1702_vm12, %vm1703_vm14 }
 0x35c   : > { %v3953_v5 = vpop.eup %3952  ;;  %v1733_v40 = vsel %vm1730_vm6, %v1732_v57, %v1728_v31  ;;  %v1792_v32 = vmul.f32 %v3945_v27, %v1695_v48  ;;  %v1699_v9 = vsub.f32 1.0, %v1698_v63  ;;  %v1771_v17 = vand.u32 2147483648, %v5177_v53 }
 0x35d   : > { %v1790_v13 = vmul.f32 %v1733_v40, %v5106_v29  ;;  %v1736_v25 = vmul.f32 %v3953_v5, %v5185_v26  ;;  %v1763_v19 = vmul.f32 %v5189_v41, %v1762_v37  ;;  %3956 = vrcp.f32 %v1759_v56  ;;  %v3955_v49 = vpop.eup %3954  ;;  %v1864_v40 = vld [vmem:[#allocation2 + $0xf8] sm:$0xff] }
 0x35e   : > { %v1700_v55 = vmul.f32 %v3949_v14, %v1699_v9  ;;  %v1746_v57 = vand.u32 2147483648, %v5185_v26  ;;  %v1709_v27 = vor.u32 1.1754944e-38, %v1708_v10  ;;  %v1744_v63 = vand.u32 2147483647, %v5185_v26 }
 0x35f   : > { %v1794_v52 = vadd.f32 %v1792_v32, %v1790_v13  ;;  %v1737_v6 = vsub.f32 1.0, %v1736_v25  ;;  %v1764_v30 = vadd.f32 %v5189_v41, %v1763_v19  ;;  %vm1741_vm0 = vweird.f32 %v3953_v5 }
 0x360   : > { %v1701_v28 = vadd.f32 %v3949_v14, %v1700_v55  ;;  %vm1707_vm2 = vcmp.eq.f32.partialorder %v1706_v44, 8.507059e+37  ;;  %v1769_v19 = vand.u32 2147483647, %v5177_v53  ;;  %vm1742_vm5 = vmor %vm1740_vm13, %vm1741_vm0  ;;  %v1747_v32 = vor.u32 1.1754944e-38, %v1746_v57 }
 0x361   : > { %3958 = vtanh.f32 %v1794_v52  ;;  %v1738_v48 = vmul.f32 %v3953_v5, %v1737_v6  ;;  %v5212_v13 = vsel %vm1804_vm7, %v1794_v52, %v5106_v29  ;;  %v1768_v29 = vsel %vm5217_vm4, %v5189_v41, %v1764_v30 }
 0x362   : > { %v1705_v31 = vsel %vm1704_vm1, %v3949_v14, %v1701_v28  ;;  %v1772_v14 = vor.u32 1.1754944e-38, %v1771_v17  ;;  %vm1745_vm8 = vcmp.eq.f32.partialorder %v1744_v63, 8.507059e+37  ;;  %vm1770_vm9 = vcmp.eq.f32.partialorder %v1769_v19, 8.507059e+37 }
 0x363   : > { %v1710_v37 = vsel %vm1707_vm2, %v1709_v27, %v1705_v31  ;;  %v1739_v10 = vadd.f32 %v3953_v5, %v1738_v48  ;;  %v3957_v20 = vpop.eup %3956  ;;  %v1786_v17 = vand.u32 2147483648, %v1759_v56  ;;  %vm1780_vm6 = vweird.f32 %v1759_v56 }
 0x364   : > { %v1793_v25 = vmul.f32 %v3955_v49, %v1710_v37  ;;  %v1776_v53 = vmul.f32 %v3957_v20, %v1759_v56  ;;  %v1773_v6 = vsel %vm1770_vm9, %v1772_v14, %v1768_v29  ;;  %vm1781_vm10 = vweird.f32 %v3957_v20 }
 0x365   : > { %v1743_v9 = vsel %vm1742_vm5, %v3953_v5, %v1739_v10  ;;  %v1784_v49 = vand.u32 2147483647, %v1759_v56  ;;  %vm1782_vm11 = vmor %vm1780_vm6, %vm1781_vm10  ;;  %v1787_v30 = vor.u32 1.1754944e-38, %v1786_v17  ;;  %v6148_v56 = vld [vmem:[#allocation11_spill] sm:$0xff] }
 0x366   : > { %v1748_v44 = vsel %vm1745_vm8, %v1747_v32, %v1743_v9  ;;  %v1777_v52 = vsub.f32 1.0, %v1776_v53  ;;  %v1866_v53 = vld [vmem:[#allocation2 + $0x30] sm:$0xff] }
 0x367   : > { %v3959_v26 = vpop.eup %3958  ;;  %v1791_v55 = vmul.f32 %v1748_v44, %v5128_v0  ;;  %vm1785_vm12 = vcmp.eq.f32.partialorder %v1784_v49, 8.507059e+37  ;;  %v1867_v44 = vld [vmem:[#allocation2 + $0x1e0] sm:$0xff] }
 0x368   : > { %v1798_v27 = vmul.f32 %v3959_v26, %v1773_v6  ;;  %v1778_v48 = vmul.f32 %v3957_v20, %v1777_v52  ;;  %v1868_v26 = vld [vmem:[#allocation2] sm:$0xff] }
 0x369   : > { %v1795_v28 = vadd.f32 %v1793_v25, %v1791_v55 }
 0x36a   : > { %v5228_v57 = vsel %vm1804_vm7, %v1798_v27, %v5122_v12  ;;  %v1779_v5 = vadd.f32 %v3957_v20, %v1778_v48 }
 0x36b   : > { %6146 = vst [vmem:[#allocation16_spill] sm:$0xff] %v5228_v57  ;;  %3960 = vtanh.f32 %v1795_v28  ;;  %1809 = vadd.xlane.f32.xlu2 %v5228_v57  ;;  %v5234_v41 = vsel %vm1804_vm7, %v1795_v28, %v5128_v0 }
 0x36c   : > { %v1783_v63 = vsel %vm1782_vm11, %v3957_v20, %v1779_v5 }
 0x36d   : > { %v1788_v19 = vsel %vm1785_vm12, %v1787_v30, %v1783_v63 }
 0x371   : > { %v3961_v31 = vpop.eup %3960 }
 0x372   : > { %v1799_v37 = vmul.f32 %v3961_v31, %v1788_v19 }
 0x374   : > { %v5239_v10 = vsel %vm1804_vm7, %v1799_v37, %v5133_v39 }
 0x375   : > { %6147 = vst [vmem:[#allocation17_spill] sm:$0xff] %v5239_v10  ;;  %1811 = vadd.xlane.f32.xlu2 %v5239_v10  ;;  %v1871_v0 = vpack.c.bf16 %v5239_v10, %v5228_v57 }
 0x377   : > { %1880 = vmatmul.bf16.vlgmr.msra.gmra.mxu0 %v1871_v0  ;;  %1894 = vmatmul.bf16.vlgmr.msra.gmra.mxu1 %v1871_v0 }
 0x378   : > { %1908 = vmatmul.bf16.vlgmr.msra.gmra.mxu2 %v1871_v0  ;;  %1922 = vmatmul.bf16.vlgmr.msra.gmra.mxu3 %v1871_v0  ;;  %v1865_v0 = vld [vmem:[#allocation2 + $0x160] sm:$0xff] }
 0x379   : > { %2396 = vmatpush.bf16.msra.mxu0 %v4598_v24  ;;  %2410 = vmatpush.bf16.msra.mxu1 %v4609_v33 }
 0x37a   : > { %2424 = vmatpush.bf16.msra.mxu2 %v4649_v47  ;;  %2438 = vmatpush.bf16.msra.mxu3 %v4611_v34 }
 0x37d   : > { %2397 = vmatpush.bf16.msra.mxu0 %v4623_v38  ;;  %2411 = vmatpush.bf16.msra.mxu1 %v4636_v42 }
 0x37e   : > { %2425 = vmatpush.bf16.msra.mxu2 %v4688_v60  ;;  %2439 = vmatpush.bf16.msra.mxu3 %v4638_v43 }
 0x381   : > { %2398 = vmatpush.bf16.msra.mxu0 %v4671_v54  ;;  %2412 = vmatpush.bf16.msra.mxu1 %v4684_v58 }
 0x382   : > { %2426 = vmatpush.bf16.msra.mxu2 %v4712_v4  ;;  %2440 = vmatpush.bf16.msra.mxu3 %v4686_v59 }
 0x385   : > { %2399 = vmatpush.bf16.msra.mxu0 %v4710_v3  ;;  %2413 = vmatpush.bf16.msra.mxu1 %v4722_v7 }
 0x386   : > { %2427 = vmatpush.bf16.msra.mxu2 %v4748_v16  ;;  %2441 = vmatpush.bf16.msra.mxu3 %v4724_v8 }
 0x389   : > { %2400 = vmatpush.bf16.msra.mxu0 %v4746_v15  ;;  %2414 = vmatpush.bf16.msra.mxu1 %v4758_v21 }
 0x38a   : > { %2428 = vmatpush.bf16.msra.mxu2 %v4784_v23  ;;  %2442 = vmatpush.bf16.msra.mxu3 %v4760_v22 }
 0x38d   : > { %2401 = vmatpush.bf16.msra.mxu0 %v4782_v18  ;;  %2415 = vmatpush.bf16.msra.mxu1 %v4797_v35 }
 0x38e   : > { %2429 = vmatpush.bf16.msra.mxu2 %v4820_v46  ;;  %2443 = vmatpush.bf16.msra.mxu3 %v4799_v36 }
 0x391   : > { %2402 = vmatpush.bf16.msra.mxu0 %v4818_v45  ;;  %2416 = vmatpush.bf16.msra.mxu1 %v4830_v50 }
 0x392   : > { %2430 = vmatpush.bf16.msra.mxu2 %v4860_v1  ;;  %2444 = vmatpush.bf16.msra.mxu3 %v4832_v51 }
 0x395   : > { %2403 = vmatpush.bf16.msra.mxu0 %v4854_v62  ;;  %2417 = vmatpush.bf16.msra.mxu1 %v4864_v2 }
 0x396   : > { %2431 = vmatpush.bf16.msra.mxu2 %v4880_v11  ;;  %2445 = vmatpush.bf16.msra.mxu3 %v6148_v56 }
 0x3f4   : > { %v1881_v20 = vpop.f32.mrf.mxu0  ;;  %v1895_v32 = vpop.f32.mrf.mxu1 }
 0x3f5   : > { %v1928_v29 = vadd.f32 %v1881_v20, %v1863_v61  ;;  %v1929_v14 = vadd.f32 %v1895_v32, %v1864_v40  ;;  %v1870_v61 = vld [vmem:[#allocation2 + $0x8] sm:$0xff] }
 0x3f7   : > { %v3663_v9 = vmul.f32 -1.442695, %v1928_v29  ;;  %v3665_v25 = vmul.f32 -1.442695, %v1929_v14 }
 0x3f9   : > { %3962 = vpow2.f32 %v3663_v9 }
 0x3fa   : > { %3964 = vpow2.f32 %v3665_v25 }
 0x3fb   : > { %v1923_v55 = vpop.f32.mrf.mxu3  ;;  %v1909_v31 = vpop.f32.mrf.mxu2 }
 0x3fc   : > { %v1931_v52 = vadd.f32 %v1923_v55, %v1866_v53  ;;  %v1883_v6 = vpop.f32.mrf.mxu0  ;;  %v1897_v27 = vpop.f32.mrf.mxu1  ;;  %v1930_v20 = vadd.f32 %v1909_v31, %v1865_v0 }
 0x3fd   : > { %v1932_v28 = vadd.f32 %v1883_v6, %v1867_v44  ;;  %v1933_v48 = vadd.f32 %v1897_v27, %v1868_v26  ;;  %v1869_v27 = vld [vmem:[#allocation2 + $0xf0] sm:$0xff] }
 0x3fe   : > { %v3667_v5 = vmul.f32 -1.442695, %v1931_v52 }
 0x3ff   : > { %v3963_v17 = vpop.eup %3962  ;;  %v3664_v49 = vmul.f32 -1.442695, %v1932_v28  ;;  %v3666_v19 = vmul.f32 -1.442695, %v1933_v48  ;;  %v5289_v48 = vstv %s2064_s24 }
 0x400   : > { %v3965_v63 = vpop.eup %3964  ;;  %v1942_v30 = vadd.f32 1.0, %v3963_v17  ;;  %3966 = vpow2.f32 %v3667_v5  ;;  %vm2066_vm0 = vcmp.eq.s32.totalorder %v5289_v48, 1  ;;  %v2125_v48 = vld [vmem:[#allocation2 + $0x148] sm:$0xff] }
 0x401   : > { %v1980_v37 = vadd.f32 1.0, %v3965_v63  ;;  %3968 = vpow2.f32 %v3664_v49 }
 0x402   : > { %3970 = vrcp.f32 %v1942_v30  ;;  %v1953_v17 = vand.u32 2147483647, %v1942_v30  ;;  %v1955_v49 = vand.u32 2147483648, %v1942_v30  ;;  %vm1949_vm15 = vweird.f32 %v1942_v30 }
 0x403   : > { %3972 = vrcp.f32 %v1980_v37  ;;  %v1925_v40 = vpop.f32.mrf.mxu3  ;;  %v1911_v28 = vpop.f32.mrf.mxu2  ;;  %v1991_v0 = vand.u32 2147483647, %v1980_v37  ;;  %vm1987_vm1 = vweird.f32 %v1980_v37 }
 0x404   : > { %3974 = vpow2.f32 %v3666_v19  ;;  %v1935_v32 = vadd.f32 %v1925_v40, %v1870_v61  ;;  %v1993_v19 = vand.u32 2147483648, %v1980_v37  ;;  %v1934_v40 = vadd.f32 %v1911_v28, %v1869_v27 }
 0x405   : > { %3976 = vtanh.f32 %v1930_v20  ;;  %vm1954_vm2 = vcmp.eq.f32.partialorder %v1953_v17, 8.507059e+37  ;;  %vm1992_vm13 = vcmp.eq.f32.partialorder %v1991_v0, 8.507059e+37 }
 0x406   : > { %v3967_v29 = vpop.eup %3966  ;;  %v3668_v44 = vmul.f32 -1.442695, %v1935_v32 }
 0x407   : > { %v3969_v14 = vpop.eup %3968  ;;  %v5283_v9 = vadd.f32 1.0, %v3967_v29 }
 0x408   : > { %v3971_v25 = vpop.eup %3970  ;;  %v5285_v53 = vadd.f32 1.0, %v3969_v14 }
 0x409   : > { %v3973_v26 = vpop.eup %3972  ;;  %v1945_v55 = vmul.f32 %v3971_v25, %v1942_v30  ;;  %3978 = vrcp.f32 %v5283_v9  ;;  %vm1950_vm7 = vweird.f32 %v3971_v25  ;;  %vm2027_vm12 = vweird.f32 %v5283_v9 }
 0x40a   : > { %v3975_v52 = vpop.eup %3974  ;;  %v1983_v6 = vmul.f32 %v3973_v26, %v1980_v37  ;;  %3980 = vrcp.f32 %v5285_v53  ;;  %vm1988_vm14 = vweird.f32 %v3973_v26  ;;  %vm1951_vm3 = vmor %vm1949_vm15, %vm1950_vm7  ;;  %vm1964_vm5 = vweird.f32 %v5285_v53 }
 0x40b   : > { %v1946_v5 = vsub.f32 1.0, %v1945_v55  ;;  %v5291_v63 = vadd.f32 1.0, %v3975_v52  ;;  %3982 = vpow2.f32 %v3668_v44  ;;  %v3977_v20 = vpop.eup %3976  ;;  %v1956_v55 = vor.u32 1.1754944e-38, %v1955_v49  ;;  %vm1989_vm4 = vmor %vm1987_vm1, %vm1988_vm14 }
 0x40c   : > { %v1984_v31 = vsub.f32 1.0, %v1983_v6  ;;  %v1994_v6 = vor.u32 1.1754944e-38, %v1993_v19 }
 0x40d   : > { %v1947_v61 = vmul.f32 %v3971_v25, %v1946_v5  ;;  %3984 = vrcp.f32 %v5291_v63  ;;  %vm2002_vm7 = vweird.f32 %v5291_v63 }
 0x40e   : > { %v1985_v32 = vmul.f32 %v3973_v26, %v1984_v31  ;;  %3986 = vtanh.f32 %v1934_v40  ;;  %v1970_v31 = vand.u32 2147483648, %v5285_v53 }
 0x40f   : > { %v5295_v29 = vpop.eup %3978  ;;  %v1948_v14 = vadd.f32 %v3971_v25, %v1947_v61 }
 0x410   : > { %v3981_v52 = vpop.eup %3980  ;;  %v1986_v44 = vadd.f32 %v3973_v26, %v1985_v32  ;;  %v2023_v27 = vmul.f32 %v5295_v29, %v5283_v9  ;;  %vm2028_vm9 = vweird.f32 %v5295_v29 }
 0x411   : > { %v1952_v28 = vsel %vm1951_vm3, %v3971_v25, %v1948_v14  ;;  %v1960_v30 = vmul.f32 %v3981_v52, %v5285_v53  ;;  %v3983_v37 = vpop.eup %3982  ;;  %v1968_v14 = vand.u32 2147483647, %v5285_v53  ;;  %vm1965_vm8 = vweird.f32 %v3981_v52  ;;  %vm5323_vm14 = vmor %vm2027_vm12, %vm2028_vm9 }
 0x412   : > { %v1957_v5 = vsel %vm1954_vm2, %v1956_v55, %v1952_v28  ;;  %v1990_v17 = vsel %vm1989_vm4, %v3973_v26, %v1986_v44  ;;  %v2024_v49 = vsub.f32 1.0, %v2023_v27  ;;  %v2021_v12 = vadd.f32 1.0, %v3983_v37  ;;  %vm1966_vm6 = vmor %vm1964_vm5, %vm1965_vm8 }
 0x413   : > { %v3985_v19 = vpop.eup %3984  ;;  %v1995_v61 = vsel %vm1992_vm13, %v1994_v6, %v1990_v17  ;;  %v2054_v32 = vmul.f32 %v3977_v20, %v1957_v5  ;;  %v1961_v0 = vsub.f32 1.0, %v1960_v30  ;;  %v2033_v26 = vand.u32 2147483648, %v5283_v9 }
 0x414   : > { %v2052_v39 = vmul.f32 %v1995_v61, %v5212_v13  ;;  %v1998_v25 = vmul.f32 %v3985_v19, %v5291_v63  ;;  %v2025_v56 = vmul.f32 %v5295_v29, %v2024_v49  ;;  %3988 = vrcp.f32 %v2021_v12  ;;  %v3987_v27 = vpop.eup %3986  ;;  %v2126_v61 = vld [vmem:[#allocation2 + $0x1d0] sm:$0xff] }
 0x415   : > { %v1962_v40 = vmul.f32 %v3981_v52, %v1961_v0  ;;  %v2008_v6 = vand.u32 2147483648, %v5291_v63  ;;  %v1971_v20 = vor.u32 1.1754944e-38, %v1970_v31  ;;  %v2006_v30 = vand.u32 2147483647, %v5291_v63 }
 0x416   : > { %v2056_v55 = vadd.f32 %v2054_v32, %v2052_v39  ;;  %v1999_v44 = vsub.f32 1.0, %v1998_v25  ;;  %v2026_v37 = vadd.f32 %v5295_v29, %v2025_v56  ;;  %vm2003_vm10 = vweird.f32 %v3985_v19 }
 0x417   : > { %v1963_v28 = vadd.f32 %v3981_v52, %v1962_v40  ;;  %vm1969_vm11 = vcmp.eq.f32.partialorder %v1968_v14, 8.507059e+37  ;;  %v2031_v56 = vand.u32 2147483647, %v5283_v9  ;;  %vm2004_vm15 = vmor %vm2002_vm7, %vm2003_vm10  ;;  %v2009_v32 = vor.u32 1.1754944e-38, %v2008_v6 }
 0x418   : > { %3990 = vtanh.f32 %v2056_v55  ;;  %v2000_v5 = vmul.f32 %v3985_v19, %v1999_v44  ;;  %v5318_v39 = vsel %vm2066_vm0, %v2056_v55, %v5212_v13  ;;  %v2030_v13 = vsel %vm5323_vm14, %v5295_v29, %v2026_v37 }
 0x419   : > { %v1967_v17 = vsel %vm1966_vm6, %v3981_v52, %v1963_v28  ;;  %v2034_v52 = vor.u32 1.1754944e-38, %v2033_v26  ;;  %vm2007_vm1 = vcmp.eq.f32.partialorder %v2006_v30, 8.507059e+37  ;;  %vm2032_vm2 = vcmp.eq.f32.partialorder %v2031_v56, 8.507059e+37 }
 0x41a   : > { %v1972_v49 = vsel %vm1969_vm11, %v1971_v20, %v1967_v17  ;;  %v2001_v31 = vadd.f32 %v3985_v19, %v2000_v5  ;;  %v3989_v53 = vpop.eup %3988  ;;  %v2048_v26 = vand.u32 2147483648, %v2021_v12  ;;  %vm2042_vm13 = vweird.f32 %v2021_v12 }
 0x41b   : > { %v2055_v25 = vmul.f32 %v3987_v27, %v1972_v49  ;;  %v2038_v9 = vmul.f32 %v3989_v53, %v2021_v12  ;;  %v2035_v44 = vsel %vm2032_vm2, %v2034_v52, %v2030_v13  ;;  %vm2043_vm3 = vweird.f32 %v3989_v53 }
 0x41c   : > { %v2005_v0 = vsel %vm2004_vm15, %v3985_v19, %v2001_v31  ;;  %v2046_v27 = vand.u32 2147483647, %v2021_v12  ;;  %vm2044_vm4 = vmor %vm2042_vm13, %vm2043_vm3  ;;  %v2049_v37 = vor.u32 1.1754944e-38, %v2048_v26  ;;  %v6152_v12 = vld [vmem:[#allocation11_spill] sm:$0xff] }
 0x41d   : > { %v2010_v14 = vsel %vm2007_vm1, %v2009_v32, %v2005_v0  ;;  %v2039_v55 = vsub.f32 1.0, %v2038_v9  ;;  %v2128_v9 = vld [vmem:[#allocation2 + $0xc8] sm:$0xff] }
 0x41e   : > { %v3991_v63 = vpop.eup %3990  ;;  %v2053_v40 = vmul.f32 %v2010_v14, %v5234_v41  ;;  %vm2047_vm5 = vcmp.eq.f32.partialorder %v2046_v27, 8.507059e+37  ;;  %v2129_v14 = vld [vmem:[#allocation2 + $0x40] sm:$0xff] }
 0x41f   : > { %v2060_v20 = vmul.f32 %v3991_v63, %v2035_v44  ;;  %v2040_v5 = vmul.f32 %v3989_v53, %v2039_v55  ;;  %v2130_v63 = vld [vmem:[#allocation2 + $0x1f8] sm:$0xff] }
 0x420   : > { %v2057_v28 = vadd.f32 %v2055_v25, %v2053_v40 }
 0x421   : > { %v5334_v6 = vsel %vm2066_vm0, %v2060_v20, %v5228_v57  ;;  %v2041_v19 = vadd.f32 %v3989_v53, %v2040_v5 }
 0x422   : > { %3992 = vtanh.f32 %v2057_v28  ;;  %2071 = vadd.xlane.f32.xlu0 %v5334_v6  ;;  %v5340_v29 = vsel %vm2066_vm0, %v2057_v28, %v5234_v41 }
 0x423   : > { %v2045_v30 = vsel %vm2044_vm4, %v3989_v53, %v2041_v19 }
 0x424   : > { %v2050_v56 = vsel %vm2047_vm5, %v2049_v37, %v2045_v30 }
 0x428   : > { %v3993_v17 = vpop.eup %3992 }
 0x429   : > { %v2061_v49 = vmul.f32 %v3993_v17, %v2050_v56 }
 0x42b   : > { %v5345_v31 = vsel %vm2066_vm0, %v2061_v49, %v5239_v10 }
 0x42c   : > { %2073 = vadd.xlane.f32.xlu1 %v5345_v31  ;;  %v2133_v41 = vpack.c.bf16 %v5345_v31, %v5334_v6 }
 0x42e   : > { %2142 = vmatmul.bf16.vlgmr.msrb.gmra.mxu0 %v2133_v41  ;;  %2156 = vmatmul.bf16.vlgmr.msrb.gmra.mxu1 %v2133_v41 }
 0x42f   : > { %2170 = vmatmul.bf16.vlgmr.msrb.gmra.mxu2 %v2133_v41  ;;  %2184 = vmatmul.bf16.vlgmr.msrb.gmra.mxu3 %v2133_v41  ;;  %v2127_v41 = vld [vmem:[#allocation2 + $0x100] sm:$0xff] }
 0x430   : > { %2658 = vmatpush.bf16.msrb.mxu0 %v4598_v24  ;;  %2672 = vmatpush.bf16.msrb.mxu1 %v4609_v33 }
 0x431   : > { %2686 = vmatpush.bf16.msrb.mxu2 %v4649_v47  ;;  %2700 = vmatpush.bf16.msrb.mxu3 %v4611_v34 }
 0x434   : > { %2659 = vmatpush.bf16.msrb.mxu0 %v4623_v38  ;;  %2673 = vmatpush.bf16.msrb.mxu1 %v4636_v42 }
 0x435   : > { %2687 = vmatpush.bf16.msrb.mxu2 %v4688_v60  ;;  %2701 = vmatpush.bf16.msrb.mxu3 %v4638_v43 }
 0x438   : > { %2660 = vmatpush.bf16.msrb.mxu0 %v4671_v54  ;;  %2674 = vmatpush.bf16.msrb.mxu1 %v4684_v58 }
 0x439   : > { %2688 = vmatpush.bf16.msrb.mxu2 %v4712_v4  ;;  %2702 = vmatpush.bf16.msrb.mxu3 %v4686_v59 }
 0x43c   : > { %2661 = vmatpush.bf16.msrb.mxu0 %v4710_v3  ;;  %2675 = vmatpush.bf16.msrb.mxu1 %v4722_v7 }
 0x43d   : > { %2689 = vmatpush.bf16.msrb.mxu2 %v4748_v16  ;;  %2703 = vmatpush.bf16.msrb.mxu3 %v4724_v8 }
 0x440   : > { %2662 = vmatpush.bf16.msrb.mxu0 %v4746_v15  ;;  %2676 = vmatpush.bf16.msrb.mxu1 %v4758_v21 }
 0x441   : > { %2690 = vmatpush.bf16.msrb.mxu2 %v4784_v23  ;;  %2704 = vmatpush.bf16.msrb.mxu3 %v4760_v22 }
 0x444   : > { %2663 = vmatpush.bf16.msrb.mxu0 %v4782_v18  ;;  %2677 = vmatpush.bf16.msrb.mxu1 %v4797_v35 }
 0x445   : > { %2691 = vmatpush.bf16.msrb.mxu2 %v4820_v46  ;;  %2705 = vmatpush.bf16.msrb.mxu3 %v4799_v36 }
 0x448   : > { %2664 = vmatpush.bf16.msrb.mxu0 %v4818_v45  ;;  %2678 = vmatpush.bf16.msrb.mxu1 %v4830_v50 }
 0x449   : > { %2692 = vmatpush.bf16.msrb.mxu2 %v4860_v1  ;;  %2706 = vmatpush.bf16.msrb.mxu3 %v4832_v51 }
 0x44c   : > { %2665 = vmatpush.bf16.msrb.mxu0 %v4854_v62  ;;  %2679 = vmatpush.bf16.msrb.mxu1 %v4864_v2 }
 0x44d   : > { %2693 = vmatpush.bf16.msrb.mxu2 %v4880_v11  ;;  %2707 = vmatpush.bf16.msrb.mxu3 %v6152_v12 }
 0x4ab   : > { %v2143_v53 = vpop.f32.mrf.mxu0  ;;  %v2157_v32 = vpop.f32.mrf.mxu1 }
 0x4ac   : > { %v2190_v13 = vadd.f32 %v2143_v53, %v2125_v48  ;;  %v2191_v52 = vadd.f32 %v2157_v32, %v2126_v61  ;;  %v2132_v48 = vld [vmem:[#allocation2 + $0x128] sm:$0xff] }
 0x4ae   : > { %v3671_v0 = vmul.f32 -1.442695, %v2190_v13  ;;  %v3673_v25 = vmul.f32 -1.442695, %v2191_v52 }
 0x4b0   : > { %3994 = vpow2.f32 %v3671_v0 }
 0x4b1   : > { %3996 = vpow2.f32 %v3673_v25 }
 0x4b2   : > { %v2185_v40 = vpop.f32.mrf.mxu3  ;;  %v2171_v17 = vpop.f32.mrf.mxu2 }
 0x4b3   : > { %v2193_v55 = vadd.f32 %v2185_v40, %v2128_v9  ;;  %v2145_v44 = vpop.f32.mrf.mxu0  ;;  %v2159_v20 = vpop.f32.mrf.mxu1  ;;  %v2192_v53 = vadd.f32 %v2171_v17, %v2127_v41 }
 0x4b4   : > { %v2194_v28 = vadd.f32 %v2145_v44, %v2129_v14  ;;  %v2195_v5 = vadd.f32 %v2159_v20, %v2130_v63  ;;  %v2131_v20 = vld [vmem:[#allocation2 + $0x20] sm:$0xff] }
 0x4b5   : > { %v3675_v19 = vmul.f32 -1.442695, %v2193_v55 }
 0x4b6   : > { %v3995_v26 = vpop.eup %3994  ;;  %v3672_v27 = vmul.f32 -1.442695, %v2194_v28  ;;  %v3674_v56 = vmul.f32 -1.442695, %v2195_v5  ;;  %v5395_v5 = vstv %s2326_s10 }
 0x4b7   : > { %v3997_v30 = vpop.eup %3996  ;;  %v2204_v37 = vadd.f32 1.0, %v3995_v26  ;;  %3998 = vpow2.f32 %v3675_v19  ;;  %vm2328_vm10 = vcmp.eq.s32.totalorder %v5395_v5, 1 }
 0x4b8   : > { %v2242_v49 = vadd.f32 1.0, %v3997_v30  ;;  %4000 = vpow2.f32 %v3672_v27 }
 0x4b9   : > { %4002 = vrcp.f32 %v2204_v37  ;;  %v2215_v26 = vand.u32 2147483647, %v2204_v37  ;;  %v2217_v27 = vand.u32 2147483648, %v2204_v37  ;;  %vm2211_vm9 = vweird.f32 %v2204_v37 }
 0x4ba   : > { %4004 = vrcp.f32 %v2242_v49  ;;  %v2187_v61 = vpop.f32.mrf.mxu3  ;;  %v2173_v28 = vpop.f32.mrf.mxu2  ;;  %v2253_v41 = vand.u32 2147483647, %v2242_v49  ;;  %vm2249_vm6 = vweird.f32 %v2242_v49 }
 0x4bb   : > { %4006 = vpow2.f32 %v3674_v56  ;;  %v2197_v32 = vadd.f32 %v2187_v61, %v2132_v48  ;;  %v2255_v56 = vand.u32 2147483648, %v2242_v49  ;;  %v2196_v61 = vadd.f32 %v2173_v28, %v2131_v20 }
 0x4bc   : > { %4008 = vtanh.f32 %v2192_v53  ;;  %vm2216_vm11 = vcmp.eq.f32.partialorder %v2215_v26, 8.507059e+37  ;;  %vm2254_vm7 = vcmp.eq.f32.partialorder %v2253_v41, 8.507059e+37 }
 0x4bd   : > { %v3999_v13 = vpop.eup %3998  ;;  %v3676_v14 = vmul.f32 -1.442695, %v2197_v32 }
 0x4be   : > { %v4001_v52 = vpop.eup %4000  ;;  %v5389_v0 = vadd.f32 1.0, %v3999_v13 }
 0x4bf   : > { %v4003_v25 = vpop.eup %4002  ;;  %v5391_v9 = vadd.f32 1.0, %v4001_v52 }
 0x4c0   : > { %v4005_v63 = vpop.eup %4004  ;;  %v2207_v40 = vmul.f32 %v4003_v25, %v2204_v37  ;;  %4010 = vrcp.f32 %v5389_v0  ;;  %vm2212_vm0 = vweird.f32 %v4003_v25  ;;  %vm2289_vm5 = vweird.f32 %v5389_v0 }
 0x4c1   : > { %v4007_v55 = vpop.eup %4006  ;;  %v2245_v44 = vmul.f32 %v4005_v63, %v2242_v49  ;;  %4012 = vrcp.f32 %v5391_v9  ;;  %vm2250_vm8 = vweird.f32 %v4005_v63  ;;  %vm2213_vm12 = vmor %vm2211_vm9, %vm2212_vm0  ;;  %vm2226_vm15 = vweird.f32 %v5391_v9 }
 0x4c2   : > { %v2208_v19 = vsub.f32 1.0, %v2207_v40  ;;  %v5397_v30 = vadd.f32 1.0, %v4007_v55  ;;  %4014 = vpow2.f32 %v3676_v14  ;;  %v4009_v53 = vpop.eup %4008  ;;  %v2218_v40 = vor.u32 1.1754944e-38, %v2217_v27  ;;  %vm2251_vm14 = vmor %vm2249_vm6, %vm2250_vm8 }
 0x4c3   : > { %v2246_v17 = vsub.f32 1.0, %v2245_v44  ;;  %v2256_v44 = vor.u32 1.1754944e-38, %v2255_v56 }
 0x4c4   : > { %v2209_v48 = vmul.f32 %v4003_v25, %v2208_v19  ;;  %4016 = vrcp.f32 %v5397_v30  ;;  %vm2264_vm0 = vweird.f32 %v5397_v30 }
 0x4c5   : > { %v2247_v32 = vmul.f32 %v4005_v63, %v2246_v17  ;;  %4018 = vtanh.f32 %v2196_v61  ;;  %v2232_v17 = vand.u32 2147483648, %v5391_v9 }
 0x4c6   : > { %v5401_v13 = vpop.eup %4010  ;;  %v2210_v52 = vadd.f32 %v4003_v25, %v2209_v48 }
 0x4c7   : > { %v4013_v55 = vpop.eup %4012  ;;  %v2248_v14 = vadd.f32 %v4005_v63, %v2247_v32  ;;  %v2285_v20 = vmul.f32 %v5401_v13, %v5389_v0  ;;  %vm2290_vm2 = vweird.f32 %v5401_v13 }
 0x4c8   : > { %v2214_v28 = vsel %vm2213_vm12, %v4003_v25, %v2210_v52  ;;  %v2222_v37 = vmul.f32 %v4013_v55, %v5391_v9  ;;  %v4015_v49 = vpop.eup %4014  ;;  %v2230_v52 = vand.u32 2147483647, %v5391_v9  ;;  %vm2227_vm1 = vweird.f32 %v4013_v55  ;;  %vm5429_vm8 = vmor %vm2289_vm5, %vm2290_vm2 }
 0x4c9   : > { %v2219_v19 = vsel %vm2216_vm11, %v2218_v40, %v2214_v28  ;;  %v2252_v26 = vsel %vm2251_vm14, %v4005_v63, %v2248_v14  ;;  %v2286_v27 = vsub.f32 1.0, %v2285_v20  ;;  %v2283_v10 = vadd.f32 1.0, %v4015_v49  ;;  %vm2228_vm13 = vmor %vm2226_vm15, %vm2227_vm1 }
 0x4ca   : > { %v4017_v56 = vpop.eup %4016  ;;  %v2257_v48 = vsel %vm2254_vm7, %v2256_v44, %v2252_v26  ;;  %v2316_v32 = vmul.f32 %v4009_v53, %v2219_v19  ;;  %v2223_v41 = vsub.f32 1.0, %v2222_v37  ;;  %v2295_v63 = vand.u32 2147483648, %v5389_v0 }
 0x4cb   : > { %v2314_v57 = vmul.f32 %v2257_v48, %v5318_v39  ;;  %v2260_v25 = vmul.f32 %v4017_v56, %v5397_v30  ;;  %v2287_v12 = vmul.f32 %v5401_v13, %v2286_v27  ;;  %4020 = vrcp.f32 %v2283_v10  ;;  %v4019_v20 = vpop.eup %4018 }
 0x4cc   : > { %v2224_v61 = vmul.f32 %v4013_v55, %v2223_v41  ;;  %v2270_v44 = vand.u32 2147483648, %v5397_v30  ;;  %v2233_v53 = vor.u32 1.1754944e-38, %v2232_v17  ;;  %v2268_v37 = vand.u32 2147483647, %v5397_v30 }
 0x4cd   : > { %v2318_v40 = vadd.f32 %v2316_v32, %v2314_v57  ;;  %v2261_v14 = vsub.f32 1.0, %v2260_v25  ;;  %v2288_v49 = vadd.f32 %v5401_v13, %v2287_v12  ;;  %vm2265_vm3 = vweird.f32 %v4017_v56 }
 0x4ce   : > { %v2225_v28 = vadd.f32 %v4013_v55, %v2224_v61  ;;  %vm2231_vm4 = vcmp.eq.f32.partialorder %v2230_v52, 8.507059e+37  ;;  %v2293_v12 = vand.u32 2147483647, %v5389_v0  ;;  %vm2266_vm9 = vmor %vm2264_vm0, %vm2265_vm3  ;;  %v2271_v32 = vor.u32 1.1754944e-38, %v2270_v44 }
 0x4cf   : > { %4022 = vtanh.f32 %v2318_v40  ;;  %v2262_v19 = vmul.f32 %v4017_v56, %v2261_v14  ;;  %v5424_v57 = vsel %vm2328_vm10, %v2318_v40, %v5318_v39  ;;  %v2292_v39 = vsel %vm5429_vm8, %v5401_v13, %v2288_v49 }
 0x4d0   : > { %v2229_v26 = vsel %vm2228_vm13, %v4013_v55, %v2225_v28  ;;  %v2296_v55 = vor.u32 1.1754944e-38, %v2295_v63  ;;  %vm2269_vm6 = vcmp.eq.f32.partialorder %v2268_v37, 8.507059e+37  ;;  %vm2294_vm11 = vcmp.eq.f32.partialorder %v2293_v12, 8.507059e+37 }
 0x4d1   : > { %v2234_v27 = vsel %vm2231_vm4, %v2233_v53, %v2229_v26  ;;  %v2263_v17 = vadd.f32 %v4017_v56, %v2262_v19  ;;  %v4021_v9 = vpop.eup %4020  ;;  %v2310_v63 = vand.u32 2147483648, %v2283_v10  ;;  %vm2304_vm7 = vweird.f32 %v2283_v10 }
 0x4d2   : > { %v2317_v25 = vmul.f32 %v4019_v20, %v2234_v27  ;;  %v2300_v0 = vmul.f32 %v4021_v9, %v2283_v10  ;;  %v2297_v14 = vsel %vm2294_vm11, %v2296_v55, %v2292_v39  ;;  %vm2305_vm12 = vweird.f32 %v4021_v9 }
 0x4d3   : > { %v2267_v41 = vsel %vm2266_vm9, %v4017_v56, %v2263_v17  ;;  %v2308_v20 = vand.u32 2147483647, %v2283_v10  ;;  %vm2306_vm14 = vmor %vm2304_vm7, %vm2305_vm12  ;;  %v2311_v49 = vor.u32 1.1754944e-38, %v2310_v63 }
 0x4d4   : > { %v2272_v52 = vsel %vm2269_vm6, %v2271_v32, %v2267_v41  ;;  %v2301_v40 = vsub.f32 1.0, %v2300_v0 }
 0x4d5   : > { %v4023_v30 = vpop.eup %4022  ;;  %v2315_v61 = vmul.f32 %v2272_v52, %v5340_v29  ;;  %vm2309_vm15 = vcmp.eq.f32.partialorder %v2308_v20, 8.507059e+37  ;;  %v2393_v52 = vld [vmem:[#allocation2 + $0x1d8] sm:$0xff] }
 0x4d6   : > { %v2322_v53 = vmul.f32 %v4023_v30, %v2297_v14  ;;  %v2302_v19 = vmul.f32 %v4021_v9, %v2301_v40 }
 0x4d7   : > { %v2319_v28 = vadd.f32 %v2317_v25, %v2315_v61  ;;  %v5501_v61 = vstv %s2588_s15  ;;  %s4246_s15 = smov 8  }
 0x4d8   : > { %v5440_v44 = vsel %vm2328_vm10, %v2322_v53, %v5334_v6  ;;  %v2303_v56 = vadd.f32 %v4021_v9, %v2302_v19  ;;  %vm2590_vm3 = vcmp.eq.s32.totalorder %v5501_v61, 1 }
 0x4d9   : > { %4024 = vtanh.f32 %v2319_v28  ;;  %2333 = vadd.xlane.f32.xlu2 %v5440_v44  ;;  %v5446_v13 = vsel %vm2328_vm10, %v2319_v28, %v5340_v29 }
 0x4da   : > { %v2307_v37 = vsel %vm2306_vm14, %v4021_v9, %v2303_v56 }
 0x4db   : > { %v2312_v12 = vsel %vm2309_vm15, %v2311_v49, %v2307_v37 }
 0x4df   : > { %v4025_v26 = vpop.eup %4024 }
 0x4e0   : > { %v2323_v27 = vmul.f32 %v4025_v26, %v2312_v12 }
 0x4e2   : > { %v5451_v17 = vsel %vm2328_vm10, %v2323_v27, %v5345_v31 }
 0x4e3   : > { %2335 = vadd.xlane.f32.xlu0 %v5451_v17  ;;  %v2395_v29 = vpack.c.bf16 %v5451_v17, %v5440_v44 }
 0x4e5   : > { %2404 = vmatmul.bf16.vlgmr.msra.gmra.mxu0 %v2395_v29  ;;  %2418 = vmatmul.bf16.vlgmr.msra.gmra.mxu1 %v2395_v29 }
 0x4e6   : > { %2432 = vmatmul.bf16.vlgmr.msra.gmra.mxu2 %v2395_v29  ;;  %2446 = vmatmul.bf16.vlgmr.msra.gmra.mxu3 %v2395_v29 }
 0x4e7   : > { %2920 = vmatpush.bf16.msra.mxu0 %v4598_v24  ;;  %2934 = vmatpush.bf16.msra.mxu1 %v4609_v33  ;;  %v6156_v24 = vld [vmem:[#allocation11_spill] sm:$0xff] }
 0x4e8   : > { %2948 = vmatpush.bf16.msra.mxu2 %v4649_v47  ;;  %2962 = vmatpush.bf16.msra.mxu3 %v4611_v34  ;;  %v2387_v33 = vld [vmem:[#allocation2 + $0x1a0] sm:$0xff]  ;;  %v2388_v34 = vld [vmem:[#allocation2 + $0x1f0] sm:$0xff] }
 0x4eb   : > { %2921 = vmatpush.bf16.msra.mxu0 %v4623_v38  ;;  %2935 = vmatpush.bf16.msra.mxu1 %v4636_v42 }
 0x4ec   : > { %2949 = vmatpush.bf16.msra.mxu2 %v4688_v60  ;;  %2963 = vmatpush.bf16.msra.mxu3 %v4638_v43  ;;  %v2391_v60 = vld [vmem:[#allocation2 + $0x70] sm:$0xff] }
 0x4ef   : > { %2922 = vmatpush.bf16.msra.mxu0 %v4671_v54  ;;  %2936 = vmatpush.bf16.msra.mxu1 %v4684_v58 }
 0x4f0   : > { %2950 = vmatpush.bf16.msra.mxu2 %v4712_v4  ;;  %2964 = vmatpush.bf16.msra.mxu3 %v4686_v59  ;;  %v2390_v59 = vld [vmem:[#allocation2 + $0x78] sm:$0xff] }
 0x4f3   : > { %2923 = vmatpush.bf16.msra.mxu0 %v4710_v3  ;;  %2937 = vmatpush.bf16.msra.mxu1 %v4722_v7  ;;  %v2392_v3 = vld [vmem:[#allocation2 + $0x90] sm:$0xff] }
 0x4f4   : > { %2951 = vmatpush.bf16.msra.mxu2 %v4748_v16  ;;  %2965 = vmatpush.bf16.msra.mxu3 %v4724_v8 }
 0x4f7   : > { %2924 = vmatpush.bf16.msra.mxu0 %v4746_v15  ;;  %2938 = vmatpush.bf16.msra.mxu1 %v4758_v21 }
 0x4f8   : > { %2952 = vmatpush.bf16.msra.mxu2 %v4784_v23  ;;  %2966 = vmatpush.bf16.msra.mxu3 %v4760_v22 }
 0x4fb   : > { %2925 = vmatpush.bf16.msra.mxu0 %v4782_v18  ;;  %2939 = vmatpush.bf16.msra.mxu1 %v4797_v35 }
 0x4fc   : > { %2953 = vmatpush.bf16.msra.mxu2 %v4820_v46  ;;  %2967 = vmatpush.bf16.msra.mxu3 %v4799_v36 }
 0x4ff   : > { %2926 = vmatpush.bf16.msra.mxu0 %v4818_v45  ;;  %2940 = vmatpush.bf16.msra.mxu1 %v4830_v50 }
 0x500   : > { %2954 = vmatpush.bf16.msra.mxu2 %v4860_v1  ;;  %2968 = vmatpush.bf16.msra.mxu3 %v4832_v51  ;;  %v2389_v51 = vld [vmem:[#allocation2 + $0xe8] sm:$0xff] }
 0x503   : > { %2927 = vmatpush.bf16.msra.mxu0 %v4854_v62  ;;  %2941 = vmatpush.bf16.msra.mxu1 %v4864_v2  ;;  %v2394_v62 = vld [vmem:[#allocation2 + $0xd0] sm:$0xff] }
 0x504   : > { %2955 = vmatpush.bf16.msra.mxu2 %v4880_v11  ;;  %2969 = vmatpush.bf16.msra.mxu3 %v6156_v24 }
 0x562   : > { %v2405_v38 = vpop.f32.mrf.mxu0  ;;  %v2419_v42 = vpop.f32.mrf.mxu1 }
 0x563   : > { %v2452_v43 = vadd.f32 %v2405_v38, %v2387_v33  ;;  %v2453_v47 = vadd.f32 %v2419_v42, %v2388_v34 }
 0x565   : > { %v3679_v54 = vmul.f32 -1.442695, %v2452_v43  ;;  %v3681_v58 = vmul.f32 -1.442695, %v2453_v47 }
 0x567   : > { %4026 = vpow2.f32 %v3679_v54 }
 0x568   : > { %4028 = vpow2.f32 %v3681_v58 }
 0x569   : > { %v2447_v4 = vpop.f32.mrf.mxu3  ;;  %v2433_v45 = vpop.f32.mrf.mxu2 }
 0x56a   : > { %v2455_v7 = vadd.f32 %v2447_v4, %v2390_v59  ;;  %v2407_v8 = vpop.f32.mrf.mxu0  ;;  %v2421_v15 = vpop.f32.mrf.mxu1  ;;  %v2454_v2 = vadd.f32 %v2433_v45, %v2389_v51 }
 0x56b   : > { %v2456_v16 = vadd.f32 %v2407_v8, %v2391_v60  ;;  %v2457_v21 = vadd.f32 %v2421_v15, %v2392_v3 }
 0x56c   : > { %v3683_v22 = vmul.f32 -1.442695, %v2455_v7 }
 0x56d   : > { %v4027_v18 = vpop.eup %4026  ;;  %v3680_v23 = vmul.f32 -1.442695, %v2456_v16  ;;  %v3682_v46 = vmul.f32 -1.442695, %v2457_v21 }
 0x56e   : > { %v4029_v35 = vpop.eup %4028  ;;  %v2466_v36 = vadd.f32 1.0, %v4027_v18  ;;  %4030 = vpow2.f32 %v3683_v22 }
 0x56f   : > { %v2504_v50 = vadd.f32 1.0, %v4029_v35  ;;  %4032 = vpow2.f32 %v3680_v23 }
 0x570   : > { %4034 = vrcp.f32 %v2466_v36  ;;  %v2477_v14 = vand.u32 2147483647, %v2466_v36  ;;  %v2479_v53 = vand.u32 2147483648, %v2466_v36  ;;  %vm2473_vm2 = vweird.f32 %v2466_v36 }
 0x571   : > { %4036 = vrcp.f32 %v2504_v50  ;;  %v2449_v1 = vpop.f32.mrf.mxu3  ;;  %v2435_v30 = vpop.f32.mrf.mxu2  ;;  %v2517_v56 = vand.u32 2147483648, %v2504_v50  ;;  %v2515_v63 = vand.u32 2147483647, %v2504_v50  ;;  %vm2511_vm13 = vweird.f32 %v2504_v50 }
 0x572   : > { %4038 = vpow2.f32 %v3682_v46  ;;  %v2459_v11 = vadd.f32 %v2449_v1, %v2394_v62  ;;  %v2458_v37 = vadd.f32 %v2435_v30, %v2393_v52  ;;  %vm2478_vm4 = vcmp.eq.f32.partialorder %v2477_v14, 8.507059e+37 }
 0x573   : > { %4040 = vtanh.f32 %v2454_v2  ;;  %v2480_v29 = vor.u32 1.1754944e-38, %v2479_v53  ;;  %v2518_v33 = vor.u32 1.1754944e-38, %v2517_v56  ;;  %vm2516_vm0 = vcmp.eq.f32.partialorder %v2515_v63, 8.507059e+37 }
 0x574   : > { %v4031_v10 = vpop.eup %4030  ;;  %v3684_v39 = vmul.f32 -1.442695, %v2459_v11 }
 0x575   : > { %v4033_v5 = vpop.eup %4032  ;;  %v5495_v48 = vadd.f32 1.0, %v4031_v10 }
 0x576   : > { %v4035_v9 = vpop.eup %4034  ;;  %v5497_v32 = vadd.f32 1.0, %v4033_v5 }
 0x577   : > { %v4037_v55 = vpop.eup %4036  ;;  %v2469_v41 = vmul.f32 %v4035_v9, %v2466_v36  ;;  %4042 = vrcp.f32 %v5495_v48  ;;  %vm2474_vm10 = vweird.f32 %v4035_v9  ;;  %v2557_v35 = vand.u32 2147483648, %v5495_v48 }
 0x578   : > { %v4039_v25 = vpop.eup %4038  ;;  %v2507_v0 = vmul.f32 %v4037_v55, %v2504_v50  ;;  %4044 = vrcp.f32 %v5497_v32  ;;  %vm2512_vm1 = vweird.f32 %v4037_v55  ;;  %vm2475_vm5 = vmor %vm2473_vm2, %vm2474_vm10  ;;  %vm2488_vm9 = vweird.f32 %v5497_v32 }
 0x579   : > { %v2470_v40 = vsub.f32 1.0, %v2469_v41  ;;  %v5503_v28 = vadd.f32 1.0, %v4039_v25  ;;  %4046 = vpow2.f32 %v3684_v39  ;;  %v4041_v49 = vpop.eup %4040  ;;  %vm2513_vm8 = vmor %vm2511_vm13, %vm2512_vm1  ;;  %v2494_v60 = vand.u32 2147483648, %v5497_v32 }
 0x57a   : > { %v2508_v19 = vsub.f32 1.0, %v2507_v0  ;;  %v2492_v22 = vand.u32 2147483647, %v5497_v32  ;;  %vm2551_vm15 = vweird.f32 %v5495_v48  ;;  %v2558_v0 = vor.u32 1.1754944e-38, %v2557_v35 }
 0x57b   : > { %v2471_v20 = vmul.f32 %v4035_v9, %v2470_v40  ;;  %4048 = vrcp.f32 %v5503_v28  ;;  %v2532_v46 = vand.u32 2147483648, %v5503_v28  ;;  %v2495_v50 = vor.u32 1.1754944e-38, %v2494_v60 }
 0x57c   : > { %v2509_v26 = vmul.f32 %v4037_v55, %v2508_v19  ;;  %4050 = vtanh.f32 %v2458_v37  ;;  %v2530_v1 = vand.u32 2147483647, %v5503_v28  ;;  %vm2493_vm14 = vcmp.eq.f32.partialorder %v2492_v22, 8.507059e+37 }
 0x57d   : > { %v5507_v12 = vpop.eup %4042  ;;  %v2472_v27 = vadd.f32 %v4035_v9, %v2471_v20  ;;  %vm2526_vm10 = vweird.f32 %v5503_v28  ;;  %v2533_v25 = vor.u32 1.1754944e-38, %v2532_v46 }
 0x57e   : > { %v4045_v24 = vpop.eup %4044  ;;  %v2510_v34 = vadd.f32 %v4037_v55, %v2509_v26  ;;  %v2547_v38 = vmul.f32 %v5507_v12, %v5495_v48  ;;  %vm2552_vm11 = vweird.f32 %v5507_v12  ;;  %vm2531_vm13 = vcmp.eq.f32.partialorder %v2530_v1, 8.507059e+37 }
 0x57f   : > { %v2476_v42 = vsel %vm2475_vm5, %v4035_v9, %v2472_v27  ;;  %v2484_v43 = vmul.f32 %v4045_v24, %v5497_v32  ;;  %v4047_v47 = vpop.eup %4046  ;;  %vm2489_vm6 = vweird.f32 %v4045_v24  ;;  %v2555_v9 = vand.u32 2147483647, %v5495_v48  ;;  %vm5535_vm1 = vmor %vm2551_vm15, %vm2552_vm11 }
 0x580   : > { %v2481_v54 = vsel %vm2478_vm4, %v2480_v29, %v2476_v42  ;;  %v2514_v58 = vsel %vm2513_vm8, %v4037_v55, %v2510_v34  ;;  %v2548_v59 = vsub.f32 1.0, %v2547_v38  ;;  %v2545_v15 = vadd.f32 1.0, %v4047_v47  ;;  %vm2490_vm7 = vmor %vm2488_vm9, %vm2489_vm6  ;;  %v2650_v47 = vld [vmem:[#allocation2 + $0x88] sm:$0xff] }
 0x581   : > { %v4049_v3 = vpop.eup %4048  ;;  %v2519_v4 = vsel %vm2516_vm0, %v2518_v33, %v2514_v58  ;;  %v2578_v7 = vmul.f32 %v4041_v49, %v2481_v54  ;;  %v2485_v8 = vsub.f32 1.0, %v2484_v43  ;;  %vm2556_vm4 = vcmp.eq.f32.partialorder %v2555_v9, 8.507059e+37  ;;  %v2649_v43 = vld [vmem:[#allocation2 + $0xb8] sm:$0xff] }
 0x582   : > { %v2576_v16 = vmul.f32 %v2519_v4, %v5424_v57  ;;  %v2522_v21 = vmul.f32 %v4049_v3, %v5503_v28  ;;  %v2549_v18 = vmul.f32 %v5507_v12, %v2548_v59  ;;  %4052 = vrcp.f32 %v2545_v15  ;;  %v4051_v51 = vpop.eup %4050  ;;  %v2652_v4 = vld [vmem:[#allocation2 + $0x1c8] sm:$0xff] }
 0x583   : > { %v2486_v23 = vmul.f32 %v4045_v24, %v2485_v8  ;;  %vm2527_vm12 = vweird.f32 %v4049_v3  ;;  %vm2566_vm0 = vweird.f32 %v2545_v15  ;;  %v2570_v27 = vand.u32 2147483647, %v2545_v15  ;;  %v2654_v8 = vld [vmem:[#allocation2 + $0x178] sm:$0xff] }
 0x584   : > { %v2580_v36 = vadd.f32 %v2578_v7, %v2576_v16  ;;  %v2523_v45 = vsub.f32 1.0, %v2522_v21  ;;  %v2550_v2 = vadd.f32 %v5507_v12, %v2549_v18  ;;  %vm2528_vm2 = vmor %vm2526_vm10, %vm2527_vm12  ;;  %v2653_v7 = vld [vmem:[#allocation2 + $0x170] sm:$0xff] }
 0x585   : > { %v2487_v62 = vadd.f32 %v4045_v24, %v2486_v23  ;;  %vm2571_vm9 = vcmp.eq.f32.partialorder %v2570_v27, 8.507059e+37 }
 0x586   : > { %4054 = vtanh.f32 %v2580_v36  ;;  %v2524_v11 = vmul.f32 %v4049_v3, %v2523_v45  ;;  %v5530_v10 = vsel %vm2590_vm3, %v2580_v36, %v5424_v57  ;;  %v2554_v57 = vsel %vm5535_vm1, %v5507_v12, %v2550_v2  ;;  %v2651_v2 = vld [vmem:[#allocation2 + $0xa8] sm:$0xff] }
 0x587   : > { %v2491_v5 = vsel %vm2490_vm7, %v4045_v24, %v2487_v62  ;;  %v2559_v19 = vsel %vm2556_vm4, %v2558_v0, %v2554_v57  ;;  %v2572_v12 = vand.u32 2147483648, %v2545_v15 }
 0x588   : > { %v2496_v39 = vsel %vm2493_vm14, %v2495_v50, %v2491_v5  ;;  %v2525_v55 = vadd.f32 %v4049_v3, %v2524_v11  ;;  %v4053_v32 = vpop.eup %4052  ;;  %v2656_v11 = vld [vmem:[#allocation2 + $0x190] sm:$0xff] }
 0x589   : > { %v2579_v30 = vmul.f32 %v4051_v51, %v2496_v39  ;;  %v2562_v48 = vmul.f32 %v4053_v32, %v2545_v15  ;;  %vm2567_vm5 = vweird.f32 %v4053_v32  ;;  %v2573_v24 = vor.u32 1.1754944e-38, %v2572_v12 }
 0x58a   : > { %v2529_v52 = vsel %vm2528_vm2, %v4049_v3, %v2525_v55  ;;  %vm2568_vm8 = vmor %vm2566_vm0, %vm2567_vm5 }
 0x58b   : > { %v2534_v40 = vsel %vm2531_vm13, %v2533_v25, %v2529_v52  ;;  %v2563_v28 = vsub.f32 1.0, %v2562_v48 }
 0x58c   : > { %v4055_v14 = vpop.eup %4054  ;;  %v2577_v53 = vmul.f32 %v2534_v40, %v5446_v13 }
 0x58d   : > { %v2584_v56 = vmul.f32 %v4055_v14, %v2559_v19  ;;  %v2564_v20 = vmul.f32 %v4053_v32, %v2563_v28  ;;  %v2655_v14 = vld [vmem:[#allocation2 + $0x68] sm:$0xff]  ;;  %v5575_v28 = vstv %s2850_s18  ;;  %s3220_s18 = sshll.u32 %s6119_s8, 4  ;;  %s3221_s18 = int_to_ptr.hbm [resolvable:$true] %s3220_s18 }
 0x58e   : > { %v2581_v63 = vadd.f32 %v2579_v30, %v2577_v53  ;;  %vm2852_vm12 = vcmp.eq.s32.totalorder %v5575_v28, 1 }
 0x58f   : > { %v5546_v37 = vsel %vm2590_vm3, %v2584_v56, %v5440_v44  ;;  %v2565_v26 = vadd.f32 %v4053_v32, %v2564_v20 }
 0x590   : > { %4056 = vtanh.f32 %v2581_v63  ;;  %2595 = vadd.xlane.f32.xlu1 %v5546_v37  ;;  %v5552_v49 = vsel %vm2590_vm3, %v2581_v63, %v5446_v13 }
 0x591   : > { %v2569_v29 = vsel %vm2568_vm8, %v4053_v32, %v2565_v26 }
 0x592   : > { %v2574_v34 = vsel %vm2571_vm9, %v2573_v24, %v2569_v29 }
 0x596   : > { %v4057_v33 = vpop.eup %4056 }
 0x597   : > { %v2585_v38 = vmul.f32 %v4057_v33, %v2574_v34 }
 0x599   : > { %v5557_v42 = vsel %vm2590_vm3, %v2585_v38, %v5451_v17 }
 0x59a   : > { %2597 = vadd.xlane.f32.xlu2 %v5557_v42  ;;  %v2657_v13 = vpack.c.bf16 %v5557_v42, %v5546_v37 }
 0x59c   : > { %2666 = vmatmul.bf16.vlgmr.msrb.gmra.mxu0 %v2657_v13  ;;  %2680 = vmatmul.bf16.vlgmr.msrb.gmra.mxu1 %v2657_v13 }
 0x59d   : > { %2694 = vmatmul.bf16.vlgmr.msrb.gmra.mxu2 %v2657_v13  ;;  %2708 = vmatmul.bf16.vlgmr.msrb.gmra.mxu3 %v2657_v13 }
 0x619   : > { %v2667_v54 = vpop.f32.mrf.mxu0  ;;  %v2681_v58 = vpop.f32.mrf.mxu1 }
 0x61a   : > { %v2714_v59 = vadd.f32 %v2667_v54, %v2649_v43  ;;  %v2715_v60 = vadd.f32 %v2681_v58, %v2650_v47 }
 0x61c   : > { %v3687_v3 = vmul.f32 -1.442695, %v2714_v59  ;;  %v3689_v61 = vmul.f32 -1.442695, %v2715_v60 }
 0x61e   : > { %4058 = vpow2.f32 %v3687_v3 }
 0x61f   : > { %4060 = vpow2.f32 %v3689_v61 }
 0x620   : > { %v2709_v15 = vpop.f32.mrf.mxu3  ;;  %v2695_v51 = vpop.f32.mrf.mxu2 }
 0x621   : > { %v2717_v16 = vadd.f32 %v2709_v15, %v2652_v4  ;;  %v2669_v21 = vpop.f32.mrf.mxu0  ;;  %v2683_v22 = vpop.f32.mrf.mxu1  ;;  %v2716_v9 = vadd.f32 %v2695_v51, %v2651_v2 }
 0x622   : > { %v2718_v18 = vadd.f32 %v2669_v21, %v2653_v7  ;;  %v2719_v23 = vadd.f32 %v2683_v22, %v2654_v8 }
 0x623   : > { %v3691_v35 = vmul.f32 -1.442695, %v2717_v16 }
 0x624   : > { %v4059_v36 = vpop.eup %4058  ;;  %v3688_v45 = vmul.f32 -1.442695, %v2718_v18  ;;  %v3690_v62 = vmul.f32 -1.442695, %v2719_v23 }
 0x625   : > { %v4061_v46 = vpop.eup %4060  ;;  %v2728_v50 = vadd.f32 1.0, %v4059_v36  ;;  %4062 = vpow2.f32 %v3691_v35 }
 0x626   : > { %v2766_v1 = vadd.f32 1.0, %v4061_v46  ;;  %4064 = vpow2.f32 %v3688_v45 }
 0x627   : > { %4066 = vrcp.f32 %v2728_v50  ;;  %v2739_v56 = vand.u32 2147483647, %v2728_v50  ;;  %v2741_v63 = vand.u32 2147483648, %v2728_v50  ;;  %vm2735_vm11 = vweird.f32 %v2728_v50 }
 0x628   : > { %4068 = vrcp.f32 %v2766_v1  ;;  %v2711_v5 = vpop.f32.mrf.mxu3  ;;  %v2697_v53 = vpop.f32.mrf.mxu2  ;;  %v2779_v12 = vand.u32 2147483648, %v2766_v1  ;;  %v2777_v27 = vand.u32 2147483647, %v2766_v1  ;;  %vm2773_vm7 = vweird.f32 %v2766_v1 }
 0x629   : > { %4070 = vpow2.f32 %v3690_v62  ;;  %v2721_v39 = vadd.f32 %v2711_v5, %v2656_v11  ;;  %v2720_v24 = vadd.f32 %v2697_v53, %v2655_v14  ;;  %vm2740_vm14 = vcmp.eq.f32.partialorder %v2739_v56, 8.507059e+37 }
 0x62a   : > { %4072 = vtanh.f32 %v2716_v9  ;;  %v2742_v43 = vor.u32 1.1754944e-38, %v2741_v63  ;;  %v2780_v54 = vor.u32 1.1754944e-38, %v2779_v12  ;;  %vm2778_vm10 = vcmp.eq.f32.partialorder %v2777_v27, 8.507059e+37 }
 0x62b   : > { %v4063_v55 = vpop.eup %4062  ;;  %v3692_v0 = vmul.f32 -1.442695, %v2721_v39 }
 0x62c   : > { %v4065_v41 = vpop.eup %4064  ;;  %v5569_v32 = vadd.f32 1.0, %v4063_v55 }
 0x62d   : > { %v4067_v25 = vpop.eup %4066  ;;  %v5571_v57 = vadd.f32 1.0, %v4065_v41 }
 0x62e   : > { %v4069_v52 = vpop.eup %4068  ;;  %v2731_v30 = vmul.f32 %v4067_v25, %v2728_v50  ;;  %4074 = vrcp.f32 %v5569_v32  ;;  %vm2736_vm3 = vweird.f32 %v4067_v25  ;;  %v2819_v51 = vand.u32 2147483648, %v5569_v32 }
 0x62f   : > { %v4071_v48 = vpop.eup %4070  ;;  %v2769_v40 = vmul.f32 %v4069_v52, %v2766_v1  ;;  %4076 = vrcp.f32 %v5571_v57  ;;  %vm2774_vm6 = vweird.f32 %v4069_v52  ;;  %vm2737_vm15 = vmor %vm2735_vm11, %vm2736_vm3  ;;  %vm2750_vm2 = vweird.f32 %v5571_v57 }
 0x630   : > { %v2732_v19 = vsub.f32 1.0, %v2731_v30  ;;  %v5577_v20 = vadd.f32 1.0, %v4071_v48  ;;  %4078 = vpow2.f32 %v3692_v0  ;;  %v4073_v33 = vpop.eup %4072  ;;  %vm2775_vm1 = vmor %vm2773_vm7, %vm2774_vm6  ;;  %v2756_v15 = vand.u32 2147483648, %v5571_v57 }
 0x631   : > { %v2770_v26 = vsub.f32 1.0, %v2769_v40  ;;  %v2754_v45 = vand.u32 2147483647, %v5571_v57  ;;  %vm2813_vm9 = vweird.f32 %v5569_v32  ;;  %v2820_v53 = vor.u32 1.1754944e-38, %v2819_v51 }
 0x632   : > { %v2733_v29 = vmul.f32 %v4067_v25, %v2732_v19  ;;  %4080 = vrcp.f32 %v5577_v20  ;;  %v2794_v2 = vand.u32 2147483648, %v5577_v20  ;;  %v2757_v11 = vor.u32 1.1754944e-38, %v2756_v15 }
 0x633   : > { %v2771_v34 = vmul.f32 %v4069_v52, %v2770_v26  ;;  %4082 = vtanh.f32 %v2720_v24  ;;  %v2792_v39 = vand.u32 2147483647, %v5577_v20  ;;  %vm2755_vm8 = vcmp.eq.f32.partialorder %v2754_v45, 8.507059e+37 }
 0x634   : > { %v5581_v38 = vpop.eup %4074  ;;  %v2734_v13 = vadd.f32 %v4067_v25, %v2733_v29  ;;  %vm2788_vm3 = vweird.f32 %v5577_v20  ;;  %v2795_v14 = vor.u32 1.1754944e-38, %v2794_v2 }
 0x635   : > { %v4077_v47 = vpop.eup %4076  ;;  %v2772_v58 = vadd.f32 %v4069_v52, %v2771_v34  ;;  %v2809_v59 = vmul.f32 %v5581_v38, %v5569_v32  ;;  %vm2814_vm4 = vweird.f32 %v5581_v38  ;;  %vm2793_vm7 = vcmp.eq.f32.partialorder %v2792_v39, 8.507059e+37 }
 0x636   : > { %v2738_v60 = vsel %vm2737_vm15, %v4067_v25, %v2734_v13  ;;  %v2746_v3 = vmul.f32 %v4077_v47, %v5571_v57  ;;  %v4079_v61 = vpop.eup %4078  ;;  %vm2751_vm13 = vweird.f32 %v4077_v47  ;;  %vm5612_vm6 = vmor %vm2813_vm9, %vm2814_vm4  ;;  %v900_v34 = vlaneseq  ;;  %v1281_v13 = vpop.xlane.xlu0 %1280 }
 0x637   : > { %v2743_v4 = vsel %vm2740_vm14, %v2742_v43, %v2738_v60  ;;  %v2776_v7 = vsel %vm2775_vm1, %v4069_v52, %v2772_v58  ;;  %v2810_v8 = vsub.f32 1.0, %v2809_v59  ;;  %v5589_v23 = vadd.f32 1.0, %v4079_v61  ;;  %vm2752_vm0 = vmor %vm2750_vm2, %vm2751_vm13  ;;  %v5621_v43 = vpop.xlane.xlu1 %1547 }
 0x638   : > { %v4081_v16 = vpop.eup %4080  ;;  %v2781_v21 = vsel %vm2778_vm10, %v2780_v54, %v2776_v7  ;;  %v2840_v22 = vmul.f32 %v4073_v33, %v2743_v4  ;;  %v2747_v18 = vsub.f32 1.0, %v2746_v3  ;;  %v2817_v52 = vand.u32 2147483647, %v5569_v32 }
 0x639   : > { %v2838_v35 = vmul.f32 %v2781_v21, %v5530_v10  ;;  %v2784_v36 = vmul.f32 %v4081_v16, %v5577_v20  ;;  %v2811_v46 = vmul.f32 %v5581_v38, %v2810_v8  ;;  %4084 = vrcp.f32 %v5589_v23  ;;  %v4083_v5 = vpop.eup %4082 }
 0x63a   : > { %v2748_v50 = vmul.f32 %v4077_v47, %v2747_v18  ;;  %vm2789_vm5 = vweird.f32 %v4081_v16  ;;  %vm2818_vm14 = vcmp.eq.f32.partialorder %v2817_v52, 8.507059e+37  ;;  %v2834_v58 = vand.u32 2147483648, %v5589_v23 }
 0x63b   : > { %v2842_v62 = vadd.f32 %v2840_v22, %v2838_v35  ;;  %v2785_v1 = vsub.f32 1.0, %v2784_v36  ;;  %v2812_v55 = vadd.f32 %v5581_v38, %v2811_v46  ;;  %vm2790_vm11 = vmor %vm2788_vm3, %vm2789_vm5  ;;  %vm2828_vm10 = vweird.f32 %v5589_v23 }
 0x63c   : > { %v2749_v9 = vadd.f32 %v4077_v47, %v2748_v50  ;;  %v2832_v59 = vand.u32 2147483647, %v5589_v23  ;;  %v901_v60 = vand.u32 127, %v900_v34  ;;  %v1284_v61 = vmul.f32 0.03125, %v1281_v13  ;;  %v6164_v50 = vld [vmem:[#allocation15_spill] sm:$0xff] }
 0x63d   : > { %4086 = vtanh.f32 %v2842_v62  ;;  %v2786_v41 = vmul.f32 %v4081_v16, %v2785_v1  ;;  %v5607_v25 = vsel %vm2852_vm12, %v2842_v62, %v5530_v10  ;;  %v2816_v10 = vsel %vm5612_vm6, %v5581_v38, %v2812_v55 }
 0x63e   : > { %v2753_v0 = vsel %vm2752_vm0, %v4077_v47, %v2749_v9  ;;  %v2821_v27 = vsel %vm2818_vm14, %v2820_v53, %v2816_v10  ;;  %v2835_v4 = vor.u32 1.1754944e-38, %v2834_v58  ;;  %vm2833_vm2 = vcmp.eq.f32.partialorder %v2832_v59, 8.507059e+37  ;;  %v5638_v21 = vpop.xlane.xlu0 %1282  ;;  %v2912_v10 = vld [vmem:[#allocation2 + $0x38] sm:$0xff] }
 0x63f   : > { %v2758_v30 = vsel %vm2755_vm8, %v2757_v11, %v2753_v0  ;;  %v2787_v48 = vadd.f32 %v4081_v16, %v2786_v41  ;;  %v4085_v57 = vpop.eup %4084  ;;  %vm902_vm13 = vcmp.lt.s32.totalorder %v901_v60, 32  ;;  %v1550_v22 = vpop.xlane.xlu1 %1549 }
 0x640   : > { %v2841_v56 = vmul.f32 %v4083_v5, %v2758_v30  ;;  %v2824_v32 = vmul.f32 %v4085_v57, %v5589_v23  ;;  %vm2829_vm15 = vweird.f32 %v4085_v57  ;;  %v4243_v23 = vmov 0.0  }
 0x641   : > { %v2791_v19 = vsel %vm2790_vm11, %v4081_v16, %v2787_v48  ;;  %vm2830_vm1 = vmor %vm2828_vm10, %vm2829_vm15  ;;  %v6163_v16 = vld [vmem:[#allocation12_spill] sm:$0xff]  ;;  %v5645_v35 = vsel %vm902_vm13, 1.0, %v4243_v23  ;;  %v1552_v45 = vmul.f32 0.03125, %v1550_v22 }
 0x642   : > { %v2796_v63 = vsel %vm2793_vm7, %v2795_v14, %v2791_v19  ;;  %v2825_v12 = vsub.f32 1.0, %v2824_v32  ;;  %v2911_v14 = vld [vmem:[#allocation2 + $0x198] sm:$0xff] }
 0x643   : > { %v4087_v20 = vpop.eup %4086  ;;  %v2839_v26 = vmul.f32 %v2796_v63, %v5552_v49  ;;  %v1554_v28 = vsub.f32 %v6164_v50, %v1552_v45 }
 0x644   : > { %v2846_v29 = vmul.f32 %v4087_v20, %v2821_v27  ;;  %v2826_v33 = vmul.f32 %v4085_v57, %v2825_v12  ;;  %v2915_v12 = vld [vmem:[#allocation2 + $0x158] sm:$0xff]  ;;  %v2916_v27 = vld [vmem:[#allocation2 + $0x10] sm:$0xff] }
 0x645   : > { %v2843_v24 = vadd.f32 %v2841_v56, %v2839_v26  ;;  %v5657_v2 = vmul.f32 %v5645_v35, %v1554_v28  ;;  %v2914_v26 = vld [vmem:[#allocation2 + $0x1c0] sm:$0xff] }
 0x646   : > { %v5626_v38 = vsel %vm2852_vm12, %v2846_v29, %v5546_v37  ;;  %v2827_v54 = vadd.f32 %v4085_v57, %v2826_v33  ;;  %v2072_v62 = vpop.xlane.xlu0 %2071 }
 0x647   : > { %4088 = vtanh.f32 %v2843_v24  ;;  %2857 = vadd.xlane.f32.xlu0 %v5626_v38  ;;  %v5632_v47 = vsel %vm2852_vm12, %v2843_v24, %v5552_v49  ;;  %v1286_v49 = vsub.f32 %v6163_v16, %v1284_v61  ;;  %v2075_v1 = vmul.f32 0.03125, %v2072_v62  ;;  %v2918_v62 = vld [vmem:[#allocation2 + $0xa0] sm:$0xff] }
 0x648   : > { %v2831_v3 = vsel %vm2830_vm1, %v4085_v57, %v2827_v54  ;;  %v1558_v5 = vmul.f32 %v5657_v2, %v5657_v2 }
 0x649   : > { %v2836_v8 = vsel %vm2833_vm2, %v2835_v4, %v2831_v3  ;;  %v5651_v46 = vmul.f32 %v5645_v35, %v1286_v49  ;;  %v2077_v11 = vsub.f32 %v5334_v6, %v2075_v1 }
 0x64b   : > { %v1290_v51 = vmul.f32 %v5651_v46, %v5651_v46  ;;  %v5663_v55 = vmul.f32 %v5645_v35, %v2077_v11 }
 0x64d   : > { %v4089_v7 = vpop.eup %4088  ;;  %v2081_v0 = vmul.f32 %v5663_v55, %v5663_v55 }
 0x64e   : > { %v2847_v15 = vmul.f32 %v4089_v7, %v2836_v8  ;;  %v2336_v9 = vpop.xlane.xlu0 %2335  ;;  %v2913_v8 = vld [vmem:[#allocation2 + $0xc0] sm:$0xff] }
 0x64f   : > { %v2338_v39 = vmul.f32 0.03125, %v2336_v9 }
 0x650   : > { %v5643_v18 = vsel %vm2852_vm12, %v2847_v15, %v5557_v42 }
 0x651   : > { %2859 = vadd.xlane.f32.xlu1 %v5643_v18  ;;  %v2919_v36 = vpack.c.bf16 %v5643_v18, %v5626_v38  ;;  %v2340_v41 = vsub.f32 %v5451_v17, %v2338_v39 }
 0x653   : > { %2928 = vmatmul.bf16.vlgmr.msra.gmra.mxu0 %v2919_v36  ;;  %2942 = vmatmul.bf16.vlgmr.msra.gmra.mxu1 %v2919_v36  ;;  %v5669_v52 = vmul.f32 %v5645_v35, %v2340_v41 }
 0x654   : > { %2956 = vmatmul.bf16.vlgmr.msra.gmra.mxu2 %v2919_v36  ;;  %2970 = vmatmul.bf16.vlgmr.msra.gmra.mxu3 %v2919_v36 }
 0x655   : > { %v2344_v6 = vmul.f32 %v5669_v52, %v5669_v52 }
 0x659   : > { %1292 = vadd.xlane.f32.xlu1 %v1290_v51 }
 0x661   : > { %1561 = vadd.xlane.f32.xlu1 %v1558_v5 }
 0x669   : > { %2083 = vadd.xlane.f32.xlu1 %v2081_v0 }
 0x671   : > { %2347 = vadd.xlane.f32.xlu1 %v2344_v6 }
 0x6ba   : > { %v2858_v30 = vpop.xlane.xlu0 %2857 }
 0x6bb   : > { %v2861_v48 = vmul.f32 0.03125, %v2858_v30 }
 0x6bd   : > { %v2863_v40 = vsub.f32 %v5626_v38, %v2861_v48 }
 0x6bf   : > { %v5675_v57 = vmul.f32 %v5645_v35, %v2863_v40 }
 0x6c1   : > { %v2867_v17 = vmul.f32 %v5675_v57, %v5675_v57 }
 0x6c3   : > { %2869 = vadd.xlane.f32.xlu1 %v2867_v17 }
 0x6d0   : > { %v2929_v53 = vpop.f32.mrf.mxu0  ;;  %v2943_v19 = vpop.f32.mrf.mxu1 }
 0x6d1   : > { %v2976_v56 = vadd.f32 %v2929_v53, %v2911_v14  ;;  %v2977_v32 = vadd.f32 %v2943_v19, %v2912_v10  ;;  %v2917_v14 = vld [vmem:[#allocation2 + $0x58] sm:$0xff] }
 0x6d3   : > { %v3695_v63 = vmul.f32 -1.442695, %v2976_v56  ;;  %v3697_v20 = vmul.f32 -1.442695, %v2977_v32 }
 0x6d5   : > { %4090 = vpow2.f32 %v3695_v63 }
 0x6d6   : > { %4092 = vpow2.f32 %v3697_v20 }
 0x6d7   : > { %v2971_v29 = vpop.f32.mrf.mxu3  ;;  %v2957_v15 = vpop.f32.mrf.mxu2 }
 0x6d8   : > { %v2979_v24 = vadd.f32 %v2971_v29, %v2914_v26  ;;  %v2931_v33 = vpop.f32.mrf.mxu0  ;;  %v2945_v34 = vpop.f32.mrf.mxu1  ;;  %v2978_v22 = vadd.f32 %v2957_v15, %v2913_v8 }
 0x6d9   : > { %v2980_v13 = vadd.f32 %v2931_v33, %v2915_v12  ;;  %v2981_v54 = vadd.f32 %v2945_v34, %v2916_v27 }
 0x6da   : > { %v3699_v58 = vmul.f32 -1.442695, %v2979_v24 }
 0x6db   : > { %v4091_v59 = vpop.eup %4090  ;;  %v3696_v60 = vmul.f32 -1.442695, %v2980_v13  ;;  %v3698_v7 = vmul.f32 -1.442695, %v2981_v54 }
 0x6dc   : > { %v4093_v3 = vpop.eup %4092  ;;  %v2990_v61 = vadd.f32 1.0, %v4091_v59  ;;  %4094 = vpow2.f32 %v3699_v58 }
 0x6dd   : > { %v3028_v4 = vadd.f32 1.0, %v4093_v3  ;;  %4096 = vpow2.f32 %v3696_v60 }
 0x6de   : > { %4098 = vrcp.f32 %v2990_v61  ;;  %v3001_v9 = vand.u32 2147483647, %v2990_v61  ;;  %v3003_v0 = vand.u32 2147483648, %v2990_v61  ;;  %vm2997_vm0 = vweird.f32 %v2990_v61 }
 0x6df   : > { %4100 = vrcp.f32 %v3028_v4  ;;  %v2973_v1 = vpop.f32.mrf.mxu3  ;;  %v3041_v41 = vand.u32 2147483648, %v3028_v4  ;;  %v3039_v17 = vand.u32 2147483647, %v3028_v4  ;;  %v2959_v10 = vpop.f32.mrf.mxu2  ;;  %vm3035_vm5 = vweird.f32 %v3028_v4 }
 0x6e0   : > { %4102 = vpow2.f32 %v3698_v7  ;;  %v2983_v48 = vadd.f32 %v2973_v1, %v2918_v62  ;;  %vm3002_vm8 = vcmp.eq.f32.partialorder %v3001_v9, 8.507059e+37  ;;  %v3004_v63 = vor.u32 1.1754944e-38, %v3003_v0 }
 0x6e1   : > { %v3042_v32 = vor.u32 1.1754944e-38, %v3041_v41  ;;  %v2982_v24 = vadd.f32 %v2959_v10, %v2917_v14  ;;  %vm3040_vm6 = vcmp.eq.f32.partialorder %v3039_v17, 8.507059e+37  ;;  %v3113_v14 = vstv %s3112_s13 }
 0x6e2   : > { %v4095_v16 = vpop.eup %4094  ;;  %v3700_v33 = vmul.f32 -1.442695, %v2983_v48 }
 0x6e3   : > { %v4097_v49 = vpop.eup %4096  ;;  %v5679_v23 = vadd.f32 1.0, %v4095_v16 }
 0x6e4   : > { %v4099_v36 = vpop.eup %4098  ;;  %v5681_v45 = vadd.f32 1.0, %v4097_v49  ;;  %v1551_v49 = vmul.f32 0.03125, %v5621_v43 }
 0x6e5   : > { %v4101_v50 = vpop.eup %4100  ;;  %v2993_v28 = vmul.f32 %v4099_v36, %v2990_v61  ;;  %4104 = vrcp.f32 %v5679_v23  ;;  %vm2998_vm12 = vweird.f32 %v4099_v36  ;;  %v3079_v48 = vand.u32 2147483647, %v5679_v23 }
 0x6e6   : > { %v3031_v51 = vmul.f32 %v4101_v50, %v3028_v4  ;;  %4106 = vrcp.f32 %v5681_v45  ;;  %v4103_v11 = vpop.eup %4102  ;;  %vm3036_vm4 = vweird.f32 %v4101_v50  ;;  %vm2999_vm9 = vmor %vm2997_vm0, %vm2998_vm12  ;;  %v3016_v54 = vand.u32 2147483647, %v5681_v45 }
 0x6e7   : > { %v2994_v5 = vsub.f32 1.0, %v2993_v28  ;;  %4108 = vtanh.f32 %v2978_v22  ;;  %v5685_v6 = vadd.f32 1.0, %v4103_v11  ;;  %vm3037_vm3 = vmor %vm3035_vm5, %vm3036_vm4  ;;  %v3018_v7 = vand.u32 2147483648, %v5681_v45 }
 0x6e8   : > { %v3032_v39 = vsub.f32 1.0, %v3031_v51  ;;  %vm3012_vm7 = vweird.f32 %v5681_v45  ;;  %vm5705_vm14 = vcmp.eq.f32.partialorder %v3016_v54, 8.507059e+37  ;;  %vm3075_vm12 = vweird.f32 %v5679_v23 }
 0x6e9   : > { %v2995_v30 = vmul.f32 %v4099_v36, %v2994_v5  ;;  %4110 = vrcp.f32 %v5685_v6  ;;  %v3019_v51 = vor.u32 1.1754944e-38, %v3018_v7  ;;  %v3054_v62 = vand.u32 2147483647, %v5685_v6 }
 0x6ea   : > { %v3033_v40 = vmul.f32 %v4101_v50, %v3032_v39  ;;  %4112 = vpow2.f32 %v3700_v33  ;;  %v1285_v5 = vmul.f32 0.03125, %v5638_v21  ;;  %vm3050_vm2 = vweird.f32 %v5685_v6 }
 0x6eb   : > { %v5688_v53 = vpop.eup %4104  ;;  %v2996_v19 = vadd.f32 %v4099_v36, %v2995_v30  ;;  %4114 = vtanh.f32 %v2982_v24  ;;  %vm3055_vm4 = vcmp.eq.f32.partialorder %v3054_v62, 8.507059e+37  ;;  %vm3114_vm0 = vcmp.eq.s32.totalorder %v3113_v14, 1  ;;  %v6172_v24 = vld [vmem:[#allocation13_spill] sm:$0xff] }
 0x6ec   : > { %v4107_v56 = vpop.eup %4106  ;;  %v3034_v20 = vadd.f32 %v4101_v50, %v3033_v40  ;;  %v3071_v26 = vmul.f32 %v5688_v53, %v5679_v23  ;;  %vm3076_vm1 = vweird.f32 %v5688_v53  ;;  %v1287_v33 = vsub.f32 %v6172_v24, %v1285_v5 }
 0x6ed   : > { %v4109_v12 = vpop.eup %4108  ;;  %v3000_v27 = vsel %vm2999_vm9, %v4099_v36, %v2996_v19  ;;  %v3008_v29 = vmul.f32 %v4107_v56, %v5681_v45  ;;  %vm3013_vm11 = vweird.f32 %v4107_v56  ;;  %v3056_v36 = vand.u32 2147483648, %v5685_v6  ;;  %vm5726_vm5 = vmor %vm3075_vm12, %vm3076_vm1 }
 0x6ee   : > { %v3005_v34 = vsel %vm3002_vm8, %v3004_v63, %v3000_v27  ;;  %v3038_v13 = vsel %vm3037_vm3, %v4101_v50, %v3034_v20  ;;  %v3072_v60 = vsub.f32 1.0, %v3071_v26  ;;  %vm3014_vm10 = vmor %vm3012_vm7, %vm3013_vm11  ;;  %vm3080_vm8 = vcmp.eq.f32.partialorder %v3079_v48, 8.507059e+37 }
 0x6ef   : > { %v3043_v58 = vsel %vm3040_vm6, %v3042_v32, %v3038_v13  ;;  %v3102_v59 = vmul.f32 %v4109_v12, %v3005_v34  ;;  %v3009_v3 = vsub.f32 1.0, %v3008_v29  ;;  %v4111_v61 = vpop.eup %4110  ;;  %v3057_v0 = vor.u32 1.1754944e-38, %v3056_v36  ;;  %v1810_v34 = vpop.xlane.xlu2 %1809 }
 0x6f0   : > { %v3100_v4 = vmul.f32 %v3043_v58, %v5607_v25  ;;  %v3046_v8 = vmul.f32 %v4111_v61, %v5685_v6  ;;  %v3073_v28 = vmul.f32 %v5688_v53, %v3072_v60  ;;  %vm3051_vm15 = vweird.f32 %v4111_v61  ;;  %v4113_v39 = vpop.eup %4112 }
 0x6f1   : > { %v3010_v15 = vmul.f32 %v4107_v56, %v3009_v3  ;;  %vm5720_vm13 = vmor %vm3050_vm2, %vm3051_vm15  ;;  %v4115_v40 = vpop.eup %4114  ;;  %v3069_v17 = vadd.f32 1.0, %v4113_v39  ;;  %v3081_v6 = vand.u32 2147483648, %v5679_v23  ;;  %v1813_v58 = vmul.f32 0.03125, %v1810_v34 }
 0x6f2   : > { %v3104_v16 = vadd.f32 %v3102_v59, %v3100_v4  ;;  %v3047_v22 = vsub.f32 1.0, %v3046_v8  ;;  %v3074_v11 = vadd.f32 %v5688_v53, %v3073_v28  ;;  %v5750_v59 = vmul.f32 %v5645_v35, %v1287_v33  ;;  %v2074_v8 = vpop.xlane.xlu1 %2073 }
 0x6f3   : > { %v3011_v50 = vadd.f32 %v4107_v56, %v3010_v15  ;;  %v3082_v20 = vor.u32 1.1754944e-38, %v3081_v6  ;;  %vm3090_vm3 = vweird.f32 %v3069_v17 }
 0x6f4   : > { %4116 = vtanh.f32 %v3104_v16  ;;  %v3048_v45 = vmul.f32 %v4111_v61, %v3047_v22  ;;  %v3115_v26 = vsel %vm3114_vm0, %v3104_v16, %v5607_v25  ;;  %v1291_v7 = vmul.f32 %v5750_v59, %v5750_v59 }
 0x6f5   : > { %v3015_v1 = vsel %vm3014_vm10, %v4107_v56, %v3011_v50  ;;  %v3078_v56 = vsel %vm5726_vm5, %v5688_v53, %v3074_v11  ;;  %4118 = vrcp.f32 %v3069_v17  ;;  %3172 = vst [vmem:[#allocation4 + $0x8] sm:$0xff] %v3115_v26  ;;  %v2076_v50 = vmul.f32 0.03125, %v2074_v8 }
 0x6f6   : > { %v3020_v9 = vsel %vm5705_vm14, %v3019_v51, %v3015_v1  ;;  %v3049_v30 = vadd.f32 %v4111_v61, %v3048_v45  ;;  %v3083_v23 = vsel %vm3080_vm8, %v3082_v20, %v3078_v56  ;;  %3176 = vst [vmem:[#allocation7] sm:$0xff] %v3115_v26  ;;  %v6174_v45 = vld [vmem:[#allocation14_spill] sm:$0xff] }
 0x6f7   : > { %v3103_v19 = vmul.f32 %v4115_v40, %v3020_v9  ;;  %v1553_v1 = vsub.f32 %v6174_v45, %v1551_v49  ;;  %v1812_v11 = vpop.xlane.xlu2 %1811  ;;  %v2078_v43 = vsub.f32 %v5345_v31, %v2076_v50  ;;  %v6175_v31 = vld [vmem:[#allocation17_spill] sm:$0xff] }
 0x6f8   : > { %v3053_v10 = vsel %vm5720_vm13, %v4111_v61, %v3049_v30  ;;  %v6173_v61 = vld [vmem:[#allocation16_spill] sm:$0xff]  ;;  %v1814_v41 = vmul.f32 0.03125, %v1812_v11 }
 0x6f9   : > { %v3058_v63 = vsel %vm3055_vm4, %v3057_v0, %v3053_v10  ;;  %v1815_v4 = vsub.f32 %v6173_v61, %v1813_v58  ;;  %v5771_v0 = vmul.f32 %v5645_v35, %v1553_v1  ;;  %v5774_v48 = vmul.f32 %v5645_v35, %v2078_v43 }
 0x6fa   : > { %v4117_v32 = vpop.eup %4116  ;;  %v3101_v12 = vmul.f32 %v3058_v63, %v5632_v47  ;;  %v2596_v39 = vpop.xlane.xlu1 %2595  ;;  %v1816_v40 = vsub.f32 %v6175_v31, %v1814_v41 }
 0x6fb   : > { %v3108_v29 = vmul.f32 %v4117_v32, %v3083_v23  ;;  %v4119_v54 = vpop.eup %4118  ;;  %v5757_v51 = vmul.f32 %v5645_v35, %v1815_v4  ;;  %v2599_v30 = vmul.f32 0.03125, %v2596_v39  ;;  %v2082_v14 = vmul.f32 %v5774_v48, %v5774_v48 }
 0x6fc   : > { %v3105_v27 = vadd.f32 %v3103_v19, %v3101_v12  ;;  %v3086_v25 = vmul.f32 %v4119_v54, %v3069_v17  ;;  %vm3091_vm9 = vweird.f32 %v4119_v54  ;;  %v5783_v56 = vmul.f32 %v5645_v35, %v1816_v40 }
 0x6fd   : > { %v5742_v53 = vsel %vm3114_vm0, %v3108_v29, %v5626_v38  ;;  %v3096_v38 = vand.u32 2147483648, %v3069_v17  ;;  %vm3092_vm6 = vmor %vm3090_vm3, %vm3091_vm9  ;;  %v1819_v9 = vmul.f32 %v5757_v51, %v5757_v51  ;;  %v2601_v6 = vsub.f32 %v5546_v37, %v2599_v30 }
 0x6fe   : > { %v3116_v13 = vsel %vm3114_vm0, %v3105_v27, %v5632_v47  ;;  %3119 = vadd.xlane.f32.xlu2 %v5742_v53  ;;  %3170 = vst [vmem:[#allocation3 + $0x8] sm:$0xff] %v5742_v53  ;;  %4120 = vtanh.f32 %v3105_v27  ;;  %v3087_v60 = vsub.f32 1.0, %v3086_v25  ;;  %v3094_v47 = vand.u32 2147483647, %v3069_v17 }
 0x6ff   : > { %3173 = vst [vmem:[#allocation4] sm:$0xff] %v3116_v13  ;;  %v3097_v22 = vor.u32 1.1754944e-38, %v3096_v38  ;;  %v1557_v17 = vmul.f32 %v5771_v0, %v5771_v0  ;;  %v2334_v21 = vpop.xlane.xlu2 %2333  ;;  %v5786_v63 = vmul.f32 %v5645_v35, %v2601_v6  ;;  %v1820_v26 = vmul.f32 %v5783_v56, %v5783_v56 }
 0x700   : > { %3174 = vst [vmem:[#allocation5] sm:$0xff] %v5742_v53  ;;  %v3088_v3 = vmul.f32 %v4119_v54, %v3087_v60  ;;  %vm3095_vm11 = vcmp.eq.f32.partialorder %v3094_v47, 8.507059e+37  ;;  %v2337_v19 = vmul.f32 0.03125, %v2334_v21 }
 0x701   : > { %3177 = vst [vmem:[#allocation7 + $0x8] sm:$0xff] %v3116_v13  ;;  %v2605_v23 = vmul.f32 %v5786_v63, %v5786_v63 }
 0x702   : > { %v3089_v15 = vadd.f32 %v4119_v54, %v3088_v3  ;;  %v2860_v10 = vpop.xlane.xlu1 %2859  ;;  %v2339_v20 = vsub.f32 %v5440_v44, %v2337_v19  ;;  %3825 = dma.vmem_to_hbm [thread:$0]  (%p5946_p0), %s3219_s20, 256, %s3221_s18, [#allocation8], %s4245_s30, %s4245_s30, %s4246_s15  }
 0x703   : > { %v2862_v32 = vmul.f32 0.03125, %v2860_v10 }
 0x704   : > { %v4121_v16 = vpop.eup %4120  ;;  %v3093_v36 = vsel %vm3092_vm6, %v4119_v54, %v3089_v15  ;;  %v5795_v29 = vmul.f32 %v5645_v35, %v2339_v20 }
 0x705   : > { %v3098_v28 = vsel %vm3095_vm11, %v3097_v22, %v3093_v36  ;;  %v2864_v12 = vsub.f32 %v5643_v18, %v2862_v32 }
 0x706   : > { %1294 = vadd.xlane.f32.xlu2 %v1291_v7  ;;  %v3109_v62 = vmul.f32 %v4121_v16, %v3098_v28  ;;  %v2343_v33 = vmul.f32 %v5795_v29, %v5795_v29 }
 0x707   : > { %v2598_v37 = vpop.xlane.xlu2 %2597  ;;  %v5798_v24 = vmul.f32 %v5645_v35, %v2864_v12 }
 0x708   : > { %v5762_v5 = vsel %vm3114_vm0, %v3109_v62, %v5643_v18  ;;  %v2600_v27 = vmul.f32 0.03125, %v2598_v37 }
 0x709   : > { %3121 = vadd.xlane.f32.xlu0 %v5762_v5  ;;  %3171 = vst [vmem:[#allocation3] sm:$0xff] %v5762_v5  ;;  %v2868_v18 = vmul.f32 %v5798_v24, %v5798_v24 }
 0x70a   : > { %3175 = vst [vmem:[#allocation5 + $0x8] sm:$0xff] %v5762_v5  ;;  %v2602_v44 = vsub.f32 %v5557_v42, %v2600_v27  ;;  %v1293_v54 = vpop.xlane.xlu1 %1292 }
 0x70b   : > { %v1296_v58 = vmul.f32 0.03125, %v1293_v54  ;;  %3823 = dma.vmem_to_hbm [thread:$0]  (%p5946_p0), %s3202_s26, 256, %s3204_s14, [#allocation6], %s4245_s30, %s4245_s30, %s4246_s15  }
 0x70c   : > { %v5806_v34 = vmul.f32 %v5645_v35, %v2602_v44 }
 0x70d   : > { %v1298_v60 = vadd.f32 1e-05, %v1296_v58 }
 0x70e   : > { %1821 = vadd.xlane.f32.xlu2 %v1819_v9  ;;  %v2606_v13 = vmul.f32 %v5806_v34, %v5806_v34 }
 0x70f   : > { %4122 = vrsqrt.f32 %v1298_v60  ;;  %vm1306_vm14 = vweird.f32 %v1298_v60 }
 0x711   : > { %1559 = vadd.xlane.f32.xlu0 %v1557_v17 }
 0x712   : > { %v1562_v25 = vpop.xlane.xlu1 %1561 }
 0x713   : > { %v1564_v42 = vmul.f32 0.03125, %v1562_v25 }
 0x715   : > { %v5810_v3 = vadd.f32 1e-05, %v1564_v42  ;;  %v4123_v61 = vpop.eup %4122 }
 0x716   : > { %2085 = vadd.xlane.f32.xlu2 %v2082_v14  ;;  %v1301_v8 = vmul.f32 %v4123_v61, %v1298_v60  ;;  %vm1307_vm7 = vweird.f32 %v4123_v61 }
 0x717   : > { %4124 = vrsqrt.f32 %v5810_v3  ;;  %vm1308_vm15 = vmor %vm1306_vm14, %vm1307_vm7  ;;  %vm1583_vm1 = vweird.f32 %v5810_v3 }
 0x718   : > { %v1302_v50 = vmul.f32 %v4123_v61, %v1301_v8 }
 0x719   : > { %1823 = vadd.xlane.f32.xlu0 %v1820_v26 }
 0x71a   : > { %v2084_v38 = vpop.xlane.xlu1 %2083  ;;  %v1303_v9 = vmul.f32 0.5, %v1302_v50 }
 0x71b   : > { %v2087_v47 = vmul.f32 0.03125, %v2084_v38 }
 0x71c   : > { %v1304_v40 = vsub.f32 1.5, %v1303_v9 }
 0x71d   : > { %v5813_v4 = vadd.f32 1e-05, %v2087_v47  ;;  %v5816_v49 = vpop.eup %4124  ;;  %v5856_v47 = vld [vmem:[%s6115_s4] ss:$0 sm:$0xff] }
 0x71e   : > { %2607 = vadd.xlane.f32.xlu2 %v2605_v23  ;;  %v1578_v62 = vmul.f32 %v5816_v49, %v5810_v3  ;;  %v1305_v32 = vmul.f32 %v4123_v61, %v1304_v40  ;;  %vm1584_vm10 = vweird.f32 %v5816_v49 }
 0x71f   : > { %4126 = vrsqrt.f32 %v5813_v4  ;;  %vm5862_vm2 = vmor %vm1583_vm1, %vm1584_vm10  ;;  %vm2097_vm5 = vweird.f32 %v5813_v4 }
 0x720   : > { %v1309_v54 = vsel %vm1308_vm15, %v4123_v61, %v1305_v32 }
 0x721   : > { %2345 = vadd.xlane.f32.xlu0 %v2343_v33  ;;  %v1320_v61 = vmul.f32 %v1309_v54, %v5651_v46 }
 0x722   : > { %v2348_v15 = vpop.xlane.xlu1 %2347 }
 0x723   : > { %v2350_v36 = vmul.f32 0.03125, %v2348_v15  ;;  %v1325_v9 = vmul.f32 %v5856_v47, %v1320_v61 }
 0x725   : > { %v5826_v1 = vpop.eup %4126  ;;  %v5828_v11 = vadd.f32 1e-05, %v2350_v36 }
 0x726   : > { %2871 = vadd.xlane.f32.xlu2 %v2868_v18  ;;  %v2092_v41 = vmul.f32 %v5826_v1, %v5813_v4  ;;  %vm2098_vm12 = vweird.f32 %v5826_v1 }
 0x727   : > { %4128 = vrsqrt.f32 %v5828_v11  ;;  %vm5892_vm8 = vmor %vm2097_vm5, %vm2098_vm12 }
 0x728   : > { %v2093_v14 = vmul.f32 %v5826_v1, %v2092_v41 }
 0x729   : > { %2609 = vadd.xlane.f32.xlu0 %v2606_v13 }
 0x72a   : > { %v2094_v44 = vmul.f32 0.5, %v2093_v14 }
 0x72c   : > { %v2095_v42 = vsub.f32 1.5, %v2094_v44 }
 0x72d   : > { %v5836_v37 = vpop.eup %4128 }
 0x72e   : > { %v2364_v58 = vmul.f32 %v5836_v37, %v5828_v11  ;;  %vm2370_vm9 = vweird.f32 %v5836_v37 }
 0x730   : > { %v2365_v50 = vmul.f32 %v5836_v37, %v2364_v58 }
 0x732   : > { %v2366_v40 = vmul.f32 0.5, %v2365_v50 }
 0x736   : > { %v2870_v30 = vpop.xlane.xlu1 %2869 }
 0x737   : > { %v2873_v21 = vmul.f32 0.03125, %v2870_v30 }
 0x739   : > { %v5838_v23 = vadd.f32 1e-05, %v2873_v21 }
 0x771   : > { %v3120_v7 = vpop.xlane.xlu2 %3119 }
 0x772   : > { %v3123_v16 = vmul.f32 0.03125, %v3120_v7 }
 0x774   : > { %v3125_v22 = vsub.f32 %v5742_v53, %v3123_v16  ;;  %v1579_v53 = vmul.f32 %v5816_v49, %v1578_v62  ;;  %v2096_v62 = vmul.f32 %v5826_v1, %v2095_v42 }
 0x776   : > { %v5820_v28 = vmul.f32 %v5645_v35, %v3125_v22  ;;  %v1580_v17 = vmul.f32 0.5, %v1579_v53 }
 0x778   : > { %v3129_v45 = vmul.f32 %v5820_v28, %v5820_v28  ;;  %v1581_v12 = vsub.f32 1.5, %v1580_v17 }
 0x779   : > { %v1295_v43 = vpop.xlane.xlu2 %1294 }
 0x77a   : > { %v1297_v39 = vmul.f32 0.03125, %v1295_v43  ;;  %3131 = vadd.xlane.f32.xlu0 %v3129_v45  ;;  %v1582_v25 = vmul.f32 %v5816_v49, %v1581_v12 }
 0x77c   : > { %v1299_v31 = vadd.f32 1e-05, %v1297_v39  ;;  %v3122_v6 = vpop.xlane.xlu0 %3121  ;;  %v1586_v36 = vsel %vm5862_vm2, %v5816_v49, %v1582_v25  ;;  %v5884_v49 = vld [vmem:[%s6116_s5] ss:$0 sm:$0xff]  ;;  %vm2369_vm2 = vweird.f32 %v5828_v11 }
 0x77d   : > { %v3124_v10 = vmul.f32 0.03125, %v3122_v6  ;;  %v1588_v41 = vmul.f32 %v1586_v36, %v5657_v2  ;;  %v1330_v2 = vadd.f32 %v5884_v49, %v1325_v9  ;;  %vm6000_vm12 = vmor %vm2369_vm2, %vm2370_vm9  ;;  %vm2883_vm9 = vweird.f32 %v5838_v23 }
 0x77e   : > { %4130 = vrsqrt.f32 %v1299_v31  ;;  %vm1316_vm4 = vweird.f32 %v1299_v31 }
 0x77f   : > { %v3126_v20 = vsub.f32 %v5762_v5, %v3124_v10  ;;  %v1590_v44 = vmul.f32 %v5856_v47, %v1588_v41 }
 0x781   : > { %v1822_v19 = vpop.xlane.xlu2 %1821  ;;  %v5843_v18 = vmul.f32 %v5645_v35, %v3126_v20 }
 0x782   : > { %v1825_v26 = vmul.f32 0.03125, %v1822_v19 }
 0x783   : > { %v3130_v5 = vmul.f32 %v5843_v18, %v5843_v18 }
 0x784   : > { %v4131_v27 = vpop.eup %4130  ;;  %v5840_v33 = vadd.f32 1e-05, %v1825_v26  ;;  %v1560_v35 = vpop.xlane.xlu0 %1559 }
 0x785   : > { %v1311_v13 = vmul.f32 %v4131_v27, %v1299_v31  ;;  %v1563_v38 = vmul.f32 0.03125, %v1560_v35  ;;  %3133 = vadd.xlane.f32.xlu1 %v3130_v5  ;;  %vm1317_vm13 = vweird.f32 %v4131_v27  ;;  %v2100_v31 = vsel %vm5892_vm8, %v5826_v1, %v2096_v62 }
 0x786   : > { %4132 = vrsqrt.f32 %v5840_v33  ;;  %vm1318_vm0 = vmor %vm1316_vm4, %vm1317_vm13  ;;  %v2111_v1 = vmul.f32 %v2100_v31, %v5663_v55  ;;  %vm1835_vm14 = vweird.f32 %v5840_v33 }
 0x787   : > { %4134 = vrsqrt.f32 %v5838_v23  ;;  %v1312_v60 = vmul.f32 %v4131_v27, %v1311_v13  ;;  %v5866_v16 = vadd.f32 1e-05, %v1563_v38  ;;  %v2367_v13 = vsub.f32 1.5, %v2366_v40 }
 0x788   : > { %v5925_v38 = vadd.f32 %v5884_v49, %v1590_v44  ;;  %v2113_v61 = vmul.f32 %v5856_v47, %v2111_v1 }
 0x789   : > { %v1313_v7 = vmul.f32 0.5, %v1312_v60  ;;  %v2086_v8 = vpop.xlane.xlu2 %2085  ;;  %4136 = vrsqrt.f32 %v5866_v16  ;;  %vm1573_vm3 = vweird.f32 %v5866_v16 }
 0x78a   : > { %v2088_v22 = vmul.f32 0.03125, %v2086_v8  ;;  %v2115_v11 = vadd.f32 %v5884_v49, %v2113_v61 }
 0x78b   : > { %v1314_v46 = vsub.f32 1.5, %v1313_v7 }
 0x78c   : > { %v5872_v3 = vpop.eup %4132  ;;  %v5877_v45 = vadd.f32 1e-05, %v2088_v22  ;;  %v1824_v6 = vpop.xlane.xlu0 %1823  ;;  %v5930_v22 = vmul.f32 %v5836_v37, %v2367_v13 }
 0x78d   : > { %v5879_v43 = vpop.eup %4134  ;;  %v1315_v39 = vmul.f32 %v4131_v27, %v1314_v46  ;;  %v1830_v53 = vmul.f32 %v5872_v3, %v5840_v33  ;;  %v1826_v10 = vmul.f32 0.03125, %v1824_v6  ;;  %vm1836_vm11 = vweird.f32 %v5872_v3 }
 0x78e   : > { %4138 = vrsqrt.f32 %v5877_v45  ;;  %v2878_v4 = vmul.f32 %v5879_v43, %v5838_v23  ;;  %vm2107_vm10 = vweird.f32 %v5877_v45  ;;  %vm5970_vm1 = vmor %vm1835_vm14, %vm1836_vm11  ;;  %v2372_v13 = vsel %vm6000_vm12, %v5836_v37, %v5930_v22 }
 0x78f   : > { %v1319_v17 = vsel %vm1318_vm0, %v4131_v27, %v1315_v39  ;;  %v1831_v21 = vmul.f32 %v5872_v3, %v1830_v53  ;;  %v5904_v32 = vpop.eup %4136  ;;  %v5907_v12 = vadd.f32 1e-05, %v1826_v10  ;;  %vm2884_vm5 = vweird.f32 %v5879_v43 }
 0x790   : > { %v1321_v14 = vmul.f32 %v1319_v17, %v5750_v59  ;;  %v1568_v59 = vmul.f32 %v5904_v32, %v5866_v16  ;;  %v2879_v5 = vmul.f32 %v5879_v43, %v2878_v4  ;;  %vm1574_vm6 = vweird.f32 %v5904_v32 }
 0x791   : > { %v2608_v19 = vpop.xlane.xlu2 %2607  ;;  %v1832_v26 = vmul.f32 0.5, %v1831_v21  ;;  %4140 = vrsqrt.f32 %v5907_v12  ;;  %vm1575_vm15 = vmor %vm1573_vm3, %vm1574_vm6  ;;  %vm1845_vm0 = vweird.f32 %v5907_v12 }
 0x792   : > { %v1326_v20 = vmul.f32 %v5856_v47, %v1321_v14  ;;  %v2611_v27 = vmul.f32 0.03125, %v2608_v19  ;;  %v1569_v60 = vmul.f32 %v5904_v32, %v1568_v59  ;;  %v5933_v36 = vmul.f32 0.5, %v2879_v5  ;;  %vm6040_vm3 = vmor %vm2883_vm9, %vm2884_vm5 }
 0x793   : > { %v1833_v42 = vsub.f32 1.5, %v1832_v26 }
 0x794   : > { %v5913_v54 = vpop.eup %4138  ;;  %v1331_v25 = vadd.f32 %v5884_v49, %v1326_v20  ;;  %v5918_v58 = vadd.f32 1e-05, %v2611_v27  ;;  %v1570_v7 = vmul.f32 0.5, %v1569_v60  ;;  %v2346_v15 = vpop.xlane.xlu0 %2345  ;;  %v2881_v26 = vsub.f32 1.5, %v5933_v36 }
 0x795   : > { %v2102_v55 = vmul.f32 %v5913_v54, %v5877_v45  ;;  %v2349_v50 = vmul.f32 0.03125, %v2346_v15  ;;  %v1834_v53 = vmul.f32 %v5872_v3, %v1833_v42  ;;  %vm2108_vm7 = vweird.f32 %v5913_v54 }
 0x796   : > { %v3778_v35 = vpack.c.bf16 %v1331_v25, %v1330_v2  ;;  %4142 = vrsqrt.f32 %v5918_v58  ;;  %v1571_v46 = vsub.f32 1.5, %v1570_v7  ;;  %vm2109_vm13 = vmor %vm2107_vm10, %vm2108_vm7  ;;  %v2882_v42 = vmul.f32 %v5879_v43, %v2881_v26 }
 0x797   : > { %v2103_v8 = vmul.f32 %v5913_v54, %v2102_v55  ;;  %v5938_v39 = vpop.eup %4140  ;;  %v5942_v41 = vadd.f32 1e-05, %v2349_v50  ;;  %v1838_v10 = vsel %vm5970_vm1, %v5872_v3, %v1834_v53 }
 0x798   : > { %3779 = vst [vmem:[%s4471_s12] sm:$0xff] %v3778_v35   ;;  %v1572_v40 = vmul.f32 %v5904_v32, %v1571_v46  ;;  %v1840_v21 = vmul.f32 %v5938_v39, %v5907_v12  ;;  %v1849_v59 = vmul.f32 %v1838_v10, %v5757_v51  ;;  %vm1846_vm4 = vweird.f32 %v5938_v39 }
 0x799   : > { %v2104_v62 = vmul.f32 0.5, %v2103_v8  ;;  %v2872_v9 = vpop.xlane.xlu2 %2871  ;;  %4144 = vrsqrt.f32 %v5942_v41  ;;  %vm1847_vm8 = vmor %vm1845_vm0, %vm1846_vm4  ;;  %v2886_v53 = vsel %vm6040_vm3, %v5879_v43, %v2882_v42  ;;  %vm2359_vm7 = vweird.f32 %v5942_v41 }
 0x79a   : > { %v2874_v30 = vmul.f32 0.03125, %v2872_v9  ;;  %v1576_v33 = vsel %vm1575_vm15, %v5904_v32, %v1572_v40  ;;  %v1841_v14 = vmul.f32 %v5938_v39, %v1840_v21  ;;  %v1851_v8 = vmul.f32 %v5856_v47, %v1849_v59 }
 0x79b   : > { %v2105_v17 = vsub.f32 1.5, %v2104_v62  ;;  %v1587_v2 = vmul.f32 %v1576_v33, %v5771_v0  ;;  %vm2621_vm15 = vweird.f32 %v5918_v58 }
 0x79c   : > { %v5957_v6 = vpop.eup %4142  ;;  %v5966_v31 = vadd.f32 1e-05, %v2874_v30  ;;  %v1842_v32 = vmul.f32 0.5, %v1841_v14  ;;  %v2610_v0 = vpop.xlane.xlu0 %2609 }
 0x79d   : > { %v2106_v16 = vmul.f32 %v5913_v54, %v2105_v17  ;;  %v2616_v45 = vmul.f32 %v5957_v6, %v5918_v58  ;;  %v1589_v27 = vmul.f32 %v5856_v47, %v1587_v2  ;;  %v2612_v1 = vmul.f32 0.03125, %v2610_v0 }
 0x79e   : > { %4146 = vrsqrt.f32 %v5966_v31  ;;  %vm2622_vm11 = vweird.f32 %v5957_v6  ;;  %vm2893_vm2 = vweird.f32 %v5966_v31 }
 0x79f   : > { %v2110_v19 = vsel %vm2109_vm13, %v5913_v54, %v2106_v16  ;;  %v2617_v3 = vmul.f32 %v5957_v6, %v2616_v45  ;;  %v1843_v54 = vsub.f32 1.5, %v1842_v32  ;;  %v4145_v5 = vpop.eup %4144  ;;  %v1591_v25 = vadd.f32 %v5884_v49, %v1589_v27  ;;  %vm6058_vm1 = vmor %vm2621_vm15, %vm2622_vm11 }
 0x7a0   : > { %v2112_v44 = vmul.f32 %v2110_v19, %v5774_v48  ;;  %v6015_v55 = vadd.f32 1e-05, %v2612_v1  ;;  %v2354_v37 = vmul.f32 %v4145_v5, %v5942_v41  ;;  %vm2360_vm6 = vweird.f32 %v4145_v5 }
 0x7a1   : > { %v2618_v60 = vmul.f32 0.5, %v2617_v3  ;;  %v1844_v51 = vmul.f32 %v5938_v39, %v1843_v54  ;;  %v3783_v61 = vpack.c.bf16 %v5925_v38, %v1591_v25  ;;  %v2897_v16 = vmul.f32 %v2886_v53, %v5675_v57  ;;  %vm2361_vm10 = vmor %vm2359_vm7, %vm2360_vm6 }
 0x7a2   : > { %v2114_v48 = vmul.f32 %v5856_v47, %v2112_v44  ;;  %4148 = vrsqrt.f32 %v6015_v55  ;;  %v2355_v12 = vmul.f32 %v4145_v5, %v2354_v37  ;;  %vm2631_vm4 = vweird.f32 %v6015_v55 }
 0x7a3   : > { %v1848_v15 = vsel %vm1847_vm8, %v5938_v39, %v1844_v51  ;;  %3815 = vst [vmem:[%s4471_s12 + $0x8] sm:$0xff] %v3783_v61   ;;  %v2619_v50 = vsub.f32 1.5, %v2618_v60  ;;  %v2374_v39 = vmul.f32 %v2372_v13, %v5669_v52  ;;  %v2899_v3 = vmul.f32 %v5856_v47, %v2897_v16 }
 0x7a4   : > { %v4147_v35 = vpop.eup %4146  ;;  %v2116_v7 = vadd.f32 %v5884_v49, %v2114_v48  ;;  %v1850_v38 = vmul.f32 %v1848_v15, %v5783_v56  ;;  %v2356_v62 = vmul.f32 0.5, %v2355_v12  ;;  %v1853_v56 = vadd.f32 %v5884_v49, %v1851_v8 }
 0x7a5   : > { %v2888_v22 = vmul.f32 %v4147_v35, %v5966_v31  ;;  %v2620_v4 = vmul.f32 %v5957_v6, %v2619_v50  ;;  %vm2894_vm14 = vweird.f32 %v4147_v35  ;;  %v2901_v1 = vadd.f32 %v5884_v49, %v2899_v3 }
 0x7a6   : > { %v3793_v36 = vpack.c.bf16 %v2116_v7, %v2115_v11  ;;  %v1852_v23 = vmul.f32 %v5856_v47, %v1850_v38  ;;  %v2357_v30 = vsub.f32 1.5, %v2356_v62  ;;  %v2376_v11 = vmul.f32 %v5856_v47, %v2374_v39  ;;  %vm2895_vm13 = vmor %vm2893_vm2, %vm2894_vm14 }
 0x7a7   : > { %v2889_v9 = vmul.f32 %v4147_v35, %v2888_v22  ;;  %v2624_v57 = vsel %vm6058_vm1, %v5957_v6, %v2620_v4 }
 0x7a8   : > { %3817 = vst [vmem:[%s4471_s12 + $0x18] sm:$0xff] %v3793_v36   ;;  %v4149_v17 = vpop.eup %4148  ;;  %v1854_v21 = vadd.f32 %v5884_v49, %v1852_v23  ;;  %v2358_v52 = vmul.f32 %v4145_v5, %v2357_v30  ;;  %v2378_v26 = vadd.f32 %v5884_v49, %v2376_v11 }
 0x7a9   : > { %v2890_v40 = vmul.f32 0.5, %v2889_v9  ;;  %v2626_v33 = vmul.f32 %v4149_v17, %v6015_v55  ;;  %vm2632_vm12 = vweird.f32 %v4149_v17 }
 0x7aa   : > { %v3788_v14 = vpack.c.bf16 %v1854_v21, %v1853_v56  ;;  %v2362_v10 = vsel %vm2361_vm10, %v4145_v5, %v2358_v52  ;;  %vm2633_vm5 = vmor %vm2631_vm4, %vm2632_vm12 }
 0x7ab   : > { %v2891_v43 = vsub.f32 1.5, %v2890_v40  ;;  %v2627_v41 = vmul.f32 %v4149_v17, %v2626_v33  ;;  %v2373_v19 = vmul.f32 %v2362_v10, %v5795_v29  ;;  %v2635_v29 = vmul.f32 %v2624_v57, %v5786_v63 }
 0x7ac   : > { %3816 = vst [vmem:[%s4471_s12 + $0x10] sm:$0xff] %v3788_v14  }
 0x7ad   : > { %v2892_v2 = vmul.f32 %v4147_v35, %v2891_v43  ;;  %v2628_v32 = vmul.f32 0.5, %v2627_v41  ;;  %v2375_v0 = vmul.f32 %v5856_v47, %v2373_v19  ;;  %v2637_v54 = vmul.f32 %v5856_v47, %v2635_v29 }
 0x7af   : > { %v2896_v58 = vsel %vm2895_vm13, %v4147_v35, %v2892_v2  ;;  %v2629_v20 = vsub.f32 1.5, %v2628_v32  ;;  %v2377_v27 = vadd.f32 %v5884_v49, %v2375_v0  ;;  %v2639_v48 = vadd.f32 %v5884_v49, %v2637_v54 }
 0x7b0   : > { %v2898_v31 = vmul.f32 %v2896_v58, %v5798_v24 }
 0x7b1   : > { %v2630_v44 = vmul.f32 %v4149_v17, %v2629_v20  ;;  %v3798_v13 = vpack.c.bf16 %v2378_v26, %v2377_v27 }
 0x7b2   : > { %v2900_v6 = vmul.f32 %v5856_v47, %v2898_v31 }
 0x7b3   : > { %v2634_v59 = vsel %vm2633_vm5, %v4149_v17, %v2630_v44  ;;  %3818 = vst [vmem:[%s4471_s12 + $0x20] sm:$0xff] %v3798_v13  }
 0x7b4   : > { %v2902_v24 = vadd.f32 %v5884_v49, %v2900_v6  ;;  %v2636_v63 = vmul.f32 %v2634_v59, %v5806_v34 }
 0x7b6   : > { %v3808_v5 = vpack.c.bf16 %v2902_v24, %v2901_v1  ;;  %v2638_v25 = vmul.f32 %v5856_v47, %v2636_v63 }
 0x7b8   : > { %3820 = vst [vmem:[%s4471_s12 + $0x30] sm:$0xff] %v3808_v5   ;;  %v2640_v60 = vadd.f32 %v5884_v49, %v2638_v25 }
 0x7ba   : > { %v3803_v55 = vpack.c.bf16 %v2640_v60, %v2639_v48 }
 0x7bc   : > { %3819 = vst [vmem:[%s4471_s12 + $0x28] sm:$0xff] %v3803_v55  }
 0x7ed   : > { %v3132_v51 = vpop.xlane.xlu0 %3131 }
 0x7ee   : > { %v3135_v37 = vmul.f32 0.03125, %v3132_v51 }
 0x7f0   : > { %v3137_v35 = vadd.f32 1e-05, %v3135_v37 }
 0x7f2   : > { %4150 = vrsqrt.f32 %v3137_v35  ;;  %vm3145_vm8 = vweird.f32 %v3137_v35 }
 0x7f8   : > { %v4151_v42 = vpop.eup %4150  ;;  %v3134_v8 = vpop.xlane.xlu1 %3133 }
 0x7f9   : > { %v3140_v61 = vmul.f32 %v4151_v42, %v3137_v35  ;;  %v3136_v15 = vmul.f32 0.03125, %v3134_v8  ;;  %vm3146_vm0 = vweird.f32 %v4151_v42 }
 0x7fa   : > { %vm3147_vm9 = vmor %vm3145_vm8, %vm3146_vm0 }
 0x7fb   : > { %v3141_v7 = vmul.f32 %v4151_v42, %v3140_v61  ;;  %v3138_v12 = vadd.f32 1e-05, %v3136_v15 }
 0x7fd   : > { %v3142_v34 = vmul.f32 0.5, %v3141_v7  ;;  %4152 = vrsqrt.f32 %v3138_v12  ;;  %vm3155_vm6 = vweird.f32 %v3138_v12 }
 0x7ff   : > { %v3143_v22 = vsub.f32 1.5, %v3142_v34 }
 0x801   : > { %v3144_v38 = vmul.f32 %v4151_v42, %v3143_v22 }
 0x803   : > { %v4153_v36 = vpop.eup %4152  ;;  %v3148_v62 = vsel %vm3147_vm9, %v4151_v42, %v3144_v38 }
 0x804   : > { %v3150_v50 = vmul.f32 %v4153_v36, %v3138_v12  ;;  %vm3156_vm3 = vweird.f32 %v4153_v36  ;;  %v3159_v53 = vmul.f32 %v3148_v62, %v5820_v28 }
 0x805   : > { %vm3157_vm11 = vmor %vm3155_vm6, %vm3156_vm3 }
 0x806   : > { %v3151_v46 = vmul.f32 %v4153_v36, %v3150_v50  ;;  %v3161_v30 = vmul.f32 %v5856_v47, %v3159_v53 }
 0x808   : > { %v3152_v9 = vmul.f32 0.5, %v3151_v46  ;;  %v3163_v21 = vadd.f32 %v5884_v49, %v3161_v30 }
 0x80a   : > { %v3153_v39 = vsub.f32 1.5, %v3152_v9 }
 0x80c   : > { %v3154_v23 = vmul.f32 %v4153_v36, %v3153_v39 }
 0x80e   : > { %v3158_v56 = vsel %vm3157_vm11, %v4153_v36, %v3154_v23 }
 0x80f   : > { %v3160_v40 = vmul.f32 %v3158_v56, %v5843_v18 }
 0x811   : > { %v3162_v17 = vmul.f32 %v5856_v47, %v3160_v40 }
 0x813   : > { %v3164_v4 = vadd.f32 %v5884_v49, %v3162_v17 }
 0x815   : > { %v3813_v52 = vpack.c.bf16 %v3164_v4, %v3163_v21 }
 0x817   : > { %3821 = vst [vmem:[%s4471_s12 + $0x38] sm:$0xff] %v3813_v52  }
 0x818   : > { %4223 = dma.done.wait (%p5946_p0), [#allocation6], 256  }
 0x819   : > { %4225 = vsyncadd (%p5946_p0), [#allocation6], 4294967040 }
 0x81a   : > { %4227 = dma.done.wait (%p5946_p0), [#allocation8], 256  }
 0x81b   : > { %4229 = vsyncadd (%p5946_p0), [#allocation8], 4294967040 }
 0x81c PF: > { %s21_s29 = sadd.s32 1, %s4240_s29   ;;  %s6189_s27 = smov %s4236_s28 }
 0x81d   : > { %p18_p1 = scmp.ge.s32.totalorder %s21_s29, 4   ;;  %s6190_s28 = smov %s6192_s9 }
 0x81f   :  { %20 = sbr.rel (!%p18_p1) target bundleno = 3 (0x3), region = 112 }
 0x824   :  { %3255 = vsyncpa [#allocation6], 1 }
 0x825   :  { %3257 = vsyncpa [#allocation6 + $0x1], 1 }
 0x826   :  { %3258 = vsyncpa [#allocation8], 1 }

// kernel: deepspeech2_forward.8
= control target key start
LH: loop header
LB: loop body
LE: loop exit
PB: predicated region body
PF: predicated region fallthrough
CT: control target
= control target key end

     0   :  { %14 = vsyncpa [#allocation6], 0  ;;  %s6165_s0 = inlined_call_operand.vmem [shape: bf16[16,16,128], index: 0, kind: input, shape index: {}]   ;;  %s6166_s1 = inlined_call_operand.vmem [shape: bf16[128,512], index: 1, kind: input, shape index: {}]   ;;  %s6167_s2 = inlined_call_operand.vmem [shape: bf16[128,512], index: 2, kind: input, shape index: {}]   ;;  %s6168_s3 = inlined_call_operand.vmem [shape: f32[1,512], index: 3, kind: input, shape index: {}]   ;;  %s6169_s4 = inlined_call_operand.vmem [shape: f32[1,128], index: 4, kind: input, shape index: {}]   ;;  %s6170_s5 = inlined_call_operand.vmem [shape: f32[1,128], index: 5, kind: input, shape index: {}]   ;;  %s6171_s6 = inlined_call_operand.vmem [shape: bf16[16,16,128], index: 6, kind: output, shape index: {0}]   ;;  %s6172_s7 = inlined_call_operand.hbm [shape: f32[16,128], index: 7, kind: output, shape index: {1}]   ;;  %s6173_s8 = inlined_call_operand.hbm [shape: f32[16,128], index: 8, kind: output, shape index: {2}]  }
   0x1   :  { %15 = vsyncpa [#allocation8], 0  ;;  %s4331_s27 = smov 0   ;;  %s4333_s28 = smov 0  }
   0x2   :  { %s4335_s29 = smov 0  }
   0x3 LB: > { %s3369_s30 = sadd.s32 4294967295, %s4278_s29   ;;  %s30_s9 = sadd.s32 1, %s4274_s28  ;;  %s4278_s29 = sphi %s4335_s29, %s21_s29   ;;  %s4274_s28 = sphi %s4333_s28, %s6244_s28   ;;  %s4270_s27 = sphi %s4331_s27, %s6243_s27  }
   0x4   : > { %p31_p0 = scmp.ge.s32.totalorder %s30_s9, 2  ;;  %p3373_p1 = scmp.ge.s32.totalorder %s4278_s29, 1 }
   0x5   : > { %p292_p2 = scmp.lt.s32.totalorder %s4278_s29, 3 }
   0x6   : > { %s6246_s9 = smov (%p31_p0, %s30_s9), 0 }
   0x7   : > { %p293_p3 = pnand %p3373_p1, %p292_p2 }
   0x9   : > { %296 = sbr.rel (%p293_p3) target bundleno = 2084 (0x824), region = 44 }
   0xe   : > { %v3526_v0 = vld [vmem:[%s6166_s1 + $0xe0] sm:$0xf]  ;;  %v3779_v1 = vld [vmem:[%s6166_s1 + $0xec] sm:$0xf0]  ;;  %v3777_v2 = vld [vmem:[%s6166_s1 + $0xe4] sm:$0xf] }
   0xf   : > { %v3527_v3 = vor.u32 %v3779_v1, %v3526_v0  ;;  %v3528_v4 = vld [vmem:[%s6166_s1 + $0xf0] sm:$0xf0]  ;;  %v3534_v5 = vld [vmem:[%s6166_s1 + $0xe8] sm:$0xf]  ;;  %v3780_v6 = vld [vmem:[%s6166_s1 + $0xf4] sm:$0xf0] }
  0x10   : > { %v3531_v7 = vor.u32 %v3777_v2, %v3528_v4  ;;  %v3535_v8 = vor.u32 %v3780_v6, %v3534_v5  ;;  %v3778_v9 = vld [vmem:[%s6166_s1 + $0xec] sm:$0xf]  ;;  %v3536_v10 = vld [vmem:[%s6166_s1 + $0xf8] sm:$0xf0]  ;;  %v3510_v11 = vld [vmem:[%s6166_s1 + $0xc0] sm:$0xf] }
  0x11   : > { %628 = vmatpush.bf16.msra.mxu0 %v3527_v3  ;;  %v3539_v12 = vor.u32 %v3778_v9, %v3536_v10  ;;  %v3775_v13 = vld [vmem:[%s6166_s1 + $0xcc] sm:$0xf0]  ;;  %v3773_v14 = vld [vmem:[%s6166_s1 + $0xc4] sm:$0xf]  ;;  %v3512_v15 = vld [vmem:[%s6166_s1 + $0xd0] sm:$0xf0] }
  0x12   : > { %677 = vmatpush.bf16.msra.mxu1 %v3531_v7  ;;  %726 = vmatpush.bf16.msra.mxu2 %v3535_v8  ;;  %v3511_v16 = vor.u32 %v3775_v13, %v3510_v11  ;;  %v3515_v17 = vor.u32 %v3773_v14, %v3512_v15  ;;  %v3518_v18 = vld [vmem:[%s6166_s1 + $0xc8] sm:$0xf]  ;;  %v3776_v19 = vld [vmem:[%s6166_s1 + $0xd4] sm:$0xf0]  ;;  %v3774_v20 = vld [vmem:[%s6166_s1 + $0xcc] sm:$0xf] }
  0x13   : > { %775 = vmatpush.bf16.msra.mxu3 %v3539_v12  ;;  %v3519_v21 = vor.u32 %v3776_v19, %v3518_v18  ;;  %v3520_v22 = vld [vmem:[%s6166_s1 + $0xd8] sm:$0xf0]  ;;  %v3494_v23 = vld [vmem:[%s6166_s1 + $0xa0] sm:$0xf]  ;;  %v3771_v24 = vld [vmem:[%s6166_s1 + $0xac] sm:$0xf0] }
  0x14   : > { %v3523_v25 = vor.u32 %v3774_v20, %v3520_v22  ;;  %v3769_v26 = vld [vmem:[%s6166_s1 + $0xa4] sm:$0xf]  ;;  %v3496_v27 = vld [vmem:[%s6166_s1 + $0xb0] sm:$0xf0]  ;;  %v3502_v28 = vld [vmem:[%s6166_s1 + $0xa8] sm:$0xf]  ;;  %v3495_v29 = vor.u32 %v3771_v24, %v3494_v23 }
  0x15   : > { %629 = vmatpush.bf16.msra.mxu0 %v3511_v16  ;;  %v3772_v30 = vld [vmem:[%s6166_s1 + $0xb4] sm:$0xf0]  ;;  %v3770_v31 = vld [vmem:[%s6166_s1 + $0xac] sm:$0xf]  ;;  %v3504_v32 = vld [vmem:[%s6166_s1 + $0xb8] sm:$0xf0]  ;;  %v3499_v33 = vor.u32 %v3769_v26, %v3496_v27 }
  0x16   : > { %678 = vmatpush.bf16.msra.mxu1 %v3515_v17  ;;  %727 = vmatpush.bf16.msra.mxu2 %v3519_v21  ;;  %v3503_v34 = vor.u32 %v3772_v30, %v3502_v28  ;;  %v3478_v35 = vld [vmem:[%s6166_s1 + $0x80] sm:$0xf]  ;;  %v3767_v36 = vld [vmem:[%s6166_s1 + $0x8c] sm:$0xf0]  ;;  %v3765_v37 = vld [vmem:[%s6166_s1 + $0x84] sm:$0xf]  ;;  %v3507_v38 = vor.u32 %v3770_v31, %v3504_v32 }
  0x17   : > { %776 = vmatpush.bf16.msra.mxu3 %v3523_v25  ;;  %v3480_v39 = vld [vmem:[%s6166_s1 + $0x90] sm:$0xf0]  ;;  %v3486_v40 = vld [vmem:[%s6166_s1 + $0x88] sm:$0xf]  ;;  %v3768_v41 = vld [vmem:[%s6166_s1 + $0x94] sm:$0xf0]  ;;  %v3479_v44 = vor.u32 %v3767_v36, %v3478_v35 }
  0x18   : > { %v3766_v42 = vld [vmem:[%s6166_s1 + $0x8c] sm:$0xf]  ;;  %v3488_v43 = vld [vmem:[%s6166_s1 + $0x98] sm:$0xf0]  ;;  %v3483_v45 = vor.u32 %v3765_v37, %v3480_v39  ;;  %v3487_v46 = vor.u32 %v3768_v41, %v3486_v40  ;;  %v3462_v47 = vld [vmem:[%s6166_s1 + $0x60] sm:$0xf] }
  0x19   : > { %630 = vmatpush.bf16.msra.mxu0 %v3495_v29  ;;  %v3763_v48 = vld [vmem:[%s6166_s1 + $0x6c] sm:$0xf0]  ;;  %v3761_v49 = vld [vmem:[%s6166_s1 + $0x64] sm:$0xf]  ;;  %v3491_v50 = vor.u32 %v3766_v42, %v3488_v43  ;;  %v3464_v51 = vld [vmem:[%s6166_s1 + $0x70] sm:$0xf0] }
  0x1a   : > { %679 = vmatpush.bf16.msra.mxu1 %v3499_v33  ;;  %728 = vmatpush.bf16.msra.mxu2 %v3503_v34  ;;  %v3470_v52 = vld [vmem:[%s6166_s1 + $0x68] sm:$0xf]  ;;  %v3764_v53 = vld [vmem:[%s6166_s1 + $0x74] sm:$0xf0]  ;;  %v3762_v54 = vld [vmem:[%s6166_s1 + $0x6c] sm:$0xf]  ;;  %v3463_v56 = vor.u32 %v3763_v48, %v3462_v47  ;;  %v3467_v57 = vor.u32 %v3761_v49, %v3464_v51 }
  0x1b   : > { %777 = vmatpush.bf16.msra.mxu3 %v3507_v38  ;;  %v3472_v55 = vld [vmem:[%s6166_s1 + $0x78] sm:$0xf0]  ;;  %v3471_v58 = vor.u32 %v3764_v53, %v3470_v52  ;;  %v3446_v59 = vld [vmem:[%s6166_s1 + $0x40] sm:$0xf]  ;;  %v3759_v60 = vld [vmem:[%s6166_s1 + $0x4c] sm:$0xf0] }
  0x1c   : > { %v3757_v61 = vld [vmem:[%s6166_s1 + $0x44] sm:$0xf]  ;;  %v3475_v62 = vor.u32 %v3762_v54, %v3472_v55  ;;  %v3448_v63 = vld [vmem:[%s6166_s1 + $0x50] sm:$0xf0]  ;;  %v3454_v0 = vld [vmem:[%s6166_s1 + $0x48] sm:$0xf]  ;;  %v3447_v4 = vor.u32 %v3759_v60, %v3446_v59 }
  0x1d   : > { %631 = vmatpush.bf16.msra.mxu0 %v3479_v44  ;;  %v3760_v1 = vld [vmem:[%s6166_s1 + $0x54] sm:$0xf0]  ;;  %v3758_v2 = vld [vmem:[%s6166_s1 + $0x4c] sm:$0xf]  ;;  %v3456_v3 = vld [vmem:[%s6166_s1 + $0x58] sm:$0xf0]  ;;  %v3451_v6 = vor.u32 %v3757_v61, %v3448_v63 }
  0x1e   : > { %680 = vmatpush.bf16.msra.mxu1 %v3483_v45  ;;  %729 = vmatpush.bf16.msra.mxu2 %v3487_v46  ;;  %v3430_v5 = vld [vmem:[%s6166_s1 + $0x20] sm:$0xf]  ;;  %v3455_v7 = vor.u32 %v3760_v1, %v3454_v0  ;;  %v3755_v8 = vld [vmem:[%s6166_s1 + $0x2c] sm:$0xf0]  ;;  %v3753_v9 = vld [vmem:[%s6166_s1 + $0x24] sm:$0xf]  ;;  %v3459_v11 = vor.u32 %v3758_v2, %v3456_v3 }
  0x1f   : > { %778 = vmatpush.bf16.msra.mxu3 %v3491_v50  ;;  %v3432_v10 = vld [vmem:[%s6166_s1 + $0x30] sm:$0xf0]  ;;  %v3438_v12 = vld [vmem:[%s6166_s1 + $0x28] sm:$0xf]  ;;  %v3756_v13 = vld [vmem:[%s6166_s1 + $0x34] sm:$0xf0]  ;;  %v3431_v16 = vor.u32 %v3755_v8, %v3430_v5 }
  0x20   : > { %s4515_s16 = sshll.u32 %s4270_s27, 3  ;;  %v3754_v14 = vld [vmem:[%s6166_s1 + $0x2c] sm:$0xf]  ;;  %v3440_v15 = vld [vmem:[%s6166_s1 + $0x38] sm:$0xf0]  ;;  %v3435_v18 = vor.u32 %v3753_v9, %v3432_v10  ;;  %v3439_v19 = vor.u32 %v3756_v13, %v3438_v12  ;;  %p3540_p5 = scmp.ne.s32.totalorder %s4270_s27, 0 }
  0x21   : > { %632 = vmatpush.bf16.msra.mxu0 %v3463_v56  ;;  %p338_p4 = scmp.lt.s32.totalorder %s4515_s16, 15  ;;  %v3414_v17 = vld [vmem:[%s6166_s1] sm:$0xf]  ;;  %v3751_v20 = vld [vmem:[%s6166_s1 + $0xc] sm:$0xf0]  ;;  %v3443_v22 = vor.u32 %v3754_v14, %v3440_v15 }
  0x22   : > { %681 = vmatpush.bf16.msra.mxu1 %v3467_v57  ;;  %730 = vmatpush.bf16.msra.mxu2 %v3471_v58  ;;  %v3749_v21 = vld [vmem:[%s6166_s1 + $0x4] sm:$0xf]  ;;  %v3416_v23 = vld [vmem:[%s6166_s1 + $0x10] sm:$0xf0]  ;;  %v3422_v24 = vld [vmem:[%s6166_s1 + $0x8] sm:$0xf]  ;;  %v3415_v28 = vor.u32 %v3751_v20, %v3414_v17 }
  0x23   : > { %779 = vmatpush.bf16.msra.mxu3 %v3475_v62  ;;  %s339_s10 = scalar_select %p338_p4, %s4515_s16, 15  ;;  %v3752_v25 = vld [vmem:[%s6166_s1 + $0x14] sm:$0xf0]  ;;  %v3750_v26 = vld [vmem:[%s6166_s1 + $0xc] sm:$0xf]  ;;  %v3419_v29 = vor.u32 %v3749_v21, %v3416_v23 }
  0x24   : > { %v3424_v27 = vld [vmem:[%s6166_s1 + $0x18] sm:$0xf0]  ;;  %v3423_v30 = vor.u32 %v3752_v25, %v3422_v24  ;;  %v410_v40 = vld [vmem:[%s6168_s3] sm:$0xf] }
  0x25   : > { %633 = vmatpush.bf16.msra.mxu0 %v3447_v4  ;;  %s3739_s22 = sshll.u32 %s339_s10, 3  ;;  %v3427_v31 = vor.u32 %v3750_v26, %v3424_v27  ;;  %v4570_v41 = vperm.slane %v410_v40, 0  ;;  %v4572_v42 = vperm.slane %v410_v40, 1  ;;  %v4576_v47 = vperm.slane %v410_v40, 2 }
  0x26   : > { %682 = vmatpush.bf16.msra.mxu1 %v3451_v6  ;;  %731 = vmatpush.bf16.msra.mxu2 %v3455_v7  ;;  %s4552_s25 = scalar_lea.vmem %s6165_s0, %s3739_s22  ;;  %s4557_s12 = scalar_lea.vmem %s6171_s6, %s3739_s22  ;;  %v4578_v48 = vperm.slane %v410_v40, 3 }
  0x27   : > { %780 = vmatpush.bf16.msra.mxu3 %v3459_v11  ;;  %v3741_v32 = vld [vmem:[%s4552_s25] sm:$0xff]  ;;  %v3742_v33 = vld [vmem:[%s4552_s25 + $0x8] sm:$0xff]  ;;  %v3743_v34 = vld [vmem:[%s4552_s25 + $0x10] sm:$0xff] }
  0x28   : > { %v3744_v35 = vld [vmem:[%s4552_s25 + $0x18] sm:$0xff]  ;;  %v3745_v36 = vld [vmem:[%s4552_s25 + $0x20] sm:$0xff]  ;;  %v3746_v37 = vld [vmem:[%s4552_s25 + $0x28] sm:$0xff] }
  0x29   : > { %634 = vmatpush.bf16.msra.mxu0 %v3431_v16  ;;  %v3747_v38 = vld [vmem:[%s4552_s25 + $0x30] sm:$0xff]  ;;  %v3748_v39 = vld [vmem:[%s4552_s25 + $0x38] sm:$0xff] }
  0x2a   : > { %683 = vmatpush.bf16.msra.mxu1 %v3435_v18  ;;  %732 = vmatpush.bf16.msra.mxu2 %v3439_v19 }
  0x2b   : > { %781 = vmatpush.bf16.msra.mxu3 %v3443_v22 }
  0x2d   : > { %635 = vmatpush.bf16.msra.mxu0 %v3415_v28 }
  0x2e   : > { %684 = vmatpush.bf16.msra.mxu1 %v3419_v29  ;;  %733 = vmatpush.bf16.msra.mxu2 %v3423_v30 }
  0x2f   : > { %782 = vmatpush.bf16.msra.mxu3 %v3427_v31 }
  0x30   : > { %636 = vmatmul.bf16.vlgmr.msra.gmra.mxu0 %v3741_v32 }
  0x31   : > { %685 = vmatmul.bf16.vlgmr.msra.gmra.mxu1 %v3741_v32  ;;  %734 = vmatmul.bf16.vlgmr.msra.gmra.mxu2 %v3741_v32 }
  0x32   : > { %783 = vmatmul.bf16.vlgmr.msra.gmra.mxu3 %v3741_v32 }
  0x40   : > { %641 = vmatmul.bf16.gmra.mxu0 %v3742_v33 }
  0x41   : > { %690 = vmatmul.bf16.gmra.mxu1 %v3742_v33  ;;  %739 = vmatmul.bf16.gmra.mxu2 %v3742_v33 }
  0x42   : > { %788 = vmatmul.bf16.gmra.mxu3 %v3742_v33 }
  0x50   : > { %646 = vmatmul.bf16.gmra.mxu0 %v3743_v34 }
  0x51   : > { %695 = vmatmul.bf16.gmra.mxu1 %v3743_v34  ;;  %744 = vmatmul.bf16.gmra.mxu2 %v3743_v34 }
  0x52   : > { %793 = vmatmul.bf16.gmra.mxu3 %v3743_v34 }
  0x60   : > { %651 = vmatmul.bf16.gmra.mxu0 %v3744_v35 }
  0x61   : > { %700 = vmatmul.bf16.gmra.mxu1 %v3744_v35  ;;  %749 = vmatmul.bf16.gmra.mxu2 %v3744_v35 }
  0x62   : > { %798 = vmatmul.bf16.gmra.mxu3 %v3744_v35 }
  0x70   : > { %656 = vmatmul.bf16.gmra.mxu0 %v3745_v36 }
  0x71   : > { %705 = vmatmul.bf16.gmra.mxu1 %v3745_v36  ;;  %754 = vmatmul.bf16.gmra.mxu2 %v3745_v36 }
  0x72   : > { %803 = vmatmul.bf16.gmra.mxu3 %v3745_v36 }
  0x80   : > { %661 = vmatmul.bf16.gmra.mxu0 %v3746_v37 }
  0x81   : > { %710 = vmatmul.bf16.gmra.mxu1 %v3746_v37  ;;  %759 = vmatmul.bf16.gmra.mxu2 %v3746_v37 }
  0x82   : > { %808 = vmatmul.bf16.gmra.mxu3 %v3746_v37 }
  0x90   : > { %666 = vmatmul.bf16.gmra.mxu0 %v3747_v38 }
  0x91   : > { %715 = vmatmul.bf16.gmra.mxu1 %v3747_v38  ;;  %764 = vmatmul.bf16.gmra.mxu2 %v3747_v38 }
  0x92   : > { %813 = vmatmul.bf16.gmra.mxu3 %v3747_v38 }
  0xa0   : > { %671 = vmatmul.bf16.gmra.mxu0 %v3748_v39 }
  0xa1   : > { %720 = vmatmul.bf16.gmra.mxu1 %v3748_v39  ;;  %769 = vmatmul.bf16.gmra.mxu2 %v3748_v39 }
  0xa2   : > { %818 = vmatmul.bf16.gmra.mxu3 %v3748_v39 }
  0xad   : > { %v637_v43 = vpop.f32.mrf.mxu0 }
  0xae   : > { %v638_v44 = vadd.f32 %v637_v43, %v4570_v41  ;;  %v686_v45 = vpop.f32.mrf.mxu1 }
  0xaf   : > { %v687_v46 = vadd.f32 %v686_v45, %v4572_v42 }
  0xb0   : > { %824 = vst [vmem:[#allocation2 + $0xb0] sm:$0xff] %v638_v44 }
  0xb1   : > { %825 = vst [vmem:[#allocation2 + $0x1b0] sm:$0xff] %v687_v46 }
  0xb4   : > { %v735_v49 = vpop.f32.mrf.mxu2 }
  0xb5   : > { %v736_v50 = vadd.f32 %v735_v49, %v4576_v47  ;;  %v784_v51 = vpop.f32.mrf.mxu3  ;;  %v639_v52 = vpop.f32.mrf.mxu0 }
  0xb6   : > { %v785_v53 = vadd.f32 %v784_v51, %v4578_v48  ;;  %v640_v54 = vadd.f32 %v639_v52, %v4570_v41  ;;  %v688_v55 = vpop.f32.mrf.mxu1 }
  0xb7   : > { %826 = vst [vmem:[#allocation2 + $0xd8] sm:$0xff] %v736_v50  ;;  %v689_v56 = vadd.f32 %v688_v55, %v4572_v42 }
  0xb8   : > { %827 = vst [vmem:[#allocation2 + $0x18] sm:$0xff] %v785_v53 }
  0xb9   : > { %828 = vst [vmem:[#allocation2 + $0x50] sm:$0xff] %v640_v54 }
  0xba   : > { %829 = vst [vmem:[#allocation2 + $0x168] sm:$0xff] %v689_v56 }
  0xbc   : > { %v737_v57 = vpop.f32.mrf.mxu2 }
  0xbd   : > { %v738_v58 = vadd.f32 %v737_v57, %v4576_v47  ;;  %v786_v59 = vpop.f32.mrf.mxu3  ;;  %v642_v60 = vpop.f32.mrf.mxu0 }
  0xbe   : > { %v787_v61 = vadd.f32 %v786_v59, %v4578_v48  ;;  %v643_v62 = vadd.f32 %v642_v60, %v4570_v41  ;;  %v691_v63 = vpop.f32.mrf.mxu1 }
  0xbf   : > { %830 = vst [vmem:[#allocation2 + $0x130] sm:$0xff] %v738_v58  ;;  %v692_v0 = vadd.f32 %v691_v63, %v4572_v42 }
  0xc0   : > { %831 = vst [vmem:[#allocation2 + $0x48] sm:$0xff] %v787_v61 }
  0xc1   : > { %832 = vst [vmem:[#allocation2 + $0x180] sm:$0xff] %v643_v62 }
  0xc2   : > { %833 = vst [vmem:[#allocation2 + $0x110] sm:$0xff] %v692_v0 }
  0xc4   : > { %v740_v1 = vpop.f32.mrf.mxu2 }
  0xc5   : > { %v741_v2 = vadd.f32 %v740_v1, %v4576_v47  ;;  %v789_v3 = vpop.f32.mrf.mxu3  ;;  %v644_v4 = vpop.f32.mrf.mxu0 }
  0xc6   : > { %v790_v5 = vadd.f32 %v789_v3, %v4578_v48  ;;  %v645_v6 = vadd.f32 %v644_v4, %v4570_v41  ;;  %v693_v7 = vpop.f32.mrf.mxu1 }
  0xc7   : > { %834 = vst [vmem:[#allocation2 + $0x118] sm:$0xff] %v741_v2  ;;  %v694_v8 = vadd.f32 %v693_v7, %v4572_v42 }
  0xc8   : > { %835 = vst [vmem:[#allocation2 + $0x98] sm:$0xff] %v790_v5 }
  0xc9   : > { %836 = vst [vmem:[#allocation2 + $0x120] sm:$0xff] %v645_v6 }
  0xca   : > { %837 = vst [vmem:[#allocation2 + $0x150] sm:$0xff] %v694_v8 }
  0xcc   : > { %v742_v9 = vpop.f32.mrf.mxu2 }
  0xcd   : > { %v743_v10 = vadd.f32 %v742_v9, %v4576_v47  ;;  %v791_v11 = vpop.f32.mrf.mxu3  ;;  %v647_v12 = vpop.f32.mrf.mxu0 }
  0xce   : > { %v792_v13 = vadd.f32 %v791_v11, %v4578_v48  ;;  %v648_v14 = vadd.f32 %v647_v12, %v4570_v41  ;;  %v696_v15 = vpop.f32.mrf.mxu1 }
  0xcf   : > { %838 = vst [vmem:[#allocation2 + $0x108] sm:$0xff] %v743_v10  ;;  %v697_v16 = vadd.f32 %v696_v15, %v4572_v42 }
  0xd0   : > { %839 = vst [vmem:[#allocation2 + $0x60] sm:$0xff] %v792_v13 }
  0xd1   : > { %840 = vst [vmem:[#allocation2 + $0xe0] sm:$0xff] %v648_v14 }
  0xd2   : > { %841 = vst [vmem:[#allocation2 + $0x188] sm:$0xff] %v697_v16 }
  0xd4   : > { %v745_v17 = vpop.f32.mrf.mxu2 }
  0xd5   : > { %v746_v18 = vadd.f32 %v745_v17, %v4576_v47  ;;  %v794_v19 = vpop.f32.mrf.mxu3  ;;  %v649_v20 = vpop.f32.mrf.mxu0 }
  0xd6   : > { %v795_v21 = vadd.f32 %v794_v19, %v4578_v48  ;;  %v650_v22 = vadd.f32 %v649_v20, %v4570_v41  ;;  %v698_v23 = vpop.f32.mrf.mxu1 }
  0xd7   : > { %842 = vst [vmem:[#allocation2 + $0x138] sm:$0xff] %v746_v18  ;;  %v699_v24 = vadd.f32 %v698_v23, %v4572_v42 }
  0xd8   : > { %843 = vst [vmem:[#allocation2 + $0x140] sm:$0xff] %v795_v21 }
  0xd9   : > { %844 = vst [vmem:[#allocation2 + $0x80] sm:$0xff] %v650_v22 }
  0xda   : > { %845 = vst [vmem:[#allocation2 + $0x1a8] sm:$0xff] %v699_v24 }
  0xdc   : > { %v747_v25 = vpop.f32.mrf.mxu2 }
  0xdd   : > { %v748_v26 = vadd.f32 %v747_v25, %v4576_v47  ;;  %v796_v27 = vpop.f32.mrf.mxu3  ;;  %v652_v28 = vpop.f32.mrf.mxu0 }
  0xde   : > { %v797_v29 = vadd.f32 %v796_v27, %v4578_v48  ;;  %v653_v30 = vadd.f32 %v652_v28, %v4570_v41  ;;  %v701_v31 = vpop.f32.mrf.mxu1 }
  0xdf   : > { %846 = vst [vmem:[#allocation2 + $0x1b8] sm:$0xff] %v748_v26  ;;  %v702_v32 = vadd.f32 %v701_v31, %v4572_v42 }
  0xe0   : > { %847 = vst [vmem:[#allocation2 + $0x28] sm:$0xff] %v797_v29 }
  0xe1   : > { %848 = vst [vmem:[#allocation2 + $0x1e8] sm:$0xff] %v653_v30 }
  0xe2   : > { %849 = vst [vmem:[#allocation2 + $0xf8] sm:$0xff] %v702_v32 }
  0xe4   : > { %v750_v33 = vpop.f32.mrf.mxu2 }
  0xe5   : > { %v751_v34 = vadd.f32 %v750_v33, %v4576_v47  ;;  %v799_v35 = vpop.f32.mrf.mxu3  ;;  %v654_v36 = vpop.f32.mrf.mxu0 }
  0xe6   : > { %v800_v37 = vadd.f32 %v799_v35, %v4578_v48  ;;  %v655_v38 = vadd.f32 %v654_v36, %v4570_v41  ;;  %v703_v39 = vpop.f32.mrf.mxu1 }
  0xe7   : > { %850 = vst [vmem:[#allocation2 + $0x160] sm:$0xff] %v751_v34  ;;  %v704_v40 = vadd.f32 %v703_v39, %v4572_v42 }
  0xe8   : > { %851 = vst [vmem:[#allocation2 + $0x30] sm:$0xff] %v800_v37 }
  0xe9   : > { %852 = vst [vmem:[#allocation2 + $0x1e0] sm:$0xff] %v655_v38 }
  0xea   : > { %853 = vst [vmem:[#allocation2] sm:$0xff] %v704_v40 }
  0xec   : > { %v752_v43 = vpop.f32.mrf.mxu2 }
  0xed   : > { %v753_v44 = vadd.f32 %v752_v43, %v4576_v47  ;;  %v801_v45 = vpop.f32.mrf.mxu3  ;;  %v657_v46 = vpop.f32.mrf.mxu0 }
  0xee   : > { %v802_v49 = vadd.f32 %v801_v45, %v4578_v48  ;;  %v658_v50 = vadd.f32 %v657_v46, %v4570_v41  ;;  %v706_v51 = vpop.f32.mrf.mxu1 }
  0xef   : > { %854 = vst [vmem:[#allocation2 + $0xf0] sm:$0xff] %v753_v44  ;;  %v707_v52 = vadd.f32 %v706_v51, %v4572_v42 }
  0xf0   : > { %855 = vst [vmem:[#allocation2 + $0x8] sm:$0xff] %v802_v49 }
  0xf1   : > { %856 = vst [vmem:[#allocation2 + $0x148] sm:$0xff] %v658_v50 }
  0xf2   : > { %857 = vst [vmem:[#allocation2 + $0x1d0] sm:$0xff] %v707_v52 }
  0xf4   : > { %v755_v53 = vpop.f32.mrf.mxu2 }
  0xf5   : > { %v756_v54 = vadd.f32 %v755_v53, %v4576_v47  ;;  %v804_v55 = vpop.f32.mrf.mxu3  ;;  %v659_v56 = vpop.f32.mrf.mxu0 }
  0xf6   : > { %v805_v57 = vadd.f32 %v804_v55, %v4578_v48  ;;  %v660_v58 = vadd.f32 %v659_v56, %v4570_v41  ;;  %v708_v59 = vpop.f32.mrf.mxu1 }
  0xf7   : > { %858 = vst [vmem:[#allocation2 + $0x100] sm:$0xff] %v756_v54  ;;  %v709_v60 = vadd.f32 %v708_v59, %v4572_v42 }
  0xf8   : > { %859 = vst [vmem:[#allocation2 + $0xc8] sm:$0xff] %v805_v57 }
  0xf9   : > { %860 = vst [vmem:[#allocation2 + $0x40] sm:$0xff] %v660_v58 }
  0xfa   : > { %861 = vst [vmem:[#allocation2 + $0x1f8] sm:$0xff] %v709_v60 }
  0xfc   : > { %v757_v61 = vpop.f32.mrf.mxu2 }
  0xfd   : > { %v758_v62 = vadd.f32 %v757_v61, %v4576_v47  ;;  %v806_v63 = vpop.f32.mrf.mxu3  ;;  %v662_v0 = vpop.f32.mrf.mxu0 }
  0xfe   : > { %v807_v1 = vadd.f32 %v806_v63, %v4578_v48  ;;  %v663_v2 = vadd.f32 %v662_v0, %v4570_v41  ;;  %v711_v3 = vpop.f32.mrf.mxu1 }
  0xff   : > { %862 = vst [vmem:[#allocation2 + $0x20] sm:$0xff] %v758_v62  ;;  %v712_v4 = vadd.f32 %v711_v3, %v4572_v42 }
 0x100   : > { %863 = vst [vmem:[#allocation2 + $0x128] sm:$0xff] %v807_v1 }
 0x101   : > { %864 = vst [vmem:[#allocation2 + $0x1a0] sm:$0xff] %v663_v2 }
 0x102   : > { %865 = vst [vmem:[#allocation2 + $0x1f0] sm:$0xff] %v712_v4 }
 0x104   : > { %v760_v5 = vpop.f32.mrf.mxu2 }
 0x105   : > { %v761_v6 = vadd.f32 %v760_v5, %v4576_v47  ;;  %v809_v7 = vpop.f32.mrf.mxu3  ;;  %v664_v8 = vpop.f32.mrf.mxu0 }
 0x106   : > { %v810_v9 = vadd.f32 %v809_v7, %v4578_v48  ;;  %v665_v10 = vadd.f32 %v664_v8, %v4570_v41  ;;  %v713_v11 = vpop.f32.mrf.mxu1 }
 0x107   : > { %866 = vst [vmem:[#allocation2 + $0xe8] sm:$0xff] %v761_v6  ;;  %v714_v12 = vadd.f32 %v713_v11, %v4572_v42 }
 0x108   : > { %867 = vst [vmem:[#allocation2 + $0x78] sm:$0xff] %v810_v9 }
 0x109   : > { %868 = vst [vmem:[#allocation2 + $0x70] sm:$0xff] %v665_v10 }
 0x10a   : > { %869 = vst [vmem:[#allocation2 + $0x90] sm:$0xff] %v714_v12 }
 0x10c   : > { %v762_v13 = vpop.f32.mrf.mxu2 }
 0x10d   : > { %v763_v14 = vadd.f32 %v762_v13, %v4576_v47  ;;  %v811_v15 = vpop.f32.mrf.mxu3  ;;  %v667_v16 = vpop.f32.mrf.mxu0 }
 0x10e   : > { %v812_v17 = vadd.f32 %v811_v15, %v4578_v48  ;;  %v668_v18 = vadd.f32 %v667_v16, %v4570_v41  ;;  %v716_v19 = vpop.f32.mrf.mxu1 }
 0x10f   : > { %870 = vst [vmem:[#allocation2 + $0x1d8] sm:$0xff] %v763_v14  ;;  %v717_v20 = vadd.f32 %v716_v19, %v4572_v42 }
 0x110   : > { %871 = vst [vmem:[#allocation2 + $0xd0] sm:$0xff] %v812_v17 }
 0x111   : > { %872 = vst [vmem:[#allocation2 + $0xb8] sm:$0xff] %v668_v18 }
 0x112   : > { %873 = vst [vmem:[#allocation2 + $0x88] sm:$0xff] %v717_v20 }
 0x114   : > { %v765_v21 = vpop.f32.mrf.mxu2 }
 0x115   : > { %v766_v22 = vadd.f32 %v765_v21, %v4576_v47  ;;  %v814_v23 = vpop.f32.mrf.mxu3  ;;  %v669_v24 = vpop.f32.mrf.mxu0 }
 0x116   : > { %v815_v25 = vadd.f32 %v814_v23, %v4578_v48  ;;  %v670_v26 = vadd.f32 %v669_v24, %v4570_v41  ;;  %v718_v27 = vpop.f32.mrf.mxu1 }
 0x117   : > { %874 = vst [vmem:[#allocation2 + $0xa8] sm:$0xff] %v766_v22  ;;  %v719_v28 = vadd.f32 %v718_v27, %v4572_v42 }
 0x118   : > { %875 = vst [vmem:[#allocation2 + $0x1c8] sm:$0xff] %v815_v25 }
 0x119   : > { %876 = vst [vmem:[#allocation2 + $0x170] sm:$0xff] %v670_v26 }
 0x11a   : > { %877 = vst [vmem:[#allocation2 + $0x178] sm:$0xff] %v719_v28 }
 0x11c   : > { %v767_v29 = vpop.f32.mrf.mxu2 }
 0x11d   : > { %v768_v30 = vadd.f32 %v767_v29, %v4576_v47  ;;  %v816_v31 = vpop.f32.mrf.mxu3  ;;  %v672_v32 = vpop.f32.mrf.mxu0 }
 0x11e   : > { %v817_v33 = vadd.f32 %v816_v31, %v4578_v48  ;;  %v673_v34 = vadd.f32 %v672_v32, %v4570_v41  ;;  %v721_v35 = vpop.f32.mrf.mxu1 }
 0x11f   : > { %878 = vst [vmem:[#allocation2 + $0x68] sm:$0xff] %v768_v30  ;;  %v722_v36 = vadd.f32 %v721_v35, %v4572_v42 }
 0x120   : > { %879 = vst [vmem:[#allocation2 + $0x190] sm:$0xff] %v817_v33 }
 0x121   : > { %880 = vst [vmem:[#allocation2 + $0x198] sm:$0xff] %v673_v34 }
 0x122   : > { %881 = vst [vmem:[#allocation2 + $0x38] sm:$0xff] %v722_v36 }
 0x124   : > { %v770_v37 = vpop.f32.mrf.mxu2 }
 0x125   : > { %v771_v38 = vadd.f32 %v770_v37, %v4576_v47  ;;  %v819_v39 = vpop.f32.mrf.mxu3  ;;  %v674_v40 = vpop.f32.mrf.mxu0 }
 0x126   : > { %v820_v43 = vadd.f32 %v819_v39, %v4578_v48  ;;  %v675_v44 = vadd.f32 %v674_v40, %v4570_v41  ;;  %v723_v45 = vpop.f32.mrf.mxu1 }
 0x127   : > { %882 = vst [vmem:[#allocation2 + $0xc0] sm:$0xff] %v771_v38  ;;  %v724_v46 = vadd.f32 %v723_v45, %v4572_v42 }
 0x128   : > { %883 = vst [vmem:[#allocation2 + $0x1c0] sm:$0xff] %v820_v43 }
 0x129   : > { %884 = vst [vmem:[#allocation2 + $0x158] sm:$0xff] %v675_v44 }
 0x12a   : > { %885 = vst [vmem:[#allocation2 + $0x10] sm:$0xff] %v724_v46 }
 0x12c   : > { %v772_v49 = vpop.f32.mrf.mxu2  ;;  %891 = sbr.rel (%p3540_p5) target bundleno = 310 (0x136), region = 48 }
 0x12d   : > { %v773_v50 = vadd.f32 %v772_v49, %v4576_v47  ;;  %v821_v51 = vpop.f32.mrf.mxu3 }
 0x12e   : > { %v822_v52 = vadd.f32 %v821_v51, %v4578_v48 }
 0x12f   : > { %886 = vst [vmem:[#allocation2 + $0x58] sm:$0xff] %v773_v50 }
 0x130   : > { %887 = vst [vmem:[#allocation2 + $0xa0] sm:$0xff] %v822_v52 }
 0x131   : > { %v4280_v53 = vmov 0.0  }
 0x132   : > { %892 = vst [vmem:[#allocation3 + $0x8] sm:$0xff] %v4280_v53 }
 0x133   : > { %893 = vst [vmem:[#allocation3] sm:$0xff] %v4280_v53 }
 0x134   : > { %894 = vst [vmem:[#allocation4 + $0x8] sm:$0xff] %v4280_v53 }
 0x135   : > { %895 = vst [vmem:[#allocation4] sm:$0xff] %v4280_v53 }
 0x136 PF: > { %v3657_v41 = vld [vmem:[%s6167_s2 + $0xe0] sm:$0xf]  ;;  %v3811_v42 = vld [vmem:[%s6167_s2 + $0xec] sm:$0xf0]  ;;  %v3809_v47 = vld [vmem:[%s6167_s2 + $0xe4] sm:$0xf] }
 0x137   : > { %v4652_v48 = vor.u32 %v3811_v42, %v3657_v41  ;;  %v3659_v54 = vld [vmem:[%s6167_s2 + $0xf0] sm:$0xf0]  ;;  %v3810_v55 = vld [vmem:[%s6167_s2 + $0xec] sm:$0xf]  ;;  %v3667_v56 = vld [vmem:[%s6167_s2 + $0xf8] sm:$0xf0] }
 0x138   : > { %v4663_v57 = vor.u32 %v3809_v47, %v3659_v54  ;;  %v4665_v58 = vor.u32 %v3810_v55, %v3667_v56  ;;  %v3641_v59 = vld [vmem:[%s6167_s2 + $0xc0] sm:$0xf]  ;;  %v3807_v60 = vld [vmem:[%s6167_s2 + $0xcc] sm:$0xf0]  ;;  %v3805_v61 = vld [vmem:[%s6167_s2 + $0xc4] sm:$0xf] }
 0x139   : > { %1112 = vmatpush.bf16.msrb.mxu0 %v4652_v48  ;;  %v4677_v62 = vor.u32 %v3807_v60, %v3641_v59  ;;  %v3643_v63 = vld [vmem:[%s6167_s2 + $0xd0] sm:$0xf0]  ;;  %v3806_v0 = vld [vmem:[%s6167_s2 + $0xcc] sm:$0xf]  ;;  %v3651_v1 = vld [vmem:[%s6167_s2 + $0xd8] sm:$0xf0] }
 0x13a   : > { %1126 = vmatpush.bf16.msrb.mxu1 %v4663_v57  ;;  %1154 = vmatpush.bf16.msrb.mxu3 %v4665_v58  ;;  %v4690_v2 = vor.u32 %v3805_v61, %v3643_v63  ;;  %v4692_v3 = vor.u32 %v3806_v0, %v3651_v1  ;;  %v3665_v4 = vld [vmem:[%s6167_s2 + $0xe8] sm:$0xf]  ;;  %v3812_v5 = vld [vmem:[%s6167_s2 + $0xf4] sm:$0xf0]  ;;  %v3625_v6 = vld [vmem:[%s6167_s2 + $0xa0] sm:$0xf] }
 0x13b   : > { %v4703_v7 = vor.u32 %v3812_v5, %v3665_v4  ;;  %v3803_v8 = vld [vmem:[%s6167_s2 + $0xac] sm:$0xf0]  ;;  %v3801_v9 = vld [vmem:[%s6167_s2 + $0xa4] sm:$0xf]  ;;  %v3627_v10 = vld [vmem:[%s6167_s2 + $0xb0] sm:$0xf0] }
 0x13c   : > { %v3802_v11 = vld [vmem:[%s6167_s2 + $0xac] sm:$0xf]  ;;  %v3635_v12 = vld [vmem:[%s6167_s2 + $0xb8] sm:$0xf0]  ;;  %v3649_v13 = vld [vmem:[%s6167_s2 + $0xc8] sm:$0xf]  ;;  %v4725_v14 = vor.u32 %v3803_v8, %v3625_v6  ;;  %v4738_v18 = vor.u32 %v3801_v9, %v3627_v10 }
 0x13d   : > { %1113 = vmatpush.bf16.msrb.mxu0 %v4677_v62  ;;  %1140 = vmatpush.bf16.msrb.mxu2 %v4703_v7  ;;  %v3808_v15 = vld [vmem:[%s6167_s2 + $0xd4] sm:$0xf0]  ;;  %v3609_v16 = vld [vmem:[%s6167_s2 + $0x80] sm:$0xf]  ;;  %v3799_v17 = vld [vmem:[%s6167_s2 + $0x8c] sm:$0xf0]  ;;  %v4740_v19 = vor.u32 %v3802_v11, %v3635_v12 }
 0x13e   : > { %1127 = vmatpush.bf16.msrb.mxu1 %v4690_v2  ;;  %1155 = vmatpush.bf16.msrb.mxu3 %v4692_v3  ;;  %v4742_v20 = vor.u32 %v3808_v15, %v3649_v13  ;;  %v3797_v21 = vld [vmem:[%s6167_s2 + $0x84] sm:$0xf]  ;;  %v3611_v22 = vld [vmem:[%s6167_s2 + $0x90] sm:$0xf0]  ;;  %v3798_v23 = vld [vmem:[%s6167_s2 + $0x8c] sm:$0xf]  ;;  %v4764_v27 = vor.u32 %v3799_v17, %v3609_v16 }
 0x13f   : > { %v3619_v24 = vld [vmem:[%s6167_s2 + $0x98] sm:$0xf0]  ;;  %v3633_v25 = vld [vmem:[%s6167_s2 + $0xa8] sm:$0xf]  ;;  %v3804_v26 = vld [vmem:[%s6167_s2 + $0xb4] sm:$0xf0]  ;;  %v4776_v31 = vor.u32 %v3797_v21, %v3611_v22 }
 0x140   : > { %v4766_v28 = vor.u32 %v3804_v26, %v3633_v25  ;;  %v3593_v29 = vld [vmem:[%s6167_s2 + $0x60] sm:$0xf]  ;;  %v3795_v30 = vld [vmem:[%s6167_s2 + $0x6c] sm:$0xf0]  ;;  %v4778_v32 = vor.u32 %v3798_v23, %v3619_v24  ;;  %v3793_v33 = vld [vmem:[%s6167_s2 + $0x64] sm:$0xf] }
 0x141   : > { %1114 = vmatpush.bf16.msrb.mxu0 %v4725_v14  ;;  %1141 = vmatpush.bf16.msrb.mxu2 %v4742_v20  ;;  %v3617_v34 = vld [vmem:[%s6167_s2 + $0x88] sm:$0xf]  ;;  %v3800_v35 = vld [vmem:[%s6167_s2 + $0x94] sm:$0xf0]  ;;  %v3595_v36 = vld [vmem:[%s6167_s2 + $0x70] sm:$0xf0]  ;;  %v4800_v39 = vor.u32 %v3795_v30, %v3593_v29 }
 0x142   : > { %1128 = vmatpush.bf16.msrb.mxu1 %v4738_v18  ;;  %1156 = vmatpush.bf16.msrb.mxu3 %v4740_v19  ;;  %v3794_v37 = vld [vmem:[%s6167_s2 + $0x6c] sm:$0xf]  ;;  %v3603_v38 = vld [vmem:[%s6167_s2 + $0x78] sm:$0xf0]  ;;  %v4802_v40 = vor.u32 %v3800_v35, %v3617_v34  ;;  %v3577_v43 = vld [vmem:[%s6167_s2 + $0x40] sm:$0xf]  ;;  %v4812_v45 = vor.u32 %v3793_v33, %v3595_v36 }
 0x143   : > { %v3791_v44 = vld [vmem:[%s6167_s2 + $0x4c] sm:$0xf0]  ;;  %v4814_v46 = vor.u32 %v3794_v37, %v3603_v38  ;;  %v3789_v49 = vld [vmem:[%s6167_s2 + $0x44] sm:$0xf]  ;;  %v3601_v50 = vld [vmem:[%s6167_s2 + $0x68] sm:$0xf] }
 0x144   : > { %v3796_v51 = vld [vmem:[%s6167_s2 + $0x74] sm:$0xf0]  ;;  %v3579_v52 = vld [vmem:[%s6167_s2 + $0x50] sm:$0xf0]  ;;  %v3790_v53 = vld [vmem:[%s6167_s2 + $0x4c] sm:$0xf]  ;;  %v4836_v42 = vor.u32 %v3791_v44, %v3577_v43 }
 0x145   : > { %1115 = vmatpush.bf16.msrb.mxu0 %v4764_v27  ;;  %1142 = vmatpush.bf16.msrb.mxu2 %v4766_v28  ;;  %v3587_v41 = vld [vmem:[%s6167_s2 + $0x58] sm:$0xf0]  ;;  %v4838_v47 = vor.u32 %v3796_v51, %v3601_v50  ;;  %v3561_v54 = vld [vmem:[%s6167_s2 + $0x20] sm:$0xf]  ;;  %v3787_v55 = vld [vmem:[%s6167_s2 + $0x2c] sm:$0xf0]  ;;  %v4851_v59 = vor.u32 %v3789_v49, %v3579_v52 }
 0x146   : > { %1129 = vmatpush.bf16.msrb.mxu1 %v4776_v31  ;;  %1157 = vmatpush.bf16.msrb.mxu3 %v4778_v32  ;;  %v3785_v56 = vld [vmem:[%s6167_s2 + $0x24] sm:$0xf]  ;;  %v4853_v60 = vor.u32 %v3790_v53, %v3587_v41  ;;  %v3585_v61 = vld [vmem:[%s6167_s2 + $0x48] sm:$0xf]  ;;  %v3792_v63 = vld [vmem:[%s6167_s2 + $0x54] sm:$0xf0]  ;;  %v4872_v5 = vor.u32 %v3787_v55, %v3561_v54 }
 0x147   : > { %v3563_v0 = vld [vmem:[%s6167_s2 + $0x30] sm:$0xf0]  ;;  %v3786_v1 = vld [vmem:[%s6167_s2 + $0x2c] sm:$0xf]  ;;  %v3571_v4 = vld [vmem:[%s6167_s2 + $0x38] sm:$0xf0]  ;;  %v4874_v6 = vor.u32 %v3792_v63, %v3585_v61 }
 0x148   : > { %v3545_v8 = vld [vmem:[%s6167_s2] sm:$0xf]  ;;  %v3783_v9 = vld [vmem:[%s6167_s2 + $0xc] sm:$0xf0]  ;;  %v4884_v10 = vor.u32 %v3785_v56, %v3563_v0  ;;  %v4886_v11 = vor.u32 %v3786_v1, %v3571_v4  ;;  %v3781_v12 = vld [vmem:[%s6167_s2 + $0x4] sm:$0xf] }
 0x149   : > { %1116 = vmatpush.bf16.msrb.mxu0 %v4800_v39  ;;  %1143 = vmatpush.bf16.msrb.mxu2 %v4802_v40  ;;  %v3569_v13 = vld [vmem:[%s6167_s2 + $0x28] sm:$0xf]  ;;  %v3788_v15 = vld [vmem:[%s6167_s2 + $0x34] sm:$0xf0]  ;;  %v3547_v16 = vld [vmem:[%s6167_s2 + $0x10] sm:$0xf0]  ;;  %v4908_v22 = vor.u32 %v3783_v9, %v3545_v8 }
 0x14a   : > { %1130 = vmatpush.bf16.msrb.mxu1 %v4812_v45  ;;  %1158 = vmatpush.bf16.msrb.mxu3 %v4814_v46  ;;  %v3782_v17 = vld [vmem:[%s6167_s2 + $0xc] sm:$0xf]  ;;  %v3555_v21 = vld [vmem:[%s6167_s2 + $0x18] sm:$0xf0]  ;;  %v4912_v24 = vld [vmem:[#allocation3] sm:$0xff]  ;;  %v4914_v25 = vor.u32 %v3788_v15, %v3569_v13  ;;  %v4918_v26 = vor.u32 %v3781_v12, %v3547_v16  ;;  %p1302_p6 = scmp.lt.s32.totalorder %s4515_s16, 11 }
 0x14b   : > { %v4910_v23 = vld [vmem:[#allocation3 + $0x8] sm:$0xff]  ;;  %v4920_v29 = vor.u32 %v3782_v17, %v3555_v21  ;;  %v3784_v33 = vld [vmem:[%s6167_s2 + $0x14] sm:$0xf0]  ;;  %v943_v36 = vld [vmem:[#allocation2 + $0xb0] sm:$0xff]  ;;  %s1568_s15 = sadd.s32 1, %s4515_s16  ;;  %s1830_s19 = sadd.s32 2, %s4515_s16 }
 0x14c   : > { %v3553_v30 = vld [vmem:[%s6167_s2 + $0x8] sm:$0xf]  ;;  %v951_v34 = vpack.c.bf16 %v4912_v24, %v4910_v23  ;;  %v944_v37 = vld [vmem:[#allocation2 + $0x1b0] sm:$0xff]  ;;  %v946_v52 = vld [vmem:[#allocation2 + $0x18] sm:$0xff]  ;;  %s5002_s14 = scalar_select %p1302_p6, 1, 0 }
 0x14d   : > { %1117 = vmatpush.bf16.msrb.mxu0 %v4836_v42  ;;  %1144 = vmatpush.bf16.msrb.mxu2 %v4838_v47  ;;  %6182 = vst [vmem:[#allocation11_spill] sm:$0xff] %v4920_v29  ;;  %v4934_v35 = vor.u32 %v3784_v33, %v3553_v30  ;;  %v947_v53 = vld [vmem:[#allocation2 + $0x50] sm:$0xff]  ;;  %v948_v54 = vld [vmem:[#allocation2 + $0x168] sm:$0xff]  ;;  %v945_v15 = vld [vmem:[#allocation2 + $0xd8] sm:$0xff]  ;;  %p5119_p7 = scmp.lt.s32.totalorder %s1568_s15, 11  ;;  %p5225_p8 = scmp.lt.s32.totalorder %s1830_s19, 11 }
 0x14e   : > { %1131 = vmatpush.bf16.msrb.mxu1 %v4851_v59  ;;  %1159 = vmatpush.bf16.msrb.mxu3 %v4853_v60  ;;  %v950_v17 = vld [vmem:[#allocation2 + $0x48] sm:$0xff]  ;;  %s2092_s21 = sadd.s32 3, %s4515_s16  ;;  %s2354_s24 = sadd.s32 4, %s4515_s16 }
 0x14f   : > { %s1570_s18 = scalar_select %p5119_p7, 1, 0 }
 0x150   : > { %s1832_s27 = scalar_select %p5225_p8, 1, 0 }
 0x151   : > { %1118 = vmatpush.bf16.msrb.mxu0 %v4872_v5  ;;  %1145 = vmatpush.bf16.msrb.mxu2 %v4874_v6  ;;  %p5331_p9 = scmp.lt.s32.totalorder %s2092_s21, 11  ;;  %p5437_p10 = scmp.lt.s32.totalorder %s2354_s24, 11 }
 0x152   : > { %1132 = vmatpush.bf16.msrb.mxu1 %v4884_v10  ;;  %1160 = vmatpush.bf16.msrb.mxu3 %v4886_v11  ;;  %s2616_s11 = sadd.s32 5, %s4515_s16  ;;  %p6000_p0 = scmp.eq.s32.totalorder %s3369_s30, 1 }
 0x153   : > { %s2094_s23 = scalar_select %p5331_p9, 1, 0 }
 0x154   : > { %s2356_s26 = scalar_select %p5437_p10, 1, 0 }
 0x155   : > { %1119 = vmatpush.bf16.msrb.mxu0 %v4908_v22  ;;  %1146 = vmatpush.bf16.msrb.mxu2 %v4914_v25  ;;  %p5543_p11 = scmp.lt.s32.totalorder %s2616_s11, 11  ;;  %s4282_s24 = smov [#allocation5]  }
 0x156   : > { %1133 = vmatpush.bf16.msrb.mxu1 %v4918_v26  ;;  %1161 = vmatpush.bf16.msrb.mxu3 %v4920_v29  ;;  %s3231_s25 = sshll.u32 %s4282_s24, 4  ;;  %s3233_s10 = sshll.u32 %s6172_s7, 4  ;;  %s3232_s25 = int_to_ptr.vmem [resolvable:$true] %s3231_s25  ;;  %s3234_s10 = int_to_ptr.hbm [resolvable:$true] %s3233_s10 }
 0x157   : > { %s2618_s13 = scalar_select %p5543_p11, 1, 0 }
 0x158   : > { %1120 = vmatmul.bf16.vlgmr.msrb.gmra.mxu0 %v951_v34  ;;  %s4283_s30 = smov 128  }
 0x159   : > { %1378 = vmatpush.bf16.msra.mxu0 %v4652_v48  ;;  %1134 = vmatmul.bf16.vlgmr.msrb.gmra.mxu1 %v951_v34 }
 0x15a   : > { %1392 = vmatpush.bf16.msra.mxu1 %v4663_v57  ;;  %1420 = vmatpush.bf16.msra.mxu3 %v4665_v58 }
 0x15b   : > { %1162 = vmatmul.bf16.vlgmr.msrb.gmra.mxu3 %v951_v34  ;;  %1147 = vmatpush.bf16.msrb.mxu2 %v4934_v35 }
 0x15d   : > { %1379 = vmatpush.bf16.msra.mxu0 %v4677_v62 }
 0x15e   : > { %1393 = vmatpush.bf16.msra.mxu1 %v4690_v2  ;;  %1421 = vmatpush.bf16.msra.mxu3 %v4692_v3 }
 0x15f   : > { %1406 = vmatpush.bf16.msra.mxu2 %v4703_v7 }
 0x160   : > { %1148 = vmatmul.bf16.vlgmr.msrb.gmra.mxu2 %v951_v34 }
 0x161   : > { %1380 = vmatpush.bf16.msra.mxu0 %v4725_v14 }
 0x162   : > { %1394 = vmatpush.bf16.msra.mxu1 %v4738_v18  ;;  %1422 = vmatpush.bf16.msra.mxu3 %v4740_v19 }
 0x163   : > { %1407 = vmatpush.bf16.msra.mxu2 %v4742_v20 }
 0x165   : > { %1381 = vmatpush.bf16.msra.mxu0 %v4764_v27 }
 0x166   : > { %1395 = vmatpush.bf16.msra.mxu1 %v4776_v31  ;;  %1423 = vmatpush.bf16.msra.mxu3 %v4778_v32 }
 0x167   : > { %1408 = vmatpush.bf16.msra.mxu2 %v4766_v28 }
 0x169   : > { %1382 = vmatpush.bf16.msra.mxu0 %v4800_v39 }
 0x16a   : > { %1396 = vmatpush.bf16.msra.mxu1 %v4812_v45  ;;  %1424 = vmatpush.bf16.msra.mxu3 %v4814_v46 }
 0x16b   : > { %1409 = vmatpush.bf16.msra.mxu2 %v4802_v40 }
 0x16d   : > { %1383 = vmatpush.bf16.msra.mxu0 %v4836_v42 }
 0x16e   : > { %1397 = vmatpush.bf16.msra.mxu1 %v4851_v59  ;;  %1425 = vmatpush.bf16.msra.mxu3 %v4853_v60 }
 0x16f   : > { %1410 = vmatpush.bf16.msra.mxu2 %v4838_v47 }
 0x171   : > { %1384 = vmatpush.bf16.msra.mxu0 %v4872_v5 }
 0x172   : > { %1398 = vmatpush.bf16.msra.mxu1 %v4884_v10  ;;  %1426 = vmatpush.bf16.msra.mxu3 %v4886_v11 }
 0x173   : > { %1411 = vmatpush.bf16.msra.mxu2 %v4874_v6 }
 0x175   : > { %1385 = vmatpush.bf16.msra.mxu0 %v4908_v22 }
 0x176   : > { %1399 = vmatpush.bf16.msra.mxu1 %v4918_v26  ;;  %1427 = vmatpush.bf16.msra.mxu3 %v4920_v29 }
 0x177   : > { %1412 = vmatpush.bf16.msra.mxu2 %v4914_v25 }
 0x179   : > { %1640 = vmatpush.bf16.msrb.mxu0 %v4652_v48 }
 0x17a   : > { %1654 = vmatpush.bf16.msrb.mxu1 %v4663_v57  ;;  %1682 = vmatpush.bf16.msrb.mxu3 %v4665_v58 }
 0x17b   : > { %1413 = vmatpush.bf16.msra.mxu2 %v4934_v35 }
 0x17d   : > { %1641 = vmatpush.bf16.msrb.mxu0 %v4677_v62 }
 0x17e   : > { %1655 = vmatpush.bf16.msrb.mxu1 %v4690_v2  ;;  %1683 = vmatpush.bf16.msrb.mxu3 %v4692_v3 }
 0x17f   : > { %1668 = vmatpush.bf16.msrb.mxu2 %v4703_v7 }
 0x181   : > { %1642 = vmatpush.bf16.msrb.mxu0 %v4725_v14 }
 0x182   : > { %1656 = vmatpush.bf16.msrb.mxu1 %v4738_v18  ;;  %1684 = vmatpush.bf16.msrb.mxu3 %v4740_v19 }
 0x183   : > { %1669 = vmatpush.bf16.msrb.mxu2 %v4742_v20 }
 0x185   : > { %1643 = vmatpush.bf16.msrb.mxu0 %v4764_v27 }
 0x186   : > { %1657 = vmatpush.bf16.msrb.mxu1 %v4776_v31  ;;  %1685 = vmatpush.bf16.msrb.mxu3 %v4778_v32 }
 0x187   : > { %1670 = vmatpush.bf16.msrb.mxu2 %v4766_v28 }
 0x189   : > { %1644 = vmatpush.bf16.msrb.mxu0 %v4800_v39 }
 0x18a   : > { %1658 = vmatpush.bf16.msrb.mxu1 %v4812_v45  ;;  %1686 = vmatpush.bf16.msrb.mxu3 %v4814_v46 }
 0x18b   : > { %1671 = vmatpush.bf16.msrb.mxu2 %v4802_v40 }
 0x18d   : > { %1645 = vmatpush.bf16.msrb.mxu0 %v4836_v42 }
 0x18e   : > { %1659 = vmatpush.bf16.msrb.mxu1 %v4851_v59  ;;  %1687 = vmatpush.bf16.msrb.mxu3 %v4853_v60 }
 0x18f   : > { %1672 = vmatpush.bf16.msrb.mxu2 %v4838_v47 }
 0x191   : > { %1646 = vmatpush.bf16.msrb.mxu0 %v4872_v5 }
 0x192   : > { %1660 = vmatpush.bf16.msrb.mxu1 %v4884_v10  ;;  %1688 = vmatpush.bf16.msrb.mxu3 %v4886_v11 }
 0x193   : > { %1673 = vmatpush.bf16.msrb.mxu2 %v4874_v6 }
 0x195   : > { %1647 = vmatpush.bf16.msrb.mxu0 %v4908_v22 }
 0x196   : > { %1661 = vmatpush.bf16.msrb.mxu1 %v4918_v26  ;;  %1689 = vmatpush.bf16.msrb.mxu3 %v4920_v29 }
 0x197   : > { %1674 = vmatpush.bf16.msrb.mxu2 %v4914_v25 }
 0x19b   : > { %1675 = vmatpush.bf16.msrb.mxu2 %v4934_v35 }
 0x1d5   : > { %v1121_v38 = vpop.f32.mrf.mxu0 }
 0x1d6   : > { %v1168_v43 = vadd.f32 %v1121_v38, %v943_v36  ;;  %v1135_v44 = vpop.f32.mrf.mxu1 }
 0x1d7   : > { %v1169_v49 = vadd.f32 %v1135_v44, %v944_v37 }
 0x1d8   : > { %v3671_v50 = vmul.f32 -1.442695, %v1168_v43 }
 0x1d9   : > { %v3673_v51 = vmul.f32 -1.442695, %v1169_v49 }
 0x1da   : > { %3904 = vpow2.f32 %v3671_v50 }
 0x1db   : > { %3906 = vpow2.f32 %v3673_v51 }
 0x1dd   : > { %v1123_v56 = vpop.f32.mrf.mxu0 }
 0x1de   : > { %v1163_v41 = vpop.f32.mrf.mxu3  ;;  %v1172_v61 = vadd.f32 %v1123_v56, %v947_v53  ;;  %v1137_v63 = vpop.f32.mrf.mxu1 }
 0x1df   : > { %v1171_v55 = vadd.f32 %v1163_v41, %v946_v52  ;;  %v1173_v1 = vadd.f32 %v1137_v63, %v948_v54  ;;  %v1304_v54 = vstv %s5002_s14  ;;  %s2878_s14 = sadd.s32 6, %s4515_s16 }
 0x1e0   : > { %v3905_v4 = vpop.eup %3904  ;;  %v3672_v8 = vmul.f32 -1.442695, %v1172_v61  ;;  %vm5018_vm5 = vcmp.eq.s32.totalorder %v1304_v54, 1  ;;  %p5617_p12 = scmp.lt.s32.totalorder %s2878_s14, 11 }
 0x1e1   : > { %v3675_v0 = vmul.f32 -1.442695, %v1171_v55  ;;  %v3907_v9 = vpop.eup %3906  ;;  %v1182_v12 = vadd.f32 1.0, %v3905_v4  ;;  %v3674_v13 = vmul.f32 -1.442695, %v1173_v1 }
 0x1e2   : > { %v1220_v16 = vadd.f32 1.0, %v3907_v9  ;;  %v949_v9 = vld [vmem:[#allocation2 + $0x130] sm:$0xff]  ;;  %s2880_s17 = scalar_select %p5617_p12, 1, 0 }
 0x1e3   : > { %3908 = vpow2.f32 %v3675_v0  ;;  %v1149_v21 = vpop.f32.mrf.mxu2  ;;  %v1193_v41 = vand.u32 2147483647, %v1182_v12  ;;  %v1195_v63 = vand.u32 2147483648, %v1182_v12  ;;  %vm1189_vm0 = vweird.f32 %v1182_v12 }
 0x1e4   : > { %3910 = vpow2.f32 %v3672_v8  ;;  %v1170_v30 = vadd.f32 %v1149_v21, %v945_v15  ;;  %v1233_v56 = vand.u32 2147483648, %v1220_v16  ;;  %v1231_v1 = vand.u32 2147483647, %v1220_v16 }
 0x1e5   : > { %3912 = vrcp.f32 %v1182_v12  ;;  %vm1227_vm2 = vweird.f32 %v1220_v16  ;;  %vm5014_vm4 = vcmp.eq.f32.partialorder %v1193_v41, 8.507059e+37 }
 0x1e6   : > { %3914 = vrcp.f32 %v1220_v16  ;;  %v1165_v33 = vpop.f32.mrf.mxu3  ;;  %vm1232_vm7 = vcmp.eq.f32.partialorder %v1231_v1, 8.507059e+37 }
 0x1e7   : > { %3916 = vpow2.f32 %v3674_v13  ;;  %v1175_v34 = vadd.f32 %v1165_v33, %v950_v17 }
 0x1e8   : > { %3918 = vtanh.f32 %v1170_v30  ;;  %v1370_v30 = vld [vmem:[#allocation2 + $0x110] sm:$0xff] }
 0x1e9   : > { %v3909_v36 = vpop.eup %3908  ;;  %v3676_v37 = vmul.f32 -1.442695, %v1175_v34  ;;  %v1234_v34 = vor.u32 1.1754944e-38, %v1233_v56 }
 0x1ea   : > { %v3911_v38 = vpop.eup %3910  ;;  %v5004_v43 = vadd.f32 1.0, %v3909_v36 }
 0x1eb   : > { %v3913_v44 = vpop.eup %3912  ;;  %v5006_v49 = vadd.f32 1.0, %v3911_v38  ;;  %3920 = vpow2.f32 %v3676_v37  ;;  %v1151_v13 = vpop.f32.mrf.mxu2  ;;  %v1196_v37 = vor.u32 1.1754944e-38, %v1195_v63 }
 0x1ec   : > { %v3915_v50 = vpop.eup %3914  ;;  %v1185_v51 = vmul.f32 %v3913_v44, %v1182_v12  ;;  %3922 = vrcp.f32 %v5004_v43  ;;  %vm1190_vm1 = vweird.f32 %v3913_v44  ;;  %v1174_v41 = vadd.f32 %v1151_v13, %v949_v9 }
 0x1ed   : > { %v3917_v52 = vpop.eup %3916  ;;  %v1223_v53 = vmul.f32 %v3915_v50, %v1220_v16  ;;  %3924 = vrcp.f32 %v5006_v49  ;;  %vm1228_vm3 = vweird.f32 %v3915_v50  ;;  %vm1191_vm6 = vmor %vm1189_vm0, %vm1190_vm1  ;;  %vm1267_vm9 = vweird.f32 %v5004_v43 }
 0x1ee   : > { %v1186_v55 = vsub.f32 1.0, %v1185_v51  ;;  %v5011_v61 = vadd.f32 1.0, %v3917_v52  ;;  %v3919_v4 = vpop.eup %3918  ;;  %vm1229_vm8 = vmor %vm1227_vm2, %vm1228_vm3  ;;  %v1210_v12 = vand.u32 2147483648, %v5006_v49  ;;  %vm1204_vm10 = vweird.f32 %v5006_v49 }
 0x1ef   : > { %v1224_v0 = vsub.f32 1.0, %v1223_v53 }
 0x1f0   : > { %3926 = vrcp.f32 %v5011_v61  ;;  %v1187_v8 = vmul.f32 %v3913_v44, %v1186_v55  ;;  %v938_v55 = vld [vmem:[#allocation4 + $0x8] sm:$0xff]  ;;  %vm1242_vm0 = vweird.f32 %v5011_v61 }
 0x1f1   : > { %v3921_v15 = vpop.eup %3920  ;;  %v1225_v17 = vmul.f32 %v3915_v50, %v1224_v0 }
 0x1f2   : > { %v5022_v33 = vpop.eup %3922  ;;  %v1188_v36 = vadd.f32 %v3913_v44, %v1187_v8  ;;  %v5024_v38 = vadd.f32 1.0, %v3921_v15 }
 0x1f3   : > { %v3925_v51 = vpop.eup %3924  ;;  %v1263_v52 = vmul.f32 %v5022_v33, %v5004_v43  ;;  %v1226_v53 = vadd.f32 %v3915_v50, %v1225_v17  ;;  %v1208_v17 = vand.u32 2147483647, %v5006_v49  ;;  %vm1268_vm12 = vweird.f32 %v5022_v33 }
 0x1f4   : > { %v1200_v54 = vmul.f32 %v3925_v51, %v5006_v49  ;;  %v1192_v56 = vsel %vm1191_vm6, %v3913_v44, %v1188_v36  ;;  %3928 = vrcp.f32 %v5024_v38  ;;  %vm1205_vm11 = vweird.f32 %v3925_v51  ;;  %vm5058_vm1 = vmor %vm1267_vm9, %vm1268_vm12 }
 0x1f5   : > { %v1264_v63 = vsub.f32 1.0, %v1263_v52  ;;  %v1197_v0 = vsel %vm5014_vm4, %v1196_v37, %v1192_v56  ;;  %v1230_v8 = vsel %vm1229_vm8, %v3915_v50, %v1226_v53  ;;  %3930 = vtanh.f32 %v1174_v41  ;;  %vm1206_vm14 = vmor %vm1204_vm10, %vm1205_vm11 }
 0x1f6   : > { %v3927_v15 = vpop.eup %3926  ;;  %v1201_v1 = vsub.f32 1.0, %v1200_v54  ;;  %v1235_v9 = vsel %vm1232_vm7, %v1234_v34, %v1230_v8  ;;  %v1294_v16 = vmul.f32 %v3919_v4, %v1197_v0  ;;  %v1273_v50 = vand.u32 2147483648, %v5004_v43 }
 0x1f7   : > { %v1238_v13 = vmul.f32 %v3927_v15, %v5011_v61  ;;  %v1292_v44 = vmul.f32 %v1235_v9, %v938_v55  ;;  %v1265_v36 = vmul.f32 %v5022_v33, %v1264_v63  ;;  %v1248_v37 = vand.u32 2147483648, %v5011_v61 }
 0x1f8   : > { %v1202_v52 = vmul.f32 %v3925_v51, %v1201_v1  ;;  %v1211_v34 = vor.u32 1.1754944e-38, %v1210_v12  ;;  %v1246_v56 = vand.u32 2147483647, %v5011_v61  ;;  %vm1243_vm13 = vweird.f32 %v3927_v15 }
 0x1f9   : > { %v1239_v21 = vsub.f32 1.0, %v1238_v13  ;;  %v1296_v53 = vadd.f32 %v1294_v16, %v1292_v44  ;;  %v1266_v0 = vadd.f32 %v5022_v33, %v1265_v36  ;;  %vm1209_vm15 = vcmp.eq.f32.partialorder %v1208_v17, 8.507059e+37  ;;  %vm1244_vm2 = vmor %vm1242_vm0, %vm1243_vm13  ;;  %v939_v17 = vld [vmem:[#allocation4] sm:$0xff] }
 0x1fa   : > { %v3929_v4 = vpop.eup %3928  ;;  %v1203_v54 = vadd.f32 %v3925_v51, %v1202_v52  ;;  %v1271_v12 = vand.u32 2147483647, %v5004_v43  ;;  %vm1247_vm3 = vcmp.eq.f32.partialorder %v1246_v56, 8.507059e+37  ;;  %v1274_v52 = vor.u32 1.1754944e-38, %v1273_v50 }
 0x1fb   : > { %v1240_v8 = vmul.f32 %v3927_v15, %v1239_v21  ;;  %3932 = vtanh.f32 %v1296_v53  ;;  %v1278_v41 = vmul.f32 %v3929_v4, %v5024_v38  ;;  %v5053_v1 = vsel %vm5018_vm5, %v1296_v53, %v938_v55  ;;  %v3931_v49 = vpop.eup %3930 }
 0x1fc   : > { %v1207_v63 = vsel %vm1206_vm14, %v3925_v51, %v1203_v54  ;;  %v1249_v51 = vor.u32 1.1754944e-38, %v1248_v37  ;;  %v1270_v55 = vsel %vm5058_vm1, %v5022_v33, %v1266_v0  ;;  %vm1272_vm4 = vcmp.eq.f32.partialorder %v1271_v12, 8.507059e+37 }
 0x1fd   : > { %v1279_v9 = vsub.f32 1.0, %v1278_v41  ;;  %v1212_v16 = vsel %vm1209_vm15, %v1211_v34, %v1207_v63  ;;  %v1241_v13 = vadd.f32 %v3927_v15, %v1240_v8  ;;  %v1275_v54 = vsel %vm1272_vm4, %v1274_v52, %v1270_v55  ;;  %v1372_v55 = vld [vmem:[#allocation2 + $0x98] sm:$0xff] }
 0x1fe   : > { %v1295_v61 = vmul.f32 %v3931_v49, %v1212_v16  ;;  %vm1283_vm6 = vweird.f32 %v3929_v4  ;;  %vm1282_vm7 = vweird.f32 %v5024_v38  ;;  %v1286_v50 = vand.u32 2147483647, %v5024_v38 }
 0x1ff   : > { %v1245_v36 = vsel %vm1244_vm2, %v3927_v15, %v1241_v13  ;;  %v1280_v53 = vmul.f32 %v3929_v4, %v1279_v9  ;;  %v1288_v15 = vand.u32 2147483648, %v5024_v38  ;;  %vm1284_vm8 = vmor %vm1282_vm7, %vm1283_vm6 }
 0x200   : > { %v1250_v21 = vsel %vm1247_vm3, %v1249_v51, %v1245_v36  ;;  %vm1287_vm9 = vcmp.eq.f32.partialorder %v1286_v50, 8.507059e+37  ;;  %v1373_v36 = vld [vmem:[#allocation2 + $0x120] sm:$0xff] }
 0x201   : > { %v3933_v43 = vpop.eup %3932  ;;  %v1293_v34 = vmul.f32 %v1250_v21, %v939_v17  ;;  %v1281_v63 = vadd.f32 %v3929_v4, %v1280_v53  ;;  %v1289_v0 = vor.u32 1.1754944e-38, %v1288_v15 }
 0x202   : > { %v1300_v8 = vmul.f32 %v3933_v43, %v1275_v54 }
 0x203   : > { %v1297_v41 = vadd.f32 %v1295_v61, %v1293_v34  ;;  %v1285_v56 = vsel %vm1284_vm8, %v3929_v4, %v1281_v63  ;;  %v1374_v61 = vld [vmem:[#allocation2 + $0x150] sm:$0xff] }
 0x204   : > { %v5068_v37 = vsel %vm5018_vm5, %v1300_v8, %v4910_v23  ;;  %v1290_v12 = vsel %vm1287_vm9, %v1289_v0, %v1285_v56 }
 0x205   : > { %6189 = vst [vmem:[#allocation12_spill] sm:$0xff] %v5068_v37  ;;  %3934 = vtanh.f32 %v1297_v41  ;;  %1310 = vadd.xlane.f32.xlu0 %v5068_v37  ;;  %v5073_v33 = vsel %vm5018_vm5, %v1297_v41, %v939_v17 }
 0x20b   : > { %v3935_v23 = vpop.eup %3934 }
 0x20c   : > { %v1301_v9 = vmul.f32 %v3935_v23, %v1290_v12  ;;  %v1371_v12 = vld [vmem:[#allocation2 + $0x118] sm:$0xff] }
 0x20e   : > { %v5081_v16 = vsel %vm5018_vm5, %v1301_v9, %v4912_v24  ;;  %v1369_v24 = vld [vmem:[#allocation2 + $0x180] sm:$0xff] }
 0x20f   : > { %6190 = vst [vmem:[#allocation13_spill] sm:$0xff] %v5081_v16  ;;  %1312 = vadd.xlane.f32.xlu0 %v5081_v16  ;;  %v1377_v13 = vpack.c.bf16 %v5081_v16, %v5068_v37  ;;  %v1376_v9 = vld [vmem:[#allocation2 + $0x60] sm:$0xff] }
 0x211   : > { %1386 = vmatmul.bf16.vlgmr.msra.gmra.mxu0 %v1377_v13  ;;  %1400 = vmatmul.bf16.vlgmr.msra.gmra.mxu1 %v1377_v13 }
 0x212   : > { %1414 = vmatmul.bf16.vlgmr.msra.gmra.mxu2 %v1377_v13  ;;  %1428 = vmatmul.bf16.vlgmr.msra.gmra.mxu3 %v1377_v13 }
 0x213   : > { %1902 = vmatpush.bf16.msra.mxu0 %v4652_v48  ;;  %1916 = vmatpush.bf16.msra.mxu1 %v4663_v57 }
 0x214   : > { %1930 = vmatpush.bf16.msra.mxu2 %v4703_v7  ;;  %1944 = vmatpush.bf16.msra.mxu3 %v4665_v58 }
 0x217   : > { %1903 = vmatpush.bf16.msra.mxu0 %v4677_v62  ;;  %1917 = vmatpush.bf16.msra.mxu1 %v4690_v2 }
 0x218   : > { %1931 = vmatpush.bf16.msra.mxu2 %v4742_v20  ;;  %1945 = vmatpush.bf16.msra.mxu3 %v4692_v3 }
 0x21b   : > { %1904 = vmatpush.bf16.msra.mxu0 %v4725_v14  ;;  %1918 = vmatpush.bf16.msra.mxu1 %v4738_v18 }
 0x21c   : > { %1932 = vmatpush.bf16.msra.mxu2 %v4766_v28  ;;  %1946 = vmatpush.bf16.msra.mxu3 %v4740_v19 }
 0x21f   : > { %1905 = vmatpush.bf16.msra.mxu0 %v4764_v27  ;;  %1919 = vmatpush.bf16.msra.mxu1 %v4776_v31 }
 0x220   : > { %1933 = vmatpush.bf16.msra.mxu2 %v4802_v40  ;;  %1947 = vmatpush.bf16.msra.mxu3 %v4778_v32 }
 0x223   : > { %1906 = vmatpush.bf16.msra.mxu0 %v4800_v39  ;;  %1920 = vmatpush.bf16.msra.mxu1 %v4812_v45 }
 0x224   : > { %1934 = vmatpush.bf16.msra.mxu2 %v4838_v47  ;;  %1948 = vmatpush.bf16.msra.mxu3 %v4814_v46 }
 0x227   : > { %1907 = vmatpush.bf16.msra.mxu0 %v4836_v42  ;;  %1921 = vmatpush.bf16.msra.mxu1 %v4851_v59 }
 0x228   : > { %1935 = vmatpush.bf16.msra.mxu2 %v4874_v6  ;;  %1949 = vmatpush.bf16.msra.mxu3 %v4853_v60 }
 0x22b   : > { %1908 = vmatpush.bf16.msra.mxu0 %v4872_v5  ;;  %1922 = vmatpush.bf16.msra.mxu1 %v4884_v10 }
 0x22c   : > { %1936 = vmatpush.bf16.msra.mxu2 %v4914_v25  ;;  %1950 = vmatpush.bf16.msra.mxu3 %v4886_v11 }
 0x22f   : > { %1909 = vmatpush.bf16.msra.mxu0 %v4908_v22  ;;  %1923 = vmatpush.bf16.msra.mxu1 %v4918_v26 }
 0x230   : > { %1937 = vmatpush.bf16.msra.mxu2 %v4934_v35  ;;  %1951 = vmatpush.bf16.msra.mxu3 %v4920_v29 }
 0x28e   : > { %v1387_v38 = vpop.f32.mrf.mxu0  ;;  %v1401_v4 = vpop.f32.mrf.mxu1 }
 0x28f   : > { %v1434_v44 = vadd.f32 %v1387_v38, %v1369_v24  ;;  %v1435_v49 = vadd.f32 %v1401_v4, %v1370_v30 }
 0x291   : > { %v3677_v51 = vmul.f32 -1.442695, %v1434_v44  ;;  %v3679_v17 = vmul.f32 -1.442695, %v1435_v49 }
 0x293   : > { %3936 = vpow2.f32 %v3677_v51 }
 0x294   : > { %3938 = vpow2.f32 %v3679_v17 }
 0x295   : > { %v1429_v52 = vpop.f32.mrf.mxu3  ;;  %v1415_v56 = vpop.f32.mrf.mxu2 }
 0x296   : > { %v1437_v21 = vadd.f32 %v1429_v52, %v1372_v55  ;;  %v1389_v53 = vpop.f32.mrf.mxu0  ;;  %v1403_v43 = vpop.f32.mrf.mxu1  ;;  %v1436_v24 = vadd.f32 %v1415_v56, %v1371_v12 }
 0x297   : > { %v1438_v34 = vadd.f32 %v1389_v53, %v1373_v36  ;;  %v1439_v54 = vadd.f32 %v1403_v43, %v1374_v61  ;;  %v5131_v43 = vstv %s1570_s18  ;;  %s3140_s18 = sadd.s32 7, %s4515_s16 }
 0x298   : > { %v3681_v8 = vmul.f32 -1.442695, %v1437_v21  ;;  %v1375_v21 = vld [vmem:[#allocation2 + $0x108] sm:$0xff]  ;;  %vm1572_vm12 = vcmp.eq.s32.totalorder %v5131_v43, 1  ;;  %v6196_v43 = vld [vmem:[#allocation11_spill] sm:$0xff]  ;;  %p5753_p13 = scmp.lt.s32.totalorder %s3140_s18, 11 }
 0x299   : > { %v3937_v41 = vpop.eup %3936  ;;  %v3678_v63 = vmul.f32 -1.442695, %v1438_v34  ;;  %v3680_v0 = vmul.f32 -1.442695, %v1439_v54  ;;  %s4285_s18 = smov [#allocation7]  }
 0x29a   : > { %v3939_v15 = vpop.eup %3938  ;;  %v1448_v50 = vadd.f32 1.0, %v3937_v41  ;;  %3940 = vpow2.f32 %v3681_v8  ;;  %s3142_s16 = scalar_select %p5753_p13, 1, 0 }
 0x29b   : > { %v1486_v23 = vadd.f32 1.0, %v3939_v15  ;;  %3942 = vpow2.f32 %v3678_v63  ;;  %s3248_s19 = sshll.u32 %s4285_s18, 4  ;;  %s3249_s19 = int_to_ptr.vmem [resolvable:$true] %s3248_s19 }
 0x29c   : > { %3944 = vrcp.f32 %v1448_v50  ;;  %v1459_v54 = vand.u32 2147483647, %v1448_v50  ;;  %v1461_v8 = vand.u32 2147483648, %v1448_v50  ;;  %vm1455_vm11 = vweird.f32 %v1448_v50 }
 0x29d   : > { %3946 = vrcp.f32 %v1486_v23  ;;  %v1431_v13 = vpop.f32.mrf.mxu3  ;;  %v1417_v53 = vpop.f32.mrf.mxu2  ;;  %v1499_v15 = vand.u32 2147483648, %v1486_v23  ;;  %v1497_v56 = vand.u32 2147483647, %v1486_v23  ;;  %vm1493_vm13 = vweird.f32 %v1486_v23 }
 0x29e   : > { %3948 = vpow2.f32 %v3680_v0  ;;  %v1441_v30 = vadd.f32 %v1431_v13, %v1376_v9  ;;  %v1440_v12 = vadd.f32 %v1417_v53, %v1375_v21  ;;  %vm1460_vm14 = vcmp.eq.f32.partialorder %v1459_v54, 8.507059e+37 }
 0x29f   : > { %3950 = vtanh.f32 %v1436_v24  ;;  %vm1498_vm0 = vcmp.eq.f32.partialorder %v1497_v56, 8.507059e+37 }
 0x2a0   : > { %v3941_v38 = vpop.eup %3940  ;;  %v3682_v17 = vmul.f32 -1.442695, %v1441_v30 }
 0x2a1   : > { %v3943_v4 = vpop.eup %3942  ;;  %v5125_v44 = vadd.f32 1.0, %v3941_v38  ;;  %v1462_v38 = vor.u32 1.1754944e-38, %v1461_v8 }
 0x2a2   : > { %v3945_v49 = vpop.eup %3944  ;;  %v5127_v51 = vadd.f32 1.0, %v3943_v4 }
 0x2a3   : > { %v3947_v55 = vpop.eup %3946  ;;  %v1451_v36 = vmul.f32 %v3945_v49, %v1448_v50  ;;  %3952 = vrcp.f32 %v5125_v44  ;;  %vm1456_vm5 = vweird.f32 %v3945_v49  ;;  %vm1533_vm9 = vweird.f32 %v5125_v44 }
 0x2a4   : > { %v3949_v61 = vpop.eup %3948  ;;  %v1489_v52 = vmul.f32 %v3947_v55, %v1486_v23  ;;  %3954 = vrcp.f32 %v5127_v51  ;;  %vm1494_vm10 = vweird.f32 %v3947_v55  ;;  %vm1457_vm15 = vmor %vm1455_vm11, %vm1456_vm5  ;;  %vm1470_vm2 = vweird.f32 %v5127_v51 }
 0x2a5   : > { %v1452_v34 = vsub.f32 1.0, %v1451_v36  ;;  %v5133_v41 = vadd.f32 1.0, %v3949_v61  ;;  %3956 = vpow2.f32 %v3682_v17  ;;  %v3951_v9 = vpop.eup %3950  ;;  %v1500_v36 = vor.u32 1.1754944e-38, %v1499_v15  ;;  %vm1495_vm1 = vmor %vm1493_vm13, %vm1494_vm10 }
 0x2a6   : > { %v1490_v63 = vsub.f32 1.0, %v1489_v52  ;;  %v1476_v54 = vand.u32 2147483648, %v5127_v51 }
 0x2a7   : > { %v1453_v0 = vmul.f32 %v3945_v49, %v1452_v34  ;;  %3958 = vrcp.f32 %v5133_v41  ;;  %vm1508_vm5 = vweird.f32 %v5133_v41 }
 0x2a8   : > { %v1491_v13 = vmul.f32 %v3947_v55, %v1490_v63  ;;  %3960 = vtanh.f32 %v1440_v12 }
 0x2a9   : > { %v5137_v24 = vpop.eup %3952  ;;  %v1454_v30 = vadd.f32 %v3945_v49, %v1453_v0 }
 0x2aa   : > { %v3955_v4 = vpop.eup %3954  ;;  %v1492_v17 = vadd.f32 %v3947_v55, %v1491_v13  ;;  %v1529_v61 = vmul.f32 %v5137_v24, %v5125_v44  ;;  %vm1534_vm4 = vweird.f32 %v5137_v24 }
 0x2ab   : > { %v1458_v52 = vsel %vm1457_vm15, %v3945_v49, %v1454_v30  ;;  %v1466_v50 = vmul.f32 %v3955_v4, %v5127_v51  ;;  %v3957_v23 = vpop.eup %3956  ;;  %v1474_v30 = vand.u32 2147483647, %v5127_v51  ;;  %vm1471_vm3 = vweird.f32 %v3955_v4  ;;  %vm5165_vm10 = vmor %vm1533_vm9, %vm1534_vm4 }
 0x2ac   : > { %v1463_v21 = vsel %vm1460_vm14, %v1462_v38, %v1458_v52  ;;  %v1496_v53 = vsel %vm1495_vm1, %v3947_v55, %v1492_v17  ;;  %v1530_v34 = vsub.f32 1.0, %v1529_v61  ;;  %v1527_v0 = vadd.f32 1.0, %v3957_v23  ;;  %vm1472_vm7 = vmor %vm1470_vm2, %vm1471_vm3 }
 0x2ad   : > { %v3959_v8 = vpop.eup %3958  ;;  %v1501_v63 = vsel %vm1498_vm0, %v1500_v36, %v1496_v53  ;;  %v1560_v15 = vmul.f32 %v3951_v9, %v1463_v21  ;;  %v1467_v56 = vsub.f32 1.0, %v1466_v50  ;;  %v1539_v55 = vand.u32 2147483648, %v5125_v44 }
 0x2ae   : > { %v1558_v13 = vmul.f32 %v1501_v63, %v5053_v1  ;;  %v1504_v49 = vmul.f32 %v3959_v8, %v5133_v41  ;;  %v1531_v29 = vmul.f32 %v5137_v24, %v1530_v34  ;;  %3962 = vrcp.f32 %v1527_v0  ;;  %v3961_v61 = vpop.eup %3960 }
 0x2af   : > { %v1468_v12 = vmul.f32 %v3955_v4, %v1467_v56  ;;  %v1514_v36 = vand.u32 2147483648, %v5133_v41  ;;  %v1477_v9 = vor.u32 1.1754944e-38, %v1476_v54  ;;  %v1512_v50 = vand.u32 2147483647, %v5133_v41 }
 0x2b0   : > { %v1562_v38 = vadd.f32 %v1560_v15, %v1558_v13  ;;  %v1505_v17 = vsub.f32 1.0, %v1504_v49  ;;  %v1532_v23 = vadd.f32 %v5137_v24, %v1531_v29  ;;  %vm1509_vm6 = vweird.f32 %v3959_v8  ;;  %v1632_v15 = vld [vmem:[#allocation2 + $0x188] sm:$0xff] }
 0x2b1   : > { %v1469_v52 = vadd.f32 %v3955_v4, %v1468_v12  ;;  %vm1475_vm8 = vcmp.eq.f32.partialorder %v1474_v30, 8.507059e+37  ;;  %v1537_v29 = vand.u32 2147483647, %v5125_v44  ;;  %vm1510_vm11 = vmor %vm1508_vm5, %vm1509_vm6  ;;  %v1515_v56 = vor.u32 1.1754944e-38, %v1514_v36 }
 0x2b2   : > { %3964 = vtanh.f32 %v1562_v38  ;;  %v1506_v21 = vmul.f32 %v3959_v8, %v1505_v17  ;;  %v5160_v53 = vsel %vm1572_vm12, %v1562_v38, %v5053_v1  ;;  %v1536_v1 = vsel %vm5165_vm10, %v5137_v24, %v1532_v23 }
 0x2b3   : > { %v1473_v34 = vsel %vm1472_vm7, %v3955_v4, %v1469_v52  ;;  %v1540_v4 = vor.u32 1.1754944e-38, %v1539_v55  ;;  %vm1513_vm13 = vcmp.eq.f32.partialorder %v1512_v50, 8.507059e+37  ;;  %vm1538_vm14 = vcmp.eq.f32.partialorder %v1537_v29, 8.507059e+37 }
 0x2b4   : > { %v1478_v54 = vsel %vm1475_vm8, %v1477_v9, %v1473_v34  ;;  %v1507_v63 = vadd.f32 %v3959_v8, %v1506_v21  ;;  %v3963_v51 = vpop.eup %3962  ;;  %v1554_v55 = vand.u32 2147483648, %v1527_v0  ;;  %vm1548_vm0 = vweird.f32 %v1527_v0 }
 0x2b5   : > { %v1561_v49 = vmul.f32 %v3961_v61, %v1478_v54  ;;  %v1544_v44 = vmul.f32 %v3963_v51, %v1527_v0  ;;  %v1541_v17 = vsel %vm1538_vm14, %v1540_v4, %v1536_v1  ;;  %vm1549_vm15 = vweird.f32 %v3963_v51 }
 0x2b6   : > { %v1511_v13 = vsel %vm1510_vm11, %v3959_v8, %v1507_v63  ;;  %v1552_v61 = vand.u32 2147483647, %v1527_v0  ;;  %vm1550_vm1 = vmor %vm1548_vm0, %vm1549_vm15  ;;  %v1555_v23 = vor.u32 1.1754944e-38, %v1554_v55  ;;  %v1631_v0 = vld [vmem:[#allocation2 + $0xe0] sm:$0xff] }
 0x2b7   : > { %v1516_v30 = vsel %vm1513_vm13, %v1515_v56, %v1511_v13  ;;  %v1545_v38 = vsub.f32 1.0, %v1544_v44  ;;  %v1634_v44 = vld [vmem:[#allocation2 + $0x140] sm:$0xff] }
 0x2b8   : > { %v3965_v41 = vpop.eup %3964  ;;  %v1559_v12 = vmul.f32 %v1516_v30, %v5073_v33  ;;  %vm1553_vm2 = vcmp.eq.f32.partialorder %v1552_v61, 8.507059e+37  ;;  %v1635_v30 = vld [vmem:[#allocation2 + $0x80] sm:$0xff] }
 0x2b9   : > { %v1566_v9 = vmul.f32 %v3965_v41, %v1541_v17  ;;  %v1546_v21 = vmul.f32 %v3963_v51, %v1545_v38  ;;  %v1636_v41 = vld [vmem:[#allocation2 + $0x1a8] sm:$0xff] }
 0x2ba   : > { %v1563_v52 = vadd.f32 %v1561_v49, %v1559_v12 }
 0x2bb   : > { %v5176_v36 = vsel %vm1572_vm12, %v1566_v9, %v5068_v37  ;;  %v1547_v8 = vadd.f32 %v3963_v51, %v1546_v21 }
 0x2bc   : > { %6194 = vst [vmem:[#allocation14_spill] sm:$0xff] %v5176_v36  ;;  %3966 = vtanh.f32 %v1563_v52  ;;  %1577 = vadd.xlane.f32.xlu1 %v5176_v36  ;;  %v5182_v24 = vsel %vm1572_vm12, %v1563_v52, %v5073_v33 }
 0x2bd   : > { %v1551_v50 = vsel %vm1550_vm1, %v3963_v51, %v1547_v8 }
 0x2be   : > { %v1556_v29 = vsel %vm1553_vm2, %v1555_v23, %v1551_v50 }
 0x2c2   : > { %v3967_v34 = vpop.eup %3966 }
 0x2c3   : > { %v1567_v54 = vmul.f32 %v3967_v34, %v1556_v29 }
 0x2c5   : > { %v5187_v63 = vsel %vm1572_vm12, %v1567_v54, %v5081_v16 }
 0x2c6   : > { %6195 = vst [vmem:[#allocation15_spill] sm:$0xff] %v5187_v63  ;;  %1579 = vadd.xlane.f32.xlu1 %v5187_v63  ;;  %v1639_v33 = vpack.c.bf16 %v5187_v63, %v5176_v36 }
 0x2c8   : > { %1648 = vmatmul.bf16.vlgmr.msrb.gmra.mxu0 %v1639_v33  ;;  %1662 = vmatmul.bf16.vlgmr.msrb.gmra.mxu1 %v1639_v33 }
 0x2c9   : > { %1676 = vmatmul.bf16.vlgmr.msrb.gmra.mxu2 %v1639_v33  ;;  %1690 = vmatmul.bf16.vlgmr.msrb.gmra.mxu3 %v1639_v33  ;;  %v1633_v33 = vld [vmem:[#allocation2 + $0x138] sm:$0xff] }
 0x2ca   : > { %2164 = vmatpush.bf16.msrb.mxu0 %v4652_v48  ;;  %2178 = vmatpush.bf16.msrb.mxu1 %v4663_v57 }
 0x2cb   : > { %2192 = vmatpush.bf16.msrb.mxu2 %v4703_v7  ;;  %2206 = vmatpush.bf16.msrb.mxu3 %v4665_v58 }
 0x2ce   : > { %2165 = vmatpush.bf16.msrb.mxu0 %v4677_v62  ;;  %2179 = vmatpush.bf16.msrb.mxu1 %v4690_v2 }
 0x2cf   : > { %2193 = vmatpush.bf16.msrb.mxu2 %v4742_v20  ;;  %2207 = vmatpush.bf16.msrb.mxu3 %v4692_v3 }
 0x2d2   : > { %2166 = vmatpush.bf16.msrb.mxu0 %v4725_v14  ;;  %2180 = vmatpush.bf16.msrb.mxu1 %v4738_v18 }
 0x2d3   : > { %2194 = vmatpush.bf16.msrb.mxu2 %v4766_v28  ;;  %2208 = vmatpush.bf16.msrb.mxu3 %v4740_v19 }
 0x2d6   : > { %2167 = vmatpush.bf16.msrb.mxu0 %v4764_v27  ;;  %2181 = vmatpush.bf16.msrb.mxu1 %v4776_v31 }
 0x2d7   : > { %2195 = vmatpush.bf16.msrb.mxu2 %v4802_v40  ;;  %2209 = vmatpush.bf16.msrb.mxu3 %v4778_v32 }
 0x2da   : > { %2168 = vmatpush.bf16.msrb.mxu0 %v4800_v39  ;;  %2182 = vmatpush.bf16.msrb.mxu1 %v4812_v45 }
 0x2db   : > { %2196 = vmatpush.bf16.msrb.mxu2 %v4838_v47  ;;  %2210 = vmatpush.bf16.msrb.mxu3 %v4814_v46 }
 0x2de   : > { %2169 = vmatpush.bf16.msrb.mxu0 %v4836_v42  ;;  %2183 = vmatpush.bf16.msrb.mxu1 %v4851_v59 }
 0x2df   : > { %2197 = vmatpush.bf16.msrb.mxu2 %v4874_v6  ;;  %2211 = vmatpush.bf16.msrb.mxu3 %v4853_v60 }
 0x2e2   : > { %2170 = vmatpush.bf16.msrb.mxu0 %v4872_v5  ;;  %2184 = vmatpush.bf16.msrb.mxu1 %v4884_v10 }
 0x2e3   : > { %2198 = vmatpush.bf16.msrb.mxu2 %v4914_v25  ;;  %2212 = vmatpush.bf16.msrb.mxu3 %v4886_v11 }
 0x2e6   : > { %2171 = vmatpush.bf16.msrb.mxu0 %v4908_v22  ;;  %2185 = vmatpush.bf16.msrb.mxu1 %v4918_v26 }
 0x2e7   : > { %2199 = vmatpush.bf16.msrb.mxu2 %v4934_v35  ;;  %2213 = vmatpush.bf16.msrb.mxu3 %v6196_v43 }
 0x345   : > { %v1649_v51 = vpop.f32.mrf.mxu0  ;;  %v1663_v56 = vpop.f32.mrf.mxu1 }
 0x346   : > { %v1696_v1 = vadd.f32 %v1649_v51, %v1631_v0  ;;  %v1697_v4 = vadd.f32 %v1663_v56, %v1632_v15  ;;  %v1638_v0 = vld [vmem:[#allocation2 + $0x28] sm:$0xff] }
 0x348   : > { %v3685_v13 = vmul.f32 -1.442695, %v1696_v1  ;;  %v3687_v49 = vmul.f32 -1.442695, %v1697_v4 }
 0x34a   : > { %3968 = vpow2.f32 %v3685_v13 }
 0x34b   : > { %3970 = vpow2.f32 %v3687_v49 }
 0x34c   : > { %v1691_v12 = vpop.f32.mrf.mxu3  ;;  %v1677_v34 = vpop.f32.mrf.mxu2 }
 0x34d   : > { %v1699_v38 = vadd.f32 %v1691_v12, %v1634_v44  ;;  %v1651_v17 = vpop.f32.mrf.mxu0  ;;  %v1665_v9 = vpop.f32.mrf.mxu1  ;;  %v1698_v51 = vadd.f32 %v1677_v34, %v1633_v33 }
 0x34e   : > { %v1700_v52 = vadd.f32 %v1651_v17, %v1635_v30  ;;  %v1701_v21 = vadd.f32 %v1665_v9, %v1636_v41  ;;  %v1637_v9 = vld [vmem:[#allocation2 + $0x1b8] sm:$0xff] }
 0x34f   : > { %v3689_v8 = vmul.f32 -1.442695, %v1699_v38 }
 0x350   : > { %v3969_v55 = vpop.eup %3968  ;;  %v3686_v61 = vmul.f32 -1.442695, %v1700_v52  ;;  %v3688_v29 = vmul.f32 -1.442695, %v1701_v21  ;;  %v5237_v21 = vstv %s1832_s27 }
 0x351   : > { %v3971_v50 = vpop.eup %3970  ;;  %v1710_v23 = vadd.f32 1.0, %v3969_v55  ;;  %3972 = vpow2.f32 %v3689_v8  ;;  %vm1834_vm6 = vcmp.eq.s32.totalorder %v5237_v21, 1  ;;  %v1893_v21 = vld [vmem:[#allocation2 + $0x1e8] sm:$0xff] }
 0x352   : > { %v1748_v54 = vadd.f32 1.0, %v3971_v50  ;;  %3974 = vpow2.f32 %v3686_v61 }
 0x353   : > { %3976 = vrcp.f32 %v1710_v23  ;;  %v1721_v55 = vand.u32 2147483647, %v1710_v23  ;;  %v1723_v61 = vand.u32 2147483648, %v1710_v23  ;;  %vm1717_vm4 = vweird.f32 %v1710_v23 }
 0x354   : > { %3978 = vrcp.f32 %v1748_v54  ;;  %v1693_v15 = vpop.f32.mrf.mxu3  ;;  %v1679_v52 = vpop.f32.mrf.mxu2  ;;  %v1759_v33 = vand.u32 2147483647, %v1748_v54  ;;  %vm1755_vm7 = vweird.f32 %v1748_v54 }
 0x355   : > { %3980 = vpow2.f32 %v3688_v29  ;;  %v1703_v56 = vadd.f32 %v1693_v15, %v1638_v0  ;;  %v1761_v29 = vand.u32 2147483648, %v1748_v54  ;;  %v1702_v15 = vadd.f32 %v1679_v52, %v1637_v9 }
 0x356   : > { %3982 = vtanh.f32 %v1698_v51  ;;  %vm1722_vm8 = vcmp.eq.f32.partialorder %v1721_v55, 8.507059e+37  ;;  %vm1760_vm5 = vcmp.eq.f32.partialorder %v1759_v33, 8.507059e+37 }
 0x357   : > { %v3973_v1 = vpop.eup %3972  ;;  %v3690_v30 = vmul.f32 -1.442695, %v1703_v56 }
 0x358   : > { %v3975_v4 = vpop.eup %3974  ;;  %v5231_v13 = vadd.f32 1.0, %v3973_v1 }
 0x359   : > { %v3977_v49 = vpop.eup %3976  ;;  %v5233_v44 = vadd.f32 1.0, %v3975_v4 }
 0x35a   : > { %v3979_v41 = vpop.eup %3978  ;;  %v1713_v12 = vmul.f32 %v3977_v49, %v1710_v23  ;;  %3984 = vrcp.f32 %v5231_v13  ;;  %vm1718_vm12 = vweird.f32 %v3977_v49  ;;  %vm1795_vm2 = vweird.f32 %v5231_v13 }
 0x35b   : > { %v3981_v38 = vpop.eup %3980  ;;  %v1751_v17 = vmul.f32 %v3979_v41, %v1748_v54  ;;  %3986 = vrcp.f32 %v5233_v44  ;;  %vm1756_vm3 = vweird.f32 %v3979_v41  ;;  %vm1719_vm9 = vmor %vm1717_vm4, %vm1718_vm12  ;;  %vm1732_vm11 = vweird.f32 %v5233_v44 }
 0x35c   : > { %v1714_v8 = vsub.f32 1.0, %v1713_v12  ;;  %v5239_v50 = vadd.f32 1.0, %v3981_v38  ;;  %3988 = vpow2.f32 %v3690_v30  ;;  %v3983_v51 = vpop.eup %3982  ;;  %v1724_v12 = vor.u32 1.1754944e-38, %v1723_v61  ;;  %vm1757_vm10 = vmor %vm1755_vm7, %vm1756_vm3 }
 0x35d   : > { %v1752_v34 = vsub.f32 1.0, %v1751_v17  ;;  %v1762_v17 = vor.u32 1.1754944e-38, %v1761_v29 }
 0x35e   : > { %v1715_v0 = vmul.f32 %v3977_v49, %v1714_v8  ;;  %3990 = vrcp.f32 %v5239_v50  ;;  %vm1770_vm12 = vweird.f32 %v5239_v50 }
 0x35f   : > { %v1753_v56 = vmul.f32 %v3979_v41, %v1752_v34  ;;  %3992 = vtanh.f32 %v1702_v15  ;;  %v1738_v34 = vand.u32 2147483648, %v5233_v44 }
 0x360   : > { %v5243_v1 = vpop.eup %3984  ;;  %v1716_v4 = vadd.f32 %v3977_v49, %v1715_v0 }
 0x361   : > { %v3987_v38 = vpop.eup %3986  ;;  %v1754_v30 = vadd.f32 %v3979_v41, %v1753_v56  ;;  %v1791_v9 = vmul.f32 %v5243_v1, %v5231_v13  ;;  %vm1796_vm14 = vweird.f32 %v5243_v1 }
 0x362   : > { %v1720_v52 = vsel %vm1719_vm9, %v3977_v49, %v1716_v4  ;;  %v1728_v23 = vmul.f32 %v3987_v38, %v5233_v44  ;;  %v3989_v54 = vpop.eup %3988  ;;  %v1736_v4 = vand.u32 2147483647, %v5233_v44  ;;  %vm1733_vm13 = vweird.f32 %v3987_v38  ;;  %vm5271_vm3 = vmor %vm1795_vm2, %vm1796_vm14 }
 0x363   : > { %v1725_v8 = vsel %vm1722_vm8, %v1724_v12, %v1720_v52  ;;  %v1758_v55 = vsel %vm1757_vm10, %v3979_v41, %v1754_v30  ;;  %v1792_v61 = vsub.f32 1.0, %v1791_v9  ;;  %v1789_v16 = vadd.f32 1.0, %v3989_v54  ;;  %vm1734_vm0 = vmor %vm1732_vm11, %vm1733_vm13 }
 0x364   : > { %v3991_v29 = vpop.eup %3990  ;;  %v1763_v0 = vsel %vm1760_vm5, %v1762_v17, %v1758_v55  ;;  %v1822_v56 = vmul.f32 %v3983_v51, %v1725_v8  ;;  %v1729_v33 = vsub.f32 1.0, %v1728_v23  ;;  %v1801_v41 = vand.u32 2147483648, %v5231_v13 }
 0x365   : > { %v1820_v37 = vmul.f32 %v1763_v0, %v5160_v53  ;;  %v1766_v49 = vmul.f32 %v3991_v29, %v5239_v50  ;;  %v1793_v43 = vmul.f32 %v5243_v1, %v1792_v61  ;;  %3994 = vrcp.f32 %v1789_v16  ;;  %v3993_v9 = vpop.eup %3992  ;;  %v1894_v0 = vld [vmem:[#allocation2 + $0xf8] sm:$0xff] }
 0x366   : > { %v1730_v15 = vmul.f32 %v3987_v38, %v1729_v33  ;;  %v1776_v17 = vand.u32 2147483648, %v5239_v50  ;;  %v1739_v51 = vor.u32 1.1754944e-38, %v1738_v34  ;;  %v1774_v23 = vand.u32 2147483647, %v5239_v50 }
 0x367   : > { %v1824_v12 = vadd.f32 %v1822_v56, %v1820_v37  ;;  %v1767_v30 = vsub.f32 1.0, %v1766_v49  ;;  %v1794_v54 = vadd.f32 %v5243_v1, %v1793_v43  ;;  %vm1771_vm15 = vweird.f32 %v3991_v29 }
 0x368   : > { %v1731_v52 = vadd.f32 %v3987_v38, %v1730_v15  ;;  %vm1737_vm1 = vcmp.eq.f32.partialorder %v1736_v4, 8.507059e+37  ;;  %v1799_v43 = vand.u32 2147483647, %v5231_v13  ;;  %vm1772_vm4 = vmor %vm1770_vm12, %vm1771_vm15  ;;  %v1777_v56 = vor.u32 1.1754944e-38, %v1776_v17 }
 0x369   : > { %3996 = vtanh.f32 %v1824_v12  ;;  %v1768_v8 = vmul.f32 %v3991_v29, %v1767_v30  ;;  %v5266_v37 = vsel %vm1834_vm6, %v1824_v12, %v5160_v53  ;;  %v1798_v53 = vsel %vm5271_vm3, %v5243_v1, %v1794_v54 }
 0x36a   : > { %v1735_v55 = vsel %vm1734_vm0, %v3987_v38, %v1731_v52  ;;  %v1802_v38 = vor.u32 1.1754944e-38, %v1801_v41  ;;  %vm1775_vm7 = vcmp.eq.f32.partialorder %v1774_v23, 8.507059e+37  ;;  %vm1800_vm8 = vcmp.eq.f32.partialorder %v1799_v43, 8.507059e+37 }
 0x36b   : > { %v1740_v61 = vsel %vm1737_vm1, %v1739_v51, %v1735_v55  ;;  %v1769_v34 = vadd.f32 %v3991_v29, %v1768_v8  ;;  %v3995_v44 = vpop.eup %3994  ;;  %v1816_v41 = vand.u32 2147483648, %v1789_v16  ;;  %vm1810_vm5 = vweird.f32 %v1789_v16 }
 0x36c   : > { %v1823_v49 = vmul.f32 %v3993_v9, %v1740_v61  ;;  %v1806_v13 = vmul.f32 %v3995_v44, %v1789_v16  ;;  %v1803_v30 = vsel %vm1800_vm8, %v1802_v38, %v1798_v53  ;;  %vm1811_vm9 = vweird.f32 %v3995_v44 }
 0x36d   : > { %v1773_v33 = vsel %vm1772_vm4, %v3991_v29, %v1769_v34  ;;  %v1814_v9 = vand.u32 2147483647, %v1789_v16  ;;  %vm1812_vm10 = vmor %vm1810_vm5, %vm1811_vm9  ;;  %v1817_v54 = vor.u32 1.1754944e-38, %v1816_v41  ;;  %v6202_v16 = vld [vmem:[#allocation11_spill] sm:$0xff] }
 0x36e   : > { %v1778_v4 = vsel %vm1775_vm7, %v1777_v56, %v1773_v33  ;;  %v1807_v12 = vsub.f32 1.0, %v1806_v13  ;;  %v1896_v13 = vld [vmem:[#allocation2 + $0x30] sm:$0xff] }
 0x36f   : > { %v3997_v50 = vpop.eup %3996  ;;  %v1821_v15 = vmul.f32 %v1778_v4, %v5182_v24  ;;  %vm1815_vm11 = vcmp.eq.f32.partialorder %v1814_v9, 8.507059e+37  ;;  %v1897_v4 = vld [vmem:[#allocation2 + $0x1e0] sm:$0xff] }
 0x370   : > { %v1828_v51 = vmul.f32 %v3997_v50, %v1803_v30  ;;  %v1808_v8 = vmul.f32 %v3995_v44, %v1807_v12  ;;  %v1898_v50 = vld [vmem:[#allocation2] sm:$0xff] }
 0x371   : > { %v1825_v52 = vadd.f32 %v1823_v49, %v1821_v15 }
 0x372   : > { %v5282_v17 = vsel %vm1834_vm6, %v1828_v51, %v5176_v36  ;;  %v1809_v29 = vadd.f32 %v3995_v44, %v1808_v8 }
 0x373   : > { %6200 = vst [vmem:[#allocation16_spill] sm:$0xff] %v5282_v17  ;;  %3998 = vtanh.f32 %v1825_v52  ;;  %1839 = vadd.xlane.f32.xlu2 %v5282_v17  ;;  %v5288_v1 = vsel %vm1834_vm6, %v1825_v52, %v5182_v24 }
 0x374   : > { %v1813_v23 = vsel %vm1812_vm10, %v3995_v44, %v1809_v29 }
 0x375   : > { %v1818_v43 = vsel %vm1815_vm11, %v1817_v54, %v1813_v23 }
 0x379   : > { %v3999_v55 = vpop.eup %3998 }
 0x37a   : > { %v1829_v61 = vmul.f32 %v3999_v55, %v1818_v43 }
 0x37c   : > { %v5293_v34 = vsel %vm1834_vm6, %v1829_v61, %v5187_v63 }
 0x37d   : > { %6201 = vst [vmem:[#allocation17_spill] sm:$0xff] %v5293_v34  ;;  %1841 = vadd.xlane.f32.xlu2 %v5293_v34  ;;  %v1901_v24 = vpack.c.bf16 %v5293_v34, %v5282_v17 }
 0x37f   : > { %1910 = vmatmul.bf16.vlgmr.msra.gmra.mxu0 %v1901_v24  ;;  %1924 = vmatmul.bf16.vlgmr.msra.gmra.mxu1 %v1901_v24 }
 0x380   : > { %1938 = vmatmul.bf16.vlgmr.msra.gmra.mxu2 %v1901_v24  ;;  %1952 = vmatmul.bf16.vlgmr.msra.gmra.mxu3 %v1901_v24  ;;  %v1895_v24 = vld [vmem:[#allocation2 + $0x160] sm:$0xff] }
 0x381   : > { %2426 = vmatpush.bf16.msra.mxu0 %v4652_v48  ;;  %2440 = vmatpush.bf16.msra.mxu1 %v4663_v57 }
 0x382   : > { %2454 = vmatpush.bf16.msra.mxu2 %v4703_v7  ;;  %2468 = vmatpush.bf16.msra.mxu3 %v4665_v58 }
 0x385   : > { %2427 = vmatpush.bf16.msra.mxu0 %v4677_v62  ;;  %2441 = vmatpush.bf16.msra.mxu1 %v4690_v2 }
 0x386   : > { %2455 = vmatpush.bf16.msra.mxu2 %v4742_v20  ;;  %2469 = vmatpush.bf16.msra.mxu3 %v4692_v3 }
 0x389   : > { %2428 = vmatpush.bf16.msra.mxu0 %v4725_v14  ;;  %2442 = vmatpush.bf16.msra.mxu1 %v4738_v18 }
 0x38a   : > { %2456 = vmatpush.bf16.msra.mxu2 %v4766_v28  ;;  %2470 = vmatpush.bf16.msra.mxu3 %v4740_v19 }
 0x38d   : > { %2429 = vmatpush.bf16.msra.mxu0 %v4764_v27  ;;  %2443 = vmatpush.bf16.msra.mxu1 %v4776_v31 }
 0x38e   : > { %2457 = vmatpush.bf16.msra.mxu2 %v4802_v40  ;;  %2471 = vmatpush.bf16.msra.mxu3 %v4778_v32 }
 0x391   : > { %2430 = vmatpush.bf16.msra.mxu0 %v4800_v39  ;;  %2444 = vmatpush.bf16.msra.mxu1 %v4812_v45 }
 0x392   : > { %2458 = vmatpush.bf16.msra.mxu2 %v4838_v47  ;;  %2472 = vmatpush.bf16.msra.mxu3 %v4814_v46 }
 0x395   : > { %2431 = vmatpush.bf16.msra.mxu0 %v4836_v42  ;;  %2445 = vmatpush.bf16.msra.mxu1 %v4851_v59 }
 0x396   : > { %2459 = vmatpush.bf16.msra.mxu2 %v4874_v6  ;;  %2473 = vmatpush.bf16.msra.mxu3 %v4853_v60 }
 0x399   : > { %2432 = vmatpush.bf16.msra.mxu0 %v4872_v5  ;;  %2446 = vmatpush.bf16.msra.mxu1 %v4884_v10 }
 0x39a   : > { %2460 = vmatpush.bf16.msra.mxu2 %v4914_v25  ;;  %2474 = vmatpush.bf16.msra.mxu3 %v4886_v11 }
 0x39d   : > { %2433 = vmatpush.bf16.msra.mxu0 %v4908_v22  ;;  %2447 = vmatpush.bf16.msra.mxu1 %v4918_v26 }
 0x39e   : > { %2461 = vmatpush.bf16.msra.mxu2 %v4934_v35  ;;  %2475 = vmatpush.bf16.msra.mxu3 %v6202_v16 }
 0x3fc   : > { %v1911_v44 = vpop.f32.mrf.mxu0  ;;  %v1925_v56 = vpop.f32.mrf.mxu1 }
 0x3fd   : > { %v1958_v53 = vadd.f32 %v1911_v44, %v1893_v21  ;;  %v1959_v38 = vadd.f32 %v1925_v56, %v1894_v0  ;;  %v1900_v21 = vld [vmem:[#allocation2 + $0x8] sm:$0xff] }
 0x3ff   : > { %v3693_v33 = vmul.f32 -1.442695, %v1958_v53  ;;  %v3695_v49 = vmul.f32 -1.442695, %v1959_v38 }
 0x401   : > { %4000 = vpow2.f32 %v3693_v33 }
 0x402   : > { %4002 = vpow2.f32 %v3695_v49 }
 0x403   : > { %v1953_v15 = vpop.f32.mrf.mxu3  ;;  %v1939_v55 = vpop.f32.mrf.mxu2 }
 0x404   : > { %v1961_v12 = vadd.f32 %v1953_v15, %v1896_v13  ;;  %v1913_v30 = vpop.f32.mrf.mxu0  ;;  %v1927_v51 = vpop.f32.mrf.mxu1  ;;  %v1960_v44 = vadd.f32 %v1939_v55, %v1895_v24 }
 0x405   : > { %v1962_v52 = vadd.f32 %v1913_v30, %v1897_v4  ;;  %v1963_v8 = vadd.f32 %v1927_v51, %v1898_v50  ;;  %v1899_v51 = vld [vmem:[#allocation2 + $0xf0] sm:$0xff] }
 0x406   : > { %v3697_v29 = vmul.f32 -1.442695, %v1961_v12 }
 0x407   : > { %v4001_v41 = vpop.eup %4000  ;;  %v3694_v9 = vmul.f32 -1.442695, %v1962_v52  ;;  %v3696_v43 = vmul.f32 -1.442695, %v1963_v8  ;;  %v5343_v8 = vstv %s2094_s23 }
 0x408   : > { %v4003_v23 = vpop.eup %4002  ;;  %v1972_v54 = vadd.f32 1.0, %v4001_v41  ;;  %4004 = vpow2.f32 %v3697_v29  ;;  %vm2096_vm15 = vcmp.eq.s32.totalorder %v5343_v8, 1  ;;  %v2155_v8 = vld [vmem:[#allocation2 + $0x148] sm:$0xff] }
 0x409   : > { %v2010_v61 = vadd.f32 1.0, %v4003_v23  ;;  %4006 = vpow2.f32 %v3694_v9 }
 0x40a   : > { %4008 = vrcp.f32 %v1972_v54  ;;  %v1983_v41 = vand.u32 2147483647, %v1972_v54  ;;  %v1985_v9 = vand.u32 2147483648, %v1972_v54  ;;  %vm1979_vm14 = vweird.f32 %v1972_v54 }
 0x40b   : > { %4010 = vrcp.f32 %v2010_v61  ;;  %v1955_v0 = vpop.f32.mrf.mxu3  ;;  %v1941_v52 = vpop.f32.mrf.mxu2  ;;  %v2021_v24 = vand.u32 2147483647, %v2010_v61  ;;  %vm2017_vm0 = vweird.f32 %v2010_v61 }
 0x40c   : > { %4012 = vpow2.f32 %v3696_v43  ;;  %v1965_v56 = vadd.f32 %v1955_v0, %v1900_v21  ;;  %v2023_v43 = vand.u32 2147483648, %v2010_v61  ;;  %v1964_v0 = vadd.f32 %v1941_v52, %v1899_v51 }
 0x40d   : > { %4014 = vtanh.f32 %v1960_v44  ;;  %vm1984_vm1 = vcmp.eq.f32.partialorder %v1983_v41, 8.507059e+37  ;;  %vm2022_vm12 = vcmp.eq.f32.partialorder %v2021_v24, 8.507059e+37 }
 0x40e   : > { %v4005_v53 = vpop.eup %4004  ;;  %v3698_v4 = vmul.f32 -1.442695, %v1965_v56 }
 0x40f   : > { %v4007_v38 = vpop.eup %4006  ;;  %v5337_v33 = vadd.f32 1.0, %v4005_v53 }
 0x410   : > { %v4009_v49 = vpop.eup %4008  ;;  %v5339_v13 = vadd.f32 1.0, %v4007_v38 }
 0x411   : > { %v4011_v50 = vpop.eup %4010  ;;  %v1975_v15 = vmul.f32 %v4009_v49, %v1972_v54  ;;  %4016 = vrcp.f32 %v5337_v33  ;;  %vm1980_vm6 = vweird.f32 %v4009_v49  ;;  %vm2057_vm11 = vweird.f32 %v5337_v33 }
 0x412   : > { %v4013_v12 = vpop.eup %4012  ;;  %v2013_v30 = vmul.f32 %v4011_v50, %v2010_v61  ;;  %4018 = vrcp.f32 %v5339_v13  ;;  %vm2018_vm13 = vweird.f32 %v4011_v50  ;;  %vm1981_vm2 = vmor %vm1979_vm14, %vm1980_vm6  ;;  %vm1994_vm4 = vweird.f32 %v5339_v13 }
 0x413   : > { %v1976_v29 = vsub.f32 1.0, %v1975_v15  ;;  %v5345_v23 = vadd.f32 1.0, %v4013_v12  ;;  %4020 = vpow2.f32 %v3698_v4  ;;  %v4015_v44 = vpop.eup %4014  ;;  %v1986_v15 = vor.u32 1.1754944e-38, %v1985_v9  ;;  %vm2019_vm3 = vmor %vm2017_vm0, %vm2018_vm13 }
 0x414   : > { %v2014_v55 = vsub.f32 1.0, %v2013_v30  ;;  %v2024_v30 = vor.u32 1.1754944e-38, %v2023_v43 }
 0x415   : > { %v1977_v21 = vmul.f32 %v4009_v49, %v1976_v29  ;;  %4022 = vrcp.f32 %v5345_v23  ;;  %vm2032_vm6 = vweird.f32 %v5345_v23 }
 0x416   : > { %v2015_v56 = vmul.f32 %v4011_v50, %v2014_v55  ;;  %4024 = vtanh.f32 %v1964_v0  ;;  %v2000_v55 = vand.u32 2147483648, %v5339_v13 }
 0x417   : > { %v5349_v53 = vpop.eup %4016  ;;  %v1978_v38 = vadd.f32 %v4009_v49, %v1977_v21 }
 0x418   : > { %v4019_v12 = vpop.eup %4018  ;;  %v2016_v4 = vadd.f32 %v4011_v50, %v2015_v56  ;;  %v2053_v51 = vmul.f32 %v5349_v53, %v5337_v33  ;;  %vm2058_vm8 = vweird.f32 %v5349_v53 }
 0x419   : > { %v1982_v52 = vsel %vm1981_vm2, %v4009_v49, %v1978_v38  ;;  %v1990_v54 = vmul.f32 %v4019_v12, %v5339_v13  ;;  %v4021_v61 = vpop.eup %4020  ;;  %v1998_v38 = vand.u32 2147483647, %v5339_v13  ;;  %vm1995_vm7 = vweird.f32 %v4019_v12  ;;  %vm5377_vm13 = vmor %vm2057_vm11, %vm2058_vm8 }
 0x41a   : > { %v1987_v29 = vsel %vm1984_vm1, %v1986_v15, %v1982_v52  ;;  %v2020_v41 = vsel %vm2019_vm3, %v4011_v50, %v2016_v4  ;;  %v2054_v9 = vsub.f32 1.0, %v2053_v51  ;;  %v2051_v36 = vadd.f32 1.0, %v4021_v61  ;;  %vm1996_vm5 = vmor %vm1994_vm4, %vm1995_vm7 }
 0x41b   : > { %v4023_v43 = vpop.eup %4022  ;;  %v2025_v21 = vsel %vm2022_vm12, %v2024_v30, %v2020_v41  ;;  %v2084_v56 = vmul.f32 %v4015_v44, %v1987_v29  ;;  %v1991_v24 = vsub.f32 1.0, %v1990_v54  ;;  %v2063_v50 = vand.u32 2147483648, %v5337_v33 }
 0x41c   : > { %v2082_v63 = vmul.f32 %v2025_v21, %v5266_v37  ;;  %v2028_v49 = vmul.f32 %v4023_v43, %v5345_v23  ;;  %v2055_v16 = vmul.f32 %v5349_v53, %v2054_v9  ;;  %4026 = vrcp.f32 %v2051_v36  ;;  %v4025_v51 = vpop.eup %4024  ;;  %v2156_v21 = vld [vmem:[#allocation2 + $0x1d0] sm:$0xff] }
 0x41d   : > { %v1992_v0 = vmul.f32 %v4019_v12, %v1991_v24  ;;  %v2038_v30 = vand.u32 2147483648, %v5345_v23  ;;  %v2001_v44 = vor.u32 1.1754944e-38, %v2000_v55  ;;  %v2036_v54 = vand.u32 2147483647, %v5345_v23 }
 0x41e   : > { %v2086_v15 = vadd.f32 %v2084_v56, %v2082_v63  ;;  %v2029_v4 = vsub.f32 1.0, %v2028_v49  ;;  %v2056_v61 = vadd.f32 %v5349_v53, %v2055_v16  ;;  %vm2033_vm9 = vweird.f32 %v4023_v43 }
 0x41f   : > { %v1993_v52 = vadd.f32 %v4019_v12, %v1992_v0  ;;  %vm1999_vm10 = vcmp.eq.f32.partialorder %v1998_v38, 8.507059e+37  ;;  %v2061_v16 = vand.u32 2147483647, %v5337_v33  ;;  %vm2034_vm14 = vmor %vm2032_vm6, %vm2033_vm9  ;;  %v2039_v56 = vor.u32 1.1754944e-38, %v2038_v30 }
 0x420   : > { %4028 = vtanh.f32 %v2086_v15  ;;  %v2030_v29 = vmul.f32 %v4023_v43, %v2029_v4  ;;  %v5372_v63 = vsel %vm2096_vm15, %v2086_v15, %v5266_v37  ;;  %v2060_v37 = vsel %vm5377_vm13, %v5349_v53, %v2056_v61 }
 0x421   : > { %v1997_v41 = vsel %vm1996_vm5, %v4019_v12, %v1993_v52  ;;  %v2064_v12 = vor.u32 1.1754944e-38, %v2063_v50  ;;  %vm2037_vm0 = vcmp.eq.f32.partialorder %v2036_v54, 8.507059e+37  ;;  %vm2062_vm1 = vcmp.eq.f32.partialorder %v2061_v16, 8.507059e+37 }
 0x422   : > { %v2002_v9 = vsel %vm1999_vm10, %v2001_v44, %v1997_v41  ;;  %v2031_v55 = vadd.f32 %v4023_v43, %v2030_v29  ;;  %v4027_v13 = vpop.eup %4026  ;;  %v2078_v50 = vand.u32 2147483648, %v2051_v36  ;;  %vm2072_vm12 = vweird.f32 %v2051_v36 }
 0x423   : > { %v2085_v49 = vmul.f32 %v4025_v51, %v2002_v9  ;;  %v2068_v33 = vmul.f32 %v4027_v13, %v2051_v36  ;;  %v2065_v4 = vsel %vm2062_vm1, %v2064_v12, %v2060_v37  ;;  %vm2073_vm2 = vweird.f32 %v4027_v13 }
 0x424   : > { %v2035_v24 = vsel %vm2034_vm14, %v4023_v43, %v2031_v55  ;;  %v2076_v51 = vand.u32 2147483647, %v2051_v36  ;;  %vm2074_vm3 = vmor %vm2072_vm12, %vm2073_vm2  ;;  %v2079_v61 = vor.u32 1.1754944e-38, %v2078_v50  ;;  %v6206_v36 = vld [vmem:[#allocation11_spill] sm:$0xff] }
 0x425   : > { %v2040_v38 = vsel %vm2037_vm0, %v2039_v56, %v2035_v24  ;;  %v2069_v15 = vsub.f32 1.0, %v2068_v33  ;;  %v2158_v33 = vld [vmem:[#allocation2 + $0xc8] sm:$0xff] }
 0x426   : > { %v4029_v23 = vpop.eup %4028  ;;  %v2083_v0 = vmul.f32 %v2040_v38, %v5288_v1  ;;  %vm2077_vm4 = vcmp.eq.f32.partialorder %v2076_v51, 8.507059e+37  ;;  %v2159_v38 = vld [vmem:[#allocation2 + $0x40] sm:$0xff] }
 0x427   : > { %v2090_v44 = vmul.f32 %v4029_v23, %v2065_v4  ;;  %v2070_v29 = vmul.f32 %v4027_v13, %v2069_v15  ;;  %v2160_v23 = vld [vmem:[#allocation2 + $0x1f8] sm:$0xff] }
 0x428   : > { %v2087_v52 = vadd.f32 %v2085_v49, %v2083_v0 }
 0x429   : > { %v5388_v30 = vsel %vm2096_vm15, %v2090_v44, %v5282_v17  ;;  %v2071_v43 = vadd.f32 %v4027_v13, %v2070_v29 }
 0x42a   : > { %4030 = vtanh.f32 %v2087_v52  ;;  %2101 = vadd.xlane.f32.xlu0 %v5388_v30  ;;  %v5394_v53 = vsel %vm2096_vm15, %v2087_v52, %v5288_v1 }
 0x42b   : > { %v2075_v54 = vsel %vm2074_vm3, %v4027_v13, %v2071_v43 }
 0x42c   : > { %v2080_v16 = vsel %vm2077_vm4, %v2079_v61, %v2075_v54 }
 0x430   : > { %v4031_v41 = vpop.eup %4030 }
 0x431   : > { %v2091_v9 = vmul.f32 %v4031_v41, %v2080_v16 }
 0x433   : > { %v5399_v55 = vsel %vm2096_vm15, %v2091_v9, %v5293_v34 }
 0x434   : > { %2103 = vadd.xlane.f32.xlu1 %v5399_v55  ;;  %v2163_v1 = vpack.c.bf16 %v5399_v55, %v5388_v30 }
 0x436   : > { %2172 = vmatmul.bf16.vlgmr.msrb.gmra.mxu0 %v2163_v1  ;;  %2186 = vmatmul.bf16.vlgmr.msrb.gmra.mxu1 %v2163_v1 }
 0x437   : > { %2200 = vmatmul.bf16.vlgmr.msrb.gmra.mxu2 %v2163_v1  ;;  %2214 = vmatmul.bf16.vlgmr.msrb.gmra.mxu3 %v2163_v1  ;;  %v2157_v1 = vld [vmem:[#allocation2 + $0x100] sm:$0xff] }
 0x438   : > { %2688 = vmatpush.bf16.msrb.mxu0 %v4652_v48  ;;  %2702 = vmatpush.bf16.msrb.mxu1 %v4663_v57 }
 0x439   : > { %2716 = vmatpush.bf16.msrb.mxu2 %v4703_v7  ;;  %2730 = vmatpush.bf16.msrb.mxu3 %v4665_v58 }
 0x43c   : > { %2689 = vmatpush.bf16.msrb.mxu0 %v4677_v62  ;;  %2703 = vmatpush.bf16.msrb.mxu1 %v4690_v2 }
 0x43d   : > { %2717 = vmatpush.bf16.msrb.mxu2 %v4742_v20  ;;  %2731 = vmatpush.bf16.msrb.mxu3 %v4692_v3 }
 0x440   : > { %2690 = vmatpush.bf16.msrb.mxu0 %v4725_v14  ;;  %2704 = vmatpush.bf16.msrb.mxu1 %v4738_v18 }
 0x441   : > { %2718 = vmatpush.bf16.msrb.mxu2 %v4766_v28  ;;  %2732 = vmatpush.bf16.msrb.mxu3 %v4740_v19 }
 0x444   : > { %2691 = vmatpush.bf16.msrb.mxu0 %v4764_v27  ;;  %2705 = vmatpush.bf16.msrb.mxu1 %v4776_v31 }
 0x445   : > { %2719 = vmatpush.bf16.msrb.mxu2 %v4802_v40  ;;  %2733 = vmatpush.bf16.msrb.mxu3 %v4778_v32 }
 0x448   : > { %2692 = vmatpush.bf16.msrb.mxu0 %v4800_v39  ;;  %2706 = vmatpush.bf16.msrb.mxu1 %v4812_v45 }
 0x449   : > { %2720 = vmatpush.bf16.msrb.mxu2 %v4838_v47  ;;  %2734 = vmatpush.bf16.msrb.mxu3 %v4814_v46 }
 0x44c   : > { %2693 = vmatpush.bf16.msrb.mxu0 %v4836_v42  ;;  %2707 = vmatpush.bf16.msrb.mxu1 %v4851_v59 }
 0x44d   : > { %2721 = vmatpush.bf16.msrb.mxu2 %v4874_v6  ;;  %2735 = vmatpush.bf16.msrb.mxu3 %v4853_v60 }
 0x450   : > { %2694 = vmatpush.bf16.msrb.mxu0 %v4872_v5  ;;  %2708 = vmatpush.bf16.msrb.mxu1 %v4884_v10 }
 0x451   : > { %2722 = vmatpush.bf16.msrb.mxu2 %v4914_v25  ;;  %2736 = vmatpush.bf16.msrb.mxu3 %v4886_v11 }
 0x454   : > { %2695 = vmatpush.bf16.msrb.mxu0 %v4908_v22  ;;  %2709 = vmatpush.bf16.msrb.mxu1 %v4918_v26 }
 0x455   : > { %2723 = vmatpush.bf16.msrb.mxu2 %v4934_v35  ;;  %2737 = vmatpush.bf16.msrb.mxu3 %v6206_v36 }
 0x4b3   : > { %v2173_v13 = vpop.f32.mrf.mxu0  ;;  %v2187_v56 = vpop.f32.mrf.mxu1 }
 0x4b4   : > { %v2220_v37 = vadd.f32 %v2173_v13, %v2155_v8  ;;  %v2221_v12 = vadd.f32 %v2187_v56, %v2156_v21  ;;  %v2162_v8 = vld [vmem:[#allocation2 + $0x128] sm:$0xff] }
 0x4b6   : > { %v3701_v24 = vmul.f32 -1.442695, %v2220_v37  ;;  %v3703_v49 = vmul.f32 -1.442695, %v2221_v12 }
 0x4b8   : > { %4032 = vpow2.f32 %v3701_v24 }
 0x4b9   : > { %4034 = vpow2.f32 %v3703_v49 }
 0x4ba   : > { %v2215_v0 = vpop.f32.mrf.mxu3  ;;  %v2201_v41 = vpop.f32.mrf.mxu2 }
 0x4bb   : > { %v2223_v15 = vadd.f32 %v2215_v0, %v2158_v33  ;;  %v2175_v4 = vpop.f32.mrf.mxu0  ;;  %v2189_v44 = vpop.f32.mrf.mxu1  ;;  %v2222_v13 = vadd.f32 %v2201_v41, %v2157_v1 }
 0x4bc   : > { %v2224_v52 = vadd.f32 %v2175_v4, %v2159_v38  ;;  %v2225_v29 = vadd.f32 %v2189_v44, %v2160_v23  ;;  %v2161_v44 = vld [vmem:[#allocation2 + $0x20] sm:$0xff] }
 0x4bd   : > { %v3705_v43 = vmul.f32 -1.442695, %v2223_v15 }
 0x4be   : > { %v4033_v50 = vpop.eup %4032  ;;  %v3702_v51 = vmul.f32 -1.442695, %v2224_v52  ;;  %v3704_v16 = vmul.f32 -1.442695, %v2225_v29  ;;  %v5449_v29 = vstv %s2356_s26 }
 0x4bf   : > { %v4035_v54 = vpop.eup %4034  ;;  %v2234_v61 = vadd.f32 1.0, %v4033_v50  ;;  %4036 = vpow2.f32 %v3705_v43  ;;  %vm2358_vm9 = vcmp.eq.s32.totalorder %v5449_v29, 1 }
 0x4c0   : > { %v2272_v9 = vadd.f32 1.0, %v4035_v54  ;;  %4038 = vpow2.f32 %v3702_v51 }
 0x4c1   : > { %4040 = vrcp.f32 %v2234_v61  ;;  %v2245_v50 = vand.u32 2147483647, %v2234_v61  ;;  %v2247_v51 = vand.u32 2147483648, %v2234_v61  ;;  %vm2241_vm8 = vweird.f32 %v2234_v61 }
 0x4c2   : > { %4042 = vrcp.f32 %v2272_v9  ;;  %v2217_v21 = vpop.f32.mrf.mxu3  ;;  %v2203_v52 = vpop.f32.mrf.mxu2  ;;  %v2283_v1 = vand.u32 2147483647, %v2272_v9  ;;  %vm2279_vm5 = vweird.f32 %v2272_v9 }
 0x4c3   : > { %4044 = vpow2.f32 %v3704_v16  ;;  %v2227_v56 = vadd.f32 %v2217_v21, %v2162_v8  ;;  %v2285_v16 = vand.u32 2147483648, %v2272_v9  ;;  %v2226_v21 = vadd.f32 %v2203_v52, %v2161_v44 }
 0x4c4   : > { %4046 = vtanh.f32 %v2222_v13  ;;  %vm2246_vm10 = vcmp.eq.f32.partialorder %v2245_v50, 8.507059e+37  ;;  %vm2284_vm6 = vcmp.eq.f32.partialorder %v2283_v1, 8.507059e+37 }
 0x4c5   : > { %v4037_v37 = vpop.eup %4036  ;;  %v3706_v38 = vmul.f32 -1.442695, %v2227_v56 }
 0x4c6   : > { %v4039_v12 = vpop.eup %4038  ;;  %v5443_v24 = vadd.f32 1.0, %v4037_v37 }
 0x4c7   : > { %v4041_v49 = vpop.eup %4040  ;;  %v5445_v33 = vadd.f32 1.0, %v4039_v12 }
 0x4c8   : > { %v4043_v23 = vpop.eup %4042  ;;  %v2237_v0 = vmul.f32 %v4041_v49, %v2234_v61  ;;  %4048 = vrcp.f32 %v5443_v24  ;;  %vm2242_vm15 = vweird.f32 %v4041_v49  ;;  %vm2319_vm4 = vweird.f32 %v5443_v24 }
 0x4c9   : > { %v4045_v15 = vpop.eup %4044  ;;  %v2275_v4 = vmul.f32 %v4043_v23, %v2272_v9  ;;  %4050 = vrcp.f32 %v5445_v33  ;;  %vm2280_vm7 = vweird.f32 %v4043_v23  ;;  %vm2243_vm11 = vmor %vm2241_vm8, %vm2242_vm15  ;;  %vm2256_vm14 = vweird.f32 %v5445_v33 }
 0x4ca   : > { %v2238_v43 = vsub.f32 1.0, %v2237_v0  ;;  %v5451_v54 = vadd.f32 1.0, %v4045_v15  ;;  %4052 = vpow2.f32 %v3706_v38  ;;  %v4047_v13 = vpop.eup %4046  ;;  %v2248_v0 = vor.u32 1.1754944e-38, %v2247_v51  ;;  %vm2281_vm13 = vmor %vm2279_vm5, %vm2280_vm7 }
 0x4cb   : > { %v2276_v41 = vsub.f32 1.0, %v2275_v4  ;;  %v2286_v4 = vor.u32 1.1754944e-38, %v2285_v16 }
 0x4cc   : > { %v2239_v8 = vmul.f32 %v4041_v49, %v2238_v43  ;;  %4054 = vrcp.f32 %v5451_v54  ;;  %vm2294_vm15 = vweird.f32 %v5451_v54 }
 0x4cd   : > { %v2277_v56 = vmul.f32 %v4043_v23, %v2276_v41  ;;  %4056 = vtanh.f32 %v2226_v21  ;;  %v2262_v41 = vand.u32 2147483648, %v5445_v33 }
 0x4ce   : > { %v5455_v37 = vpop.eup %4048  ;;  %v2240_v12 = vadd.f32 %v4041_v49, %v2239_v8 }
 0x4cf   : > { %v4051_v15 = vpop.eup %4050  ;;  %v2278_v38 = vadd.f32 %v4043_v23, %v2277_v56  ;;  %v2315_v44 = vmul.f32 %v5455_v37, %v5443_v24  ;;  %vm2320_vm1 = vweird.f32 %v5455_v37 }
 0x4d0   : > { %v2244_v52 = vsel %vm2243_vm11, %v4041_v49, %v2240_v12  ;;  %v2252_v61 = vmul.f32 %v4051_v15, %v5445_v33  ;;  %v4053_v9 = vpop.eup %4052  ;;  %v2260_v12 = vand.u32 2147483647, %v5445_v33  ;;  %vm2257_vm0 = vweird.f32 %v4051_v15  ;;  %vm5483_vm7 = vmor %vm2319_vm4, %vm2320_vm1 }
 0x4d1   : > { %v2249_v43 = vsel %vm2246_vm10, %v2248_v0, %v2244_v52  ;;  %v2282_v50 = vsel %vm2281_vm13, %v4043_v23, %v2278_v38  ;;  %v2316_v51 = vsub.f32 1.0, %v2315_v44  ;;  %v2313_v34 = vadd.f32 1.0, %v4053_v9  ;;  %vm2258_vm12 = vmor %vm2256_vm14, %vm2257_vm0 }
 0x4d2   : > { %v4055_v16 = vpop.eup %4054  ;;  %v2287_v8 = vsel %vm2284_vm6, %v2286_v4, %v2282_v50  ;;  %v2346_v56 = vmul.f32 %v4047_v13, %v2249_v43  ;;  %v2253_v1 = vsub.f32 1.0, %v2252_v61  ;;  %v2325_v23 = vand.u32 2147483648, %v5443_v24 }
 0x4d3   : > { %v2344_v17 = vmul.f32 %v2287_v8, %v5372_v63  ;;  %v2290_v49 = vmul.f32 %v4055_v16, %v5451_v54  ;;  %v2317_v36 = vmul.f32 %v5455_v37, %v2316_v51  ;;  %4058 = vrcp.f32 %v2313_v34  ;;  %v4057_v44 = vpop.eup %4056 }
 0x4d4   : > { %v2254_v21 = vmul.f32 %v4051_v15, %v2253_v1  ;;  %v2300_v4 = vand.u32 2147483648, %v5451_v54  ;;  %v2263_v13 = vor.u32 1.1754944e-38, %v2262_v41  ;;  %v2298_v61 = vand.u32 2147483647, %v5451_v54 }
 0x4d5   : > { %v2348_v0 = vadd.f32 %v2346_v56, %v2344_v17  ;;  %v2291_v38 = vsub.f32 1.0, %v2290_v49  ;;  %v2318_v9 = vadd.f32 %v5455_v37, %v2317_v36  ;;  %vm2295_vm2 = vweird.f32 %v4055_v16 }
 0x4d6   : > { %v2255_v52 = vadd.f32 %v4051_v15, %v2254_v21  ;;  %vm2261_vm3 = vcmp.eq.f32.partialorder %v2260_v12, 8.507059e+37  ;;  %v2323_v36 = vand.u32 2147483647, %v5443_v24  ;;  %vm2296_vm8 = vmor %vm2294_vm15, %vm2295_vm2  ;;  %v2301_v56 = vor.u32 1.1754944e-38, %v2300_v4 }
 0x4d7   : > { %4060 = vtanh.f32 %v2348_v0  ;;  %v2292_v43 = vmul.f32 %v4055_v16, %v2291_v38  ;;  %v5478_v17 = vsel %vm2358_vm9, %v2348_v0, %v5372_v63  ;;  %v2322_v63 = vsel %vm5483_vm7, %v5455_v37, %v2318_v9 }
 0x4d8   : > { %v2259_v50 = vsel %vm2258_vm12, %v4051_v15, %v2255_v52  ;;  %v2326_v15 = vor.u32 1.1754944e-38, %v2325_v23  ;;  %vm2299_vm5 = vcmp.eq.f32.partialorder %v2298_v61, 8.507059e+37  ;;  %vm2324_vm10 = vcmp.eq.f32.partialorder %v2323_v36, 8.507059e+37 }
 0x4d9   : > { %v2264_v51 = vsel %vm2261_vm3, %v2263_v13, %v2259_v50  ;;  %v2293_v41 = vadd.f32 %v4055_v16, %v2292_v43  ;;  %v4059_v33 = vpop.eup %4058  ;;  %v2340_v23 = vand.u32 2147483648, %v2313_v34  ;;  %vm2334_vm6 = vweird.f32 %v2313_v34 }
 0x4da   : > { %v2347_v49 = vmul.f32 %v4057_v44, %v2264_v51  ;;  %v2330_v24 = vmul.f32 %v4059_v33, %v2313_v34  ;;  %v2327_v38 = vsel %vm2324_vm10, %v2326_v15, %v2322_v63  ;;  %vm2335_vm11 = vweird.f32 %v4059_v33 }
 0x4db   : > { %v2297_v1 = vsel %vm2296_vm8, %v4055_v16, %v2293_v41  ;;  %v2338_v44 = vand.u32 2147483647, %v2313_v34  ;;  %vm2336_vm13 = vmor %vm2334_vm6, %vm2335_vm11  ;;  %v2341_v9 = vor.u32 1.1754944e-38, %v2340_v23 }
 0x4dc   : > { %v2302_v12 = vsel %vm2299_vm5, %v2301_v56, %v2297_v1  ;;  %v2331_v0 = vsub.f32 1.0, %v2330_v24 }
 0x4dd   : > { %v4061_v54 = vpop.eup %4060  ;;  %v2345_v21 = vmul.f32 %v2302_v12, %v5394_v53  ;;  %vm2339_vm14 = vcmp.eq.f32.partialorder %v2338_v44, 8.507059e+37  ;;  %v2423_v12 = vld [vmem:[#allocation2 + $0x1d8] sm:$0xff] }
 0x4de   : > { %v2352_v13 = vmul.f32 %v4061_v54, %v2327_v38  ;;  %v2332_v43 = vmul.f32 %v4059_v33, %v2331_v0 }
 0x4df   : > { %v2349_v52 = vadd.f32 %v2347_v49, %v2345_v21  ;;  %v5555_v21 = vstv %s2618_s13  ;;  %s4284_s13 = smov 8  }
 0x4e0   : > { %v5494_v4 = vsel %vm2358_vm9, %v2352_v13, %v5388_v30  ;;  %v2333_v16 = vadd.f32 %v4059_v33, %v2332_v43  ;;  %vm2620_vm2 = vcmp.eq.s32.totalorder %v5555_v21, 1 }
 0x4e1   : > { %4062 = vtanh.f32 %v2349_v52  ;;  %2363 = vadd.xlane.f32.xlu2 %v5494_v4  ;;  %v5500_v37 = vsel %vm2358_vm9, %v2349_v52, %v5394_v53 }
 0x4e2   : > { %v2337_v61 = vsel %vm2336_vm13, %v4059_v33, %v2333_v16 }
 0x4e3   : > { %v2342_v36 = vsel %vm2339_vm14, %v2341_v9, %v2337_v61 }
 0x4e7   : > { %v4063_v50 = vpop.eup %4062 }
 0x4e8   : > { %v2353_v51 = vmul.f32 %v4063_v50, %v2342_v36 }
 0x4ea   : > { %v5505_v41 = vsel %vm2358_vm9, %v2353_v51, %v5399_v55 }
 0x4eb   : > { %2365 = vadd.xlane.f32.xlu0 %v5505_v41  ;;  %v2425_v53 = vpack.c.bf16 %v5505_v41, %v5494_v4 }
 0x4ed   : > { %2434 = vmatmul.bf16.vlgmr.msra.gmra.mxu0 %v2425_v53  ;;  %2448 = vmatmul.bf16.vlgmr.msra.gmra.mxu1 %v2425_v53 }
 0x4ee   : > { %2462 = vmatmul.bf16.vlgmr.msra.gmra.mxu2 %v2425_v53  ;;  %2476 = vmatmul.bf16.vlgmr.msra.gmra.mxu3 %v2425_v53 }
 0x4ef   : > { %2950 = vmatpush.bf16.msra.mxu0 %v4652_v48  ;;  %2964 = vmatpush.bf16.msra.mxu1 %v4663_v57  ;;  %v6210_v48 = vld [vmem:[#allocation11_spill] sm:$0xff] }
 0x4f0   : > { %2978 = vmatpush.bf16.msra.mxu2 %v4703_v7  ;;  %2992 = vmatpush.bf16.msra.mxu3 %v4665_v58  ;;  %v2417_v57 = vld [vmem:[#allocation2 + $0x1a0] sm:$0xff]  ;;  %v2418_v58 = vld [vmem:[#allocation2 + $0x1f0] sm:$0xff] }
 0x4f3   : > { %2951 = vmatpush.bf16.msra.mxu0 %v4677_v62  ;;  %2965 = vmatpush.bf16.msra.mxu1 %v4690_v2 }
 0x4f4   : > { %2979 = vmatpush.bf16.msra.mxu2 %v4742_v20  ;;  %2993 = vmatpush.bf16.msra.mxu3 %v4692_v3  ;;  %v2421_v20 = vld [vmem:[#allocation2 + $0x70] sm:$0xff] }
 0x4f7   : > { %2952 = vmatpush.bf16.msra.mxu0 %v4725_v14  ;;  %2966 = vmatpush.bf16.msra.mxu1 %v4738_v18 }
 0x4f8   : > { %2980 = vmatpush.bf16.msra.mxu2 %v4766_v28  ;;  %2994 = vmatpush.bf16.msra.mxu3 %v4740_v19  ;;  %v2420_v19 = vld [vmem:[#allocation2 + $0x78] sm:$0xff] }
 0x4fb   : > { %2953 = vmatpush.bf16.msra.mxu0 %v4764_v27  ;;  %2967 = vmatpush.bf16.msra.mxu1 %v4776_v31  ;;  %v2422_v27 = vld [vmem:[#allocation2 + $0x90] sm:$0xff] }
 0x4fc   : > { %2981 = vmatpush.bf16.msra.mxu2 %v4802_v40  ;;  %2995 = vmatpush.bf16.msra.mxu3 %v4778_v32 }
 0x4ff   : > { %2954 = vmatpush.bf16.msra.mxu0 %v4800_v39  ;;  %2968 = vmatpush.bf16.msra.mxu1 %v4812_v45 }
 0x500   : > { %2982 = vmatpush.bf16.msra.mxu2 %v4838_v47  ;;  %2996 = vmatpush.bf16.msra.mxu3 %v4814_v46 }
 0x503   : > { %2955 = vmatpush.bf16.msra.mxu0 %v4836_v42  ;;  %2969 = vmatpush.bf16.msra.mxu1 %v4851_v59 }
 0x504   : > { %2983 = vmatpush.bf16.msra.mxu2 %v4874_v6  ;;  %2997 = vmatpush.bf16.msra.mxu3 %v4853_v60 }
 0x507   : > { %2956 = vmatpush.bf16.msra.mxu0 %v4872_v5  ;;  %2970 = vmatpush.bf16.msra.mxu1 %v4884_v10 }
 0x508   : > { %2984 = vmatpush.bf16.msra.mxu2 %v4914_v25  ;;  %2998 = vmatpush.bf16.msra.mxu3 %v4886_v11  ;;  %v2419_v11 = vld [vmem:[#allocation2 + $0xe8] sm:$0xff] }
 0x50b   : > { %2957 = vmatpush.bf16.msra.mxu0 %v4908_v22  ;;  %2971 = vmatpush.bf16.msra.mxu1 %v4918_v26  ;;  %v2424_v22 = vld [vmem:[#allocation2 + $0xd0] sm:$0xff] }
 0x50c   : > { %2985 = vmatpush.bf16.msra.mxu2 %v4934_v35  ;;  %2999 = vmatpush.bf16.msra.mxu3 %v6210_v48 }
 0x56a   : > { %v2435_v62 = vpop.f32.mrf.mxu0  ;;  %v2449_v2 = vpop.f32.mrf.mxu1 }
 0x56b   : > { %v2482_v3 = vadd.f32 %v2435_v62, %v2417_v57  ;;  %v2483_v7 = vadd.f32 %v2449_v2, %v2418_v58 }
 0x56d   : > { %v3709_v14 = vmul.f32 -1.442695, %v2482_v3  ;;  %v3711_v18 = vmul.f32 -1.442695, %v2483_v7 }
 0x56f   : > { %4064 = vpow2.f32 %v3709_v14 }
 0x570   : > { %4066 = vpow2.f32 %v3711_v18 }
 0x571   : > { %v2477_v28 = vpop.f32.mrf.mxu3  ;;  %v2463_v5 = vpop.f32.mrf.mxu2 }
 0x572   : > { %v2485_v31 = vadd.f32 %v2477_v28, %v2420_v19  ;;  %v2437_v32 = vpop.f32.mrf.mxu0  ;;  %v2451_v39 = vpop.f32.mrf.mxu1  ;;  %v2484_v26 = vadd.f32 %v2463_v5, %v2419_v11 }
 0x573   : > { %v2486_v40 = vadd.f32 %v2437_v32, %v2421_v20  ;;  %v2487_v45 = vadd.f32 %v2451_v39, %v2422_v27 }
 0x574   : > { %v3713_v46 = vmul.f32 -1.442695, %v2485_v31 }
 0x575   : > { %v4065_v42 = vpop.eup %4064  ;;  %v3710_v47 = vmul.f32 -1.442695, %v2486_v40  ;;  %v3712_v6 = vmul.f32 -1.442695, %v2487_v45 }
 0x576   : > { %v4067_v59 = vpop.eup %4066  ;;  %v2496_v60 = vadd.f32 1.0, %v4065_v42  ;;  %4068 = vpow2.f32 %v3713_v46 }
 0x577   : > { %v2534_v10 = vadd.f32 1.0, %v4067_v59  ;;  %4070 = vpow2.f32 %v3710_v47 }
 0x578   : > { %4072 = vrcp.f32 %v2496_v60  ;;  %v2507_v38 = vand.u32 2147483647, %v2496_v60  ;;  %v2509_v13 = vand.u32 2147483648, %v2496_v60  ;;  %vm2503_vm1 = vweird.f32 %v2496_v60 }
 0x579   : > { %4074 = vrcp.f32 %v2534_v10  ;;  %v2479_v25 = vpop.f32.mrf.mxu3  ;;  %v2465_v54 = vpop.f32.mrf.mxu2  ;;  %v2547_v16 = vand.u32 2147483648, %v2534_v10  ;;  %v2545_v23 = vand.u32 2147483647, %v2534_v10  ;;  %vm2541_vm12 = vweird.f32 %v2534_v10 }
 0x57a   : > { %4076 = vpow2.f32 %v3712_v6  ;;  %v2489_v35 = vadd.f32 %v2479_v25, %v2424_v22  ;;  %v2488_v61 = vadd.f32 %v2465_v54, %v2423_v12  ;;  %vm2508_vm3 = vcmp.eq.f32.partialorder %v2507_v38, 8.507059e+37 }
 0x57b   : > { %4078 = vtanh.f32 %v2484_v26  ;;  %v2510_v53 = vor.u32 1.1754944e-38, %v2509_v13  ;;  %v2548_v57 = vor.u32 1.1754944e-38, %v2547_v16  ;;  %vm2546_vm15 = vcmp.eq.f32.partialorder %v2545_v23, 8.507059e+37 }
 0x57c   : > { %v4069_v34 = vpop.eup %4068  ;;  %v3714_v63 = vmul.f32 -1.442695, %v2489_v35 }
 0x57d   : > { %v4071_v29 = vpop.eup %4070  ;;  %v5549_v8 = vadd.f32 1.0, %v4069_v34 }
 0x57e   : > { %v4073_v33 = vpop.eup %4072  ;;  %v5551_v56 = vadd.f32 1.0, %v4071_v29 }
 0x57f   : > { %v4075_v15 = vpop.eup %4074  ;;  %v2499_v1 = vmul.f32 %v4073_v33, %v2496_v60  ;;  %4080 = vrcp.f32 %v5549_v8  ;;  %vm2504_vm9 = vweird.f32 %v4073_v33  ;;  %v2587_v59 = vand.u32 2147483648, %v5549_v8 }
 0x580   : > { %v4077_v49 = vpop.eup %4076  ;;  %v2537_v24 = vmul.f32 %v4075_v15, %v2534_v10  ;;  %4082 = vrcp.f32 %v5551_v56  ;;  %vm2542_vm0 = vweird.f32 %v4075_v15  ;;  %vm2505_vm4 = vmor %vm2503_vm1, %vm2504_vm9  ;;  %vm2518_vm8 = vweird.f32 %v5551_v56 }
 0x581   : > { %v2500_v0 = vsub.f32 1.0, %v2499_v1  ;;  %v5557_v52 = vadd.f32 1.0, %v4077_v49  ;;  %4084 = vpow2.f32 %v3714_v63  ;;  %v4079_v9 = vpop.eup %4078  ;;  %vm2543_vm7 = vmor %vm2541_vm12, %vm2542_vm0  ;;  %v2524_v20 = vand.u32 2147483648, %v5551_v56 }
 0x582   : > { %v2538_v43 = vsub.f32 1.0, %v2537_v24  ;;  %v2522_v46 = vand.u32 2147483647, %v5551_v56  ;;  %vm2581_vm14 = vweird.f32 %v5549_v8  ;;  %v2588_v24 = vor.u32 1.1754944e-38, %v2587_v59 }
 0x583   : > { %v2501_v44 = vmul.f32 %v4073_v33, %v2500_v0  ;;  %4086 = vrcp.f32 %v5557_v52  ;;  %v2562_v6 = vand.u32 2147483648, %v5557_v52  ;;  %v2525_v10 = vor.u32 1.1754944e-38, %v2524_v20 }
 0x584   : > { %v2539_v50 = vmul.f32 %v4075_v15, %v2538_v43  ;;  %4088 = vtanh.f32 %v2488_v61  ;;  %v2560_v25 = vand.u32 2147483647, %v5557_v52  ;;  %vm2523_vm13 = vcmp.eq.f32.partialorder %v2522_v46, 8.507059e+37 }
 0x585   : > { %v5561_v36 = vpop.eup %4080  ;;  %v2502_v51 = vadd.f32 %v4073_v33, %v2501_v44  ;;  %vm2556_vm9 = vweird.f32 %v5557_v52  ;;  %v2563_v49 = vor.u32 1.1754944e-38, %v2562_v6 }
 0x586   : > { %v4083_v48 = vpop.eup %4082  ;;  %v2540_v58 = vadd.f32 %v4075_v15, %v2539_v50  ;;  %v2577_v62 = vmul.f32 %v5561_v36, %v5549_v8  ;;  %vm2582_vm10 = vweird.f32 %v5561_v36  ;;  %vm2561_vm12 = vcmp.eq.f32.partialorder %v2560_v25, 8.507059e+37 }
 0x587   : > { %v2506_v2 = vsel %vm2505_vm4, %v4073_v33, %v2502_v51  ;;  %v2514_v3 = vmul.f32 %v4083_v48, %v5551_v56  ;;  %v4085_v7 = vpop.eup %4084  ;;  %vm2519_vm5 = vweird.f32 %v4083_v48  ;;  %v2585_v33 = vand.u32 2147483647, %v5549_v8  ;;  %vm5589_vm0 = vmor %vm2581_vm14, %vm2582_vm10 }
 0x588   : > { %v2511_v14 = vsel %vm2508_vm3, %v2510_v53, %v2506_v2  ;;  %v2544_v18 = vsel %vm2543_vm7, %v4075_v15, %v2540_v58  ;;  %v2578_v19 = vsub.f32 1.0, %v2577_v62  ;;  %v2575_v39 = vadd.f32 1.0, %v4085_v7  ;;  %vm2520_vm6 = vmor %vm2518_vm8, %vm2519_vm5  ;;  %v2680_v7 = vld [vmem:[#allocation2 + $0x88] sm:$0xff] }
 0x589   : > { %v4087_v27 = vpop.eup %4086  ;;  %v2549_v28 = vsel %vm2546_vm15, %v2548_v57, %v2544_v18  ;;  %v2608_v31 = vmul.f32 %v4079_v9, %v2511_v14  ;;  %v2515_v32 = vsub.f32 1.0, %v2514_v3  ;;  %vm2586_vm3 = vcmp.eq.f32.partialorder %v2585_v33, 8.507059e+37  ;;  %v2679_v3 = vld [vmem:[#allocation2 + $0xb8] sm:$0xff] }
 0x58a   : > { %v2606_v40 = vmul.f32 %v2549_v28, %v5478_v17  ;;  %v2552_v45 = vmul.f32 %v4087_v27, %v5557_v52  ;;  %v2579_v42 = vmul.f32 %v5561_v36, %v2578_v19  ;;  %4090 = vrcp.f32 %v2575_v39  ;;  %v4089_v11 = vpop.eup %4088  ;;  %v2682_v28 = vld [vmem:[#allocation2 + $0x1c8] sm:$0xff] }
 0x58b   : > { %v2516_v47 = vmul.f32 %v4083_v48, %v2515_v32  ;;  %vm2557_vm11 = vweird.f32 %v4087_v27  ;;  %vm2596_vm15 = vweird.f32 %v2575_v39  ;;  %v2600_v51 = vand.u32 2147483647, %v2575_v39  ;;  %v2684_v32 = vld [vmem:[#allocation2 + $0x178] sm:$0xff] }
 0x58c   : > { %v2610_v60 = vadd.f32 %v2608_v31, %v2606_v40  ;;  %v2553_v5 = vsub.f32 1.0, %v2552_v45  ;;  %v2580_v26 = vadd.f32 %v5561_v36, %v2579_v42  ;;  %vm2558_vm1 = vmor %vm2556_vm9, %vm2557_vm11  ;;  %v2683_v31 = vld [vmem:[#allocation2 + $0x170] sm:$0xff] }
 0x58d   : > { %v2517_v22 = vadd.f32 %v4083_v48, %v2516_v47  ;;  %vm2601_vm8 = vcmp.eq.f32.partialorder %v2600_v51, 8.507059e+37 }
 0x58e   : > { %4092 = vtanh.f32 %v2610_v60  ;;  %v2554_v35 = vmul.f32 %v4087_v27, %v2553_v5  ;;  %v5584_v34 = vsel %vm2620_vm2, %v2610_v60, %v5478_v17  ;;  %v2584_v17 = vsel %vm5589_vm0, %v5561_v36, %v2580_v26  ;;  %v2681_v26 = vld [vmem:[#allocation2 + $0xa8] sm:$0xff] }
 0x58f   : > { %v2521_v29 = vsel %vm2520_vm6, %v4083_v48, %v2517_v22  ;;  %v2589_v43 = vsel %vm2586_vm3, %v2588_v24, %v2584_v17  ;;  %v2602_v36 = vand.u32 2147483648, %v2575_v39 }
 0x590   : > { %v2526_v63 = vsel %vm2523_vm13, %v2525_v10, %v2521_v29  ;;  %v2555_v15 = vadd.f32 %v4087_v27, %v2554_v35  ;;  %v4091_v56 = vpop.eup %4090  ;;  %v2686_v35 = vld [vmem:[#allocation2 + $0x190] sm:$0xff] }
 0x591   : > { %v2609_v54 = vmul.f32 %v4089_v11, %v2526_v63  ;;  %v2592_v8 = vmul.f32 %v4091_v56, %v2575_v39  ;;  %vm2597_vm4 = vweird.f32 %v4091_v56  ;;  %v2603_v48 = vor.u32 1.1754944e-38, %v2602_v36 }
 0x592   : > { %v2559_v12 = vsel %vm2558_vm1, %v4087_v27, %v2555_v15  ;;  %vm2598_vm7 = vmor %vm2596_vm15, %vm2597_vm4 }
 0x593   : > { %v2564_v0 = vsel %vm2561_vm12, %v2563_v49, %v2559_v12  ;;  %v2593_v52 = vsub.f32 1.0, %v2592_v8 }
 0x594   : > { %v4093_v38 = vpop.eup %4092  ;;  %v2607_v13 = vmul.f32 %v2564_v0, %v5500_v37 }
 0x595   : > { %v2614_v16 = vmul.f32 %v4093_v38, %v2589_v43  ;;  %v2594_v44 = vmul.f32 %v4091_v56, %v2593_v52  ;;  %v2685_v38 = vld [vmem:[#allocation2 + $0x68] sm:$0xff]  ;;  %v5629_v52 = vstv %s2880_s17  ;;  %s3250_s17 = sshll.u32 %s6173_s8, 4  ;;  %s3251_s17 = int_to_ptr.hbm [resolvable:$true] %s3250_s17 }
 0x596   : > { %v2611_v23 = vadd.f32 %v2609_v54, %v2607_v13  ;;  %vm2882_vm11 = vcmp.eq.s32.totalorder %v5629_v52, 1 }
 0x597   : > { %v5600_v61 = vsel %vm2620_vm2, %v2614_v16, %v5494_v4  ;;  %v2595_v50 = vadd.f32 %v4091_v56, %v2594_v44 }
 0x598   : > { %4094 = vtanh.f32 %v2611_v23  ;;  %2625 = vadd.xlane.f32.xlu1 %v5600_v61  ;;  %v5606_v9 = vsel %vm2620_vm2, %v2611_v23, %v5500_v37 }
 0x599   : > { %v2599_v53 = vsel %vm2598_vm7, %v4091_v56, %v2595_v50 }
 0x59a   : > { %v2604_v58 = vsel %vm2601_vm8, %v2603_v48, %v2599_v53 }
 0x59e   : > { %v4095_v57 = vpop.eup %4094 }
 0x59f   : > { %v2615_v62 = vmul.f32 %v4095_v57, %v2604_v58 }
 0x5a1   : > { %v5611_v2 = vsel %vm2620_vm2, %v2615_v62, %v5505_v41 }
 0x5a2   : > { %2627 = vadd.xlane.f32.xlu2 %v5611_v2  ;;  %v2687_v37 = vpack.c.bf16 %v5611_v2, %v5600_v61 }
 0x5a4   : > { %2696 = vmatmul.bf16.vlgmr.msrb.gmra.mxu0 %v2687_v37  ;;  %2710 = vmatmul.bf16.vlgmr.msrb.gmra.mxu1 %v2687_v37 }
 0x5a5   : > { %2724 = vmatmul.bf16.vlgmr.msrb.gmra.mxu2 %v2687_v37  ;;  %2738 = vmatmul.bf16.vlgmr.msrb.gmra.mxu3 %v2687_v37 }
 0x621   : > { %v2697_v14 = vpop.f32.mrf.mxu0  ;;  %v2711_v18 = vpop.f32.mrf.mxu1 }
 0x622   : > { %v2744_v19 = vadd.f32 %v2697_v14, %v2679_v3  ;;  %v2745_v20 = vadd.f32 %v2711_v18, %v2680_v7 }
 0x624   : > { %v3717_v27 = vmul.f32 -1.442695, %v2744_v19  ;;  %v3719_v21 = vmul.f32 -1.442695, %v2745_v20 }
 0x626   : > { %4096 = vpow2.f32 %v3717_v27 }
 0x627   : > { %4098 = vpow2.f32 %v3719_v21 }
 0x628   : > { %v2739_v39 = vpop.f32.mrf.mxu3  ;;  %v2725_v11 = vpop.f32.mrf.mxu2 }
 0x629   : > { %v2747_v40 = vadd.f32 %v2739_v39, %v2682_v28  ;;  %v2699_v45 = vpop.f32.mrf.mxu0  ;;  %v2713_v46 = vpop.f32.mrf.mxu1  ;;  %v2746_v33 = vadd.f32 %v2725_v11, %v2681_v26 }
 0x62a   : > { %v2748_v42 = vadd.f32 %v2699_v45, %v2683_v31  ;;  %v2749_v47 = vadd.f32 %v2713_v46, %v2684_v32 }
 0x62b   : > { %v3721_v59 = vmul.f32 -1.442695, %v2747_v40 }
 0x62c   : > { %v4097_v60 = vpop.eup %4096  ;;  %v3718_v5 = vmul.f32 -1.442695, %v2748_v42  ;;  %v3720_v22 = vmul.f32 -1.442695, %v2749_v47 }
 0x62d   : > { %v4099_v6 = vpop.eup %4098  ;;  %v2758_v10 = vadd.f32 1.0, %v4097_v60  ;;  %4100 = vpow2.f32 %v3721_v59 }
 0x62e   : > { %v2796_v25 = vadd.f32 1.0, %v4099_v6  ;;  %4102 = vpow2.f32 %v3718_v5 }
 0x62f   : > { %4104 = vrcp.f32 %v2758_v10  ;;  %v2769_v16 = vand.u32 2147483647, %v2758_v10  ;;  %v2771_v23 = vand.u32 2147483648, %v2758_v10  ;;  %vm2765_vm10 = vweird.f32 %v2758_v10 }
 0x630   : > { %4106 = vrcp.f32 %v2796_v25  ;;  %v2741_v29 = vpop.f32.mrf.mxu3  ;;  %v2727_v13 = vpop.f32.mrf.mxu2  ;;  %v2809_v36 = vand.u32 2147483648, %v2796_v25  ;;  %v2807_v51 = vand.u32 2147483647, %v2796_v25  ;;  %vm2803_vm6 = vweird.f32 %v2796_v25 }
 0x631   : > { %4108 = vpow2.f32 %v3720_v22  ;;  %v2751_v63 = vadd.f32 %v2741_v29, %v2686_v35  ;;  %v2750_v48 = vadd.f32 %v2727_v13, %v2685_v38  ;;  %vm2770_vm13 = vcmp.eq.f32.partialorder %v2769_v16, 8.507059e+37 }
 0x632   : > { %4110 = vtanh.f32 %v2746_v33  ;;  %v2772_v3 = vor.u32 1.1754944e-38, %v2771_v23  ;;  %v2810_v14 = vor.u32 1.1754944e-38, %v2809_v36  ;;  %vm2808_vm9 = vcmp.eq.f32.partialorder %v2807_v51, 8.507059e+37 }
 0x633   : > { %v4101_v15 = vpop.eup %4100  ;;  %v3722_v24 = vmul.f32 -1.442695, %v2751_v63 }
 0x634   : > { %v4103_v1 = vpop.eup %4102  ;;  %v5623_v56 = vadd.f32 1.0, %v4101_v15 }
 0x635   : > { %v4105_v49 = vpop.eup %4104  ;;  %v5625_v17 = vadd.f32 1.0, %v4103_v1 }
 0x636   : > { %v4107_v12 = vpop.eup %4106  ;;  %v2761_v54 = vmul.f32 %v4105_v49, %v2758_v10  ;;  %4112 = vrcp.f32 %v5623_v56  ;;  %vm2766_vm2 = vweird.f32 %v4105_v49  ;;  %v2849_v11 = vand.u32 2147483648, %v5623_v56 }
 0x637   : > { %v4109_v8 = vpop.eup %4108  ;;  %v2799_v0 = vmul.f32 %v4107_v12, %v2796_v25  ;;  %4114 = vrcp.f32 %v5625_v17  ;;  %vm2804_vm5 = vweird.f32 %v4107_v12  ;;  %vm2767_vm14 = vmor %vm2765_vm10, %vm2766_vm2  ;;  %vm2780_vm1 = vweird.f32 %v5625_v17 }
 0x638   : > { %v2762_v43 = vsub.f32 1.0, %v2761_v54  ;;  %v5631_v44 = vadd.f32 1.0, %v4109_v8  ;;  %4116 = vpow2.f32 %v3722_v24  ;;  %v4111_v57 = vpop.eup %4110  ;;  %vm2805_vm0 = vmor %vm2803_vm6, %vm2804_vm5  ;;  %v2786_v39 = vand.u32 2147483648, %v5625_v17 }
 0x639   : > { %v2800_v50 = vsub.f32 1.0, %v2799_v0  ;;  %v2784_v5 = vand.u32 2147483647, %v5625_v17  ;;  %vm2843_vm8 = vweird.f32 %v5623_v56  ;;  %v2850_v13 = vor.u32 1.1754944e-38, %v2849_v11 }
 0x63a   : > { %v2763_v53 = vmul.f32 %v4105_v49, %v2762_v43  ;;  %4118 = vrcp.f32 %v5631_v44  ;;  %v2824_v26 = vand.u32 2147483648, %v5631_v44  ;;  %v2787_v35 = vor.u32 1.1754944e-38, %v2786_v39 }
 0x63b   : > { %v2801_v58 = vmul.f32 %v4107_v12, %v2800_v50  ;;  %4120 = vtanh.f32 %v2750_v48  ;;  %v2822_v63 = vand.u32 2147483647, %v5631_v44  ;;  %vm2785_vm7 = vcmp.eq.f32.partialorder %v2784_v5, 8.507059e+37 }
 0x63c   : > { %v5635_v62 = vpop.eup %4112  ;;  %v2764_v37 = vadd.f32 %v4105_v49, %v2763_v53  ;;  %vm2818_vm2 = vweird.f32 %v5631_v44  ;;  %v2825_v38 = vor.u32 1.1754944e-38, %v2824_v26 }
 0x63d   : > { %v4115_v7 = vpop.eup %4114  ;;  %v2802_v18 = vadd.f32 %v4107_v12, %v2801_v58  ;;  %v2839_v19 = vmul.f32 %v5635_v62, %v5623_v56  ;;  %vm2844_vm3 = vweird.f32 %v5635_v62  ;;  %vm2823_vm6 = vcmp.eq.f32.partialorder %v2822_v63, 8.507059e+37 }
 0x63e   : > { %v2768_v20 = vsel %vm2767_vm14, %v4105_v49, %v2764_v37  ;;  %v2776_v27 = vmul.f32 %v4115_v7, %v5625_v17  ;;  %v4117_v21 = vpop.eup %4116  ;;  %vm2781_vm12 = vweird.f32 %v4115_v7  ;;  %vm5666_vm5 = vmor %vm2843_vm8, %vm2844_vm3  ;;  %v930_v58 = vlaneseq  ;;  %v1311_v37 = vpop.xlane.xlu0 %1310 }
 0x63f   : > { %v2773_v28 = vsel %vm2770_vm13, %v2772_v3, %v2768_v20  ;;  %v2806_v31 = vsel %vm2805_vm0, %v4107_v12, %v2802_v18  ;;  %v2840_v32 = vsub.f32 1.0, %v2839_v19  ;;  %v5643_v47 = vadd.f32 1.0, %v4117_v21  ;;  %vm2782_vm15 = vmor %vm2780_vm1, %vm2781_vm12  ;;  %v5675_v3 = vpop.xlane.xlu1 %1577 }
 0x640   : > { %v4119_v40 = vpop.eup %4118  ;;  %v2811_v45 = vsel %vm2808_vm9, %v2810_v14, %v2806_v31  ;;  %v2870_v46 = vmul.f32 %v4111_v57, %v2773_v28  ;;  %v2777_v42 = vsub.f32 1.0, %v2776_v27  ;;  %v2847_v12 = vand.u32 2147483647, %v5623_v56 }
 0x641   : > { %v2868_v59 = vmul.f32 %v2811_v45, %v5584_v34  ;;  %v2814_v60 = vmul.f32 %v4119_v40, %v5631_v44  ;;  %v2841_v6 = vmul.f32 %v5635_v62, %v2840_v32  ;;  %4122 = vrcp.f32 %v5643_v47  ;;  %v4121_v29 = vpop.eup %4120 }
 0x642   : > { %v2778_v10 = vmul.f32 %v4115_v7, %v2777_v42  ;;  %vm2819_vm4 = vweird.f32 %v4119_v40  ;;  %vm2848_vm13 = vcmp.eq.f32.partialorder %v2847_v12, 8.507059e+37  ;;  %v2864_v18 = vand.u32 2147483648, %v5643_v47 }
 0x643   : > { %v2872_v22 = vadd.f32 %v2870_v46, %v2868_v59  ;;  %v2815_v25 = vsub.f32 1.0, %v2814_v60  ;;  %v2842_v15 = vadd.f32 %v5635_v62, %v2841_v6  ;;  %vm2820_vm10 = vmor %vm2818_vm2, %vm2819_vm4  ;;  %vm2858_vm9 = vweird.f32 %v5643_v47 }
 0x644   : > { %v2779_v33 = vadd.f32 %v4115_v7, %v2778_v10  ;;  %v2862_v19 = vand.u32 2147483647, %v5643_v47  ;;  %v931_v20 = vand.u32 127, %v930_v58  ;;  %v1314_v21 = vmul.f32 0.03125, %v1311_v37  ;;  %v6218_v10 = vld [vmem:[#allocation15_spill] sm:$0xff] }
 0x645   : > { %4124 = vtanh.f32 %v2872_v22  ;;  %v2816_v1 = vmul.f32 %v4119_v40, %v2815_v25  ;;  %v5661_v49 = vsel %vm2882_vm11, %v2872_v22, %v5584_v34  ;;  %v2846_v34 = vsel %vm5666_vm5, %v5635_v62, %v2842_v15 }
 0x646   : > { %v2783_v24 = vsel %vm2782_vm15, %v4115_v7, %v2779_v33  ;;  %v2851_v51 = vsel %vm2848_vm13, %v2850_v13, %v2846_v34  ;;  %v2865_v28 = vor.u32 1.1754944e-38, %v2864_v18  ;;  %vm2863_vm1 = vcmp.eq.f32.partialorder %v2862_v19, 8.507059e+37  ;;  %v5692_v45 = vpop.xlane.xlu0 %1312  ;;  %v2942_v34 = vld [vmem:[#allocation2 + $0x38] sm:$0xff] }
 0x647   : > { %v2788_v54 = vsel %vm2785_vm7, %v2787_v35, %v2783_v24  ;;  %v2817_v8 = vadd.f32 %v4119_v40, %v2816_v1  ;;  %v4123_v17 = vpop.eup %4122  ;;  %vm932_vm12 = vcmp.lt.s32.totalorder %v931_v20, 32  ;;  %v1580_v46 = vpop.xlane.xlu1 %1579 }
 0x648   : > { %v2871_v16 = vmul.f32 %v4121_v29, %v2788_v54  ;;  %v2854_v56 = vmul.f32 %v4123_v17, %v5643_v47  ;;  %vm2859_vm14 = vweird.f32 %v4123_v17  ;;  %v4281_v47 = vmov 0.0  }
 0x649   : > { %v2821_v43 = vsel %vm2820_vm10, %v4119_v40, %v2817_v8  ;;  %vm2860_vm0 = vmor %vm2858_vm9, %vm2859_vm14  ;;  %v6217_v40 = vld [vmem:[#allocation12_spill] sm:$0xff]  ;;  %v5699_v59 = vsel %vm932_vm12, 1.0, %v4281_v47  ;;  %v1582_v5 = vmul.f32 0.03125, %v1580_v46 }
 0x64a   : > { %v2826_v23 = vsel %vm2823_vm6, %v2825_v38, %v2821_v43  ;;  %v2855_v36 = vsub.f32 1.0, %v2854_v56  ;;  %v2941_v38 = vld [vmem:[#allocation2 + $0x198] sm:$0xff] }
 0x64b   : > { %v4125_v44 = vpop.eup %4124  ;;  %v2869_v50 = vmul.f32 %v2826_v23, %v5606_v9  ;;  %v1584_v52 = vsub.f32 %v6218_v10, %v1582_v5 }
 0x64c   : > { %v2876_v53 = vmul.f32 %v4125_v44, %v2851_v51  ;;  %v2856_v57 = vmul.f32 %v4123_v17, %v2855_v36  ;;  %v2945_v36 = vld [vmem:[#allocation2 + $0x158] sm:$0xff]  ;;  %v2946_v51 = vld [vmem:[#allocation2 + $0x10] sm:$0xff] }
 0x64d   : > { %v2873_v48 = vadd.f32 %v2871_v16, %v2869_v50  ;;  %v5711_v26 = vmul.f32 %v5699_v59, %v1584_v52  ;;  %v2944_v50 = vld [vmem:[#allocation2 + $0x1c0] sm:$0xff] }
 0x64e   : > { %v5680_v62 = vsel %vm2882_vm11, %v2876_v53, %v5600_v61  ;;  %v2857_v14 = vadd.f32 %v4123_v17, %v2856_v57  ;;  %v2102_v22 = vpop.xlane.xlu0 %2101 }
 0x64f   : > { %4126 = vtanh.f32 %v2873_v48  ;;  %2887 = vadd.xlane.f32.xlu0 %v5680_v62  ;;  %v5686_v7 = vsel %vm2882_vm11, %v2873_v48, %v5606_v9  ;;  %v1316_v9 = vsub.f32 %v6217_v40, %v1314_v21  ;;  %v2105_v25 = vmul.f32 0.03125, %v2102_v22  ;;  %v2948_v22 = vld [vmem:[#allocation2 + $0xa0] sm:$0xff] }
 0x650   : > { %v2861_v27 = vsel %vm2860_vm0, %v4123_v17, %v2857_v14  ;;  %v1588_v29 = vmul.f32 %v5711_v26, %v5711_v26 }
 0x651   : > { %v2866_v32 = vsel %vm2863_vm1, %v2865_v28, %v2861_v27  ;;  %v5705_v6 = vmul.f32 %v5699_v59, %v1316_v9  ;;  %v2107_v35 = vsub.f32 %v5388_v30, %v2105_v25 }
 0x653   : > { %v1320_v11 = vmul.f32 %v5705_v6, %v5705_v6  ;;  %v5717_v15 = vmul.f32 %v5699_v59, %v2107_v35 }
 0x655   : > { %v4127_v31 = vpop.eup %4126  ;;  %v2111_v24 = vmul.f32 %v5717_v15, %v5717_v15 }
 0x656   : > { %v2877_v39 = vmul.f32 %v4127_v31, %v2866_v32  ;;  %v2366_v33 = vpop.xlane.xlu0 %2365  ;;  %v2943_v32 = vld [vmem:[#allocation2 + $0xc0] sm:$0xff] }
 0x657   : > { %v2368_v63 = vmul.f32 0.03125, %v2366_v33 }
 0x658   : > { %v5697_v42 = vsel %vm2882_vm11, %v2877_v39, %v5611_v2 }
 0x659   : > { %2889 = vadd.xlane.f32.xlu1 %v5697_v42  ;;  %v2949_v60 = vpack.c.bf16 %v5697_v42, %v5680_v62  ;;  %v2370_v1 = vsub.f32 %v5505_v41, %v2368_v63 }
 0x65b   : > { %2958 = vmatmul.bf16.vlgmr.msra.gmra.mxu0 %v2949_v60  ;;  %2972 = vmatmul.bf16.vlgmr.msra.gmra.mxu1 %v2949_v60  ;;  %v5723_v12 = vmul.f32 %v5699_v59, %v2370_v1 }
 0x65c   : > { %2986 = vmatmul.bf16.vlgmr.msra.gmra.mxu2 %v2949_v60  ;;  %3000 = vmatmul.bf16.vlgmr.msra.gmra.mxu3 %v2949_v60 }
 0x65d   : > { %v2374_v30 = vmul.f32 %v5723_v12, %v5723_v12 }
 0x661   : > { %1322 = vadd.xlane.f32.xlu1 %v1320_v11 }
 0x669   : > { %1591 = vadd.xlane.f32.xlu1 %v1588_v29 }
 0x671   : > { %2113 = vadd.xlane.f32.xlu1 %v2111_v24 }
 0x679   : > { %2377 = vadd.xlane.f32.xlu1 %v2374_v30 }
 0x6c2   : > { %v2888_v54 = vpop.xlane.xlu0 %2887 }
 0x6c3   : > { %v2891_v8 = vmul.f32 0.03125, %v2888_v54 }
 0x6c5   : > { %v2893_v0 = vsub.f32 %v5680_v62, %v2891_v8 }
 0x6c7   : > { %v5729_v17 = vmul.f32 %v5699_v59, %v2893_v0 }
 0x6c9   : > { %v2897_v41 = vmul.f32 %v5729_v17, %v5729_v17 }
 0x6cb   : > { %2899 = vadd.xlane.f32.xlu1 %v2897_v41 }
 0x6d8   : > { %v2959_v13 = vpop.f32.mrf.mxu0  ;;  %v2973_v43 = vpop.f32.mrf.mxu1 }
 0x6d9   : > { %v3006_v16 = vadd.f32 %v2959_v13, %v2941_v38  ;;  %v3007_v56 = vadd.f32 %v2973_v43, %v2942_v34  ;;  %v2947_v38 = vld [vmem:[#allocation2 + $0x58] sm:$0xff] }
 0x6db   : > { %v3725_v23 = vmul.f32 -1.442695, %v3006_v16  ;;  %v3727_v44 = vmul.f32 -1.442695, %v3007_v56 }
 0x6dd   : > { %4128 = vpow2.f32 %v3725_v23 }
 0x6de   : > { %4130 = vpow2.f32 %v3727_v44 }
 0x6df   : > { %v3001_v53 = vpop.f32.mrf.mxu3  ;;  %v2987_v39 = vpop.f32.mrf.mxu2 }
 0x6e0   : > { %v3009_v48 = vadd.f32 %v3001_v53, %v2944_v50  ;;  %v2961_v57 = vpop.f32.mrf.mxu0  ;;  %v2975_v58 = vpop.f32.mrf.mxu1  ;;  %v3008_v46 = vadd.f32 %v2987_v39, %v2943_v32 }
 0x6e1   : > { %v3010_v37 = vadd.f32 %v2961_v57, %v2945_v36  ;;  %v3011_v14 = vadd.f32 %v2975_v58, %v2946_v51 }
 0x6e2   : > { %v3729_v18 = vmul.f32 -1.442695, %v3009_v48 }
 0x6e3   : > { %v4129_v19 = vpop.eup %4128  ;;  %v3726_v20 = vmul.f32 -1.442695, %v3010_v37  ;;  %v3728_v31 = vmul.f32 -1.442695, %v3011_v14 }
 0x6e4   : > { %v4131_v27 = vpop.eup %4130  ;;  %v3020_v21 = vadd.f32 1.0, %v4129_v19  ;;  %4132 = vpow2.f32 %v3729_v18 }
 0x6e5   : > { %v3058_v28 = vadd.f32 1.0, %v4131_v27  ;;  %4134 = vpow2.f32 %v3726_v20 }
 0x6e6   : > { %4136 = vrcp.f32 %v3020_v21  ;;  %v3031_v33 = vand.u32 2147483647, %v3020_v21  ;;  %v3033_v24 = vand.u32 2147483648, %v3020_v21  ;;  %vm3027_vm15 = vweird.f32 %v3020_v21 }
 0x6e7   : > { %4138 = vrcp.f32 %v3058_v28  ;;  %v3003_v25 = vpop.f32.mrf.mxu3  ;;  %v3071_v1 = vand.u32 2147483648, %v3058_v28  ;;  %v3069_v41 = vand.u32 2147483647, %v3058_v28  ;;  %v2989_v34 = vpop.f32.mrf.mxu2  ;;  %vm3065_vm4 = vweird.f32 %v3058_v28 }
 0x6e8   : > { %4140 = vpow2.f32 %v3728_v31  ;;  %v3013_v8 = vadd.f32 %v3003_v25, %v2948_v22  ;;  %vm3032_vm7 = vcmp.eq.f32.partialorder %v3031_v33, 8.507059e+37  ;;  %v3034_v23 = vor.u32 1.1754944e-38, %v3033_v24 }
 0x6e9   : > { %v3072_v56 = vor.u32 1.1754944e-38, %v3071_v1  ;;  %v3012_v48 = vadd.f32 %v2989_v34, %v2947_v38  ;;  %vm3070_vm5 = vcmp.eq.f32.partialorder %v3069_v41, 8.507059e+37  ;;  %v3143_v38 = vstv %s3142_s16 }
 0x6ea   : > { %v4133_v40 = vpop.eup %4132  ;;  %v3730_v57 = vmul.f32 -1.442695, %v3013_v8 }
 0x6eb   : > { %v4135_v9 = vpop.eup %4134  ;;  %v5733_v47 = vadd.f32 1.0, %v4133_v40 }
 0x6ec   : > { %v4137_v60 = vpop.eup %4136  ;;  %v5735_v5 = vadd.f32 1.0, %v4135_v9  ;;  %v1581_v9 = vmul.f32 0.03125, %v5675_v3 }
 0x6ed   : > { %v4139_v10 = vpop.eup %4138  ;;  %v3023_v52 = vmul.f32 %v4137_v60, %v3020_v21  ;;  %4142 = vrcp.f32 %v5733_v47  ;;  %vm3028_vm11 = vweird.f32 %v4137_v60  ;;  %v3109_v8 = vand.u32 2147483647, %v5733_v47 }
 0x6ee   : > { %v3061_v11 = vmul.f32 %v4139_v10, %v3058_v28  ;;  %4144 = vrcp.f32 %v5735_v5  ;;  %v4141_v35 = vpop.eup %4140  ;;  %vm3066_vm3 = vweird.f32 %v4139_v10  ;;  %vm3029_vm8 = vmor %vm3027_vm15, %vm3028_vm11  ;;  %v3046_v14 = vand.u32 2147483647, %v5735_v5 }
 0x6ef   : > { %v3024_v29 = vsub.f32 1.0, %v3023_v52  ;;  %4146 = vtanh.f32 %v3008_v46  ;;  %v5739_v30 = vadd.f32 1.0, %v4141_v35  ;;  %vm3067_vm2 = vmor %vm3065_vm4, %vm3066_vm3  ;;  %v3048_v31 = vand.u32 2147483648, %v5735_v5 }
 0x6f0   : > { %v3062_v63 = vsub.f32 1.0, %v3061_v11  ;;  %vm3042_vm6 = vweird.f32 %v5735_v5  ;;  %vm5759_vm13 = vcmp.eq.f32.partialorder %v3046_v14, 8.507059e+37  ;;  %vm3105_vm11 = vweird.f32 %v5733_v47 }
 0x6f1   : > { %v3025_v54 = vmul.f32 %v4137_v60, %v3024_v29  ;;  %4148 = vrcp.f32 %v5739_v30  ;;  %v3049_v11 = vor.u32 1.1754944e-38, %v3048_v31  ;;  %v3084_v22 = vand.u32 2147483647, %v5739_v30 }
 0x6f2   : > { %v3063_v0 = vmul.f32 %v4139_v10, %v3062_v63  ;;  %4150 = vpow2.f32 %v3730_v57  ;;  %v1315_v29 = vmul.f32 0.03125, %v5692_v45  ;;  %vm3080_vm1 = vweird.f32 %v5739_v30 }
 0x6f3   : > { %v5742_v13 = vpop.eup %4142  ;;  %v3026_v43 = vadd.f32 %v4137_v60, %v3025_v54  ;;  %4152 = vtanh.f32 %v3012_v48  ;;  %vm3085_vm3 = vcmp.eq.f32.partialorder %v3084_v22, 8.507059e+37  ;;  %vm3144_vm15 = vcmp.eq.s32.totalorder %v3143_v38, 1  ;;  %v6226_v48 = vld [vmem:[#allocation13_spill] sm:$0xff] }
 0x6f4   : > { %v4145_v16 = vpop.eup %4144  ;;  %v3064_v44 = vadd.f32 %v4139_v10, %v3063_v0  ;;  %v3101_v50 = vmul.f32 %v5742_v13, %v5733_v47  ;;  %vm3106_vm0 = vweird.f32 %v5742_v13  ;;  %v1317_v57 = vsub.f32 %v6226_v48, %v1315_v29 }
 0x6f5   : > { %v4147_v36 = vpop.eup %4146  ;;  %v3030_v51 = vsel %vm3029_vm8, %v4137_v60, %v3026_v43  ;;  %v3038_v53 = vmul.f32 %v4145_v16, %v5735_v5  ;;  %vm3043_vm10 = vweird.f32 %v4145_v16  ;;  %v3086_v60 = vand.u32 2147483648, %v5739_v30  ;;  %vm5780_vm4 = vmor %vm3105_vm11, %vm3106_vm0 }
 0x6f6   : > { %v3035_v58 = vsel %vm3032_vm7, %v3034_v23, %v3030_v51  ;;  %v3068_v37 = vsel %vm3067_vm2, %v4139_v10, %v3064_v44  ;;  %v3102_v20 = vsub.f32 1.0, %v3101_v50  ;;  %vm3044_vm9 = vmor %vm3042_vm6, %vm3043_vm10  ;;  %vm3110_vm7 = vcmp.eq.f32.partialorder %v3109_v8, 8.507059e+37 }
 0x6f7   : > { %v3073_v18 = vsel %vm3070_vm5, %v3072_v56, %v3068_v37  ;;  %v3132_v19 = vmul.f32 %v4147_v36, %v3035_v58  ;;  %v3039_v27 = vsub.f32 1.0, %v3038_v53  ;;  %v4149_v21 = vpop.eup %4148  ;;  %v3087_v24 = vor.u32 1.1754944e-38, %v3086_v60  ;;  %v1840_v58 = vpop.xlane.xlu2 %1839 }
 0x6f8   : > { %v3130_v28 = vmul.f32 %v3073_v18, %v5661_v49  ;;  %v3076_v32 = vmul.f32 %v4149_v21, %v5739_v30  ;;  %v3103_v52 = vmul.f32 %v5742_v13, %v3102_v20  ;;  %vm3081_vm14 = vweird.f32 %v4149_v21  ;;  %v4151_v63 = vpop.eup %4150 }
 0x6f9   : > { %v3040_v39 = vmul.f32 %v4145_v16, %v3039_v27  ;;  %vm5774_vm12 = vmor %vm3080_vm1, %vm3081_vm14  ;;  %v4153_v0 = vpop.eup %4152  ;;  %v3099_v41 = vadd.f32 1.0, %v4151_v63  ;;  %v3111_v30 = vand.u32 2147483648, %v5733_v47  ;;  %v1843_v18 = vmul.f32 0.03125, %v1840_v58 }
 0x6fa   : > { %v3134_v40 = vadd.f32 %v3132_v19, %v3130_v28  ;;  %v3077_v46 = vsub.f32 1.0, %v3076_v32  ;;  %v3104_v35 = vadd.f32 %v5742_v13, %v3103_v52  ;;  %v5804_v19 = vmul.f32 %v5699_v59, %v1317_v57  ;;  %v2104_v32 = vpop.xlane.xlu1 %2103 }
 0x6fb   : > { %v3041_v10 = vadd.f32 %v4145_v16, %v3040_v39  ;;  %v3112_v44 = vor.u32 1.1754944e-38, %v3111_v30  ;;  %vm3120_vm2 = vweird.f32 %v3099_v41 }
 0x6fc   : > { %4154 = vtanh.f32 %v3134_v40  ;;  %v3078_v5 = vmul.f32 %v4149_v21, %v3077_v46  ;;  %v3145_v50 = vsel %vm3144_vm15, %v3134_v40, %v5661_v49  ;;  %v1321_v31 = vmul.f32 %v5804_v19, %v5804_v19 }
 0x6fd   : > { %v3045_v25 = vsel %vm3044_vm9, %v4145_v16, %v3041_v10  ;;  %v3108_v16 = vsel %vm5780_vm4, %v5742_v13, %v3104_v35  ;;  %4156 = vrcp.f32 %v3099_v41  ;;  %3202 = vst [vmem:[#allocation4 + $0x8] sm:$0xff] %v3145_v50  ;;  %v2106_v10 = vmul.f32 0.03125, %v2104_v32 }
 0x6fe   : > { %v3050_v33 = vsel %vm5759_vm13, %v3049_v11, %v3045_v25  ;;  %v3079_v54 = vadd.f32 %v4149_v21, %v3078_v5  ;;  %v3113_v47 = vsel %vm3110_vm7, %v3112_v44, %v3108_v16  ;;  %3206 = vst [vmem:[#allocation7] sm:$0xff] %v3145_v50  ;;  %v6228_v5 = vld [vmem:[#allocation14_spill] sm:$0xff] }
 0x6ff   : > { %v3133_v43 = vmul.f32 %v4153_v0, %v3050_v33  ;;  %v1583_v25 = vsub.f32 %v6228_v5, %v1581_v9  ;;  %v1842_v35 = vpop.xlane.xlu2 %1841  ;;  %v2108_v3 = vsub.f32 %v5399_v55, %v2106_v10  ;;  %v6229_v55 = vld [vmem:[#allocation17_spill] sm:$0xff] }
 0x700   : > { %v3083_v34 = vsel %vm5774_vm12, %v4149_v21, %v3079_v54  ;;  %v6227_v21 = vld [vmem:[#allocation16_spill] sm:$0xff]  ;;  %v1844_v1 = vmul.f32 0.03125, %v1842_v35 }
 0x701   : > { %v3088_v23 = vsel %vm3085_vm3, %v3087_v24, %v3083_v34  ;;  %v1845_v28 = vsub.f32 %v6227_v21, %v1843_v18  ;;  %v5825_v24 = vmul.f32 %v5699_v59, %v1583_v25  ;;  %v5828_v8 = vmul.f32 %v5699_v59, %v2108_v3 }
 0x702   : > { %v4155_v56 = vpop.eup %4154  ;;  %v3131_v36 = vmul.f32 %v3088_v23, %v5686_v7  ;;  %v2626_v63 = vpop.xlane.xlu1 %2625  ;;  %v1846_v0 = vsub.f32 %v6229_v55, %v1844_v1 }
 0x703   : > { %v3138_v53 = vmul.f32 %v4155_v56, %v3113_v47  ;;  %v4157_v14 = vpop.eup %4156  ;;  %v5811_v11 = vmul.f32 %v5699_v59, %v1845_v28  ;;  %v2629_v54 = vmul.f32 0.03125, %v2626_v63  ;;  %v2112_v38 = vmul.f32 %v5828_v8, %v5828_v8 }
 0x704   : > { %v3135_v51 = vadd.f32 %v3133_v43, %v3131_v36  ;;  %v3116_v49 = vmul.f32 %v4157_v14, %v3099_v41  ;;  %vm3121_vm8 = vweird.f32 %v4157_v14  ;;  %v5837_v16 = vmul.f32 %v5699_v59, %v1846_v0 }
 0x705   : > { %v5796_v13 = vsel %vm3144_vm15, %v3138_v53, %v5680_v62  ;;  %v3126_v62 = vand.u32 2147483648, %v3099_v41  ;;  %vm3122_vm5 = vmor %vm3120_vm2, %vm3121_vm8  ;;  %v1849_v33 = vmul.f32 %v5811_v11, %v5811_v11  ;;  %v2631_v30 = vsub.f32 %v5600_v61, %v2629_v54 }
 0x706   : > { %v3146_v37 = vsel %vm3144_vm15, %v3135_v51, %v5686_v7  ;;  %3149 = vadd.xlane.f32.xlu2 %v5796_v13  ;;  %3200 = vst [vmem:[#allocation3 + $0x8] sm:$0xff] %v5796_v13  ;;  %4158 = vtanh.f32 %v3135_v51  ;;  %v3117_v20 = vsub.f32 1.0, %v3116_v49  ;;  %v3124_v7 = vand.u32 2147483647, %v3099_v41 }
 0x707   : > { %3203 = vst [vmem:[#allocation4] sm:$0xff] %v3146_v37  ;;  %v3127_v46 = vor.u32 1.1754944e-38, %v3126_v62  ;;  %v1587_v41 = vmul.f32 %v5825_v24, %v5825_v24  ;;  %v2364_v45 = vpop.xlane.xlu2 %2363  ;;  %v5840_v23 = vmul.f32 %v5699_v59, %v2631_v30  ;;  %v1850_v50 = vmul.f32 %v5837_v16, %v5837_v16 }
 0x708   : > { %3204 = vst [vmem:[#allocation5] sm:$0xff] %v5796_v13  ;;  %v3118_v27 = vmul.f32 %v4157_v14, %v3117_v20  ;;  %vm3125_vm10 = vcmp.eq.f32.partialorder %v3124_v7, 8.507059e+37  ;;  %v2367_v43 = vmul.f32 0.03125, %v2364_v45 }
 0x709   : > { %3207 = vst [vmem:[#allocation7 + $0x8] sm:$0xff] %v3146_v37  ;;  %v2635_v47 = vmul.f32 %v5840_v23, %v5840_v23 }
 0x70a   : > { %v3119_v39 = vadd.f32 %v4157_v14, %v3118_v27  ;;  %v2890_v34 = vpop.xlane.xlu1 %2889  ;;  %v2369_v44 = vsub.f32 %v5494_v4, %v2367_v43  ;;  %3863 = dma.vmem_to_hbm [thread:$0]  (%p6000_p0), %s3249_s19, 256, %s3251_s17, [#allocation8], %s4283_s30, %s4283_s30, %s4284_s13  }
 0x70b   : > { %v2892_v56 = vmul.f32 0.03125, %v2890_v34 }
 0x70c   : > { %v4159_v40 = vpop.eup %4158  ;;  %v3123_v60 = vsel %vm3122_vm5, %v4157_v14, %v3119_v39  ;;  %v5849_v53 = vmul.f32 %v5699_v59, %v2369_v44 }
 0x70d   : > { %v3128_v52 = vsel %vm3125_vm10, %v3127_v46, %v3123_v60  ;;  %v2894_v36 = vsub.f32 %v5697_v42, %v2892_v56 }
 0x70e   : > { %1324 = vadd.xlane.f32.xlu2 %v1321_v31  ;;  %v3139_v22 = vmul.f32 %v4159_v40, %v3128_v52  ;;  %v2373_v57 = vmul.f32 %v5849_v53, %v5849_v53 }
 0x70f   : > { %v2628_v61 = vpop.xlane.xlu2 %2627  ;;  %v5852_v48 = vmul.f32 %v5699_v59, %v2894_v36 }
 0x710   : > { %v5816_v29 = vsel %vm3144_vm15, %v3139_v22, %v5697_v42  ;;  %v2630_v51 = vmul.f32 0.03125, %v2628_v61 }
 0x711   : > { %3151 = vadd.xlane.f32.xlu0 %v5816_v29  ;;  %3201 = vst [vmem:[#allocation3] sm:$0xff] %v5816_v29  ;;  %v2898_v42 = vmul.f32 %v5852_v48, %v5852_v48 }
 0x712   : > { %3205 = vst [vmem:[#allocation5 + $0x8] sm:$0xff] %v5816_v29  ;;  %v2632_v4 = vsub.f32 %v5611_v2, %v2630_v51  ;;  %v1323_v14 = vpop.xlane.xlu1 %1322 }
 0x713   : > { %v1326_v18 = vmul.f32 0.03125, %v1323_v14  ;;  %3861 = dma.vmem_to_hbm [thread:$0]  (%p6000_p0), %s3232_s25, 256, %s3234_s10, [#allocation6], %s4283_s30, %s4283_s30, %s4284_s13  }
 0x714   : > { %v5860_v58 = vmul.f32 %v5699_v59, %v2632_v4 }
 0x715   : > { %v1328_v20 = vadd.f32 1e-05, %v1326_v18 }
 0x716   : > { %1851 = vadd.xlane.f32.xlu2 %v1849_v33  ;;  %v2636_v37 = vmul.f32 %v5860_v58, %v5860_v58 }
 0x717   : > { %4160 = vrsqrt.f32 %v1328_v20  ;;  %vm1336_vm13 = vweird.f32 %v1328_v20 }
 0x719   : > { %1589 = vadd.xlane.f32.xlu0 %v1587_v41 }
 0x71a   : > { %v1592_v49 = vpop.xlane.xlu1 %1591 }
 0x71b   : > { %v1594_v2 = vmul.f32 0.03125, %v1592_v49 }
 0x71d   : > { %v5864_v27 = vadd.f32 1e-05, %v1594_v2  ;;  %v4161_v21 = vpop.eup %4160 }
 0x71e   : > { %2115 = vadd.xlane.f32.xlu2 %v2112_v38  ;;  %v1331_v32 = vmul.f32 %v4161_v21, %v1328_v20  ;;  %vm1337_vm6 = vweird.f32 %v4161_v21 }
 0x71f   : > { %4162 = vrsqrt.f32 %v5864_v27  ;;  %vm1338_vm14 = vmor %vm1336_vm13, %vm1337_vm6  ;;  %vm1613_vm0 = vweird.f32 %v5864_v27 }
 0x720   : > { %v1332_v10 = vmul.f32 %v4161_v21, %v1331_v32 }
 0x721   : > { %1853 = vadd.xlane.f32.xlu0 %v1850_v50 }
 0x722   : > { %v2114_v62 = vpop.xlane.xlu1 %2113  ;;  %v1333_v33 = vmul.f32 0.5, %v1332_v10 }
 0x723   : > { %v2117_v7 = vmul.f32 0.03125, %v2114_v62 }
 0x724   : > { %v1334_v0 = vsub.f32 1.5, %v1333_v33 }
 0x725   : > { %v5867_v28 = vadd.f32 1e-05, %v2117_v7  ;;  %v5870_v9 = vpop.eup %4162  ;;  %v5910_v7 = vld [vmem:[%s6169_s4] ss:$0 sm:$0xff] }
 0x726   : > { %2637 = vadd.xlane.f32.xlu2 %v2635_v47  ;;  %v1608_v22 = vmul.f32 %v5870_v9, %v5864_v27  ;;  %v1335_v56 = vmul.f32 %v4161_v21, %v1334_v0  ;;  %vm1614_vm9 = vweird.f32 %v5870_v9 }
 0x727   : > { %4164 = vrsqrt.f32 %v5867_v28  ;;  %vm5916_vm1 = vmor %vm1613_vm0, %vm1614_vm9  ;;  %vm2127_vm4 = vweird.f32 %v5867_v28 }
 0x728   : > { %v1339_v14 = vsel %vm1338_vm14, %v4161_v21, %v1335_v56 }
 0x729   : > { %2375 = vadd.xlane.f32.xlu0 %v2373_v57  ;;  %v1350_v21 = vmul.f32 %v1339_v14, %v5705_v6 }
 0x72a   : > { %v2378_v39 = vpop.xlane.xlu1 %2377 }
 0x72b   : > { %v2380_v60 = vmul.f32 0.03125, %v2378_v39  ;;  %v1355_v33 = vmul.f32 %v5910_v7, %v1350_v21 }
 0x72d   : > { %v5880_v25 = vpop.eup %4164  ;;  %v5882_v35 = vadd.f32 1e-05, %v2380_v60 }
 0x72e   : > { %2901 = vadd.xlane.f32.xlu2 %v2898_v42  ;;  %v2122_v1 = vmul.f32 %v5880_v25, %v5867_v28  ;;  %vm2128_vm11 = vweird.f32 %v5880_v25 }
 0x72f   : > { %4166 = vrsqrt.f32 %v5882_v35  ;;  %vm5946_vm7 = vmor %vm2127_vm4, %vm2128_vm11 }
 0x730   : > { %v2123_v38 = vmul.f32 %v5880_v25, %v2122_v1 }
 0x731   : > { %2639 = vadd.xlane.f32.xlu0 %v2636_v37 }
 0x732   : > { %v2124_v4 = vmul.f32 0.5, %v2123_v38 }
 0x734   : > { %v2125_v2 = vsub.f32 1.5, %v2124_v4 }
 0x735   : > { %v5890_v61 = vpop.eup %4166 }
 0x736   : > { %v2394_v18 = vmul.f32 %v5890_v61, %v5882_v35  ;;  %vm2400_vm8 = vweird.f32 %v5890_v61 }
 0x738   : > { %v2395_v10 = vmul.f32 %v5890_v61, %v2394_v18 }
 0x73a   : > { %v2396_v0 = vmul.f32 0.5, %v2395_v10 }
 0x73e   : > { %v2900_v54 = vpop.xlane.xlu1 %2899 }
 0x73f   : > { %v2903_v45 = vmul.f32 0.03125, %v2900_v54 }
 0x741   : > { %v5892_v47 = vadd.f32 1e-05, %v2903_v45 }
 0x779   : > { %v3150_v31 = vpop.xlane.xlu2 %3149 }
 0x77a   : > { %v3153_v40 = vmul.f32 0.03125, %v3150_v31 }
 0x77c   : > { %v3155_v46 = vsub.f32 %v5796_v13, %v3153_v40  ;;  %v1609_v13 = vmul.f32 %v5870_v9, %v1608_v22  ;;  %v2126_v22 = vmul.f32 %v5880_v25, %v2125_v2 }
 0x77e   : > { %v5874_v52 = vmul.f32 %v5699_v59, %v3155_v46  ;;  %v1610_v41 = vmul.f32 0.5, %v1609_v13 }
 0x780   : > { %v3159_v5 = vmul.f32 %v5874_v52, %v5874_v52  ;;  %v1611_v36 = vsub.f32 1.5, %v1610_v41 }
 0x781   : > { %v1325_v3 = vpop.xlane.xlu2 %1324 }
 0x782   : > { %v1327_v63 = vmul.f32 0.03125, %v1325_v3  ;;  %3161 = vadd.xlane.f32.xlu0 %v3159_v5  ;;  %v1612_v49 = vmul.f32 %v5870_v9, %v1611_v36 }
 0x784   : > { %v1329_v55 = vadd.f32 1e-05, %v1327_v63  ;;  %v3152_v30 = vpop.xlane.xlu0 %3151  ;;  %v1616_v60 = vsel %vm5916_vm1, %v5870_v9, %v1612_v49  ;;  %v5938_v9 = vld [vmem:[%s6170_s5] ss:$0 sm:$0xff]  ;;  %vm2399_vm1 = vweird.f32 %v5882_v35 }
 0x785   : > { %v3154_v34 = vmul.f32 0.03125, %v3152_v30  ;;  %v1618_v1 = vmul.f32 %v1616_v60, %v5711_v26  ;;  %v1360_v26 = vadd.f32 %v5938_v9, %v1355_v33  ;;  %vm6054_vm11 = vmor %vm2399_vm1, %vm2400_vm8  ;;  %vm2913_vm8 = vweird.f32 %v5892_v47 }
 0x786   : > { %4168 = vrsqrt.f32 %v1329_v55  ;;  %vm1346_vm3 = vweird.f32 %v1329_v55 }
 0x787   : > { %v3156_v44 = vsub.f32 %v5816_v29, %v3154_v34  ;;  %v1620_v4 = vmul.f32 %v5910_v7, %v1618_v1 }
 0x789   : > { %v1852_v43 = vpop.xlane.xlu2 %1851  ;;  %v5897_v42 = vmul.f32 %v5699_v59, %v3156_v44 }
 0x78a   : > { %v1855_v50 = vmul.f32 0.03125, %v1852_v43 }
 0x78b   : > { %v3160_v29 = vmul.f32 %v5897_v42, %v5897_v42 }
 0x78c   : > { %v4169_v51 = vpop.eup %4168  ;;  %v5894_v57 = vadd.f32 1e-05, %v1855_v50  ;;  %v1590_v59 = vpop.xlane.xlu0 %1589 }
 0x78d   : > { %v1341_v37 = vmul.f32 %v4169_v51, %v1329_v55  ;;  %v1593_v62 = vmul.f32 0.03125, %v1590_v59  ;;  %3163 = vadd.xlane.f32.xlu1 %v3160_v29  ;;  %vm1347_vm12 = vweird.f32 %v4169_v51  ;;  %v2130_v55 = vsel %vm5946_vm7, %v5880_v25, %v2126_v22 }
 0x78e   : > { %4170 = vrsqrt.f32 %v5894_v57  ;;  %vm1348_vm15 = vmor %vm1346_vm3, %vm1347_vm12  ;;  %v2141_v25 = vmul.f32 %v2130_v55, %v5717_v15  ;;  %vm1865_vm13 = vweird.f32 %v5894_v57 }
 0x78f   : > { %4172 = vrsqrt.f32 %v5892_v47  ;;  %v1342_v20 = vmul.f32 %v4169_v51, %v1341_v37  ;;  %v5920_v40 = vadd.f32 1e-05, %v1593_v62  ;;  %v2397_v37 = vsub.f32 1.5, %v2396_v0 }
 0x790   : > { %v5979_v62 = vadd.f32 %v5938_v9, %v1620_v4  ;;  %v2143_v21 = vmul.f32 %v5910_v7, %v2141_v25 }
 0x791   : > { %v1343_v31 = vmul.f32 0.5, %v1342_v20  ;;  %v2116_v32 = vpop.xlane.xlu2 %2115  ;;  %4174 = vrsqrt.f32 %v5920_v40  ;;  %vm1603_vm2 = vweird.f32 %v5920_v40 }
 0x792   : > { %v2118_v46 = vmul.f32 0.03125, %v2116_v32  ;;  %v2145_v35 = vadd.f32 %v5938_v9, %v2143_v21 }
 0x793   : > { %v1344_v6 = vsub.f32 1.5, %v1343_v31 }
 0x794   : > { %v5926_v27 = vpop.eup %4170  ;;  %v5931_v5 = vadd.f32 1e-05, %v2118_v46  ;;  %v1854_v30 = vpop.xlane.xlu0 %1853  ;;  %v5984_v46 = vmul.f32 %v5890_v61, %v2397_v37 }
 0x795   : > { %v5933_v3 = vpop.eup %4172  ;;  %v1345_v63 = vmul.f32 %v4169_v51, %v1344_v6  ;;  %v1860_v13 = vmul.f32 %v5926_v27, %v5894_v57  ;;  %v1856_v34 = vmul.f32 0.03125, %v1854_v30  ;;  %vm1866_vm10 = vweird.f32 %v5926_v27 }
 0x796   : > { %4176 = vrsqrt.f32 %v5931_v5  ;;  %v2908_v28 = vmul.f32 %v5933_v3, %v5892_v47  ;;  %vm2137_vm9 = vweird.f32 %v5931_v5  ;;  %vm6024_vm0 = vmor %vm1865_vm13, %vm1866_vm10  ;;  %v2402_v37 = vsel %vm6054_vm11, %v5890_v61, %v5984_v46 }
 0x797   : > { %v1349_v41 = vsel %vm1348_vm15, %v4169_v51, %v1345_v63  ;;  %v1861_v45 = vmul.f32 %v5926_v27, %v1860_v13  ;;  %v5958_v56 = vpop.eup %4174  ;;  %v5961_v36 = vadd.f32 1e-05, %v1856_v34  ;;  %vm2914_vm4 = vweird.f32 %v5933_v3 }
 0x798   : > { %v1351_v38 = vmul.f32 %v1349_v41, %v5804_v19  ;;  %v1598_v19 = vmul.f32 %v5958_v56, %v5920_v40  ;;  %v2909_v29 = vmul.f32 %v5933_v3, %v2908_v28  ;;  %vm1604_vm5 = vweird.f32 %v5958_v56 }
 0x799   : > { %v2638_v43 = vpop.xlane.xlu2 %2637  ;;  %v1862_v50 = vmul.f32 0.5, %v1861_v45  ;;  %4178 = vrsqrt.f32 %v5961_v36  ;;  %vm1605_vm14 = vmor %vm1603_vm2, %vm1604_vm5  ;;  %vm1875_vm15 = vweird.f32 %v5961_v36 }
 0x79a   : > { %v1356_v44 = vmul.f32 %v5910_v7, %v1351_v38  ;;  %v2641_v51 = vmul.f32 0.03125, %v2638_v43  ;;  %v1599_v20 = vmul.f32 %v5958_v56, %v1598_v19  ;;  %v5987_v60 = vmul.f32 0.5, %v2909_v29  ;;  %vm6094_vm2 = vmor %vm2913_vm8, %vm2914_vm4 }
 0x79b   : > { %v1863_v2 = vsub.f32 1.5, %v1862_v50 }
 0x79c   : > { %v5967_v14 = vpop.eup %4176  ;;  %v1361_v49 = vadd.f32 %v5938_v9, %v1356_v44  ;;  %v5972_v18 = vadd.f32 1e-05, %v2641_v51  ;;  %v1600_v31 = vmul.f32 0.5, %v1599_v20  ;;  %v2376_v39 = vpop.xlane.xlu0 %2375  ;;  %v2911_v50 = vsub.f32 1.5, %v5987_v60 }
 0x79d   : > { %v2132_v15 = vmul.f32 %v5967_v14, %v5931_v5  ;;  %v2379_v10 = vmul.f32 0.03125, %v2376_v39  ;;  %v1864_v13 = vmul.f32 %v5926_v27, %v1863_v2  ;;  %vm2138_vm6 = vweird.f32 %v5967_v14 }
 0x79e   : > { %v3816_v59 = vpack.c.bf16 %v1361_v49, %v1360_v26  ;;  %4180 = vrsqrt.f32 %v5972_v18  ;;  %v1601_v6 = vsub.f32 1.5, %v1600_v31  ;;  %vm2139_vm12 = vmor %vm2137_vm9, %vm2138_vm6  ;;  %v2912_v2 = vmul.f32 %v5933_v3, %v2911_v50 }
 0x79f   : > { %v2133_v32 = vmul.f32 %v5967_v14, %v2132_v15  ;;  %v5992_v63 = vpop.eup %4178  ;;  %v5996_v1 = vadd.f32 1e-05, %v2379_v10  ;;  %v1868_v34 = vsel %vm6024_vm0, %v5926_v27, %v1864_v13 }
 0x7a0   : > { %3817 = vst [vmem:[%s4557_s12] sm:$0xff] %v3816_v59   ;;  %v1602_v0 = vmul.f32 %v5958_v56, %v1601_v6  ;;  %v1870_v45 = vmul.f32 %v5992_v63, %v5961_v36  ;;  %v1879_v19 = vmul.f32 %v1868_v34, %v5811_v11  ;;  %vm1876_vm3 = vweird.f32 %v5992_v63 }
 0x7a1   : > { %v2134_v22 = vmul.f32 0.5, %v2133_v32  ;;  %v2902_v33 = vpop.xlane.xlu2 %2901  ;;  %4182 = vrsqrt.f32 %v5996_v1  ;;  %vm1877_vm7 = vmor %vm1875_vm15, %vm1876_vm3  ;;  %v2916_v13 = vsel %vm6094_vm2, %v5933_v3, %v2912_v2  ;;  %vm2389_vm6 = vweird.f32 %v5996_v1 }
 0x7a2   : > { %v2904_v54 = vmul.f32 0.03125, %v2902_v33  ;;  %v1606_v57 = vsel %vm1605_vm14, %v5958_v56, %v1602_v0  ;;  %v1871_v38 = vmul.f32 %v5992_v63, %v1870_v45  ;;  %v1881_v32 = vmul.f32 %v5910_v7, %v1879_v19 }
 0x7a3   : > { %v2135_v41 = vsub.f32 1.5, %v2134_v22  ;;  %v1617_v26 = vmul.f32 %v1606_v57, %v5825_v24  ;;  %vm2651_vm14 = vweird.f32 %v5972_v18 }
 0x7a4   : > { %v6011_v30 = vpop.eup %4180  ;;  %v6020_v55 = vadd.f32 1e-05, %v2904_v54  ;;  %v1872_v56 = vmul.f32 0.5, %v1871_v38  ;;  %v2640_v24 = vpop.xlane.xlu0 %2639 }
 0x7a5   : > { %v2136_v40 = vmul.f32 %v5967_v14, %v2135_v41  ;;  %v2646_v5 = vmul.f32 %v6011_v30, %v5972_v18  ;;  %v1619_v51 = vmul.f32 %v5910_v7, %v1617_v26  ;;  %v2642_v25 = vmul.f32 0.03125, %v2640_v24 }
 0x7a6   : > { %4184 = vrsqrt.f32 %v6020_v55  ;;  %vm2652_vm10 = vweird.f32 %v6011_v30  ;;  %vm2923_vm1 = vweird.f32 %v6020_v55 }
 0x7a7   : > { %v2140_v43 = vsel %vm2139_vm12, %v5967_v14, %v2136_v40  ;;  %v2647_v27 = vmul.f32 %v6011_v30, %v2646_v5  ;;  %v1873_v14 = vsub.f32 1.5, %v1872_v56  ;;  %v4183_v29 = vpop.eup %4182  ;;  %v1621_v49 = vadd.f32 %v5938_v9, %v1619_v51  ;;  %vm6112_vm0 = vmor %vm2651_vm14, %vm2652_vm10 }
 0x7a8   : > { %v2142_v4 = vmul.f32 %v2140_v43, %v5828_v8  ;;  %v6069_v15 = vadd.f32 1e-05, %v2642_v25  ;;  %v2384_v61 = vmul.f32 %v4183_v29, %v5996_v1  ;;  %vm2390_vm5 = vweird.f32 %v4183_v29 }
 0x7a9   : > { %v2648_v20 = vmul.f32 0.5, %v2647_v27  ;;  %v1874_v11 = vmul.f32 %v5992_v63, %v1873_v14  ;;  %v3821_v21 = vpack.c.bf16 %v5979_v62, %v1621_v49  ;;  %v2927_v40 = vmul.f32 %v2916_v13, %v5729_v17  ;;  %vm2391_vm9 = vmor %vm2389_vm6, %vm2390_vm5 }
 0x7aa   : > { %v2144_v8 = vmul.f32 %v5910_v7, %v2142_v4  ;;  %4186 = vrsqrt.f32 %v6069_v15  ;;  %v2385_v36 = vmul.f32 %v4183_v29, %v2384_v61  ;;  %vm2661_vm3 = vweird.f32 %v6069_v15 }
 0x7ab   : > { %v1878_v39 = vsel %vm1877_vm7, %v5992_v63, %v1874_v11  ;;  %3853 = vst [vmem:[%s4557_s12 + $0x8] sm:$0xff] %v3821_v21   ;;  %v2649_v10 = vsub.f32 1.5, %v2648_v20  ;;  %v2404_v63 = vmul.f32 %v2402_v37, %v5723_v12  ;;  %v2929_v27 = vmul.f32 %v5910_v7, %v2927_v40 }
 0x7ac   : > { %v4185_v59 = vpop.eup %4184  ;;  %v2146_v31 = vadd.f32 %v5938_v9, %v2144_v8  ;;  %v1880_v62 = vmul.f32 %v1878_v39, %v5837_v16  ;;  %v2386_v22 = vmul.f32 0.5, %v2385_v36  ;;  %v1883_v16 = vadd.f32 %v5938_v9, %v1881_v32 }
 0x7ad   : > { %v2918_v46 = vmul.f32 %v4185_v59, %v6020_v55  ;;  %v2650_v28 = vmul.f32 %v6011_v30, %v2649_v10  ;;  %vm2924_vm13 = vweird.f32 %v4185_v59  ;;  %v2931_v25 = vadd.f32 %v5938_v9, %v2929_v27 }
 0x7ae   : > { %v3831_v60 = vpack.c.bf16 %v2146_v31, %v2145_v35  ;;  %v1882_v47 = vmul.f32 %v5910_v7, %v1880_v62  ;;  %v2387_v54 = vsub.f32 1.5, %v2386_v22  ;;  %v2406_v35 = vmul.f32 %v5910_v7, %v2404_v63  ;;  %vm2925_vm12 = vmor %vm2923_vm1, %vm2924_vm13 }
 0x7af   : > { %v2919_v33 = vmul.f32 %v4185_v59, %v2918_v46  ;;  %v2654_v17 = vsel %vm6112_vm0, %v6011_v30, %v2650_v28 }
 0x7b0   : > { %3855 = vst [vmem:[%s4557_s12 + $0x18] sm:$0xff] %v3831_v60   ;;  %v4187_v41 = vpop.eup %4186  ;;  %v1884_v45 = vadd.f32 %v5938_v9, %v1882_v47  ;;  %v2388_v12 = vmul.f32 %v4183_v29, %v2387_v54  ;;  %v2408_v50 = vadd.f32 %v5938_v9, %v2406_v35 }
 0x7b1   : > { %v2920_v0 = vmul.f32 0.5, %v2919_v33  ;;  %v2656_v57 = vmul.f32 %v4187_v41, %v6069_v15  ;;  %vm2662_vm11 = vweird.f32 %v4187_v41 }
 0x7b2   : > { %v3826_v38 = vpack.c.bf16 %v1884_v45, %v1883_v16  ;;  %v2392_v34 = vsel %vm2391_vm9, %v4183_v29, %v2388_v12  ;;  %vm2663_vm4 = vmor %vm2661_vm3, %vm2662_vm11 }
 0x7b3   : > { %v2921_v3 = vsub.f32 1.5, %v2920_v0  ;;  %v2657_v1 = vmul.f32 %v4187_v41, %v2656_v57  ;;  %v2403_v43 = vmul.f32 %v2392_v34, %v5849_v53  ;;  %v2665_v53 = vmul.f32 %v2654_v17, %v5840_v23 }
 0x7b4   : > { %3854 = vst [vmem:[%s4557_s12 + $0x10] sm:$0xff] %v3826_v38  }
 0x7b5   : > { %v2922_v26 = vmul.f32 %v4185_v59, %v2921_v3  ;;  %v2658_v56 = vmul.f32 0.5, %v2657_v1  ;;  %v2405_v24 = vmul.f32 %v5910_v7, %v2403_v43  ;;  %v2667_v14 = vmul.f32 %v5910_v7, %v2665_v53 }
 0x7b7   : > { %v2926_v18 = vsel %vm2925_vm12, %v4185_v59, %v2922_v26  ;;  %v2659_v44 = vsub.f32 1.5, %v2658_v56  ;;  %v2407_v51 = vadd.f32 %v5938_v9, %v2405_v24  ;;  %v2669_v8 = vadd.f32 %v5938_v9, %v2667_v14 }
 0x7b8   : > { %v2928_v55 = vmul.f32 %v2926_v18, %v5852_v48 }
 0x7b9   : > { %v2660_v4 = vmul.f32 %v4187_v41, %v2659_v44  ;;  %v3836_v37 = vpack.c.bf16 %v2408_v50, %v2407_v51 }
 0x7ba   : > { %v2930_v30 = vmul.f32 %v5910_v7, %v2928_v55 }
 0x7bb   : > { %v2664_v19 = vsel %vm2663_vm4, %v4187_v41, %v2660_v4  ;;  %3856 = vst [vmem:[%s4557_s12 + $0x20] sm:$0xff] %v3836_v37  }
 0x7bc   : > { %v2932_v48 = vadd.f32 %v5938_v9, %v2930_v30  ;;  %v2666_v23 = vmul.f32 %v2664_v19, %v5860_v58 }
 0x7be   : > { %v3846_v29 = vpack.c.bf16 %v2932_v48, %v2931_v25  ;;  %v2668_v49 = vmul.f32 %v5910_v7, %v2666_v23 }
 0x7c0   : > { %3858 = vst [vmem:[%s4557_s12 + $0x30] sm:$0xff] %v3846_v29   ;;  %v2670_v20 = vadd.f32 %v5938_v9, %v2668_v49 }
 0x7c2   : > { %v3841_v15 = vpack.c.bf16 %v2670_v20, %v2669_v8 }
 0x7c4   : > { %3857 = vst [vmem:[%s4557_s12 + $0x28] sm:$0xff] %v3841_v15  }
 0x7f5   : > { %v3162_v11 = vpop.xlane.xlu0 %3161 }
 0x7f6   : > { %v3165_v61 = vmul.f32 0.03125, %v3162_v11 }
 0x7f8   : > { %v3167_v59 = vadd.f32 1e-05, %v3165_v61 }
 0x7fa   : > { %4188 = vrsqrt.f32 %v3167_v59  ;;  %vm3175_vm7 = vweird.f32 %v3167_v59 }
 0x800   : > { %v4189_v2 = vpop.eup %4188  ;;  %v3164_v32 = vpop.xlane.xlu1 %3163 }
 0x801   : > { %v3170_v21 = vmul.f32 %v4189_v2, %v3167_v59  ;;  %v3166_v39 = vmul.f32 0.03125, %v3164_v32  ;;  %vm3176_vm15 = vweird.f32 %v4189_v2 }
 0x802   : > { %vm3177_vm8 = vmor %vm3175_vm7, %vm3176_vm15 }
 0x803   : > { %v3171_v31 = vmul.f32 %v4189_v2, %v3170_v21  ;;  %v3168_v36 = vadd.f32 1e-05, %v3166_v39 }
 0x805   : > { %v3172_v58 = vmul.f32 0.5, %v3171_v31  ;;  %4190 = vrsqrt.f32 %v3168_v36  ;;  %vm3185_vm5 = vweird.f32 %v3168_v36 }
 0x807   : > { %v3173_v46 = vsub.f32 1.5, %v3172_v58 }
 0x809   : > { %v3174_v62 = vmul.f32 %v4189_v2, %v3173_v46 }
 0x80b   : > { %v4191_v60 = vpop.eup %4190  ;;  %v3178_v22 = vsel %vm3177_vm8, %v4189_v2, %v3174_v62 }
 0x80c   : > { %v3180_v10 = vmul.f32 %v4191_v60, %v3168_v36  ;;  %vm3186_vm2 = vweird.f32 %v4191_v60  ;;  %v3189_v13 = vmul.f32 %v3178_v22, %v5874_v52 }
 0x80d   : > { %vm3187_vm10 = vmor %vm3185_vm5, %vm3186_vm2 }
 0x80e   : > { %v3181_v6 = vmul.f32 %v4191_v60, %v3180_v10  ;;  %v3191_v54 = vmul.f32 %v5910_v7, %v3189_v13 }
 0x810   : > { %v3182_v33 = vmul.f32 0.5, %v3181_v6  ;;  %v3193_v45 = vadd.f32 %v5938_v9, %v3191_v54 }
 0x812   : > { %v3183_v63 = vsub.f32 1.5, %v3182_v33 }
 0x814   : > { %v3184_v47 = vmul.f32 %v4191_v60, %v3183_v63 }
 0x816   : > { %v3188_v16 = vsel %vm3187_vm10, %v4191_v60, %v3184_v47 }
 0x817   : > { %v3190_v0 = vmul.f32 %v3188_v16, %v5897_v42 }
 0x819   : > { %v3192_v41 = vmul.f32 %v5910_v7, %v3190_v0 }
 0x81b   : > { %v3194_v28 = vadd.f32 %v5938_v9, %v3192_v41 }
 0x81d   : > { %v3851_v12 = vpack.c.bf16 %v3194_v28, %v3193_v45 }
 0x81f   : > { %3859 = vst [vmem:[%s4557_s12 + $0x38] sm:$0xff] %v3851_v12  }
 0x820   : > { %4261 = dma.done.wait (%p6000_p0), [#allocation6], 256  }
 0x821   : > { %4263 = vsyncadd (%p6000_p0), [#allocation6], 4294967040 }
 0x822   : > { %4265 = dma.done.wait (%p6000_p0), [#allocation8], 256  }
 0x823   : > { %4267 = vsyncadd (%p6000_p0), [#allocation8], 4294967040 }
 0x824 PF: > { %s21_s29 = sadd.s32 1, %s4278_s29   ;;  %s6243_s27 = smov %s4274_s28 }
 0x825   : > { %p18_p1 = scmp.ge.s32.totalorder %s21_s29, 4   ;;  %s6244_s28 = smov %s6246_s9 }
 0x827   :  { %20 = sbr.rel (!%p18_p1) target bundleno = 3 (0x3), region = 112 }
 0x82c   :  { %3285 = vsyncpa [#allocation6], 1 }
 0x82d   :  { %3287 = vsyncpa [#allocation6 + $0x1], 1 }
 0x82e   :  { %3288 = vsyncpa [#allocation8], 1 }

</bundles_post_ra>
